<compile_context>
chip_gen: v5e
topology: v5e:2x2
jax: 0.10.0
libtpu: 0.0.40
codegen_flags: <defaults>
</compile_context>

<pallas_src>
import jax
import jax.numpy as jnp
from jax.experimental import pallas as pl
from jax.experimental.pallas import tpu as pltpu


def _conv3x3_bias_relu_kernel(x_ref, w_ref, b_ref, o_ref):
    """Fused 3x3 conv + bias + ReLU for one batch element (NHWC, pre-padded).

    x_ref: (1, H+2, W+2, Cin)  zero-padded NHWC input tile
    w_ref: (9, Cin, Cout)      weight taps, index kh*3 + kw
    b_ref: (1, Cout)           bias
    o_ref: (1, H, W, Cout)     NHWC output tile
    """
    H = o_ref.shape[1]
    W = o_ref.shape[2]
    Cin = x_ref.shape[3]
    Cout = o_ref.shape[3]

    acc = jnp.zeros((H, W, Cout), dtype=jnp.float32)
    # Fully unrolled over the 3x3 taps and the (tiny) input-channel dim.
    for kh in range(3):
        for kw in range(3):
            # Shifted tap window: static slice of the padded tile.
            window = x_ref[0, kh:kh + H, kw:kw + W, :]                 # (H, W, Cin)
            for ci in range(Cin):
                x_plane = window[:, :, ci:ci + 1].astype(jnp.float32)  # (H, W, 1)
                w_vec = w_ref[kh * 3 + kw, ci].astype(jnp.float32)     # (Cout,)
                acc = acc + x_plane * w_vec                            # -> (H, W, Cout)

    acc = acc + b_ref[0].astype(jnp.float32)                           # bias
    o_ref[0] = jnp.maximum(acc, 0.0).astype(o_ref.dtype)               # ReLU


@jax.jit
def simple_conv_forward(x, weight, bias):
    """Equivalent of SimpleConv.forward: Conv2d(3->16, k=3, pad=1) + ReLU.

    x:      (B, Cin, H, W)  NCHW, like the PyTorch module
    weight: (Cout, Cin, 3, 3)
    bias:   (Cout,)
    returns (B, Cout, H, W)
    """
    B, Cin, H, W = x.shape
    Cout, Cin_w, KH, KW = weight.shape
    assert (KH, KW) == (3, 3) and Cin_w == Cin

    # Layout plumbing (tiny, one pass): NCHW -> NHWC + zero pad of 1.
    x_nhwc = jnp.transpose(x, (0, 2, 3, 1))                        # (B, H, W, Cin)
    x_pad = jnp.pad(x_nhwc, ((0, 0), (1, 1), (1, 1), (0, 0)))      # (B, H+2, W+2, Cin)

    # (Cout, Cin, 3, 3) -> (9, Cin, Cout), tap-major (kh*3 + kw).
    w_taps = jnp.transpose(weight, (2, 3, 1, 0)).reshape(KH * KW, Cin, Cout)
    b2d = bias.reshape(1, Cout)

    itemsize = jnp.dtype(x.dtype).itemsize
    cost = pl.CostEstimate(
        flops=2 * B * H * W * Cout * Cin * KH * KW,
        transcendentals=0,
        bytes_accessed=(x_pad.size + w_taps.size + b2d.size + B * H * W * Cout)
        * itemsize,
    )

    out_nhwc = pl.pallas_call(
        _conv3x3_bias_relu_kernel,
        out_shape=jax.ShapeDtypeStruct((B, H, W, Cout), x.dtype),
        grid_spec=pltpu.PrefetchScalarGridSpec(
            num_scalar_prefetch=0,
            # One batch element per grid step; B >= 2 blocks lets the
            # "parallel" axis shard across v7x's 2 TensorCores.
            grid=(B,),
            in_specs=[
                pl.BlockSpec((1, H + 2, W + 2, Cin), lambda b: (b, 0, 0, 0)),
                pl.BlockSpec((KH * KW, Cin, Cout), lambda b: (0, 0, 0)),
                pl.BlockSpec((1, Cout), lambda b: (0, 0)),
            ],
            out_specs=pl.BlockSpec((1, H, W, Cout), lambda b: (b, 0, 0, 0)),
        ),
        compiler_params=pltpu.CompilerParams(
            dimension_semantics=("parallel",),
        ),
        cost_estimate=cost,
    )(x_pad, w_taps, b2d)

    # NHWC -> NCHW to match the PyTorch module's output layout.
    return jnp.transpose(out_nhwc, (0, 3, 1, 2))


if __name__ == "__main__":
    key = jax.random.PRNGKey(0)
    kx, kw_, kb = jax.random.split(key, 3)

    B, Cin, H, W = 2, 3, 16, 16
    Cout, KH, KW = 16, 3, 3

    x = jax.random.normal(kx, (B, Cin, H, W), dtype=jnp.float32)
    weight = 0.1 * jax.random.normal(kw_, (Cout, Cin, KH, KW), dtype=jnp.float32)
    bias = 0.1 * jax.random.normal(kb, (Cout,), dtype=jnp.float32)

    y = simple_conv_forward(x, weight, bias)
    jax.block_until_ready(y)

    # Pure-JAX f32 reference: conv (padding=1) + bias + ReLU.
    ref = jax.lax.conv_general_dilated(
        x, weight, window_strides=(1, 1), padding=((1, 1), (1, 1)),
        dimension_numbers=("NCHW", "OIHW", "NCHW"),
        precision=jax.lax.Precision.HIGHEST)
    ref = jnp.maximum(ref + bias.reshape(1, Cout, 1, 1), 0.0)

    assert y.shape == ref.shape and y.dtype == ref.dtype
    assert jnp.allclose(y, ref, atol=1e-5, rtol=1e-5), float(jnp.max(jnp.abs(y - ref)))
    print("KERNEL_OK")
</pallas_src>

<mosaic_0001>
module attributes {stable_mosaic.version = 11 : i64} {
  func.func @_conv3x3_bias_relu_kernel(%arg0: i32, %arg1: memref<1x18x18x3xf32, #tpu.memory_space<vmem>>, %arg2: memref<9x3x16xf32, #tpu.memory_space<vmem>>, %arg3: memref<1x16xf32, #tpu.memory_space<vmem>>, %arg4: memref<1x16x16x16xf32, #tpu.memory_space<vmem>>) attributes {dimension_semantics = [#tpu.dimension_semantics<parallel>], iteration_bounds = array<i64: 2>, scalar_prefetch = 0 : i64, scratch_operands = 0 : i64, tpu.core_type = #tpu.core_type<tc>, window_params = [{transform_indices = @transform_0, window_bounds = array<i64: 1, 18, 18, 3>}, {pipeline_mode = #tpu.pipeline_mode<synchronous>, transform_indices = @transform_1, window_bounds = array<i64: 9, 3, 16>}, {pipeline_mode = #tpu.pipeline_mode<synchronous>, transform_indices = @transform_2, window_bounds = array<i64: 1, 16>}, {transform_indices = @transform_3, window_bounds = array<i64: 1, 16, 16, 16>}]} {
    %cst = arith.constant 0.000000e+00 : f32
    %0 = vector.broadcast %cst : f32 to vector<16x16x16xf32>
    %c0 = arith.constant 0 : index
    %c0_0 = arith.constant 0 : index
    %c0_1 = arith.constant 0 : index
    %c0_2 = arith.constant 0 : index
    %1 = vector.load %arg1[%c0, %c0_0, %c0_1, %c0_2] : memref<1x18x18x3xf32, #tpu.memory_space<vmem>>, vector<1x16x16x3xf32>
    %2 = vector.shape_cast %1 : vector<1x16x16x3xf32> to vector<16x16x3xf32>
    %3 = vector.extract_strided_slice %2 {offsets = [0, 0, 0], sizes = [16, 16, 1], strides = [1, 1, 1]} : vector<16x16x3xf32> to vector<16x16x1xf32>
    %c0_3 = arith.constant 0 : index
    %c0_4 = arith.constant 0 : index
    %c0_5 = arith.constant 0 : index
    %4 = vector.load %arg2[%c0_3, %c0_4, %c0_5] : memref<9x3x16xf32, #tpu.memory_space<vmem>>, vector<1x1x16xf32>
    %5 = vector.shape_cast %4 : vector<1x1x16xf32> to vector<16xf32>
    %6 = vector.shape_cast %5 : vector<16xf32> to vector<1x1x16xf32>
    %7 = vector.broadcast %3 : vector<16x16x1xf32> to vector<16x16x16xf32>
    %8 = vector.broadcast %6 : vector<1x1x16xf32> to vector<16x16x16xf32>
    %9 = arith.mulf %7, %8 : vector<16x16x16xf32>
    %10 = arith.addf %0, %9 : vector<16x16x16xf32>
    %11 = vector.extract_strided_slice %2 {offsets = [0, 0, 1], sizes = [16, 16, 1], strides = [1, 1, 1]} : vector<16x16x3xf32> to vector<16x16x1xf32>
    %c0_6 = arith.constant 0 : index
    %c1 = arith.constant 1 : index
    %c0_7 = arith.constant 0 : index
    %12 = vector.load %arg2[%c0_6, %c1, %c0_7] : memref<9x3x16xf32, #tpu.memory_space<vmem>>, vector<1x1x16xf32>
    %13 = vector.shape_cast %12 : vector<1x1x16xf32> to vector<16xf32>
    %14 = vector.shape_cast %13 : vector<16xf32> to vector<1x1x16xf32>
    %15 = vector.broadcast %11 : vector<16x16x1xf32> to vector<16x16x16xf32>
    %16 = vector.broadcast %14 : vector<1x1x16xf32> to vector<16x16x16xf32>
    %17 = arith.mulf %15, %16 : vector<16x16x16xf32>
    %18 = arith.addf %10, %17 : vector<16x16x16xf32>
    %19 = vector.extract_strided_slice %2 {offsets = [0, 0, 2], sizes = [16, 16, 1], strides = [1, 1, 1]} : vector<16x16x3xf32> to vector<16x16x1xf32>
    %c0_8 = arith.constant 0 : index
    %c2 = arith.constant 2 : index
    %c0_9 = arith.constant 0 : index
    %20 = vector.load %arg2[%c0_8, %c2, %c0_9] : memref<9x3x16xf32, #tpu.memory_space<vmem>>, vector<1x1x16xf32>
    %21 = vector.shape_cast %20 : vector<1x1x16xf32> to vector<16xf32>
    %22 = vector.shape_cast %21 : vector<16xf32> to vector<1x1x16xf32>
    %23 = vector.broadcast %19 : vector<16x16x1xf32> to vector<16x16x16xf32>
    %24 = vector.broadcast %22 : vector<1x1x16xf32> to vector<16x16x16xf32>
    %25 = arith.mulf %23, %24 : vector<16x16x16xf32>
    %26 = arith.addf %18, %25 : vector<16x16x16xf32>
    %c0_10 = arith.constant 0 : index
    %c0_11 = arith.constant 0 : index
    %c1_12 = arith.constant 1 : index
    %c0_13 = arith.constant 0 : index
    %27 = vector.load %arg1[%c0_10, %c0_11, %c1_12, %c0_13] : memref<1x18x18x3xf32, #tpu.memory_space<vmem>>, vector<1x16x16x3xf32>
    %28 = vector.shape_cast %27 : vector<1x16x16x3xf32> to vector<16x16x3xf32>
    %29 = vector.extract_strided_slice %28 {offsets = [0, 0, 0], sizes = [16, 16, 1], strides = [1, 1, 1]} : vector<16x16x3xf32> to vector<16x16x1xf32>
    %c1_14 = arith.constant 1 : index
    %c0_15 = arith.constant 0 : index
    %c0_16 = arith.constant 0 : index
    %30 = vector.load %arg2[%c1_14, %c0_15, %c0_16] : memref<9x3x16xf32, #tpu.memory_space<vmem>>, vector<1x1x16xf32>
    %31 = vector.shape_cast %30 : vector<1x1x16xf32> to vector<16xf32>
    %32 = vector.shape_cast %31 : vector<16xf32> to vector<1x1x16xf32>
    %33 = vector.broadcast %29 : vector<16x16x1xf32> to vector<16x16x16xf32>
    %34 = vector.broadcast %32 : vector<1x1x16xf32> to vector<16x16x16xf32>
    %35 = arith.mulf %33, %34 : vector<16x16x16xf32>
    %36 = arith.addf %26, %35 : vector<16x16x16xf32>
    %37 = vector.extract_strided_slice %28 {offsets = [0, 0, 1], sizes = [16, 16, 1], strides = [1, 1, 1]} : vector<16x16x3xf32> to vector<16x16x1xf32>
    %c1_17 = arith.constant 1 : index
    %c1_18 = arith.constant 1 : index
    %c0_19 = arith.constant 0 : index
    %38 = vector.load %arg2[%c1_17, %c1_18, %c0_19] : memref<9x3x16xf32, #tpu.memory_space<vmem>>, vector<1x1x16xf32>
    %39 = vector.shape_cast %38 : vector<1x1x16xf32> to vector<16xf32>
    %40 = vector.shape_cast %39 : vector<16xf32> to vector<1x1x16xf32>
    %41 = vector.broadcast %37 : vector<16x16x1xf32> to vector<16x16x16xf32>
    %42 = vector.broadcast %40 : vector<1x1x16xf32> to vector<16x16x16xf32>
    %43 = arith.mulf %41, %42 : vector<16x16x16xf32>
    %44 = arith.addf %36, %43 : vector<16x16x16xf32>
    %45 = vector.extract_strided_slice %28 {offsets = [0, 0, 2], sizes = [16, 16, 1], strides = [1, 1, 1]} : vector<16x16x3xf32> to vector<16x16x1xf32>
    %c1_20 = arith.constant 1 : index
    %c2_21 = arith.constant 2 : index
    %c0_22 = arith.constant 0 : index
    %46 = vector.load %arg2[%c1_20, %c2_21, %c0_22] : memref<9x3x16xf32, #tpu.memory_space<vmem>>, vector<1x1x16xf32>
    %47 = vector.shape_cast %46 : vector<1x1x16xf32> to vector<16xf32>
    %48 = vector.shape_cast %47 : vector<16xf32> to vector<1x1x16xf32>
    %49 = vector.broadcast %45 : vector<16x16x1xf32> to vector<16x16x16xf32>
    %50 = vector.broadcast %48 : vector<1x1x16xf32> to vector<16x16x16xf32>
    %51 = arith.mulf %49, %50 : vector<16x16x16xf32>
    %52 = arith.addf %44, %51 : vector<16x16x16xf32>
    %c0_23 = arith.constant 0 : index
    %c0_24 = arith.constant 0 : index
    %c2_25 = arith.constant 2 : index
    %c0_26 = arith.constant 0 : index
    %53 = vector.load %arg1[%c0_23, %c0_24, %c2_25, %c0_26] : memref<1x18x18x3xf32, #tpu.memory_space<vmem>>, vector<1x16x16x3xf32>
    %54 = vector.shape_cast %53 : vector<1x16x16x3xf32> to vector<16x16x3xf32>
    %55 = vector.extract_strided_slice %54 {offsets = [0, 0, 0], sizes = [16, 16, 1], strides = [1, 1, 1]} : vector<16x16x3xf32> to vector<16x16x1xf32>
    %c2_27 = arith.constant 2 : index
    %c0_28 = arith.constant 0 : index
    %c0_29 = arith.constant 0 : index
    %56 = vector.load %arg2[%c2_27, %c0_28, %c0_29] : memref<9x3x16xf32, #tpu.memory_space<vmem>>, vector<1x1x16xf32>
    %57 = vector.shape_cast %56 : vector<1x1x16xf32> to vector<16xf32>
    %58 = vector.shape_cast %57 : vector<16xf32> to vector<1x1x16xf32>
    %59 = vector.broadcast %55 : vector<16x16x1xf32> to vector<16x16x16xf32>
    %60 = vector.broadcast %58 : vector<1x1x16xf32> to vector<16x16x16xf32>
    %61 = arith.mulf %59, %60 : vector<16x16x16xf32>
    %62 = arith.addf %52, %61 : vector<16x16x16xf32>
    %63 = vector.extract_strided_slice %54 {offsets = [0, 0, 1], sizes = [16, 16, 1], strides = [1, 1, 1]} : vector<16x16x3xf32> to vector<16x16x1xf32>
    %c2_30 = arith.constant 2 : index
    %c1_31 = arith.constant 1 : index
    %c0_32 = arith.constant 0 : index
    %64 = vector.load %arg2[%c2_30, %c1_31, %c0_32] : memref<9x3x16xf32, #tpu.memory_space<vmem>>, vector<1x1x16xf32>
    %65 = vector.shape_cast %64 : vector<1x1x16xf32> to vector<16xf32>
    %66 = vector.shape_cast %65 : vector<16xf32> to vector<1x1x16xf32>
    %67 = vector.broadcast %63 : vector<16x16x1xf32> to vector<16x16x16xf32>
    %68 = vector.broadcast %66 : vector<1x1x16xf32> to vector<16x16x16xf32>
    %69 = arith.mulf %67, %68 : vector<16x16x16xf32>
    %70 = arith.addf %62, %69 : vector<16x16x16xf32>
    %71 = vector.extract_strided_slice %54 {offsets = [0, 0, 2], sizes = [16, 16, 1], strides = [1, 1, 1]} : vector<16x16x3xf32> to vector<16x16x1xf32>
    %c2_33 = arith.constant 2 : index
    %c2_34 = arith.constant 2 : index
    %c0_35 = arith.constant 0 : index
    %72 = vector.load %arg2[%c2_33, %c2_34, %c0_35] : memref<9x3x16xf32, #tpu.memory_space<vmem>>, vector<1x1x16xf32>
    %73 = vector.shape_cast %72 : vector<1x1x16xf32> to vector<16xf32>
    %74 = vector.shape_cast %73 : vector<16xf32> to vector<1x1x16xf32>
    %75 = vector.broadcast %71 : vector<16x16x1xf32> to vector<16x16x16xf32>
    %76 = vector.broadcast %74 : vector<1x1x16xf32> to vector<16x16x16xf32>
    %77 = arith.mulf %75, %76 : vector<16x16x16xf32>
    %78 = arith.addf %70, %77 : vector<16x16x16xf32>
    %c0_36 = arith.constant 0 : index
    %c1_37 = arith.constant 1 : index
    %c0_38 = arith.constant 0 : index
    %c0_39 = arith.constant 0 : index
    %79 = vector.load %arg1[%c0_36, %c1_37, %c0_38, %c0_39] : memref<1x18x18x3xf32, #tpu.memory_space<vmem>>, vector<1x16x16x3xf32>
    %80 = vector.shape_cast %79 : vector<1x16x16x3xf32> to vector<16x16x3xf32>
    %81 = vector.extract_strided_slice %80 {offsets = [0, 0, 0], sizes = [16, 16, 1], strides = [1, 1, 1]} : vector<16x16x3xf32> to vector<16x16x1xf32>
    %c3 = arith.constant 3 : index
    %c0_40 = arith.constant 0 : index
    %c0_41 = arith.constant 0 : index
    %82 = vector.load %arg2[%c3, %c0_40, %c0_41] : memref<9x3x16xf32, #tpu.memory_space<vmem>>, vector<1x1x16xf32>
    %83 = vector.shape_cast %82 : vector<1x1x16xf32> to vector<16xf32>
    %84 = vector.shape_cast %83 : vector<16xf32> to vector<1x1x16xf32>
    %85 = vector.broadcast %81 : vector<16x16x1xf32> to vector<16x16x16xf32>
    %86 = vector.broadcast %84 : vector<1x1x16xf32> to vector<16x16x16xf32>
    %87 = arith.mulf %85, %86 : vector<16x16x16xf32>
    %88 = arith.addf %78, %87 : vector<16x16x16xf32>
    %89 = vector.extract_strided_slice %80 {offsets = [0, 0, 1], sizes = [16, 16, 1], strides = [1, 1, 1]} : vector<16x16x3xf32> to vector<16x16x1xf32>
    %c3_42 = arith.constant 3 : index
    %c1_43 = arith.constant 1 : index
    %c0_44 = arith.constant 0 : index
    %90 = vector.load %arg2[%c3_42, %c1_43, %c0_44] : memref<9x3x16xf32, #tpu.memory_space<vmem>>, vector<1x1x16xf32>
    %91 = vector.shape_cast %90 : vector<1x1x16xf32> to vector<16xf32>
    %92 = vector.shape_cast %91 : vector<16xf32> to vector<1x1x16xf32>
    %93 = vector.broadcast %89 : vector<16x16x1xf32> to vector<16x16x16xf32>
    %94 = vector.broadcast %92 : vector<1x1x16xf32> to vector<16x16x16xf32>
    %95 = arith.mulf %93, %94 : vector<16x16x16xf32>
    %96 = arith.addf %88, %95 : vector<16x16x16xf32>
    %97 = vector.extract_strided_slice %80 {offsets = [0, 0, 2], sizes = [16, 16, 1], strides = [1, 1, 1]} : vector<16x16x3xf32> to vector<16x16x1xf32>
    %c3_45 = arith.constant 3 : index
    %c2_46 = arith.constant 2 : index
    %c0_47 = arith.constant 0 : index
    %98 = vector.load %arg2[%c3_45, %c2_46, %c0_47] : memref<9x3x16xf32, #tpu.memory_space<vmem>>, vector<1x1x16xf32>
    %99 = vector.shape_cast %98 : vector<1x1x16xf32> to vector<16xf32>
    %100 = vector.shape_cast %99 : vector<16xf32> to vector<1x1x16xf32>
    %101 = vector.broadcast %97 : vector<16x16x1xf32> to vector<16x16x16xf32>
    %102 = vector.broadcast %100 : vector<1x1x16xf32> to vector<16x16x16xf32>
    %103 = arith.mulf %101, %102 : vector<16x16x16xf32>
    %104 = arith.addf %96, %103 : vector<16x16x16xf32>
    %c0_48 = arith.constant 0 : index
    %c1_49 = arith.constant 1 : index
    %c1_50 = arith.constant 1 : index
    %c0_51 = arith.constant 0 : index
    %105 = vector.load %arg1[%c0_48, %c1_49, %c1_50, %c0_51] : memref<1x18x18x3xf32, #tpu.memory_space<vmem>>, vector<1x16x16x3xf32>
    %106 = vector.shape_cast %105 : vector<1x16x16x3xf32> to vector<16x16x3xf32>
    %107 = vector.extract_strided_slice %106 {offsets = [0, 0, 0], sizes = [16, 16, 1], strides = [1, 1, 1]} : vector<16x16x3xf32> to vector<16x16x1xf32>
    %c4 = arith.constant 4 : index
    %c0_52 = arith.constant 0 : index
    %c0_53 = arith.constant 0 : index
    %108 = vector.load %arg2[%c4, %c0_52, %c0_53] : memref<9x3x16xf32, #tpu.memory_space<vmem>>, vector<1x1x16xf32>
    %109 = vector.shape_cast %108 : vector<1x1x16xf32> to vector<16xf32>
    %110 = vector.shape_cast %109 : vector<16xf32> to vector<1x1x16xf32>
    %111 = vector.broadcast %107 : vector<16x16x1xf32> to vector<16x16x16xf32>
    %112 = vector.broadcast %110 : vector<1x1x16xf32> to vector<16x16x16xf32>
    %113 = arith.mulf %111, %112 : vector<16x16x16xf32>
    %114 = arith.addf %104, %113 : vector<16x16x16xf32>
    %115 = vector.extract_strided_slice %106 {offsets = [0, 0, 1], sizes = [16, 16, 1], strides = [1, 1, 1]} : vector<16x16x3xf32> to vector<16x16x1xf32>
    %c4_54 = arith.constant 4 : index
    %c1_55 = arith.constant 1 : index
    %c0_56 = arith.constant 0 : index
    %116 = vector.load %arg2[%c4_54, %c1_55, %c0_56] : memref<9x3x16xf32, #tpu.memory_space<vmem>>, vector<1x1x16xf32>
    %117 = vector.shape_cast %116 : vector<1x1x16xf32> to vector<16xf32>
    %118 = vector.shape_cast %117 : vector<16xf32> to vector<1x1x16xf32>
    %119 = vector.broadcast %115 : vector<16x16x1xf32> to vector<16x16x16xf32>
    %120 = vector.broadcast %118 : vector<1x1x16xf32> to vector<16x16x16xf32>
    %121 = arith.mulf %119, %120 : vector<16x16x16xf32>
    %122 = arith.addf %114, %121 : vector<16x16x16xf32>
    %123 = vector.extract_strided_slice %106 {offsets = [0, 0, 2], sizes = [16, 16, 1], strides = [1, 1, 1]} : vector<16x16x3xf32> to vector<16x16x1xf32>
    %c4_57 = arith.constant 4 : index
    %c2_58 = arith.constant 2 : index
    %c0_59 = arith.constant 0 : index
    %124 = vector.load %arg2[%c4_57, %c2_58, %c0_59] : memref<9x3x16xf32, #tpu.memory_space<vmem>>, vector<1x1x16xf32>
    %125 = vector.shape_cast %124 : vector<1x1x16xf32> to vector<16xf32>
    %126 = vector.shape_cast %125 : vector<16xf32> to vector<1x1x16xf32>
    %127 = vector.broadcast %123 : vector<16x16x1xf32> to vector<16x16x16xf32>
    %128 = vector.broadcast %126 : vector<1x1x16xf32> to vector<16x16x16xf32>
    %129 = arith.mulf %127, %128 : vector<16x16x16xf32>
    %130 = arith.addf %122, %129 : vector<16x16x16xf32>
    %c0_60 = arith.constant 0 : index
    %c1_61 = arith.constant 1 : index
    %c2_62 = arith.constant 2 : index
    %c0_63 = arith.constant 0 : index
    %131 = vector.load %arg1[%c0_60, %c1_61, %c2_62, %c0_63] : memref<1x18x18x3xf32, #tpu.memory_space<vmem>>, vector<1x16x16x3xf32>
    %132 = vector.shape_cast %131 : vector<1x16x16x3xf32> to vector<16x16x3xf32>
    %133 = vector.extract_strided_slice %132 {offsets = [0, 0, 0], sizes = [16, 16, 1], strides = [1, 1, 1]} : vector<16x16x3xf32> to vector<16x16x1xf32>
    %c5 = arith.constant 5 : index
    %c0_64 = arith.constant 0 : index
    %c0_65 = arith.constant 0 : index
    %134 = vector.load %arg2[%c5, %c0_64, %c0_65] : memref<9x3x16xf32, #tpu.memory_space<vmem>>, vector<1x1x16xf32>
    %135 = vector.shape_cast %134 : vector<1x1x16xf32> to vector<16xf32>
    %136 = vector.shape_cast %135 : vector<16xf32> to vector<1x1x16xf32>
    %137 = vector.broadcast %133 : vector<16x16x1xf32> to vector<16x16x16xf32>
    %138 = vector.broadcast %136 : vector<1x1x16xf32> to vector<16x16x16xf32>
    %139 = arith.mulf %137, %138 : vector<16x16x16xf32>
    %140 = arith.addf %130, %139 : vector<16x16x16xf32>
    %141 = vector.extract_strided_slice %132 {offsets = [0, 0, 1], sizes = [16, 16, 1], strides = [1, 1, 1]} : vector<16x16x3xf32> to vector<16x16x1xf32>
    %c5_66 = arith.constant 5 : index
    %c1_67 = arith.constant 1 : index
    %c0_68 = arith.constant 0 : index
    %142 = vector.load %arg2[%c5_66, %c1_67, %c0_68] : memref<9x3x16xf32, #tpu.memory_space<vmem>>, vector<1x1x16xf32>
    %143 = vector.shape_cast %142 : vector<1x1x16xf32> to vector<16xf32>
    %144 = vector.shape_cast %143 : vector<16xf32> to vector<1x1x16xf32>
    %145 = vector.broadcast %141 : vector<16x16x1xf32> to vector<16x16x16xf32>
    %146 = vector.broadcast %144 : vector<1x1x16xf32> to vector<16x16x16xf32>
    %147 = arith.mulf %145, %146 : vector<16x16x16xf32>
    %148 = arith.addf %140, %147 : vector<16x16x16xf32>
    %149 = vector.extract_strided_slice %132 {offsets = [0, 0, 2], sizes = [16, 16, 1], strides = [1, 1, 1]} : vector<16x16x3xf32> to vector<16x16x1xf32>
    %c5_69 = arith.constant 5 : index
    %c2_70 = arith.constant 2 : index
    %c0_71 = arith.constant 0 : index
    %150 = vector.load %arg2[%c5_69, %c2_70, %c0_71] : memref<9x3x16xf32, #tpu.memory_space<vmem>>, vector<1x1x16xf32>
    %151 = vector.shape_cast %150 : vector<1x1x16xf32> to vector<16xf32>
    %152 = vector.shape_cast %151 : vector<16xf32> to vector<1x1x16xf32>
    %153 = vector.broadcast %149 : vector<16x16x1xf32> to vector<16x16x16xf32>
    %154 = vector.broadcast %152 : vector<1x1x16xf32> to vector<16x16x16xf32>
    %155 = arith.mulf %153, %154 : vector<16x16x16xf32>
    %156 = arith.addf %148, %155 : vector<16x16x16xf32>
    %c0_72 = arith.constant 0 : index
    %c2_73 = arith.constant 2 : index
    %c0_74 = arith.constant 0 : index
    %c0_75 = arith.constant 0 : index
    %157 = vector.load %arg1[%c0_72, %c2_73, %c0_74, %c0_75] : memref<1x18x18x3xf32, #tpu.memory_space<vmem>>, vector<1x16x16x3xf32>
    %158 = vector.shape_cast %157 : vector<1x16x16x3xf32> to vector<16x16x3xf32>
    %159 = vector.extract_strided_slice %158 {offsets = [0, 0, 0], sizes = [16, 16, 1], strides = [1, 1, 1]} : vector<16x16x3xf32> to vector<16x16x1xf32>
    %c6 = arith.constant 6 : index
    %c0_76 = arith.constant 0 : index
    %c0_77 = arith.constant 0 : index
    %160 = vector.load %arg2[%c6, %c0_76, %c0_77] : memref<9x3x16xf32, #tpu.memory_space<vmem>>, vector<1x1x16xf32>
    %161 = vector.shape_cast %160 : vector<1x1x16xf32> to vector<16xf32>
    %162 = vector.shape_cast %161 : vector<16xf32> to vector<1x1x16xf32>
    %163 = vector.broadcast %159 : vector<16x16x1xf32> to vector<16x16x16xf32>
    %164 = vector.broadcast %162 : vector<1x1x16xf32> to vector<16x16x16xf32>
    %165 = arith.mulf %163, %164 : vector<16x16x16xf32>
    %166 = arith.addf %156, %165 : vector<16x16x16xf32>
    %167 = vector.extract_strided_slice %158 {offsets = [0, 0, 1], sizes = [16, 16, 1], strides = [1, 1, 1]} : vector<16x16x3xf32> to vector<16x16x1xf32>
    %c6_78 = arith.constant 6 : index
    %c1_79 = arith.constant 1 : index
    %c0_80 = arith.constant 0 : index
    %168 = vector.load %arg2[%c6_78, %c1_79, %c0_80] : memref<9x3x16xf32, #tpu.memory_space<vmem>>, vector<1x1x16xf32>
    %169 = vector.shape_cast %168 : vector<1x1x16xf32> to vector<16xf32>
    %170 = vector.shape_cast %169 : vector<16xf32> to vector<1x1x16xf32>
    %171 = vector.broadcast %167 : vector<16x16x1xf32> to vector<16x16x16xf32>
    %172 = vector.broadcast %170 : vector<1x1x16xf32> to vector<16x16x16xf32>
    %173 = arith.mulf %171, %172 : vector<16x16x16xf32>
    %174 = arith.addf %166, %173 : vector<16x16x16xf32>
    %175 = vector.extract_strided_slice %158 {offsets = [0, 0, 2], sizes = [16, 16, 1], strides = [1, 1, 1]} : vector<16x16x3xf32> to vector<16x16x1xf32>
    %c6_81 = arith.constant 6 : index
    %c2_82 = arith.constant 2 : index
    %c0_83 = arith.constant 0 : index
    %176 = vector.load %arg2[%c6_81, %c2_82, %c0_83] : memref<9x3x16xf32, #tpu.memory_space<vmem>>, vector<1x1x16xf32>
    %177 = vector.shape_cast %176 : vector<1x1x16xf32> to vector<16xf32>
    %178 = vector.shape_cast %177 : vector<16xf32> to vector<1x1x16xf32>
    %179 = vector.broadcast %175 : vector<16x16x1xf32> to vector<16x16x16xf32>
    %180 = vector.broadcast %178 : vector<1x1x16xf32> to vector<16x16x16xf32>
    %181 = arith.mulf %179, %180 : vector<16x16x16xf32>
    %182 = arith.addf %174, %181 : vector<16x16x16xf32>
    %c0_84 = arith.constant 0 : index
    %c2_85 = arith.constant 2 : index
    %c1_86 = arith.constant 1 : index
    %c0_87 = arith.constant 0 : index
    %183 = vector.load %arg1[%c0_84, %c2_85, %c1_86, %c0_87] : memref<1x18x18x3xf32, #tpu.memory_space<vmem>>, vector<1x16x16x3xf32>
    %184 = vector.shape_cast %183 : vector<1x16x16x3xf32> to vector<16x16x3xf32>
    %185 = vector.extract_strided_slice %184 {offsets = [0, 0, 0], sizes = [16, 16, 1], strides = [1, 1, 1]} : vector<16x16x3xf32> to vector<16x16x1xf32>
    %c7 = arith.constant 7 : index
    %c0_88 = arith.constant 0 : index
    %c0_89 = arith.constant 0 : index
    %186 = vector.load %arg2[%c7, %c0_88, %c0_89] : memref<9x3x16xf32, #tpu.memory_space<vmem>>, vector<1x1x16xf32>
    %187 = vector.shape_cast %186 : vector<1x1x16xf32> to vector<16xf32>
    %188 = vector.shape_cast %187 : vector<16xf32> to vector<1x1x16xf32>
    %189 = vector.broadcast %185 : vector<16x16x1xf32> to vector<16x16x16xf32>
    %190 = vector.broadcast %188 : vector<1x1x16xf32> to vector<16x16x16xf32>
    %191 = arith.mulf %189, %190 : vector<16x16x16xf32>
    %192 = arith.addf %182, %191 : vector<16x16x16xf32>
    %193 = vector.extract_strided_slice %184 {offsets = [0, 0, 1], sizes = [16, 16, 1], strides = [1, 1, 1]} : vector<16x16x3xf32> to vector<16x16x1xf32>
    %c7_90 = arith.constant 7 : index
    %c1_91 = arith.constant 1 : index
    %c0_92 = arith.constant 0 : index
    %194 = vector.load %arg2[%c7_90, %c1_91, %c0_92] : memref<9x3x16xf32, #tpu.memory_space<vmem>>, vector<1x1x16xf32>
    %195 = vector.shape_cast %194 : vector<1x1x16xf32> to vector<16xf32>
    %196 = vector.shape_cast %195 : vector<16xf32> to vector<1x1x16xf32>
    %197 = vector.broadcast %193 : vector<16x16x1xf32> to vector<16x16x16xf32>
    %198 = vector.broadcast %196 : vector<1x1x16xf32> to vector<16x16x16xf32>
    %199 = arith.mulf %197, %198 : vector<16x16x16xf32>
    %200 = arith.addf %192, %199 : vector<16x16x16xf32>
    %201 = vector.extract_strided_slice %184 {offsets = [0, 0, 2], sizes = [16, 16, 1], strides = [1, 1, 1]} : vector<16x16x3xf32> to vector<16x16x1xf32>
    %c7_93 = arith.constant 7 : index
    %c2_94 = arith.constant 2 : index
    %c0_95 = arith.constant 0 : index
    %202 = vector.load %arg2[%c7_93, %c2_94, %c0_95] : memref<9x3x16xf32, #tpu.memory_space<vmem>>, vector<1x1x16xf32>
    %203 = vector.shape_cast %202 : vector<1x1x16xf32> to vector<16xf32>
    %204 = vector.shape_cast %203 : vector<16xf32> to vector<1x1x16xf32>
    %205 = vector.broadcast %201 : vector<16x16x1xf32> to vector<16x16x16xf32>
    %206 = vector.broadcast %204 : vector<1x1x16xf32> to vector<16x16x16xf32>
    %207 = arith.mulf %205, %206 : vector<16x16x16xf32>
    %208 = arith.addf %200, %207 : vector<16x16x16xf32>
    %c0_96 = arith.constant 0 : index
    %c2_97 = arith.constant 2 : index
    %c2_98 = arith.constant 2 : index
    %c0_99 = arith.constant 0 : index
    %209 = vector.load %arg1[%c0_96, %c2_97, %c2_98, %c0_99] : memref<1x18x18x3xf32, #tpu.memory_space<vmem>>, vector<1x16x16x3xf32>
    %210 = vector.shape_cast %209 : vector<1x16x16x3xf32> to vector<16x16x3xf32>
    %211 = vector.extract_strided_slice %210 {offsets = [0, 0, 0], sizes = [16, 16, 1], strides = [1, 1, 1]} : vector<16x16x3xf32> to vector<16x16x1xf32>
    %c8 = arith.constant 8 : index
    %c0_100 = arith.constant 0 : index
    %c0_101 = arith.constant 0 : index
    %212 = vector.load %arg2[%c8, %c0_100, %c0_101] : memref<9x3x16xf32, #tpu.memory_space<vmem>>, vector<1x1x16xf32>
    %213 = vector.shape_cast %212 : vector<1x1x16xf32> to vector<16xf32>
    %214 = vector.shape_cast %213 : vector<16xf32> to vector<1x1x16xf32>
    %215 = vector.broadcast %211 : vector<16x16x1xf32> to vector<16x16x16xf32>
    %216 = vector.broadcast %214 : vector<1x1x16xf32> to vector<16x16x16xf32>
    %217 = arith.mulf %215, %216 : vector<16x16x16xf32>
    %218 = arith.addf %208, %217 : vector<16x16x16xf32>
    %219 = vector.extract_strided_slice %210 {offsets = [0, 0, 1], sizes = [16, 16, 1], strides = [1, 1, 1]} : vector<16x16x3xf32> to vector<16x16x1xf32>
    %c8_102 = arith.constant 8 : index
    %c1_103 = arith.constant 1 : index
    %c0_104 = arith.constant 0 : index
    %220 = vector.load %arg2[%c8_102, %c1_103, %c0_104] : memref<9x3x16xf32, #tpu.memory_space<vmem>>, vector<1x1x16xf32>
    %221 = vector.shape_cast %220 : vector<1x1x16xf32> to vector<16xf32>
    %222 = vector.shape_cast %221 : vector<16xf32> to vector<1x1x16xf32>
    %223 = vector.broadcast %219 : vector<16x16x1xf32> to vector<16x16x16xf32>
    %224 = vector.broadcast %222 : vector<1x1x16xf32> to vector<16x16x16xf32>
    %225 = arith.mulf %223, %224 : vector<16x16x16xf32>
    %226 = arith.addf %218, %225 : vector<16x16x16xf32>
    %227 = vector.extract_strided_slice %210 {offsets = [0, 0, 2], sizes = [16, 16, 1], strides = [1, 1, 1]} : vector<16x16x3xf32> to vector<16x16x1xf32>
    %c8_105 = arith.constant 8 : index
    %c2_106 = arith.constant 2 : index
    %c0_107 = arith.constant 0 : index
    %228 = vector.load %arg2[%c8_105, %c2_106, %c0_107] : memref<9x3x16xf32, #tpu.memory_space<vmem>>, vector<1x1x16xf32>
    %229 = vector.shape_cast %228 : vector<1x1x16xf32> to vector<16xf32>
    %230 = vector.shape_cast %229 : vector<16xf32> to vector<1x1x16xf32>
    %231 = vector.broadcast %227 : vector<16x16x1xf32> to vector<16x16x16xf32>
    %232 = vector.broadcast %230 : vector<1x1x16xf32> to vector<16x16x16xf32>
    %233 = arith.mulf %231, %232 : vector<16x16x16xf32>
    %234 = arith.addf %226, %233 : vector<16x16x16xf32>
    %c0_108 = arith.constant 0 : index
    %c0_109 = arith.constant 0 : index
    %235 = vector.load %arg3[%c0_108, %c0_109] : memref<1x16xf32, #tpu.memory_space<vmem>>, vector<1x16xf32>
    %236 = vector.shape_cast %235 : vector<1x16xf32> to vector<16xf32>
    %237 = vector.shape_cast %236 : vector<16xf32> to vector<1x1x16xf32>
    %238 = vector.broadcast %237 : vector<1x1x16xf32> to vector<16x16x16xf32>
    %239 = arith.addf %234, %238 : vector<16x16x16xf32>
    %cst_110 = arith.constant 0.000000e+00 : f32
    %240 = vector.broadcast %cst_110 : f32 to vector<16x16x16xf32>
    %241 = arith.maximumf %239, %240 : vector<16x16x16xf32>
    %c0_111 = arith.constant 0 : index
    %c0_112 = arith.constant 0 : index
    %c0_113 = arith.constant 0 : index
    %c0_114 = arith.constant 0 : index
    %242 = vector.load %arg4[%c0_111, %c0_112, %c0_113, %c0_114] : memref<1x16x16x16xf32, #tpu.memory_space<vmem>>, vector<1x16x16x16xf32>
    %243 = vector.shape_cast %242 : vector<1x16x16x16xf32> to vector<16x16x16xf32>
    %244 = vector.shape_cast %241 : vector<16x16x16xf32> to vector<1x16x16x16xf32>
    tpu.vector_store %arg4[%c0_111, %c0_112, %c0_113, %c0_114], %244 {strides = array<i32>} : memref<1x16x16x16xf32, #tpu.memory_space<vmem>>, vector<1x16x16x16xf32>,
    return
  }
  func.func @transform_0(%arg0: i32) -> (i32, i32, i32, i32) {
    %c0_i32 = arith.constant 0 : i32
    %c0_i32_0 = arith.constant 0 : i32
    %c0_i32_1 = arith.constant 0 : i32
    %c0_i32_2 = arith.constant 0 : i32
    return %arg0, %c0_i32, %c0_i32_0, %c0_i32_1 : i32, i32, i32, i32
  }
  func.func @transform_1(%arg0: i32) -> (i32, i32, i32) {
    %c0_i32 = arith.constant 0 : i32
    %c0_i32_0 = arith.constant 0 : i32
    %c0_i32_1 = arith.constant 0 : i32
    %c0_i32_2 = arith.constant 0 : i32
    return %c0_i32, %c0_i32_0, %c0_i32_1 : i32, i32, i32
  }
  func.func @transform_2(%arg0: i32) -> (i32, i32) {
    %c0_i32 = arith.constant 0 : i32
    %c0_i32_0 = arith.constant 0 : i32
    %c0_i32_1 = arith.constant 0 : i32
    return %c0_i32, %c0_i32_0 : i32, i32
  }
  func.func @transform_3(%arg0: i32) -> (i32, i32, i32, i32) {
    %c0_i32 = arith.constant 0 : i32
    %c0_i32_0 = arith.constant 0 : i32
    %c0_i32_1 = arith.constant 0 : i32
    %c0_i32_2 = arith.constant 0 : i32
    return %arg0, %c0_i32, %c0_i32_0, %c0_i32_1 : i32, i32, i32, i32
  }
}

</mosaic_0001>

<bundles_post_ra>
// kernel: simple_conv_forward.1
= control target key start
LH: loop header
LB: loop body
LE: loop exit
PB: predicated region body
PF: predicated region fallthrough
CT: control target
= control target key end

     0   :  { %s6756_s12 = smov 0   ;;  %s13245_s0 = inlined_call_operand.vmem [shape: f32[2,18,18,3], index: 0, kind: input, shape index: {}]   ;;  %s13246_s1 = inlined_call_operand.vmem [shape: f32[9,3,16], index: 1, kind: input, shape index: {}]   ;;  %s13247_s2 = inlined_call_operand.vmem [shape: f32[1,16], index: 2, kind: input, shape index: {}]   ;;  %s13248_s3 = inlined_call_operand.vmem [shape: f32[2,16,16,16], index: 3, kind: output, shape index: {}]  }
   0x1 LB: > { %s6151_s13 = sadd.s32 4294967295, %s6731_s12   ;;  %p6155_p0 = scmp.ge.s32.totalorder %s6731_s12, 1  ;;  %s6731_s12 = sphi %s6756_s12, %s13_s12  }
   0x2   : > { %p137_p1 = scmp.lt.s32.totalorder %s6731_s12, 3 }
   0x4   : > { %p138_p2 = pnand %p6155_p0, %p137_p1 }
   0x6   : > { %141 = sbr.rel (%p138_p2) target bundleno = 2553 (0x9f9), region = 32 }
   0xb   : > { %p161_p3 = scmp.lt.s32.totalorder %s6151_s13, 1  ;;  %v13253_v0 = vmov 0   ;;  %v13251_v33 = vmov 1   ;;  %vm6063_vm0 = vcmask 130048  }
   0xc   : > { %6392 = vset.pattern.permute.xlu2 %v13253_v0  ;;  %6391 = vset.pattern.permute.xlu1 %v13253_v0 }
   0xd   : > { %6390 = vset.pattern.permute.xlu0 %v13253_v0  ;;  %s14987_s13 = smov (!%p161_p3, %s6151_s13), 1 }
   0xe   : > { %s6378_s14 = smul.u32 432, %s14987_s13  ;;  %s6377_s9 = sshll.u32 %s14987_s13, 8 }
   0xf   : > { %s12582_s11 = scalar_lea.vmem %s13248_s3, %s6377_s9 }
  0x10   : > { %s6773_s17 = scalar_lea.vmem %s13245_s0, %s6378_s14 }
  0x11   : > { %v6776_v1 = vld [vmem:[%s6773_s17 + $0x30] sm:$0xff]  ;;  %v6779_v2 = vld [vmem:[%s6773_s17 + $0x18] sm:$0xff]  ;;  %v6782_v3 = vld [vmem:[%s6773_s17] sm:$0xff] }
  0x12   : > { %226 = vperm.xlu2 %6392, %v6776_v1   ;;  %216 = vperm.xlu1 %6391, %v6779_v2   ;;  %v6788_v4 = vld [vmem:[%s6773_s17 + $0x38] sm:$0xff]  ;;  %v6791_v5 = vld [vmem:[%s6773_s17 + $0x20] sm:$0xff]  ;;  %v172_v6 = vld [vmem:[%s6773_s17 + $0x8] sm:$0xff] }
  0x13   : > { %206 = vperm.xlu0 %6390, %v6782_v3   ;;  %v6797_v7 = vld [vmem:[%s6773_s17 + $0x60] sm:$0xff]  ;;  %v6800_v8 = vld [vmem:[%s6773_s17 + $0x50] sm:$0xff]  ;;  %v177_v9 = vld [vmem:[%s6773_s17 + $0x48] sm:$0xff] }
  0x14   : > { %v6806_v10 = vld [vmem:[%s6773_s17 + $0x80] sm:$0xff]  ;;  %v6809_v11 = vld [vmem:[%s6773_s17 + $0x78] sm:$0xff]  ;;  %v180_v12 = vld [vmem:[%s6773_s17 + $0x68] sm:$0xff] }
  0x15   : > { %v6815_v13 = vld [vmem:[%s6773_s17 + $0xa8] sm:$0xff]  ;;  %v6818_v14 = vld [vmem:[%s6773_s17 + $0x98] sm:$0xff]  ;;  %v183_v15 = vld [vmem:[%s6773_s17 + $0x90] sm:$0xff] }
  0x16   : > { %v6824_v16 = vld [vmem:[%s6773_s17 + $0xc8] sm:$0xff]  ;;  %v6827_v17 = vld [vmem:[%s6773_s17 + $0xc0] sm:$0xff]  ;;  %v186_v18 = vld [vmem:[%s6773_s17 + $0xb0] sm:$0xff] }
  0x17   : > { %v6833_v19 = vld [vmem:[%s6773_s17 + $0xf0] sm:$0xff]  ;;  %v6836_v20 = vld [vmem:[%s6773_s17 + $0xe0] sm:$0xff]  ;;  %v189_v21 = vld [vmem:[%s6773_s17 + $0xd8] sm:$0xff] }
  0x18   : > { %v6842_v22 = vld [vmem:[%s6773_s17 + $0x110] sm:$0xff]  ;;  %v6845_v23 = vld [vmem:[%s6773_s17 + $0x108] sm:$0xff]  ;;  %v192_v24 = vld [vmem:[%s6773_s17 + $0xf8] sm:$0xff] }
  0x19   : > { %v6851_v25 = vld [vmem:[%s6773_s17 + $0x138] sm:$0xff]  ;;  %v6854_v26 = vld [vmem:[%s6773_s17 + $0x128] sm:$0xff]  ;;  %v195_v27 = vld [vmem:[%s6773_s17 + $0x120] sm:$0xff] }
  0x1a   : > { %231 = vperm.xlu2 %6392, %v6788_v4   ;;  %221 = vperm.xlu1 %6391, %v6791_v5   ;;  %v6860_v28 = vld [vmem:[%s6773_s17 + $0x158] sm:$0xff]  ;;  %v6863_v29 = vld [vmem:[%s6773_s17 + $0x150] sm:$0xff]  ;;  %v198_v30 = vld [vmem:[%s6773_s17 + $0x140] sm:$0xff] }
  0x1b   : > { %211 = vperm.xlu0 %6390, %v172_v6   ;;  %v6869_v31 = vld [vmem:[%s6773_s17 + $0x170] sm:$0xff]  ;;  %v201_v32 = vld [vmem:[%s6773_s17 + $0x168] sm:$0xff]  ;;  %v835_v48 = vld [vmem:[%s6773_s17 + $0xd9] sm:$0xff] }
  0x1c   : > { %v818_v34 = vld [vmem:[%s6773_s17 + $0x9] sm:$0xff]  ;;  %v829_v40 = vld [vmem:[%s6773_s17 + $0x91] sm:$0xff]  ;;  %v838_v52 = vld [vmem:[%s6773_s17 + $0xf9] sm:$0xff] }
  0x1d   : > { %v823_v36 = vld [vmem:[%s6773_s17 + $0x49] sm:$0xff]  ;;  %v832_v44 = vld [vmem:[%s6773_s17 + $0xb1] sm:$0xff]  ;;  %v841_v56 = vld [vmem:[%s6773_s17 + $0x121] sm:$0xff] }
  0x1e   : > { %v826_v38 = vld [vmem:[%s6773_s17 + $0x69] sm:$0xff]  ;;  %v844_v60 = vld [vmem:[%s6773_s17 + $0x141] sm:$0xff] }
  0x1f   : > { %v847_v6 = vld [vmem:[%s6773_s17 + $0x169] sm:$0xff] }
  0x20   : > { %v1491_v0 = vld [vmem:[%s6773_s17 + $0x142] sm:$0xff] }
  0x22   : > { %246 = vperm.xlu2 %6392, %v6797_v7   ;;  %241 = vperm.xlu1 %6391, %v6800_v8  }
  0x23   : > { %236 = vperm.xlu0 %6390, %v177_v9  }
  0x2a   : > { %261 = vperm.xlu2 %6392, %v6806_v10   ;;  %256 = vperm.xlu1 %6391, %v6809_v11  }
  0x2b   : > { %251 = vperm.xlu0 %6390, %v180_v12  }
  0x32   : > { %276 = vperm.xlu2 %6392, %v6815_v13   ;;  %271 = vperm.xlu1 %6391, %v6818_v14  }
  0x33   : > { %266 = vperm.xlu0 %6390, %v183_v15  }
  0x3a   : > { %291 = vperm.xlu2 %6392, %v6824_v16   ;;  %286 = vperm.xlu1 %6391, %v6827_v17  }
  0x3b   : > { %281 = vperm.xlu0 %6390, %v186_v18   ;;  %v1465_v18 = vld [vmem:[%s6773_s17 + $0xa] sm:$0xff] }
  0x42   : > { %306 = vperm.xlu2 %6392, %v6833_v19   ;;  %301 = vperm.xlu1 %6391, %v6836_v20  }
  0x43   : > { %296 = vperm.xlu0 %6390, %v189_v21   ;;  %v13249_v21 = vmov 2  }
  0x4a   : > { %321 = vperm.xlu2 %6392, %v6842_v22   ;;  %316 = vperm.xlu1 %6391, %v6845_v23  }
  0x4b   : > { %311 = vperm.xlu0 %6390, %v192_v24  }
  0x52   : > { %336 = vperm.xlu2 %6392, %v6851_v25   ;;  %331 = vperm.xlu1 %6391, %v6854_v26  }
  0x53   : > { %326 = vperm.xlu0 %6390, %v195_v27  }
  0x5a   : > { %351 = vperm.xlu2 %6392, %v6860_v28   ;;  %346 = vperm.xlu1 %6391, %v6863_v29  }
  0x5b   : > { %341 = vperm.xlu0 %6390, %v198_v30  }
  0x62   : > { %6393 = vset.pattern.permute.xlu2 %v13251_v33  ;;  %361 = vperm.xlu1 %6391, %v6869_v31  }
  0x63   : > { %356 = vperm.xlu0 %6390, %v201_v32   ;;  %431 = vperm.xlu2 %6393, %v6782_v3   ;;  %v1470_v32 = vld [vmem:[%s6773_s17 + $0x4a] sm:$0xff] }
  0x6a   : > { %6394 = vset.pattern.permute.xlu1 %v13251_v33 }
  0x6b   : > { %858 = vperm.xlu0 %6390, %v818_v34   ;;  %439 = vperm.xlu1 %6394, %v6779_v2  }
  0x6c   : > { %443 = vperm.xlu2 %6393, %v6791_v5   ;;  %v6879_v35 = vpop.permute.xlu2 %226 }
  0x73   : > { %883 = vperm.xlu0 %6390, %v823_v36   ;;  %447 = vperm.xlu1 %6394, %v6776_v1  }
  0x74   : > { %451 = vperm.xlu2 %6393, %v6788_v4   ;;  %v6884_v37 = vpop.permute.xlu2 %231 }
  0x7b   : > { %898 = vperm.xlu0 %6390, %v826_v38   ;;  %459 = vperm.xlu1 %6394, %v6800_v8  }
  0x7c   : > { %463 = vperm.xlu2 %6393, %v6797_v7   ;;  %v6889_v39 = vpop.permute.xlu2 %246 }
  0x83   : > { %913 = vperm.xlu0 %6390, %v829_v40   ;;  %471 = vperm.xlu1 %6394, %v6809_v11  }
  0x84   : > { %475 = vperm.xlu2 %6393, %v6806_v10   ;;  %v6894_v41 = vpop.permute.xlu2 %261  ;;  %v6896_v42 = vpop.permute.xlu1 %216 }
  0x85   : > { %v6898_v43 = vpop.permute.xlu0 %206 }
  0x8b   : > { %928 = vperm.xlu0 %6390, %v832_v44   ;;  %483 = vperm.xlu1 %6394, %v6818_v14  }
  0x8c   : > { %487 = vperm.xlu2 %6393, %v6815_v13   ;;  %v6903_v45 = vpop.permute.xlu2 %276  ;;  %v6905_v46 = vpop.permute.xlu1 %221 }
  0x8d   : > { %v6907_v47 = vpop.permute.xlu0 %211 }
  0x93   : > { %943 = vperm.xlu0 %6390, %v835_v48   ;;  %495 = vperm.xlu1 %6394, %v6827_v17   ;;  %v1476_v48 = vld [vmem:[%s6773_s17 + $0x92] sm:$0xff] }
  0x94   : > { %499 = vperm.xlu2 %6393, %v6824_v16   ;;  %v6912_v49 = vpop.permute.xlu2 %291  ;;  %v6914_v50 = vpop.permute.xlu1 %241 }
  0x95   : > { %v6916_v51 = vpop.permute.xlu0 %236 }
  0x9b   : > { %958 = vperm.xlu0 %6390, %v838_v52   ;;  %507 = vperm.xlu1 %6394, %v6836_v20  }
  0x9c   : > { %511 = vperm.xlu2 %6393, %v6833_v19   ;;  %v6921_v53 = vpop.permute.xlu2 %306  ;;  %v6923_v54 = vpop.permute.xlu1 %256 }
  0x9d   : > { %v6925_v55 = vpop.permute.xlu0 %251 }
  0xa3   : > { %973 = vperm.xlu0 %6390, %v841_v56   ;;  %519 = vperm.xlu1 %6394, %v6845_v23  }
  0xa4   : > { %523 = vperm.xlu2 %6393, %v6842_v22   ;;  %v6930_v57 = vpop.permute.xlu2 %321  ;;  %v6932_v58 = vpop.permute.xlu1 %271 }
  0xa5   : > { %v6934_v59 = vpop.permute.xlu0 %266 }
  0xab   : > { %988 = vperm.xlu0 %6390, %v844_v60   ;;  %531 = vperm.xlu1 %6394, %v6854_v26   ;;  %v1479_v60 = vld [vmem:[%s6773_s17 + $0xb2] sm:$0xff] }
  0xac   : > { %535 = vperm.xlu2 %6393, %v6851_v25   ;;  %v6939_v61 = vpop.permute.xlu2 %336  ;;  %v6941_v62 = vpop.permute.xlu1 %286 }
  0xad   : > { %v6943_v63 = vpop.permute.xlu0 %281 }
  0xb3   : > { %1003 = vperm.xlu0 %6390, %v847_v6   ;;  %543 = vperm.xlu1 %6394, %v6863_v29  }
  0xb4   : > { %547 = vperm.xlu2 %6393, %v6860_v28   ;;  %v6948_v9 = vpop.permute.xlu2 %351  ;;  %v6950_v12 = vpop.permute.xlu1 %301 }
  0xb5   : > { %13304 = vst [vmem:[#allocation2_spill] sm:$0xff] %v6950_v12  ;;  %v6952_v15 = vpop.permute.xlu0 %296 }
  0xb6   : > { %13305 = vst [vmem:[#allocation3_spill] sm:$0xff] %v6952_v15 }
  0xbb   : > { %1505 = vperm.xlu0 %6390, %v1465_v18   ;;  %555 = vperm.xlu1 %6394, %v6869_v31   ;;  %v1482_v18 = vld [vmem:[%s6773_s17 + $0xda] sm:$0xff] }
  0xbc   : > { %6395 = vset.pattern.permute.xlu2 %v13249_v21  ;;  %v6957_v24 = vpop.permute.xlu1 %316 }
  0xbd   : > { %13306 = vst [vmem:[#allocation4_spill] sm:$0xff] %v6957_v24  ;;  %625 = vperm.xlu2 %6395, %v6782_v3   ;;  %v6960_v27 = vpop.permute.xlu0 %311  ;;  %v6962_v30 = vpop.permute.xlu2 %431  ;;  %v1473_v3 = vld [vmem:[%s6773_s17 + $0x6a] sm:$0xff] }
  0xbe   : > { %13307 = vst [vmem:[#allocation5_spill] sm:$0xff] %v6960_v27  ;;  %v7523_v27 = vld [vmem:[%s6773_s17 + $0x7a] sm:$0xff] }
  0xc3   : > { %1530 = vperm.xlu0 %6390, %v1470_v32   ;;  %6396 = vset.pattern.permute.xlu1 %v13249_v21  ;;  %v1488_v21 = vld [vmem:[%s6773_s17 + $0x122] sm:$0xff] }
  0xc4   : > { %633 = vperm.xlu1 %6396, %v6779_v2   ;;  %v6967_v34 = vpop.permute.xlu1 %331 }
  0xc5   : > { %13308 = vst [vmem:[#allocation6_spill] sm:$0xff] %v6967_v34  ;;  %637 = vperm.xlu2 %6395, %v6791_v5   ;;  %v6970_v36 = vpop.permute.xlu0 %326  ;;  %v7514_v34 = vld [vmem:[%s6773_s17 + $0x170] sm:$0xff] }
  0xc6   : > { %13309 = vst [vmem:[#allocation7_spill] sm:$0xff] %v6970_v36  ;;  %v6972_v38 = vpop.permute.xlu2 %443  ;;  %v7333_v36 = vld [vmem:[%s6773_s17 + $0xaa] sm:$0xff] }
  0xcb   : > { %1545 = vperm.xlu0 %6390, %v1473_v3  }
  0xcc   : > { %641 = vperm.xlu1 %6396, %v6776_v1   ;;  %v6976_v40 = vpop.permute.xlu1 %346 }
  0xcd   : > { %13310 = vst [vmem:[#allocation8_spill] sm:$0xff] %v6976_v40  ;;  %645 = vperm.xlu2 %6395, %v6788_v4   ;;  %v6979_v44 = vpop.permute.xlu0 %341 }
  0xce   : > { %13311 = vst [vmem:[#allocation9_spill] sm:$0xff] %v6979_v44  ;;  %v6981_v2 = vpop.permute.xlu2 %451 }
  0xcf   : > { %13312 = vst [vmem:[#allocation10_spill] sm:$0xff] %v6981_v2 }
  0xd3   : > { %1560 = vperm.xlu0 %6390, %v1476_v48   ;;  %v1485_v48 = vld [vmem:[%s6773_s17 + $0xfa] sm:$0xff] }
  0xd4   : > { %653 = vperm.xlu1 %6396, %v6800_v8   ;;  %v6985_v52 = vpop.permute.xlu1 %361 }
  0xd5   : > { %13313 = vst [vmem:[#allocation11_spill] sm:$0xff] %v6985_v52  ;;  %657 = vperm.xlu2 %6395, %v6797_v7   ;;  %v6988_v56 = vpop.permute.xlu0 %356 }
  0xd6   : > { %13314 = vst [vmem:[#allocation12_spill] sm:$0xff] %v6988_v56  ;;  %v6990_v1 = vpop.permute.xlu2 %463 }
  0xd7   : > { %13315 = vst [vmem:[#allocation13_spill] sm:$0xff] %v6990_v1  ;;  %v7344_v1 = vld [vmem:[%s6773_s17 + $0xca] sm:$0xff] }
  0xdb   : > { %1575 = vperm.xlu0 %6390, %v1479_v60  }
  0xdc   : > { %665 = vperm.xlu1 %6396, %v6809_v11  }
  0xdd   : > { %669 = vperm.xlu2 %6395, %v6806_v10   ;;  %v6995_v4 = vpop.permute.xlu0 %858  ;;  %v6997_v6 = vpop.permute.xlu1 %439 }
  0xde   : > { %13316 = vst [vmem:[#allocation14_spill] sm:$0xff] %v6995_v4  ;;  %v6999_v8 = vpop.permute.xlu2 %475 }
  0xdf   : > { %13317 = vst [vmem:[#allocation15_spill] sm:$0xff] %v6997_v6  ;;  %v7321_v6 = vld [vmem:[%s6773_s17 + $0x82] sm:$0xff] }
  0xe0   : > { %13318 = vst [vmem:[#allocation16_spill] sm:$0xff] %v6999_v8 }
  0xe3   : > { %1590 = vperm.xlu0 %6390, %v1482_v18  }
  0xe4   : > { %677 = vperm.xlu1 %6396, %v6818_v14  }
  0xe5   : > { %681 = vperm.xlu2 %6395, %v6815_v13   ;;  %v7004_v32 = vpop.permute.xlu0 %883  ;;  %v7006_v3 = vpop.permute.xlu1 %447 }
  0xe6   : > { %13319 = vst [vmem:[#allocation17_spill] sm:$0xff] %v7004_v32  ;;  %v7008_v11 = vpop.permute.xlu2 %487 }
  0xe7   : > { %13320 = vst [vmem:[#allocation18_spill] sm:$0xff] %v7006_v3  ;;  %v7220_v3 = vld [vmem:[%s6773_s17 + $0x171] sm:$0xff] }
  0xe8   : > { %13321 = vst [vmem:[#allocation19_spill] sm:$0xff] %v7008_v11 }
  0xeb   : > { %1605 = vperm.xlu0 %6390, %v1485_v48  }
  0xec   : > { %689 = vperm.xlu1 %6396, %v6827_v17  }
  0xed   : > { %693 = vperm.xlu2 %6395, %v6824_v16   ;;  %v7013_v60 = vpop.permute.xlu0 %898  ;;  %v7015_v18 = vpop.permute.xlu1 %459 }
  0xee   : > { %13322 = vst [vmem:[#allocation20_spill] sm:$0xff] %v7013_v60  ;;  %v7017_v14 = vpop.permute.xlu2 %499 }
  0xef   : > { %13323 = vst [vmem:[#allocation21_spill] sm:$0xff] %v7015_v18 }
  0xf0   : > { %13324 = vst [vmem:[#allocation22_spill] sm:$0xff] %v7017_v14 }
  0xf3   : > { %1620 = vperm.xlu0 %6390, %v1488_v21   ;;  %v1494_v21 = vld [vmem:[%s6773_s17 + $0x16a] sm:$0xff] }
  0xf4   : > { %701 = vperm.xlu1 %6396, %v6836_v20  }
  0xf5   : > { %705 = vperm.xlu2 %6395, %v6833_v19   ;;  %v7022_v33 = vpop.permute.xlu0 %913  ;;  %v7024_v48 = vpop.permute.xlu1 %471 }
  0xf6   : > { %13325 = vst [vmem:[#allocation23_spill] sm:$0xff] %v7022_v33  ;;  %v7026_v17 = vpop.permute.xlu2 %511 }
  0xf7   : > { %13326 = vst [vmem:[#allocation24_spill] sm:$0xff] %v7024_v48 }
  0xf8   : > { %13327 = vst [vmem:[#allocation25_spill] sm:$0xff] %v7026_v17 }
  0xfb   : > { %1635 = vperm.xlu0 %6390, %v1491_v0  }
  0xfc   : > { %713 = vperm.xlu1 %6396, %v6845_v23  }
  0xfd   : > { %717 = vperm.xlu2 %6395, %v6842_v22   ;;  %v7031_v60 = vpop.permute.xlu0 %928  ;;  %v7033_v32 = vpop.permute.xlu1 %483 }
  0xfe   : > { %13328 = vst [vmem:[#allocation26_spill] sm:$0xff] %v7031_v60  ;;  %v7035_v20 = vpop.permute.xlu2 %523 }
  0xff   : > { %13329 = vst [vmem:[#allocation27_spill] sm:$0xff] %v7033_v32  ;;  %v7130_v32 = vld [vmem:[%s6773_s17 + $0x99] sm:$0xff] }
 0x100   : > { %13330 = vst [vmem:[#allocation28_spill] sm:$0xff] %v7035_v20  ;;  %v7115_v20 = vld [vmem:[%s6773_s17 + $0x79] sm:$0xff] }
 0x103   : > { %1650 = vperm.xlu0 %6390, %v1494_v21  }
 0x104   : > { %725 = vperm.xlu1 %6396, %v6854_v26  }
 0x105   : > { %729 = vperm.xlu2 %6395, %v6851_v25   ;;  %v7040_v33 = vpop.permute.xlu0 %943  ;;  %v7042_v0 = vpop.permute.xlu1 %495 }
 0x106   : > { %13331 = vst [vmem:[#allocation29_spill] sm:$0xff] %v7040_v33  ;;  %v7044_v23 = vpop.permute.xlu2 %535  ;;  %v7057_v33 = vld [vmem:[%s6773_s17 + $0x1] sm:$0xff] }
 0x107   : > { %13332 = vst [vmem:[#allocation30_spill] sm:$0xff] %v7042_v0  ;;  %v7100_v0 = vld [vmem:[%s6773_s17 + $0x51] sm:$0xff] }
 0x108   : > { %13333 = vst [vmem:[#allocation31_spill] sm:$0xff] %v7044_v23  ;;  %v13337_v23 = vmov 0  }
 0x10b   : > { %2153 = vperm.xlu0 %6390, %v6791_v5  }
 0x10c   : > { %737 = vperm.xlu1 %6396, %v6863_v29  }
 0x10d   : > { %741 = vperm.xlu2 %6395, %v6860_v28   ;;  %v7049_v60 = vpop.permute.xlu0 %958  ;;  %v7051_v21 = vpop.permute.xlu1 %507 }
 0x10e   : > { %13334 = vst [vmem:[#allocation32_spill] sm:$0xff] %v7049_v60  ;;  %v7053_v26 = vpop.permute.xlu2 %547 }
 0x10f   : > { %13335 = vst [vmem:[#allocation33_spill] sm:$0xff] %v7051_v21  ;;  %v7069_v21 = vld [vmem:[%s6773_s17 + $0x19] sm:$0xff] }
 0x110   : > { %13336 = vst [vmem:[#allocation34_spill] sm:$0xff] %v7053_v26 }
 0x113   : > { %2178 = vperm.xlu0 %6390, %v6797_v7   ;;  %v7073_v7 = vld [vmem:[%s6773_s17 + $0x21] sm:$0xff] }
 0x114   : > { %749 = vperm.xlu1 %6396, %v6869_v31  }
 0x115   : > { %6397 = vset.pattern.permute.xlu2 %v13337_v23  ;;  %v7061_v5 = vpop.permute.xlu0 %973  ;;  %v7063_v29 = vpop.permute.xlu1 %519 }
 0x116   : > { %13338 = vst [vmem:[#allocation35_spill] sm:$0xff] %v7061_v5  ;;  %853 = vperm.xlu2 %6397, %v7057_v33  }
 0x117   : > { %13339 = vst [vmem:[#allocation36_spill] sm:$0xff] %v7063_v29  ;;  %v7066_v60 = vpop.permute.xlu2 %625 }
 0x118   : > { %13340 = vst [vmem:[#allocation37_spill] sm:$0xff] %v7066_v60  ;;  %v7085_v60 = vld [vmem:[%s6773_s17 + $0x31] sm:$0xff] }
 0x11b   : > { %2193 = vperm.xlu0 %6390, %v6806_v10   ;;  %v7089_v10 = vld [vmem:[%s6773_s17 + $0x39] sm:$0xff] }
 0x11c   : > { %6398 = vset.pattern.permute.xlu1 %v13337_v23 }
 0x11d   : > { %v7076_v31 = vpop.permute.xlu0 %988  ;;  %863 = vperm.xlu1 %6398, %v7069_v21   ;;  %v7079_v5 = vpop.permute.xlu1 %531 }
 0x11e   : > { %13341 = vst [vmem:[#allocation38_spill] sm:$0xff] %v7076_v31  ;;  %868 = vperm.xlu2 %6397, %v7073_v7  }
 0x11f   : > { %13342 = vst [vmem:[#allocation39_spill] sm:$0xff] %v7079_v5  ;;  %v7082_v29 = vpop.permute.xlu2 %637 }
 0x120   : > { %13343 = vst [vmem:[#allocation40_spill] sm:$0xff] %v7082_v29  ;;  %v7104_v29 = vld [vmem:[%s6773_s17 + $0x61] sm:$0xff] }
 0x123   : > { %2208 = vperm.xlu0 %6390, %v6815_v13  }
 0x125   : > { %v7091_v26 = vpop.permute.xlu0 %1003  ;;  %873 = vperm.xlu1 %6398, %v7085_v60   ;;  %v7094_v31 = vpop.permute.xlu1 %543 }
 0x126   : > { %13344 = vst [vmem:[#allocation41_spill] sm:$0xff] %v7091_v26  ;;  %878 = vperm.xlu2 %6397, %v7089_v10  }
 0x127   : > { %13345 = vst [vmem:[#allocation42_spill] sm:$0xff] %v7094_v31  ;;  %v7097_v5 = vpop.permute.xlu2 %645 }
 0x128   : > { %13346 = vst [vmem:[#allocation43_spill] sm:$0xff] %v7097_v5  ;;  %v7119_v5 = vld [vmem:[%s6773_s17 + $0x81] sm:$0xff] }
 0x12b   : > { %2223 = vperm.xlu0 %6390, %v6824_v16  }
 0x12d   : > { %v7106_v13 = vpop.permute.xlu0 %1505  ;;  %888 = vperm.xlu1 %6398, %v7100_v0   ;;  %v7109_v26 = vpop.permute.xlu1 %555 }
 0x12e   : > { %13347 = vst [vmem:[#allocation44_spill] sm:$0xff] %v7106_v13  ;;  %893 = vperm.xlu2 %6397, %v7104_v29  }
 0x12f   : > { %13348 = vst [vmem:[#allocation45_spill] sm:$0xff] %v7109_v26  ;;  %v7112_v31 = vpop.permute.xlu2 %657 }
 0x130   : > { %13349 = vst [vmem:[#allocation46_spill] sm:$0xff] %v7112_v31  ;;  %v7134_v31 = vld [vmem:[%s6773_s17 + $0xa9] sm:$0xff] }
 0x133   : > { %2238 = vperm.xlu0 %6390, %v6833_v19  }
 0x135   : > { %v7121_v16 = vpop.permute.xlu0 %1530  ;;  %903 = vperm.xlu1 %6398, %v7115_v20  }
 0x136   : > { %13350 = vst [vmem:[#allocation47_spill] sm:$0xff] %v7121_v16  ;;  %908 = vperm.xlu2 %6397, %v7119_v5   ;;  %v7125_v13 = vpop.permute.xlu1 %633 }
 0x137   : > { %13351 = vst [vmem:[#allocation48_spill] sm:$0xff] %v7125_v13  ;;  %v7127_v26 = vpop.permute.xlu2 %669  ;;  %v7145_v13 = vld [vmem:[%s6773_s17 + $0xc1] sm:$0xff] }
 0x138   : > { %13352 = vst [vmem:[#allocation49_spill] sm:$0xff] %v7127_v26 }
 0x13b   : > { %2253 = vperm.xlu0 %6390, %v6842_v22   ;;  %v7149_v22 = vld [vmem:[%s6773_s17 + $0xc9] sm:$0xff] }
 0x13d   : > { %v7136_v19 = vpop.permute.xlu0 %1545  ;;  %918 = vperm.xlu1 %6398, %v7130_v32  }
 0x13e   : > { %13353 = vst [vmem:[#allocation50_spill] sm:$0xff] %v7136_v19  ;;  %923 = vperm.xlu2 %6397, %v7134_v31   ;;  %v7140_v16 = vpop.permute.xlu1 %641 }
 0x13f   : > { %13354 = vst [vmem:[#allocation51_spill] sm:$0xff] %v7140_v16  ;;  %v7142_v17 = vpop.permute.xlu2 %681 }
 0x140   : > { %13355 = vst [vmem:[#allocation52_spill] sm:$0xff] %v7142_v17  ;;  %v7160_v17 = vld [vmem:[%s6773_s17 + $0xe1] sm:$0xff] }
 0x143   : > { %2268 = vperm.xlu0 %6390, %v6851_v25   ;;  %v7164_v25 = vld [vmem:[%s6773_s17 + $0xf1] sm:$0xff] }
 0x145   : > { %v7151_v26 = vpop.permute.xlu0 %1560  ;;  %933 = vperm.xlu1 %6398, %v7145_v13  }
 0x146   : > { %13356 = vst [vmem:[#allocation53_spill] sm:$0xff] %v7151_v26  ;;  %938 = vperm.xlu2 %6397, %v7149_v22   ;;  %v7155_v19 = vpop.permute.xlu1 %653 }
 0x147   : > { %13357 = vst [vmem:[#allocation54_spill] sm:$0xff] %v7155_v19  ;;  %v7157_v16 = vpop.permute.xlu2 %693  ;;  %v6195_v19 = vld [vmem:[%s6773_s17 + $0x180] sm:$0xff] }
 0x148   : > { %13358 = vst [vmem:[#allocation55_spill] sm:$0xff] %v7157_v16  ;;  %v7176_v16 = vld [vmem:[%s6773_s17 + $0x109] sm:$0xff] }
 0x14b   : > { %2283 = vperm.xlu0 %6390, %v6860_v28   ;;  %v7179_v28 = vld [vmem:[%s6773_s17 + $0x111] sm:$0xff] }
 0x14d   : > { %v7166_v48 = vpop.permute.xlu0 %1575  ;;  %948 = vperm.xlu1 %6398, %v7160_v17  }
 0x14e   : > { %13359 = vst [vmem:[#allocation56_spill] sm:$0xff] %v7166_v48  ;;  %953 = vperm.xlu2 %6397, %v7164_v25   ;;  %v7170_v26 = vpop.permute.xlu1 %665 }
 0x14f   : > { %13360 = vst [vmem:[#allocation57_spill] sm:$0xff] %v7170_v26  ;;  %v7172_v14 = vpop.permute.xlu2 %705  ;;  %v7190_v26 = vld [vmem:[%s6773_s17 + $0x129] sm:$0xff] }
 0x150   : > { %13361 = vst [vmem:[#allocation58_spill] sm:$0xff] %v7172_v14  ;;  %v7194_v14 = vld [vmem:[%s6773_s17 + $0x139] sm:$0xff] }
 0x153   : > { %2298 = vperm.xlu0 %6390, %v6195_v19  }
 0x155   : > { %v7181_v4 = vpop.permute.xlu0 %1590  ;;  %963 = vperm.xlu1 %6398, %v7176_v16  }
 0x156   : > { %13362 = vst [vmem:[#allocation59_spill] sm:$0xff] %v7181_v4  ;;  %968 = vperm.xlu2 %6397, %v7179_v28   ;;  %v7185_v48 = vpop.permute.xlu1 %677 }
 0x157   : > { %13363 = vst [vmem:[#allocation60_spill] sm:$0xff] %v7185_v48  ;;  %v7187_v18 = vpop.permute.xlu2 %717  ;;  %v7205_v48 = vld [vmem:[%s6773_s17 + $0x151] sm:$0xff] }
 0x158   : > { %13364 = vst [vmem:[#allocation61_spill] sm:$0xff] %v7187_v18  ;;  %v7209_v18 = vld [vmem:[%s6773_s17 + $0x159] sm:$0xff] }
 0x15b   : > { %2800 = vperm.xlu0 %6390, %v7073_v7  }
 0x15d   : > { %v7196_v19 = vpop.permute.xlu0 %1605  ;;  %978 = vperm.xlu1 %6398, %v7190_v26  }
 0x15e   : > { %13365 = vst [vmem:[#allocation62_spill] sm:$0xff] %v7196_v19  ;;  %983 = vperm.xlu2 %6397, %v7194_v14   ;;  %v7200_v4 = vpop.permute.xlu1 %689 }
 0x15f   : > { %13366 = vst [vmem:[#allocation63_spill] sm:$0xff] %v7200_v4  ;;  %v7202_v56 = vpop.permute.xlu2 %729  ;;  %v13372_v4 = vmov 1  }
 0x160   : > { %13367 = vst [vmem:[#allocation64_spill] sm:$0xff] %v7202_v56 }
 0x163   : > { %2825 = vperm.xlu0 %6390, %v7104_v29  }
 0x165   : > { %v7211_v52 = vpop.permute.xlu0 %1620  ;;  %993 = vperm.xlu1 %6398, %v7205_v48  }
 0x166   : > { %13368 = vst [vmem:[#allocation65_spill] sm:$0xff] %v7211_v52  ;;  %998 = vperm.xlu2 %6397, %v7209_v18   ;;  %v7215_v19 = vpop.permute.xlu1 %701 }
 0x167   : > { %13369 = vst [vmem:[#allocation66_spill] sm:$0xff] %v7215_v19  ;;  %v7217_v11 = vpop.permute.xlu2 %741 }
 0x168   : > { %13370 = vst [vmem:[#allocation67_spill] sm:$0xff] %v7217_v11 }
 0x16b   : > { %2840 = vperm.xlu0 %6390, %v7119_v5  }
 0x16d   : > { %v7223_v56 = vpop.permute.xlu0 %1635  ;;  %1008 = vperm.xlu1 %6398, %v7220_v3  }
 0x16e   : > { %13371 = vst [vmem:[#allocation68_spill] sm:$0xff] %v7223_v56  ;;  %6399 = vset.pattern.permute.xlu2 %v13372_v4  ;;  %v7227_v44 = vpop.permute.xlu1 %713 }
 0x16f   : > { %13373 = vst [vmem:[#allocation69_spill] sm:$0xff] %v7227_v44  ;;  %1078 = vperm.xlu2 %6399, %v7057_v33  }
 0x170   : > { %v7230_v52 = vpop.permute.xlu2 %853 }
 0x171   : > { %13374 = vst [vmem:[#allocation70_spill] sm:$0xff] %v7230_v52 }
 0x173   : > { %2855 = vperm.xlu0 %6390, %v7134_v31  }
 0x175   : > { %v7233_v19 = vpop.permute.xlu0 %1650  ;;  %6400 = vset.pattern.permute.xlu1 %v13372_v4 }
 0x176   : > { %13375 = vst [vmem:[#allocation71_spill] sm:$0xff] %v7233_v19  ;;  %1086 = vperm.xlu1 %6400, %v7069_v21   ;;  %v7237_v11 = vpop.permute.xlu1 %725 }
 0x177   : > { %13376 = vst [vmem:[#allocation72_spill] sm:$0xff] %v7237_v11  ;;  %1090 = vperm.xlu2 %6399, %v7073_v7  }
 0x178   : > { %v7240_v56 = vpop.permute.xlu2 %868 }
 0x179   : > { %13377 = vst [vmem:[#allocation73_spill] sm:$0xff] %v7240_v56 }
 0x17b   : > { %2870 = vperm.xlu0 %6390, %v7149_v22  }
 0x17d   : > { %v7243_v44 = vpop.permute.xlu0 %2153 }
 0x17e   : > { %13378 = vst [vmem:[#allocation74_spill] sm:$0xff] %v7243_v44  ;;  %1094 = vperm.xlu1 %6400, %v7085_v60   ;;  %v7246_v52 = vpop.permute.xlu1 %737 }
 0x17f   : > { %13379 = vst [vmem:[#allocation75_spill] sm:$0xff] %v7246_v52  ;;  %1098 = vperm.xlu2 %6399, %v7089_v10  }
 0x180   : > { %v7249_v19 = vpop.permute.xlu2 %878 }
 0x181   : > { %13380 = vst [vmem:[#allocation76_spill] sm:$0xff] %v7249_v19 }
 0x183   : > { %2885 = vperm.xlu0 %6390, %v7164_v25  }
 0x185   : > { %v7252_v40 = vpop.permute.xlu0 %2178 }
 0x186   : > { %13381 = vst [vmem:[#allocation77_spill] sm:$0xff] %v7252_v40  ;;  %1106 = vperm.xlu1 %6400, %v7100_v0   ;;  %v7255_v11 = vpop.permute.xlu1 %749 }
 0x187   : > { %13382 = vst [vmem:[#allocation78_spill] sm:$0xff] %v7255_v11  ;;  %1110 = vperm.xlu2 %6399, %v7104_v29  }
 0x188   : > { %v7258_v56 = vpop.permute.xlu2 %893 }
 0x189   : > { %13383 = vst [vmem:[#allocation79_spill] sm:$0xff] %v7258_v56 }
 0x18b   : > { %2900 = vperm.xlu0 %6390, %v7179_v28  }
 0x18d   : > { %v7261_v44 = vpop.permute.xlu0 %2193 }
 0x18e   : > { %13384 = vst [vmem:[#allocation80_spill] sm:$0xff] %v7261_v44  ;;  %1118 = vperm.xlu1 %6400, %v7115_v20  }
 0x18f   : > { %1122 = vperm.xlu2 %6399, %v7119_v5   ;;  %v7265_v19 = vpop.permute.xlu1 %863 }
 0x190   : > { %13385 = vst [vmem:[#allocation81_spill] sm:$0xff] %v7265_v19  ;;  %v7267_v40 = vpop.permute.xlu2 %908  ;;  %v6230_v19 = vld [vmem:[%s6773_s17 + $0x181] sm:$0xff] }
 0x191   : > { %13386 = vst [vmem:[#allocation82_spill] sm:$0xff] %v7267_v40 }
 0x193   : > { %2915 = vperm.xlu0 %6390, %v7194_v14  }
 0x195   : > { %v7270_v11 = vpop.permute.xlu0 %2208 }
 0x196   : > { %13387 = vst [vmem:[#allocation83_spill] sm:$0xff] %v7270_v11  ;;  %1130 = vperm.xlu1 %6400, %v7130_v32  }
 0x197   : > { %1134 = vperm.xlu2 %6399, %v7134_v31   ;;  %v7274_v56 = vpop.permute.xlu1 %873 }
 0x198   : > { %13388 = vst [vmem:[#allocation84_spill] sm:$0xff] %v7274_v56  ;;  %v7276_v44 = vpop.permute.xlu2 %923  ;;  %v7297_v56 = vld [vmem:[%s6773_s17 + $0x22] sm:$0xff] }
 0x199   : > { %13389 = vst [vmem:[#allocation85_spill] sm:$0xff] %v7276_v44 }
 0x19b   : > { %2930 = vperm.xlu0 %6390, %v7209_v18  }
 0x19d   : > { %v7279_v52 = vpop.permute.xlu0 %2223 }
 0x19e   : > { %13390 = vst [vmem:[#allocation86_spill] sm:$0xff] %v7279_v52  ;;  %1142 = vperm.xlu1 %6400, %v7145_v13  }
 0x19f   : > { %1146 = vperm.xlu2 %6399, %v7149_v22   ;;  %v7283_v40 = vpop.permute.xlu1 %888 }
 0x1a0   : > { %13391 = vst [vmem:[#allocation87_spill] sm:$0xff] %v7283_v40  ;;  %v7285_v11 = vpop.permute.xlu2 %938 }
 0x1a1   : > { %13392 = vst [vmem:[#allocation88_spill] sm:$0xff] %v7285_v11  ;;  %v7309_v11 = vld [vmem:[%s6773_s17 + $0x62] sm:$0xff] }
 0x1a3   : > { %2945 = vperm.xlu0 %6390, %v6230_v19  }
 0x1a5   : > { %v7288_v8 = vpop.permute.xlu0 %2238 }
 0x1a6   : > { %13393 = vst [vmem:[#allocation89_spill] sm:$0xff] %v7288_v8  ;;  %1154 = vperm.xlu1 %6400, %v7160_v17  }
 0x1a7   : > { %1158 = vperm.xlu2 %6399, %v7164_v25   ;;  %v7292_v44 = vpop.permute.xlu1 %903 }
 0x1a8   : > { %13394 = vst [vmem:[#allocation90_spill] sm:$0xff] %v7292_v44  ;;  %v7294_v52 = vpop.permute.xlu2 %953 }
 0x1a9   : > { %13395 = vst [vmem:[#allocation91_spill] sm:$0xff] %v7294_v52 }
 0x1ab   : > { %3447 = vperm.xlu0 %6390, %v7297_v56  }
 0x1ad   : > { %v7300_v40 = vpop.permute.xlu0 %2253 }
 0x1ae   : > { %13396 = vst [vmem:[#allocation92_spill] sm:$0xff] %v7300_v40  ;;  %1166 = vperm.xlu1 %6400, %v7176_v16  }
 0x1af   : > { %1170 = vperm.xlu2 %6399, %v7179_v28   ;;  %v7304_v19 = vpop.permute.xlu1 %918 }
 0x1b0   : > { %13397 = vst [vmem:[#allocation93_spill] sm:$0xff] %v7304_v19  ;;  %v7306_v8 = vpop.permute.xlu2 %968 }
 0x1b1   : > { %13398 = vst [vmem:[#allocation94_spill] sm:$0xff] %v7306_v8 }
 0x1b3   : > { %3472 = vperm.xlu0 %6390, %v7309_v11  }
 0x1b5   : > { %v7312_v52 = vpop.permute.xlu0 %2268 }
 0x1b6   : > { %13399 = vst [vmem:[#allocation95_spill] sm:$0xff] %v7312_v52  ;;  %1178 = vperm.xlu1 %6400, %v7190_v26  }
 0x1b7   : > { %1182 = vperm.xlu2 %6399, %v7194_v14   ;;  %v7316_v40 = vpop.permute.xlu1 %933 }
 0x1b8   : > { %13400 = vst [vmem:[#allocation96_spill] sm:$0xff] %v7316_v40  ;;  %v7318_v44 = vpop.permute.xlu2 %983  ;;  %v13406_v40 = vmov 2  }
 0x1b9   : > { %13401 = vst [vmem:[#allocation97_spill] sm:$0xff] %v7318_v44 }
 0x1bb   : > { %3487 = vperm.xlu0 %6390, %v7321_v6  }
 0x1bd   : > { %v7324_v8 = vpop.permute.xlu0 %2283 }
 0x1be   : > { %13402 = vst [vmem:[#allocation98_spill] sm:$0xff] %v7324_v8  ;;  %1190 = vperm.xlu1 %6400, %v7205_v48  }
 0x1bf   : > { %1194 = vperm.xlu2 %6399, %v7209_v18   ;;  %v7328_v52 = vpop.permute.xlu1 %948 }
 0x1c0   : > { %13403 = vst [vmem:[#allocation99_spill] sm:$0xff] %v7328_v52  ;;  %v7330_v19 = vpop.permute.xlu2 %998 }
 0x1c1   : > { %13404 = vst [vmem:[#allocation100_spill] sm:$0xff] %v7330_v19 }
 0x1c3   : > { %3502 = vperm.xlu0 %6390, %v7333_v36  }
 0x1c5   : > { %v7336_v44 = vpop.permute.xlu0 %2298 }
 0x1c6   : > { %13405 = vst [vmem:[#allocation101_spill] sm:$0xff] %v7336_v44  ;;  %1202 = vperm.xlu1 %6400, %v7220_v3  }
 0x1c7   : > { %6401 = vset.pattern.permute.xlu2 %v13406_v40  ;;  %v7340_v8 = vpop.permute.xlu1 %963 }
 0x1c8   : > { %13407 = vst [vmem:[#allocation102_spill] sm:$0xff] %v7340_v8  ;;  %1272 = vperm.xlu2 %6401, %v7057_v33   ;;  %v7357_v8 = vld [vmem:[%s6773_s17 + $0xf2] sm:$0xff] }
 0x1c9   : > { %v7346_v52 = vpop.permute.xlu2 %1078 }
 0x1ca   : > { %13408 = vst [vmem:[#allocation103_spill] sm:$0xff] %v7346_v52 }
 0x1cb   : > { %3517 = vperm.xlu0 %6390, %v7344_v1  }
 0x1cd   : > { %v7349_v19 = vpop.permute.xlu0 %2800 }
 0x1ce   : > { %13409 = vst [vmem:[#allocation104_spill] sm:$0xff] %v7349_v19  ;;  %6402 = vset.pattern.permute.xlu1 %v13406_v40 }
 0x1cf   : > { %1280 = vperm.xlu1 %6402, %v7069_v21   ;;  %v7353_v44 = vpop.permute.xlu1 %978  ;;  %v7369_v21 = vld [vmem:[%s6773_s17 + $0x112] sm:$0xff] }
 0x1d0   : > { %13410 = vst [vmem:[#allocation105_spill] sm:$0xff] %v7353_v44  ;;  %1284 = vperm.xlu2 %6401, %v7073_v7  }
 0x1d1   : > { %v7359_v33 = vpop.permute.xlu2 %1090 }
 0x1d2   : > { %13411 = vst [vmem:[#allocation106_spill] sm:$0xff] %v7359_v33 }
 0x1d3   : > { %3532 = vperm.xlu0 %6390, %v7357_v8  }
 0x1d5   : > { %v7362_v52 = vpop.permute.xlu0 %2825 }
 0x1d6   : > { %13412 = vst [vmem:[#allocation107_spill] sm:$0xff] %v7362_v52 }
 0x1d7   : > { %1288 = vperm.xlu1 %6402, %v7085_v60   ;;  %v7365_v19 = vpop.permute.xlu1 %993  ;;  %v7381_v60 = vld [vmem:[%s6773_s17 + $0x13a] sm:$0xff] }
 0x1d8   : > { %13413 = vst [vmem:[#allocation108_spill] sm:$0xff] %v7365_v19  ;;  %1292 = vperm.xlu2 %6401, %v7089_v10  }
 0x1d9   : > { %v7371_v44 = vpop.permute.xlu2 %1098 }
 0x1da   : > { %13414 = vst [vmem:[#allocation109_spill] sm:$0xff] %v7371_v44 }
 0x1db   : > { %3547 = vperm.xlu0 %6390, %v7369_v21  }
 0x1dd   : > { %v7374_v7 = vpop.permute.xlu0 %2840 }
 0x1de   : > { %13415 = vst [vmem:[#allocation110_spill] sm:$0xff] %v7374_v7 }
 0x1df   : > { %1300 = vperm.xlu1 %6402, %v7100_v0   ;;  %v7377_v33 = vpop.permute.xlu1 %1008  ;;  %v7393_v0 = vld [vmem:[%s6773_s17 + $0x15a] sm:$0xff] }
 0x1e0   : > { %13416 = vst [vmem:[#allocation111_spill] sm:$0xff] %v7377_v33  ;;  %1304 = vperm.xlu2 %6401, %v7104_v29  }
 0x1e1   : > { %v7383_v52 = vpop.permute.xlu2 %1110 }
 0x1e2   : > { %13417 = vst [vmem:[#allocation112_spill] sm:$0xff] %v7383_v52  ;;  %v6265_v52 = vld [vmem:[%s6773_s17 + $0x182] sm:$0xff] }
 0x1e3   : > { %3562 = vperm.xlu0 %6390, %v7381_v60  }
 0x1e5   : > { %v7386_v19 = vpop.permute.xlu0 %2855 }
 0x1e6   : > { %13418 = vst [vmem:[#allocation113_spill] sm:$0xff] %v7386_v19 }
 0x1e7   : > { %1312 = vperm.xlu1 %6402, %v7115_v20  }
 0x1e8   : > { %1316 = vperm.xlu2 %6401, %v7119_v5   ;;  %v7390_v7 = vpop.permute.xlu1 %1086 }
 0x1e9   : > { %13419 = vst [vmem:[#allocation114_spill] sm:$0xff] %v7390_v7  ;;  %v7395_v33 = vpop.permute.xlu2 %1122 }
 0x1ea   : > { %13420 = vst [vmem:[#allocation115_spill] sm:$0xff] %v7395_v33 }
 0x1eb   : > { %3577 = vperm.xlu0 %6390, %v7393_v0  }
 0x1ed   : > { %v7398_v29 = vpop.permute.xlu0 %2870 }
 0x1ee   : > { %13421 = vst [vmem:[#allocation116_spill] sm:$0xff] %v7398_v29  ;;  %v7414_v29 = vld [vmem:[%s6773_s17 + $0x38] sm:$0xff] }
 0x1ef   : > { %1324 = vperm.xlu1 %6402, %v7130_v32  }
 0x1f0   : > { %1328 = vperm.xlu2 %6401, %v7134_v31   ;;  %v7402_v19 = vpop.permute.xlu1 %1094 }
 0x1f1   : > { %13422 = vst [vmem:[#allocation117_spill] sm:$0xff] %v7402_v19  ;;  %v7405_v5 = vpop.permute.xlu2 %1134 }
 0x1f2   : > { %13423 = vst [vmem:[#allocation118_spill] sm:$0xff] %v7405_v5 }
 0x1f3   : > { %3592 = vperm.xlu0 %6390, %v6265_v52  }
 0x1f5   : > { %v7407_v7 = vpop.permute.xlu0 %2885 }
 0x1f6   : > { %13424 = vst [vmem:[#allocation119_spill] sm:$0xff] %v7407_v7  ;;  %v6276_v7 = vld [vmem:[%s6773_s17 + $0x78] sm:$0xff] }
 0x1f7   : > { %1336 = vperm.xlu1 %6402, %v7145_v13  }
 0x1f8   : > { %1340 = vperm.xlu2 %6401, %v7149_v22   ;;  %v7411_v33 = vpop.permute.xlu1 %1106 }
 0x1f9   : > { %13425 = vst [vmem:[#allocation120_spill] sm:$0xff] %v7411_v33  ;;  %v7416_v44 = vpop.permute.xlu2 %1146 }
 0x1fa   : > { %13426 = vst [vmem:[#allocation121_spill] sm:$0xff] %v7416_v44 }
 0x1fb   : > { %4095 = vperm.xlu0 %6390, %v7414_v29  }
 0x1fd   : > { %v7419_v31 = vpop.permute.xlu0 %2900 }
 0x1fe   : > { %13427 = vst [vmem:[#allocation122_spill] sm:$0xff] %v7419_v31  ;;  %v6279_v31 = vld [vmem:[%s6773_s17 + $0x98] sm:$0xff] }
 0x1ff   : > { %1348 = vperm.xlu1 %6402, %v7160_v17  }
 0x200   : > { %1352 = vperm.xlu2 %6401, %v7164_v25   ;;  %v7423_v52 = vpop.permute.xlu1 %1118 }
 0x201   : > { %13428 = vst [vmem:[#allocation123_spill] sm:$0xff] %v7423_v52  ;;  %v7426_v22 = vpop.permute.xlu2 %1158 }
 0x202   : > { %13429 = vst [vmem:[#allocation124_spill] sm:$0xff] %v7426_v22 }
 0x203   : > { %4120 = vperm.xlu0 %6390, %v6276_v7  }
 0x205   : > { %v7428_v33 = vpop.permute.xlu0 %2915 }
 0x206   : > { %13430 = vst [vmem:[#allocation125_spill] sm:$0xff] %v7428_v33  ;;  %v6282_v33 = vld [vmem:[%s6773_s17 + $0xc0] sm:$0xff] }
 0x207   : > { %1360 = vperm.xlu1 %6402, %v7176_v16  }
 0x208   : > { %1364 = vperm.xlu2 %6401, %v7179_v28   ;;  %v7432_v44 = vpop.permute.xlu1 %1130 }
 0x209   : > { %13431 = vst [vmem:[#allocation126_spill] sm:$0xff] %v7432_v44  ;;  %v7435_v5 = vpop.permute.xlu2 %1170 }
 0x20a   : > { %13432 = vst [vmem:[#allocation127_spill] sm:$0xff] %v7435_v5 }
 0x20b   : > { %4135 = vperm.xlu0 %6390, %v6279_v31  }
 0x20d   : > { %v7437_v25 = vpop.permute.xlu0 %2930 }
 0x20e   : > { %13433 = vst [vmem:[#allocation128_spill] sm:$0xff] %v7437_v25  ;;  %v6285_v25 = vld [vmem:[%s6773_s17 + $0xe0] sm:$0xff] }
 0x20f   : > { %1372 = vperm.xlu1 %6402, %v7190_v26  }
 0x210   : > { %1376 = vperm.xlu2 %6401, %v7194_v14   ;;  %v7441_v7 = vpop.permute.xlu1 %1142 }
 0x211   : > { %13434 = vst [vmem:[#allocation129_spill] sm:$0xff] %v7441_v7  ;;  %v7444_v22 = vpop.permute.xlu2 %1182  ;;  %v7458_v7 = vld [vmem:[%s6773_s17 + $0x2] sm:$0xff] }
 0x212   : > { %13435 = vst [vmem:[#allocation130_spill] sm:$0xff] %v7444_v22  ;;  %v7493_v22 = vld [vmem:[%s6773_s17 + $0x3a] sm:$0xff] }
 0x213   : > { %4150 = vperm.xlu0 %6390, %v6282_v33  }
 0x215   : > { %v7446_v28 = vpop.permute.xlu0 %2945 }
 0x216   : > { %13436 = vst [vmem:[#allocation131_spill] sm:$0xff] %v7446_v28 }
 0x217   : > { %1384 = vperm.xlu1 %6402, %v7205_v48  }
 0x218   : > { %1388 = vperm.xlu2 %6401, %v7209_v18   ;;  %v7450_v31 = vpop.permute.xlu1 %1154  ;;  %v7465_v18 = vld [vmem:[%s6773_s17 + $0x108] sm:$0xff] }
 0x219   : > { %13437 = vst [vmem:[#allocation132_spill] sm:$0xff] %v7450_v31  ;;  %v7453_v5 = vpop.permute.xlu2 %1194 }
 0x21a   : > { %13438 = vst [vmem:[#allocation133_spill] sm:$0xff] %v7453_v5  ;;  %v7481_v5 = vld [vmem:[%s6773_s17 + $0x128] sm:$0xff] }
 0x21b   : > { %4165 = vperm.xlu0 %6390, %v6285_v25  }
 0x21d   : > { %v7455_v14 = vpop.permute.xlu0 %3447 }
 0x21e   : > { %13439 = vst [vmem:[#allocation134_spill] sm:$0xff] %v7455_v14  ;;  %v7474_v14 = vld [vmem:[%s6773_s17 + $0x1a] sm:$0xff] }
 0x21f   : > { %1396 = vperm.xlu1 %6402, %v7220_v3  }
 0x220   : > { %6403 = vset.pattern.permute.xlu2 %v13337_v23  ;;  %v7462_v33 = vpop.permute.xlu1 %1166 }
 0x221   : > { %13440 = vst [vmem:[#allocation135_spill] sm:$0xff] %v7462_v33  ;;  %1500 = vperm.xlu2 %6403, %v7458_v7  }
 0x222   : > { %v7468_v28 = vpop.permute.xlu2 %1272 }
 0x223   : > { %13441 = vst [vmem:[#allocation136_spill] sm:$0xff] %v7468_v28  ;;  %4180 = vperm.xlu0 %6390, %v7465_v18  }
 0x225   : > { %v7471_v25 = vpop.permute.xlu0 %3472 }
 0x226   : > { %13442 = vst [vmem:[#allocation137_spill] sm:$0xff] %v7471_v25  ;;  %v7490_v25 = vld [vmem:[%s6773_s17 + $0x32] sm:$0xff] }
 0x227   : > { %6404 = vset.pattern.permute.xlu1 %v13337_v23 }
 0x228   : > { %1510 = vperm.xlu1 %6404, %v7474_v14   ;;  %v7478_v33 = vpop.permute.xlu1 %1178 }
 0x229   : > { %13443 = vst [vmem:[#allocation138_spill] sm:$0xff] %v7478_v33  ;;  %1515 = vperm.xlu2 %6403, %v7297_v56   ;;  %v7499_v33 = vld [vmem:[%s6773_s17 + $0x150] sm:$0xff] }
 0x22a   : > { %v7484_v28 = vpop.permute.xlu2 %1284 }
 0x22b   : > { %13444 = vst [vmem:[#allocation139_spill] sm:$0xff] %v7484_v28  ;;  %4195 = vperm.xlu0 %6390, %v7481_v5  }
 0x22d   : > { %v7487_v31 = vpop.permute.xlu0 %3487 }
 0x22e   : > { %13445 = vst [vmem:[#allocation140_spill] sm:$0xff] %v7487_v31  ;;  %v7508_v31 = vld [vmem:[%s6773_s17 + $0x52] sm:$0xff] }
 0x230   : > { %1520 = vperm.xlu1 %6404, %v7490_v25   ;;  %v7496_v44 = vpop.permute.xlu1 %1190 }
 0x231   : > { %13446 = vst [vmem:[#allocation141_spill] sm:$0xff] %v7496_v44  ;;  %1525 = vperm.xlu2 %6403, %v7493_v22  }
 0x232   : > { %v7502_v52 = vpop.permute.xlu2 %1292 }
 0x233   : > { %13447 = vst [vmem:[#allocation142_spill] sm:$0xff] %v7502_v52  ;;  %4210 = vperm.xlu0 %6390, %v7499_v33  }
 0x235   : > { %v7505_v28 = vpop.permute.xlu0 %3502 }
 0x236   : > { %13448 = vst [vmem:[#allocation143_spill] sm:$0xff] %v7505_v28  ;;  %v6300_v28 = vld [vmem:[%s6773_s17 + $0x198] sm:$0xff] }
 0x238   : > { %1535 = vperm.xlu1 %6404, %v7508_v31   ;;  %v7511_v19 = vpop.permute.xlu1 %1202 }
 0x239   : > { %13449 = vst [vmem:[#allocation144_spill] sm:$0xff] %v7511_v19  ;;  %1540 = vperm.xlu2 %6403, %v7309_v11  }
 0x23a   : > { %v7517_v44 = vpop.permute.xlu2 %1304 }
 0x23b   : > { %13450 = vst [vmem:[#allocation145_spill] sm:$0xff] %v7517_v44  ;;  %4225 = vperm.xlu0 %6390, %v7514_v34   ;;  %v7535_v44 = vld [vmem:[%s6773_s17 + $0x9a] sm:$0xff] }
 0x23d   : > { %v7520_v52 = vpop.permute.xlu0 %3517 }
 0x23e   : > { %13451 = vst [vmem:[#allocation146_spill] sm:$0xff] %v7520_v52 }
 0x240   : > { %1550 = vperm.xlu1 %6404, %v7523_v27  }
 0x241   : > { %1555 = vperm.xlu2 %6403, %v7321_v6   ;;  %v7528_v2 = vpop.permute.xlu1 %1280 }
 0x242   : > { %13452 = vst [vmem:[#allocation147_spill] sm:$0xff] %v7528_v2  ;;  %v7530_v19 = vpop.permute.xlu2 %1316 }
 0x243   : > { %13453 = vst [vmem:[#allocation148_spill] sm:$0xff] %v7530_v19  ;;  %4240 = vperm.xlu0 %6390, %v6300_v28   ;;  %v7547_v19 = vld [vmem:[%s6773_s17 + $0xc2] sm:$0xff] }
 0x245   : > { %v7532_v24 = vpop.permute.xlu0 %3532 }
 0x246   : > { %13454 = vst [vmem:[#allocation149_spill] sm:$0xff] %v7532_v24 }
 0x248   : > { %1565 = vperm.xlu1 %6404, %v7535_v44  }
 0x249   : > { %1570 = vperm.xlu2 %6403, %v7333_v36   ;;  %v7539_v52 = vpop.permute.xlu1 %1288 }
 0x24a   : > { %13455 = vst [vmem:[#allocation150_spill] sm:$0xff] %v7539_v52  ;;  %v7541_v15 = vpop.permute.xlu2 %1328 }
 0x24b   : > { %13456 = vst [vmem:[#allocation151_spill] sm:$0xff] %v7541_v15  ;;  %4742 = vperm.xlu0 %6390, %v7089_v10   ;;  %v7559_v15 = vld [vmem:[%s6773_s17 + $0xe2] sm:$0xff] }
 0x24d   : > { %v7544_v2 = vpop.permute.xlu0 %3547 }
 0x24e   : > { %13457 = vst [vmem:[#allocation152_spill] sm:$0xff] %v7544_v2 }
 0x250   : > { %1580 = vperm.xlu1 %6404, %v7547_v19  }
 0x251   : > { %1585 = vperm.xlu2 %6403, %v7344_v1   ;;  %v7551_v28 = vpop.permute.xlu1 %1300 }
 0x252   : > { %13458 = vst [vmem:[#allocation153_spill] sm:$0xff] %v7551_v28  ;;  %v7553_v24 = vpop.permute.xlu2 %1340 }
 0x253   : > { %13459 = vst [vmem:[#allocation154_spill] sm:$0xff] %v7553_v24  ;;  %4767 = vperm.xlu0 %6390, %v7115_v20   ;;  %v7571_v24 = vld [vmem:[%s6773_s17 + $0x10a] sm:$0xff] }
 0x255   : > { %v7556_v52 = vpop.permute.xlu0 %3562 }
 0x256   : > { %13460 = vst [vmem:[#allocation155_spill] sm:$0xff] %v7556_v52 }
 0x258   : > { %1595 = vperm.xlu1 %6404, %v7559_v15  }
 0x259   : > { %1600 = vperm.xlu2 %6403, %v7357_v8   ;;  %v7563_v10 = vpop.permute.xlu1 %1312 }
 0x25a   : > { %13461 = vst [vmem:[#allocation156_spill] sm:$0xff] %v7563_v10  ;;  %v7565_v2 = vpop.permute.xlu2 %1352 }
 0x25b   : > { %13462 = vst [vmem:[#allocation157_spill] sm:$0xff] %v7565_v2  ;;  %4782 = vperm.xlu0 %6390, %v7130_v32   ;;  %v7583_v2 = vld [vmem:[%s6773_s17 + $0x12a] sm:$0xff] }
 0x25d   : > { %v7568_v28 = vpop.permute.xlu0 %3577 }
 0x25e   : > { %13463 = vst [vmem:[#allocation158_spill] sm:$0xff] %v7568_v28 }
 0x260   : > { %1610 = vperm.xlu1 %6404, %v7571_v24  }
 0x261   : > { %1615 = vperm.xlu2 %6403, %v7369_v21   ;;  %v7575_v20 = vpop.permute.xlu1 %1324 }
 0x262   : > { %13464 = vst [vmem:[#allocation159_spill] sm:$0xff] %v7575_v20  ;;  %v7577_v52 = vpop.permute.xlu2 %1364 }
 0x263   : > { %13465 = vst [vmem:[#allocation160_spill] sm:$0xff] %v7577_v52  ;;  %4797 = vperm.xlu0 %6390, %v7145_v13   ;;  %v7595_v52 = vld [vmem:[%s6773_s17 + $0x152] sm:$0xff] }
 0x265   : > { %v7580_v10 = vpop.permute.xlu0 %3592 }
 0x266   : > { %13466 = vst [vmem:[#allocation161_spill] sm:$0xff] %v7580_v10 }
 0x268   : > { %1625 = vperm.xlu1 %6404, %v7583_v2  }
 0x269   : > { %1630 = vperm.xlu2 %6403, %v7381_v60   ;;  %v7587_v32 = vpop.permute.xlu1 %1336 }
 0x26a   : > { %13467 = vst [vmem:[#allocation162_spill] sm:$0xff] %v7587_v32  ;;  %v7589_v28 = vpop.permute.xlu2 %1376  ;;  %v7607_v32 = vld [vmem:[%s6773_s17 + $0x172] sm:$0xff] }
 0x26b   : > { %13468 = vst [vmem:[#allocation163_spill] sm:$0xff] %v7589_v28  ;;  %4812 = vperm.xlu0 %6390, %v7160_v17  }
 0x26d   : > { %v7592_v20 = vpop.permute.xlu0 %4095 }
 0x26e   : > { %13469 = vst [vmem:[#allocation164_spill] sm:$0xff] %v7592_v20 }
 0x270   : > { %1640 = vperm.xlu1 %6404, %v7595_v52  }
 0x271   : > { %1645 = vperm.xlu2 %6403, %v7393_v0   ;;  %v7599_v13 = vpop.permute.xlu1 %1348 }
 0x272   : > { %13470 = vst [vmem:[#allocation165_spill] sm:$0xff] %v7599_v13  ;;  %v7601_v10 = vpop.permute.xlu2 %1388 }
 0x273   : > { %13471 = vst [vmem:[#allocation166_spill] sm:$0xff] %v7601_v10  ;;  %4827 = vperm.xlu0 %6390, %v7176_v16  }
 0x275   : > { %v7604_v12 = vpop.permute.xlu0 %4120 }
 0x276   : > { %13472 = vst [vmem:[#allocation167_spill] sm:$0xff] %v7604_v12 }
 0x278   : > { %1655 = vperm.xlu1 %6404, %v7607_v32  }
 0x279   : > { %6405 = vset.pattern.permute.xlu2 %v13372_v4  ;;  %v7611_v17 = vpop.permute.xlu1 %1360 }
 0x27a   : > { %13473 = vst [vmem:[#allocation168_spill] sm:$0xff] %v7611_v17  ;;  %1725 = vperm.xlu2 %6405, %v7458_v7  }
 0x27b   : > { %v7614_v20 = vpop.permute.xlu2 %1500  ;;  %4842 = vperm.xlu0 %6390, %v7190_v26  }
 0x27c   : > { %13474 = vst [vmem:[#allocation169_spill] sm:$0xff] %v7614_v20 }
 0x27d   : > { %v7617_v10 = vpop.permute.xlu0 %4135 }
 0x27e   : > { %13475 = vst [vmem:[#allocation170_spill] sm:$0xff] %v7617_v10 }
 0x280   : > { %6406 = vset.pattern.permute.xlu1 %v13372_v4 }
 0x281   : > { %1733 = vperm.xlu1 %6406, %v7474_v14   ;;  %v7621_v16 = vpop.permute.xlu1 %1372 }
 0x282   : > { %13476 = vst [vmem:[#allocation171_spill] sm:$0xff] %v7621_v16  ;;  %1737 = vperm.xlu2 %6405, %v7297_v56   ;;  %v6335_v16 = vld [vmem:[%s6773_s17 + $0x199] sm:$0xff] }
 0x283   : > { %v7624_v12 = vpop.permute.xlu2 %1515  ;;  %4857 = vperm.xlu0 %6390, %v7205_v48  }
 0x284   : > { %13477 = vst [vmem:[#allocation172_spill] sm:$0xff] %v7624_v12 }
 0x285   : > { %v7627_v17 = vpop.permute.xlu0 %4150 }
 0x286   : > { %13478 = vst [vmem:[#allocation173_spill] sm:$0xff] %v7627_v17 }
 0x289   : > { %1741 = vperm.xlu1 %6406, %v7490_v25   ;;  %v7630_v20 = vpop.permute.xlu1 %1384 }
 0x28a   : > { %13479 = vst [vmem:[#allocation174_spill] sm:$0xff] %v7630_v20  ;;  %1745 = vperm.xlu2 %6405, %v7493_v22  }
 0x28b   : > { %v7633_v26 = vpop.permute.xlu2 %1525  ;;  %4872 = vperm.xlu0 %6390, %v7220_v3  }
 0x28c   : > { %13480 = vst [vmem:[#allocation175_spill] sm:$0xff] %v7633_v26 }
 0x28d   : > { %v7636_v10 = vpop.permute.xlu0 %4165 }
 0x28e   : > { %13481 = vst [vmem:[#allocation176_spill] sm:$0xff] %v7636_v10 }
 0x291   : > { %1753 = vperm.xlu1 %6406, %v7508_v31   ;;  %v7640_v12 = vpop.permute.xlu1 %1396 }
 0x292   : > { %13482 = vst [vmem:[#allocation177_spill] sm:$0xff] %v7640_v12  ;;  %1757 = vperm.xlu2 %6405, %v7309_v11   ;;  %v6496_v12 = vld [vmem:[%s6773_s17 + $0x4a] sm:$0xff] }
 0x293   : > { %v7643_v48 = vpop.permute.xlu2 %1540  ;;  %4887 = vperm.xlu0 %6390, %v6335_v16  }
 0x294   : > { %13483 = vst [vmem:[#allocation178_spill] sm:$0xff] %v7643_v48 }
 0x295   : > { %v7645_v17 = vpop.permute.xlu0 %4180 }
 0x296   : > { %13484 = vst [vmem:[#allocation179_spill] sm:$0xff] %v7645_v17 }
 0x299   : > { %1765 = vperm.xlu1 %6406, %v7523_v27  }
 0x29a   : > { %1769 = vperm.xlu2 %6405, %v7321_v6   ;;  %v7649_v26 = vpop.permute.xlu1 %1510 }
 0x29b   : > { %13485 = vst [vmem:[#allocation180_spill] sm:$0xff] %v7649_v26  ;;  %v7651_v3 = vpop.permute.xlu2 %1555  ;;  %5389 = vperm.xlu0 %6390, %v7493_v22  }
 0x29c   : > { %13486 = vst [vmem:[#allocation181_spill] sm:$0xff] %v7651_v3 }
 0x29d   : > { %v7654_v10 = vpop.permute.xlu0 %4195 }
 0x29e   : > { %13487 = vst [vmem:[#allocation182_spill] sm:$0xff] %v7654_v10 }
 0x2a1   : > { %1777 = vperm.xlu1 %6406, %v7535_v44  }
 0x2a2   : > { %1781 = vperm.xlu2 %6405, %v7333_v36   ;;  %v7658_v48 = vpop.permute.xlu1 %1520 }
 0x2a3   : > { %13488 = vst [vmem:[#allocation183_spill] sm:$0xff] %v7658_v48  ;;  %v7660_v16 = vpop.permute.xlu2 %1570  ;;  %5414 = vperm.xlu0 %6390, %v7523_v27  }
 0x2a4   : > { %13489 = vst [vmem:[#allocation184_spill] sm:$0xff] %v7660_v16 }
 0x2a5   : > { %v7663_v17 = vpop.permute.xlu0 %4210 }
 0x2a6   : > { %13490 = vst [vmem:[#allocation185_spill] sm:$0xff] %v7663_v17 }
 0x2a9   : > { %1789 = vperm.xlu1 %6406, %v7547_v19  }
 0x2aa   : > { %1793 = vperm.xlu2 %6405, %v7344_v1   ;;  %v7667_v3 = vpop.permute.xlu1 %1535 }
 0x2ab   : > { %13491 = vst [vmem:[#allocation186_spill] sm:$0xff] %v7667_v3  ;;  %v7669_v26 = vpop.permute.xlu2 %1585  ;;  %5429 = vperm.xlu0 %6390, %v7535_v44  }
 0x2ac   : > { %13492 = vst [vmem:[#allocation187_spill] sm:$0xff] %v7669_v26 }
 0x2ad   : > { %v7672_v10 = vpop.permute.xlu0 %4225 }
 0x2ae   : > { %13493 = vst [vmem:[#allocation188_spill] sm:$0xff] %v7672_v10 }
 0x2b1   : > { %1801 = vperm.xlu1 %6406, %v7559_v15  }
 0x2b2   : > { %1805 = vperm.xlu2 %6405, %v7357_v8   ;;  %v7676_v16 = vpop.permute.xlu1 %1550 }
 0x2b3   : > { %13494 = vst [vmem:[#allocation189_spill] sm:$0xff] %v7676_v16  ;;  %v7678_v48 = vpop.permute.xlu2 %1600  ;;  %5444 = vperm.xlu0 %6390, %v7547_v19  }
 0x2b4   : > { %13495 = vst [vmem:[#allocation190_spill] sm:$0xff] %v7678_v48 }
 0x2b5   : > { %v7681_v17 = vpop.permute.xlu0 %4240 }
 0x2b6   : > { %13496 = vst [vmem:[#allocation191_spill] sm:$0xff] %v7681_v17 }
 0x2b9   : > { %1813 = vperm.xlu1 %6406, %v7571_v24  }
 0x2ba   : > { %1817 = vperm.xlu2 %6405, %v7369_v21   ;;  %v7685_v26 = vpop.permute.xlu1 %1565 }
 0x2bb   : > { %13497 = vst [vmem:[#allocation192_spill] sm:$0xff] %v7685_v26  ;;  %v7687_v3 = vpop.permute.xlu2 %1615  ;;  %5459 = vperm.xlu0 %6390, %v7559_v15  }
 0x2bc   : > { %13498 = vst [vmem:[#allocation193_spill] sm:$0xff] %v7687_v3 }
 0x2bd   : > { %v7690_v10 = vpop.permute.xlu0 %4742 }
 0x2be   : > { %13499 = vst [vmem:[#allocation194_spill] sm:$0xff] %v7690_v10 }
 0x2c1   : > { %1825 = vperm.xlu1 %6406, %v7583_v2  }
 0x2c2   : > { %1829 = vperm.xlu2 %6405, %v7381_v60   ;;  %v7694_v48 = vpop.permute.xlu1 %1580 }
 0x2c3   : > { %13500 = vst [vmem:[#allocation195_spill] sm:$0xff] %v7694_v48  ;;  %v7696_v16 = vpop.permute.xlu2 %1630  ;;  %5474 = vperm.xlu0 %6390, %v7571_v24  }
 0x2c4   : > { %13501 = vst [vmem:[#allocation196_spill] sm:$0xff] %v7696_v16 }
 0x2c5   : > { %v7699_v17 = vpop.permute.xlu0 %4767 }
 0x2c6   : > { %13502 = vst [vmem:[#allocation197_spill] sm:$0xff] %v7699_v17 }
 0x2c9   : > { %1837 = vperm.xlu1 %6406, %v7595_v52  }
 0x2ca   : > { %1841 = vperm.xlu2 %6405, %v7393_v0   ;;  %v7703_v3 = vpop.permute.xlu1 %1595 }
 0x2cb   : > { %13503 = vst [vmem:[#allocation198_spill] sm:$0xff] %v7703_v3  ;;  %v7705_v26 = vpop.permute.xlu2 %1645  ;;  %5489 = vperm.xlu0 %6390, %v7583_v2  }
 0x2cc   : > { %13504 = vst [vmem:[#allocation199_spill] sm:$0xff] %v7705_v26 }
 0x2cd   : > { %v7708_v10 = vpop.permute.xlu0 %4782 }
 0x2ce   : > { %13505 = vst [vmem:[#allocation200_spill] sm:$0xff] %v7708_v10 }
 0x2d1   : > { %1849 = vperm.xlu1 %6406, %v7607_v32  }
 0x2d2   : > { %6407 = vset.pattern.permute.xlu2 %v13406_v40  ;;  %v7712_v16 = vpop.permute.xlu1 %1610 }
 0x2d3   : > { %13506 = vst [vmem:[#allocation201_spill] sm:$0xff] %v7712_v16  ;;  %1919 = vperm.xlu2 %6407, %v7458_v7   ;;  %5504 = vperm.xlu0 %6390, %v7595_v52   ;;  %v6370_v16 = vld [vmem:[%s6773_s17 + $0x19a] sm:$0xff] }
 0x2d4   : > { %v7716_v17 = vpop.permute.xlu2 %1725 }
 0x2d5   : > { %13507 = vst [vmem:[#allocation202_spill] sm:$0xff] %v7716_v17  ;;  %v7718_v3 = vpop.permute.xlu0 %4797 }
 0x2d6   : > { %13508 = vst [vmem:[#allocation203_spill] sm:$0xff] %v7718_v3 }
 0x2d9   : > { %6408 = vset.pattern.permute.xlu1 %v13406_v40 }
 0x2da   : > { %1927 = vperm.xlu1 %6408, %v7474_v14   ;;  %v7722_v26 = vpop.permute.xlu1 %1625 }
 0x2db   : > { %13509 = vst [vmem:[#allocation204_spill] sm:$0xff] %v7722_v26  ;;  %1931 = vperm.xlu2 %6407, %v7297_v56   ;;  %5519 = vperm.xlu0 %6390, %v7607_v32  }
 0x2dc   : > { %v7726_v10 = vpop.permute.xlu2 %1737 }
 0x2dd   : > { %13510 = vst [vmem:[#allocation205_spill] sm:$0xff] %v7726_v10  ;;  %v7728_v7 = vpop.permute.xlu0 %4812 }
 0x2de   : > { %13511 = vst [vmem:[#allocation206_spill] sm:$0xff] %v7728_v7  ;;  %v6475_v7 = vld [vmem:[%s6773_s17 + $0x8] sm:$0xff] }
 0x2e2   : > { %1935 = vperm.xlu1 %6408, %v7490_v25   ;;  %v7732_v17 = vpop.permute.xlu1 %1640 }
 0x2e3   : > { %13512 = vst [vmem:[#allocation207_spill] sm:$0xff] %v7732_v17  ;;  %1939 = vperm.xlu2 %6407, %v7493_v22   ;;  %5534 = vperm.xlu0 %6390, %v6370_v16  }
 0x2e4   : > { %v7735_v14 = vpop.permute.xlu2 %1745 }
 0x2e5   : > { %13513 = vst [vmem:[#allocation208_spill] sm:$0xff] %v7735_v14  ;;  %v7737_v3 = vpop.permute.xlu0 %4827 }
 0x2e6   : > { %13514 = vst [vmem:[#allocation209_spill] sm:$0xff] %v7737_v3  ;;  %v6476_v3 = vld [vmem:[%s6773_s17 + $0x48] sm:$0xff] }
 0x2ea   : > { %1947 = vperm.xlu1 %6408, %v7508_v31   ;;  %v7740_v56 = vpop.permute.xlu1 %1655 }
 0x2eb   : > { %13515 = vst [vmem:[#allocation210_spill] sm:$0xff] %v7740_v56  ;;  %1951 = vperm.xlu2 %6407, %v7309_v11   ;;  %6441 = vset.pattern.permute.xlu0 %v13372_v4 }
 0x2ec   : > { %v7744_v25 = vpop.permute.xlu2 %1757  ;;  %435 = vperm.xlu0 %6441, %v6475_v7  }
 0x2ed   : > { %13516 = vst [vmem:[#allocation211_spill] sm:$0xff] %v7744_v25  ;;  %v7747_v22 = vpop.permute.xlu0 %4842 }
 0x2ee   : > { %13517 = vst [vmem:[#allocation212_spill] sm:$0xff] %v7747_v22 }
 0x2f2   : > { %1959 = vperm.xlu1 %6408, %v7523_v27   ;;  %v6477_v27 = vld [vmem:[%s6773_s17 + $0x68] sm:$0xff] }
 0x2f3   : > { %1963 = vperm.xlu2 %6407, %v7321_v6   ;;  %v7751_v16 = vpop.permute.xlu1 %1733 }
 0x2f4   : > { %13518 = vst [vmem:[#allocation213_spill] sm:$0xff] %v7751_v16  ;;  %v7753_v31 = vpop.permute.xlu2 %1769  ;;  %455 = vperm.xlu0 %6441, %v6476_v3  }
 0x2f5   : > { %13519 = vst [vmem:[#allocation214_spill] sm:$0xff] %v7753_v31  ;;  %v7756_v11 = vpop.permute.xlu0 %4857 }
 0x2f6   : > { %13520 = vst [vmem:[#allocation215_spill] sm:$0xff] %v7756_v11 }
 0x2fa   : > { %1971 = vperm.xlu1 %6408, %v7535_v44   ;;  %v6478_v44 = vld [vmem:[%s6773_s17 + $0x90] sm:$0xff] }
 0x2fb   : > { %1975 = vperm.xlu2 %6407, %v7333_v36   ;;  %v7760_v7 = vpop.permute.xlu1 %1741 }
 0x2fc   : > { %13521 = vst [vmem:[#allocation216_spill] sm:$0xff] %v7760_v7  ;;  %v7762_v22 = vpop.permute.xlu2 %1781  ;;  %467 = vperm.xlu0 %6441, %v6477_v27  }
 0x2fd   : > { %13522 = vst [vmem:[#allocation217_spill] sm:$0xff] %v7762_v22  ;;  %v7765_v6 = vpop.permute.xlu0 %4872 }
 0x2fe   : > { %13523 = vst [vmem:[#allocation218_spill] sm:$0xff] %v7765_v6 }
 0x302   : > { %1983 = vperm.xlu1 %6408, %v7547_v19   ;;  %v6479_v19 = vld [vmem:[%s6773_s17 + $0xb0] sm:$0xff] }
 0x303   : > { %1987 = vperm.xlu2 %6407, %v7344_v1   ;;  %v7769_v3 = vpop.permute.xlu1 %1753 }
 0x304   : > { %13524 = vst [vmem:[#allocation219_spill] sm:$0xff] %v7769_v3  ;;  %v7771_v11 = vpop.permute.xlu2 %1793  ;;  %479 = vperm.xlu0 %6441, %v6478_v44   ;;  %v6489_v3 = vld [vmem:[%s6773_s17 + $0xb1] sm:$0xff] }
 0x305   : > { %13525 = vst [vmem:[#allocation220_spill] sm:$0xff] %v7771_v11  ;;  %v7774_v36 = vpop.permute.xlu0 %4887 }
 0x306   : > { %13526 = vst [vmem:[#allocation221_spill] sm:$0xff] %v7774_v36 }
 0x30a   : > { %1995 = vperm.xlu1 %6408, %v7559_v15   ;;  %v6480_v15 = vld [vmem:[%s6773_s17 + $0xd8] sm:$0xff] }
 0x30b   : > { %1999 = vperm.xlu2 %6407, %v7357_v8   ;;  %v7778_v27 = vpop.permute.xlu1 %1765 }
 0x30c   : > { %13527 = vst [vmem:[#allocation222_spill] sm:$0xff] %v7778_v27  ;;  %v7780_v6 = vpop.permute.xlu2 %1805  ;;  %491 = vperm.xlu0 %6441, %v6479_v19   ;;  %v6488_v27 = vld [vmem:[%s6773_s17 + $0x91] sm:$0xff] }
 0x30d   : > { %13528 = vst [vmem:[#allocation223_spill] sm:$0xff] %v7780_v6  ;;  %v7783_v1 = vpop.permute.xlu0 %5389  ;;  %v7887_v6 = vld [vmem:[%s6773_s17 + $0xc0] sm:$0xff] }
 0x30e   : > { %13529 = vst [vmem:[#allocation224_spill] sm:$0xff] %v7783_v1 }
 0x312   : > { %2007 = vperm.xlu1 %6408, %v7571_v24   ;;  %v6481_v24 = vld [vmem:[%s6773_s17 + $0xf8] sm:$0xff] }
 0x313   : > { %2011 = vperm.xlu2 %6407, %v7369_v21   ;;  %v7787_v44 = vpop.permute.xlu1 %1777 }
 0x314   : > { %13530 = vst [vmem:[#allocation225_spill] sm:$0xff] %v7787_v44  ;;  %v7789_v36 = vpop.permute.xlu2 %1817  ;;  %503 = vperm.xlu0 %6441, %v6480_v15  }
 0x315   : > { %13531 = vst [vmem:[#allocation226_spill] sm:$0xff] %v7789_v36  ;;  %v7792_v8 = vpop.permute.xlu0 %5414  ;;  %v7872_v36 = vld [vmem:[%s6773_s17 + $0x98] sm:$0xff] }
 0x316   : > { %13532 = vst [vmem:[#allocation227_spill] sm:$0xff] %v7792_v8 }
 0x31a   : > { %2019 = vperm.xlu1 %6408, %v7583_v2   ;;  %v6482_v2 = vld [vmem:[%s6773_s17 + $0x120] sm:$0xff] }
 0x31b   : > { %2023 = vperm.xlu2 %6407, %v7381_v60   ;;  %v7796_v19 = vpop.permute.xlu1 %1789 }
 0x31c   : > { %13533 = vst [vmem:[#allocation228_spill] sm:$0xff] %v7796_v19  ;;  %v7798_v1 = vpop.permute.xlu2 %1829  ;;  %515 = vperm.xlu0 %6441, %v6481_v24  }
 0x31d   : > { %13534 = vst [vmem:[#allocation229_spill] sm:$0xff] %v7798_v1  ;;  %v7801_v21 = vpop.permute.xlu0 %5429  ;;  %v7813_v1 = vld [vmem:[%s6773_s17 + $0x18] sm:$0xff] }
 0x31e   : > { %13535 = vst [vmem:[#allocation230_spill] sm:$0xff] %v7801_v21  ;;  %v6484_v21 = vld [vmem:[%s6773_s17 + $0x168] sm:$0xff] }
 0x322   : > { %2031 = vperm.xlu1 %6408, %v7595_v52  }
 0x323   : > { %2035 = vperm.xlu2 %6407, %v7393_v0   ;;  %v7805_v15 = vpop.permute.xlu1 %1801  ;;  %v6483_v0 = vld [vmem:[%s6773_s17 + $0x140] sm:$0xff] }
 0x324   : > { %13536 = vst [vmem:[#allocation231_spill] sm:$0xff] %v7805_v15  ;;  %v7807_v8 = vpop.permute.xlu2 %1841  ;;  %527 = vperm.xlu0 %6441, %v6482_v2   ;;  %v7857_v15 = vld [vmem:[%s6773_s17 + $0x78] sm:$0xff] }
 0x325   : > { %13537 = vst [vmem:[#allocation232_spill] sm:$0xff] %v7807_v8  ;;  %v7810_v60 = vpop.permute.xlu0 %5444 }
 0x326   : > { %13538 = vst [vmem:[#allocation233_spill] sm:$0xff] %v7810_v60  ;;  %v7826_v60 = vld [vmem:[%s6773_s17 + $0x30] sm:$0xff] }
 0x32a   : > { %2043 = vperm.xlu1 %6408, %v7607_v32  }
 0x32b   : > { %6409 = vset.pattern.permute.xlu2 %v13337_v23  ;;  %v7817_v52 = vpop.permute.xlu1 %1813 }
 0x32c   : > { %13539 = vst [vmem:[#allocation234_spill] sm:$0xff] %v7817_v52  ;;  %2148 = vperm.xlu2 %6409, %v7813_v1   ;;  %539 = vperm.xlu0 %6441, %v6483_v0   ;;  %v7842_v52 = vld [vmem:[%s6773_s17 + $0x50] sm:$0xff] }
 0x32d   : > { %v7821_v24 = vpop.permute.xlu2 %1919  ;;  %v7823_v2 = vpop.permute.xlu0 %5459 }
 0x32e   : > { %13540 = vst [vmem:[#allocation235_spill] sm:$0xff] %v7821_v24 }
 0x32f   : > { %13541 = vst [vmem:[#allocation236_spill] sm:$0xff] %v7823_v2  ;;  %v7839_v2 = vld [vmem:[%s6773_s17 + $0x48] sm:$0xff] }
 0x332   : > { %6410 = vset.pattern.permute.xlu1 %v13337_v23 }
 0x333   : > { %2158 = vperm.xlu1 %6410, %v7826_v60   ;;  %v7830_v32 = vpop.permute.xlu1 %1825 }
 0x334   : > { %13542 = vst [vmem:[#allocation237_spill] sm:$0xff] %v7830_v32  ;;  %2163 = vperm.xlu2 %6409, %v7414_v29   ;;  %551 = vperm.xlu0 %6441, %v6484_v21   ;;  %v6485_v32 = vld [vmem:[%s6773_s17 + $0x9] sm:$0xff] }
 0x335   : > { %v7834_v0 = vpop.permute.xlu2 %1931  ;;  %v7836_v24 = vpop.permute.xlu0 %5474 }
 0x336   : > { %13543 = vst [vmem:[#allocation238_spill] sm:$0xff] %v7834_v0 }
 0x337   : > { %13544 = vst [vmem:[#allocation239_spill] sm:$0xff] %v7836_v24  ;;  %v7854_v24 = vld [vmem:[%s6773_s17 + $0x68] sm:$0xff] }
 0x33b   : > { %2168 = vperm.xlu1 %6410, %v7839_v2   ;;  %v7845_v8 = vpop.permute.xlu1 %1837 }
 0x33c   : > { %13545 = vst [vmem:[#allocation240_spill] sm:$0xff] %v7845_v8  ;;  %2173 = vperm.xlu2 %6409, %v7842_v52   ;;  %1082 = vperm.xlu0 %6441, %v6485_v32   ;;  %v6486_v8 = vld [vmem:[%s6773_s17 + $0x49] sm:$0xff] }
 0x33d   : > { %v7849_v21 = vpop.permute.xlu2 %1939  ;;  %v7851_v0 = vpop.permute.xlu0 %5489 }
 0x33e   : > { %13546 = vst [vmem:[#allocation241_spill] sm:$0xff] %v7849_v21 }
 0x33f   : > { %13547 = vst [vmem:[#allocation242_spill] sm:$0xff] %v7851_v0  ;;  %v7869_v0 = vld [vmem:[%s6773_s17 + $0x90] sm:$0xff] }
 0x343   : > { %2183 = vperm.xlu1 %6410, %v7854_v24   ;;  %v7860_v19 = vpop.permute.xlu1 %1849 }
 0x344   : > { %13548 = vst [vmem:[#allocation243_spill] sm:$0xff] %v7860_v19  ;;  %2188 = vperm.xlu2 %6409, %v7857_v15   ;;  %1102 = vperm.xlu0 %6441, %v6486_v8   ;;  %v6487_v19 = vld [vmem:[%s6773_s17 + $0x69] sm:$0xff] }
 0x345   : > { %v7864_v32 = vpop.permute.xlu2 %1951  ;;  %v7866_v21 = vpop.permute.xlu0 %5504 }
 0x346   : > { %13549 = vst [vmem:[#allocation244_spill] sm:$0xff] %v7864_v32 }
 0x347   : > { %13550 = vst [vmem:[#allocation245_spill] sm:$0xff] %v7866_v21  ;;  %v7884_v21 = vld [vmem:[%s6773_s17 + $0xb0] sm:$0xff] }
 0x34b   : > { %2198 = vperm.xlu1 %6410, %v7869_v0  }
 0x34c   : > { %2203 = vperm.xlu2 %6409, %v7872_v36   ;;  %1114 = vperm.xlu0 %6441, %v6487_v19   ;;  %v7877_v44 = vpop.permute.xlu1 %1927 }
 0x34d   : > { %13551 = vst [vmem:[#allocation246_spill] sm:$0xff] %v7877_v44  ;;  %v7879_v8 = vpop.permute.xlu2 %1963  ;;  %v7881_v32 = vpop.permute.xlu0 %5519 }
 0x34e   : > { %13552 = vst [vmem:[#allocation247_spill] sm:$0xff] %v7879_v8  ;;  %v7899_v8 = vld [vmem:[%s6773_s17 + $0xd8] sm:$0xff] }
 0x34f   : > { %13553 = vst [vmem:[#allocation248_spill] sm:$0xff] %v7881_v32  ;;  %v7902_v32 = vld [vmem:[%s6773_s17 + $0xe0] sm:$0xff] }
 0x353   : > { %2213 = vperm.xlu1 %6410, %v7884_v21  }
 0x354   : > { %2218 = vperm.xlu2 %6409, %v7887_v6   ;;  %1126 = vperm.xlu0 %6441, %v6488_v27   ;;  %v7892_v19 = vpop.permute.xlu1 %1935 }
 0x355   : > { %13554 = vst [vmem:[#allocation249_spill] sm:$0xff] %v7892_v19  ;;  %v7894_v44 = vpop.permute.xlu2 %1975  ;;  %v7896_v11 = vpop.permute.xlu0 %5534 }
 0x356   : > { %13555 = vst [vmem:[#allocation250_spill] sm:$0xff] %v7894_v44  ;;  %v7914_v44 = vld [vmem:[%s6773_s17 + $0xf8] sm:$0xff] }
 0x357   : > { %13556 = vst [vmem:[#allocation251_spill] sm:$0xff] %v7896_v11  ;;  %v6490_v11 = vld [vmem:[%s6773_s17 + $0xd9] sm:$0xff] }
 0x35b   : > { %2228 = vperm.xlu1 %6410, %v7899_v8  }
 0x35c   : > { %2233 = vperm.xlu2 %6409, %v7902_v32   ;;  %1138 = vperm.xlu0 %6441, %v6489_v3   ;;  %v7907_v27 = vpop.permute.xlu1 %1947 }
 0x35d   : > { %13557 = vst [vmem:[#allocation252_spill] sm:$0xff] %v7907_v27  ;;  %v7909_v22 = vpop.permute.xlu2 %1987  ;;  %v7926_v27 = vld [vmem:[%s6773_s17 + $0x120] sm:$0xff] }
 0x35e   : > { %13558 = vst [vmem:[#allocation253_spill] sm:$0xff] %v7909_v22  ;;  %v7911_v19 = vpop.permute.xlu0 %435  ;;  %v6491_v22 = vld [vmem:[%s6773_s17 + $0xf9] sm:$0xff] }
 0x35f   : > { %13559 = vst [vmem:[#allocation254_spill] sm:$0xff] %v7911_v19 }
 0x363   : > { %2243 = vperm.xlu1 %6410, %v7914_v44  }
 0x364   : > { %2248 = vperm.xlu2 %6409, %v7465_v18   ;;  %1150 = vperm.xlu0 %6441, %v6490_v11   ;;  %v7919_v7 = vpop.permute.xlu1 %1959 }
 0x365   : > { %13560 = vst [vmem:[#allocation255_spill] sm:$0xff] %v7919_v7  ;;  %v7921_v31 = vpop.permute.xlu2 %1999  ;;  %v7938_v7 = vld [vmem:[%s6773_s17 + $0x140] sm:$0xff] }
 0x366   : > { %13561 = vst [vmem:[#allocation256_spill] sm:$0xff] %v7921_v31  ;;  %v7923_v3 = vpop.permute.xlu0 %455  ;;  %v6492_v31 = vld [vmem:[%s6773_s17 + $0x121] sm:$0xff] }
 0x36b   : > { %2258 = vperm.xlu1 %6410, %v7926_v27  }
 0x36c   : > { %2263 = vperm.xlu2 %6409, %v7481_v5   ;;  %1162 = vperm.xlu0 %6441, %v6491_v22   ;;  %v7931_v16 = vpop.permute.xlu1 %1971 }
 0x36d   : > { %13562 = vst [vmem:[#allocation257_spill] sm:$0xff] %v7931_v16  ;;  %v7933_v25 = vpop.permute.xlu2 %2011  ;;  %v7950_v16 = vld [vmem:[%s6773_s17 + $0x168] sm:$0xff] }
 0x36e   : > { %13563 = vst [vmem:[#allocation258_spill] sm:$0xff] %v7933_v25  ;;  %v7935_v11 = vpop.permute.xlu0 %467  ;;  %v6493_v25 = vld [vmem:[%s6773_s17 + $0x141] sm:$0xff] }
 0x373   : > { %2273 = vperm.xlu1 %6410, %v7938_v7  }
 0x374   : > { %2278 = vperm.xlu2 %6409, %v7499_v33   ;;  %1174 = vperm.xlu0 %6441, %v6492_v31   ;;  %v7943_v56 = vpop.permute.xlu1 %1983 }
 0x375   : > { %13564 = vst [vmem:[#allocation259_spill] sm:$0xff] %v7943_v56  ;;  %v7945_v14 = vpop.permute.xlu2 %2023  ;;  %v7962_v56 = vld [vmem:[%s6773_s17 + $0x188] sm:$0xff] }
 0x376   : > { %13565 = vst [vmem:[#allocation260_spill] sm:$0xff] %v7945_v14  ;;  %v7947_v22 = vpop.permute.xlu0 %479  ;;  %v6494_v14 = vld [vmem:[%s6773_s17 + $0x169] sm:$0xff] }
 0x37b   : > { %2288 = vperm.xlu1 %6410, %v7950_v16  }
 0x37c   : > { %2293 = vperm.xlu2 %6409, %v7514_v34   ;;  %1186 = vperm.xlu0 %6441, %v6493_v25   ;;  %v7955_v17 = vpop.permute.xlu1 %1995 }
 0x37d   : > { %13566 = vst [vmem:[#allocation261_spill] sm:$0xff] %v7955_v17  ;;  %v7957_v10 = vpop.permute.xlu2 %2035 }
 0x37e   : > { %13567 = vst [vmem:[#allocation262_spill] sm:$0xff] %v7957_v10  ;;  %v7959_v31 = vpop.permute.xlu0 %491  ;;  %v6495_v10 = vld [vmem:[%s6773_s17 + $0xa] sm:$0xff] }
 0x37f   : > { %13568 = vst [vmem:[#allocation263_spill] sm:$0xff] %v7959_v31  ;;  %v6593_v31 = vld [vmem:[%s6773_s17 + $0x142] sm:$0xff] }
 0x383   : > { %2303 = vperm.xlu1 %6410, %v7962_v56  }
 0x384   : > { %6411 = vset.pattern.permute.xlu2 %v13372_v4  ;;  %1198 = vperm.xlu0 %6441, %v6494_v14   ;;  %v7967_v26 = vpop.permute.xlu1 %2007 }
 0x385   : > { %13569 = vst [vmem:[#allocation264_spill] sm:$0xff] %v7967_v26  ;;  %2373 = vperm.xlu2 %6411, %v7813_v1  }
 0x386   : > { %v7970_v25 = vpop.permute.xlu2 %2148  ;;  %v7972_v17 = vpop.permute.xlu0 %503 }
 0x387   : > { %13570 = vst [vmem:[#allocation265_spill] sm:$0xff] %v7970_v25 }
 0x388   : > { %13571 = vst [vmem:[#allocation266_spill] sm:$0xff] %v7972_v17  ;;  %v6505_v17 = vld [vmem:[%s6773_s17 + $0x20] sm:$0xff] }
 0x38b   : > { %6412 = vset.pattern.permute.xlu1 %v13372_v4 }
 0x38c   : > { %1729 = vperm.xlu0 %6441, %v6495_v10   ;;  %2381 = vperm.xlu1 %6412, %v7826_v60   ;;  %v7977_v48 = vpop.permute.xlu1 %2019 }
 0x38d   : > { %13572 = vst [vmem:[#allocation267_spill] sm:$0xff] %v7977_v48  ;;  %2385 = vperm.xlu2 %6411, %v7414_v29   ;;  %v6497_v48 = vld [vmem:[%s6773_s17 + $0x6a] sm:$0xff] }
 0x38e   : > { %v7980_v14 = vpop.permute.xlu2 %2163  ;;  %v7982_v26 = vpop.permute.xlu0 %515 }
 0x38f   : > { %13573 = vst [vmem:[#allocation268_spill] sm:$0xff] %v7980_v14 }
 0x390   : > { %13574 = vst [vmem:[#allocation269_spill] sm:$0xff] %v7982_v26  ;;  %v6504_v26 = vld [vmem:[%s6773_s17 + $0x16a] sm:$0xff] }
 0x394   : > { %1749 = vperm.xlu0 %6441, %v6496_v12   ;;  %2389 = vperm.xlu1 %6412, %v7839_v2   ;;  %v7986_v25 = vpop.permute.xlu1 %2031 }
 0x395   : > { %13575 = vst [vmem:[#allocation270_spill] sm:$0xff] %v7986_v25  ;;  %2393 = vperm.xlu2 %6411, %v7842_v52   ;;  %v6498_v25 = vld [vmem:[%s6773_s17 + $0x92] sm:$0xff] }
 0x396   : > { %v7989_v10 = vpop.permute.xlu2 %2173  ;;  %v7991_v20 = vpop.permute.xlu0 %527 }
 0x397   : > { %13576 = vst [vmem:[#allocation271_spill] sm:$0xff] %v7989_v10 }
 0x398   : > { %13577 = vst [vmem:[#allocation272_spill] sm:$0xff] %v7991_v20  ;;  %v6503_v20 = vld [vmem:[%s6773_s17 + $0x142] sm:$0xff] }
 0x39c   : > { %1761 = vperm.xlu0 %6441, %v6497_v48   ;;  %2401 = vperm.xlu1 %6412, %v7854_v24   ;;  %v7995_v14 = vpop.permute.xlu1 %2043 }
 0x39d   : > { %13578 = vst [vmem:[#allocation273_spill] sm:$0xff] %v7995_v14  ;;  %2405 = vperm.xlu2 %6411, %v7857_v15   ;;  %v6499_v14 = vld [vmem:[%s6773_s17 + $0xb2] sm:$0xff] }
 0x39e   : > { %v7998_v12 = vpop.permute.xlu2 %2188  ;;  %v8000_v13 = vpop.permute.xlu0 %539 }
 0x39f   : > { %13579 = vst [vmem:[#allocation274_spill] sm:$0xff] %v7998_v12 }
 0x3a0   : > { %13580 = vst [vmem:[#allocation275_spill] sm:$0xff] %v8000_v13  ;;  %v6500_v13 = vld [vmem:[%s6773_s17 + $0xda] sm:$0xff] }
 0x3a4   : > { %1773 = vperm.xlu0 %6441, %v6498_v25   ;;  %2413 = vperm.xlu1 %6412, %v7869_v0  }
 0x3a5   : > { %2417 = vperm.xlu2 %6411, %v7872_v36   ;;  %v8005_v10 = vpop.permute.xlu1 %2158 }
 0x3a6   : > { %13581 = vst [vmem:[#allocation276_spill] sm:$0xff] %v8005_v10  ;;  %v8007_v48 = vpop.permute.xlu2 %2203  ;;  %v8009_v28 = vpop.permute.xlu0 %551 }
 0x3a7   : > { %13582 = vst [vmem:[#allocation277_spill] sm:$0xff] %v8007_v48 }
 0x3a8   : > { %13583 = vst [vmem:[#allocation278_spill] sm:$0xff] %v8009_v28  ;;  %v6501_v28 = vld [vmem:[%s6773_s17 + $0xfa] sm:$0xff] }
 0x3ac   : > { %1785 = vperm.xlu0 %6441, %v6499_v14   ;;  %2425 = vperm.xlu1 %6412, %v7884_v21  }
 0x3ad   : > { %2429 = vperm.xlu2 %6411, %v7887_v6   ;;  %v8014_v12 = vpop.permute.xlu1 %2168 }
 0x3ae   : > { %13584 = vst [vmem:[#allocation279_spill] sm:$0xff] %v8014_v12  ;;  %v8016_v25 = vpop.permute.xlu2 %2218  ;;  %v8018_v19 = vpop.permute.xlu0 %1082 }
 0x3af   : > { %13585 = vst [vmem:[#allocation280_spill] sm:$0xff] %v8016_v25 }
 0x3b0   : > { %13586 = vst [vmem:[#allocation281_spill] sm:$0xff] %v8018_v19  ;;  %v6502_v19 = vld [vmem:[%s6773_s17 + $0x122] sm:$0xff] }
 0x3b4   : > { %1797 = vperm.xlu0 %6441, %v6500_v13   ;;  %2437 = vperm.xlu1 %6412, %v7899_v8  }
 0x3b5   : > { %2441 = vperm.xlu2 %6411, %v7902_v32   ;;  %v8023_v48 = vpop.permute.xlu1 %2183 }
 0x3b6   : > { %13587 = vst [vmem:[#allocation282_spill] sm:$0xff] %v8023_v48  ;;  %v8025_v14 = vpop.permute.xlu2 %2233  ;;  %v8027_v10 = vpop.permute.xlu0 %1102 }
 0x3b7   : > { %13588 = vst [vmem:[#allocation283_spill] sm:$0xff] %v8025_v14 }
 0x3bc   : > { %1809 = vperm.xlu0 %6441, %v6501_v28   ;;  %2449 = vperm.xlu1 %6412, %v7914_v44  }
 0x3bd   : > { %2453 = vperm.xlu2 %6411, %v7465_v18   ;;  %v8032_v25 = vpop.permute.xlu1 %2198 }
 0x3be   : > { %13589 = vst [vmem:[#allocation284_spill] sm:$0xff] %v8032_v25  ;;  %v8034_v13 = vpop.permute.xlu2 %2248  ;;  %v8036_v12 = vpop.permute.xlu0 %1114 }
 0x3bf   : > { %13590 = vst [vmem:[#allocation285_spill] sm:$0xff] %v8034_v13 }
 0x3c0   : > { %13591 = vst [vmem:[#allocation286_spill] sm:$0xff] %v8036_v12  ;;  %v6596_v12 = vld [vmem:[%s6773_s17 + $0x60] sm:$0xff] }
 0x3c4   : > { %1821 = vperm.xlu0 %6441, %v6502_v19   ;;  %2461 = vperm.xlu1 %6412, %v7926_v27  }
 0x3c5   : > { %2465 = vperm.xlu2 %6411, %v7481_v5   ;;  %v8041_v14 = vpop.permute.xlu1 %2213 }
 0x3c6   : > { %13592 = vst [vmem:[#allocation287_spill] sm:$0xff] %v8041_v14  ;;  %v8043_v28 = vpop.permute.xlu2 %2263  ;;  %v8045_v48 = vpop.permute.xlu0 %1126 }
 0x3c7   : > { %13593 = vst [vmem:[#allocation288_spill] sm:$0xff] %v8043_v28 }
 0x3c8   : > { %13594 = vst [vmem:[#allocation289_spill] sm:$0xff] %v8045_v48 }
 0x3cc   : > { %1833 = vperm.xlu0 %6441, %v6503_v20   ;;  %2473 = vperm.xlu1 %6412, %v7938_v7  }
 0x3cd   : > { %2477 = vperm.xlu2 %6411, %v7499_v33   ;;  %v8050_v13 = vpop.permute.xlu1 %2228 }
 0x3ce   : > { %13595 = vst [vmem:[#allocation290_spill] sm:$0xff] %v8050_v13  ;;  %v8052_v19 = vpop.permute.xlu2 %2278  ;;  %v8054_v25 = vpop.permute.xlu0 %1138 }
 0x3cf   : > { %13596 = vst [vmem:[#allocation291_spill] sm:$0xff] %v8052_v19 }
 0x3d0   : > { %13597 = vst [vmem:[#allocation292_spill] sm:$0xff] %v8054_v25 }
 0x3d4   : > { %1845 = vperm.xlu0 %6441, %v6504_v26   ;;  %2485 = vperm.xlu1 %6412, %v7950_v16  }
 0x3d5   : > { %2489 = vperm.xlu2 %6411, %v7514_v34   ;;  %v8059_v28 = vpop.permute.xlu1 %2243 }
 0x3d6   : > { %13598 = vst [vmem:[#allocation293_spill] sm:$0xff] %v8059_v28  ;;  %v8061_v20 = vpop.permute.xlu2 %2293  ;;  %v8063_v14 = vpop.permute.xlu0 %1150  ;;  %v6506_v28 = vld [vmem:[%s6773_s17 + $0x60] sm:$0xff] }
 0x3d7   : > { %13599 = vst [vmem:[#allocation294_spill] sm:$0xff] %v8061_v20 }
 0x3d8   : > { %13600 = vst [vmem:[#allocation295_spill] sm:$0xff] %v8063_v14 }
 0x3dc   : > { %2377 = vperm.xlu0 %6441, %v6505_v17   ;;  %2497 = vperm.xlu1 %6412, %v7962_v56  }
 0x3dd   : > { %6413 = vset.pattern.permute.xlu2 %v13406_v40  ;;  %v8068_v19 = vpop.permute.xlu1 %2258 }
 0x3de   : > { %13601 = vst [vmem:[#allocation296_spill] sm:$0xff] %v8068_v19  ;;  %2567 = vperm.xlu2 %6413, %v7813_v1   ;;  %v8071_v26 = vpop.permute.xlu0 %1162  ;;  %v6507_v1 = vld [vmem:[%s6773_s17 + $0x80] sm:$0xff] }
 0x3df   : > { %13602 = vst [vmem:[#allocation297_spill] sm:$0xff] %v8071_v26  ;;  %v8073_v13 = vpop.permute.xlu2 %2373  ;;  %v6524_v26 = vld [vmem:[%s6773_s17 + $0x181] sm:$0xff] }
 0x3e0   : > { %13603 = vst [vmem:[#allocation298_spill] sm:$0xff] %v8073_v13 }
 0x3e4   : > { %2397 = vperm.xlu0 %6441, %v6506_v28   ;;  %6414 = vset.pattern.permute.xlu1 %v13406_v40 }
 0x3e5   : > { %2575 = vperm.xlu1 %6414, %v7826_v60   ;;  %v8078_v17 = vpop.permute.xlu1 %2273 }
 0x3e6   : > { %13604 = vst [vmem:[#allocation299_spill] sm:$0xff] %v8078_v17  ;;  %2579 = vperm.xlu2 %6413, %v7414_v29   ;;  %v8081_v20 = vpop.permute.xlu0 %1174  ;;  %v6508_v17 = vld [vmem:[%s6773_s17 + $0xa8] sm:$0xff] }
 0x3e7   : > { %13605 = vst [vmem:[#allocation300_spill] sm:$0xff] %v8081_v20  ;;  %v8083_v19 = vpop.permute.xlu2 %2385 }
 0x3e8   : > { %13606 = vst [vmem:[#allocation301_spill] sm:$0xff] %v8083_v19 }
 0x3ec   : > { %2409 = vperm.xlu0 %6441, %v6507_v1  }
 0x3ed   : > { %2583 = vperm.xlu1 %6414, %v7839_v2   ;;  %v8087_v13 = vpop.permute.xlu1 %2288 }
 0x3ee   : > { %13607 = vst [vmem:[#allocation302_spill] sm:$0xff] %v8087_v13  ;;  %2587 = vperm.xlu2 %6413, %v7842_v52   ;;  %v8090_v28 = vpop.permute.xlu0 %1186  ;;  %v6509_v13 = vld [vmem:[%s6773_s17 + $0xc8] sm:$0xff] }
 0x3ef   : > { %13608 = vst [vmem:[#allocation303_spill] sm:$0xff] %v8090_v28  ;;  %v8092_v60 = vpop.permute.xlu2 %2393 }
 0x3f0   : > { %13609 = vst [vmem:[#allocation304_spill] sm:$0xff] %v8092_v60  ;;  %v6520_v60 = vld [vmem:[%s6773_s17 + $0xf1] sm:$0xff] }
 0x3f4   : > { %2421 = vperm.xlu0 %6441, %v6508_v17  }
 0x3f5   : > { %2595 = vperm.xlu1 %6414, %v7854_v24   ;;  %v8096_v29 = vpop.permute.xlu1 %2303 }
 0x3f6   : > { %13610 = vst [vmem:[#allocation305_spill] sm:$0xff] %v8096_v29  ;;  %2599 = vperm.xlu2 %6413, %v7857_v15   ;;  %v8099_v1 = vpop.permute.xlu0 %1198  ;;  %v6510_v29 = vld [vmem:[%s6773_s17 + $0xf0] sm:$0xff] }
 0x3f7   : > { %13611 = vst [vmem:[#allocation306_spill] sm:$0xff] %v8099_v1  ;;  %v8101_v2 = vpop.permute.xlu2 %2405  ;;  %v6522_v1 = vld [vmem:[%s6773_s17 + $0x139] sm:$0xff] }
 0x3f8   : > { %13612 = vst [vmem:[#allocation307_spill] sm:$0xff] %v8101_v2 }
 0x3fc   : > { %2433 = vperm.xlu0 %6441, %v6509_v13  }
 0x3fd   : > { %2607 = vperm.xlu1 %6414, %v7869_v0  }
 0x3fe   : > { %2611 = vperm.xlu2 %6413, %v7872_v36   ;;  %v8106_v52 = vpop.permute.xlu0 %1729  ;;  %v8108_v17 = vpop.permute.xlu1 %2381  ;;  %v6511_v36 = vld [vmem:[%s6773_s17 + $0x110] sm:$0xff] }
 0x3ff   : > { %13613 = vst [vmem:[#allocation308_spill] sm:$0xff] %v8106_v52  ;;  %v8110_v24 = vpop.permute.xlu2 %2417 }
 0x400   : > { %13614 = vst [vmem:[#allocation309_spill] sm:$0xff] %v8108_v17 }
 0x401   : > { %13615 = vst [vmem:[#allocation310_spill] sm:$0xff] %v8110_v24 }
 0x404   : > { %2445 = vperm.xlu0 %6441, %v6510_v29  }
 0x405   : > { %2619 = vperm.xlu1 %6414, %v7884_v21  }
 0x406   : > { %2623 = vperm.xlu2 %6413, %v7887_v6   ;;  %v8115_v15 = vpop.permute.xlu0 %1749  ;;  %v8117_v13 = vpop.permute.xlu1 %2389  ;;  %v6512_v6 = vld [vmem:[%s6773_s17 + $0x138] sm:$0xff] }
 0x407   : > { %13616 = vst [vmem:[#allocation311_spill] sm:$0xff] %v8115_v15  ;;  %v8119_v0 = vpop.permute.xlu2 %2429 }
 0x408   : > { %13617 = vst [vmem:[#allocation312_spill] sm:$0xff] %v8117_v13  ;;  %v6519_v13 = vld [vmem:[%s6773_s17 + $0xc9] sm:$0xff] }
 0x409   : > { %13618 = vst [vmem:[#allocation313_spill] sm:$0xff] %v8119_v0 }
 0x40c   : > { %2457 = vperm.xlu0 %6441, %v6511_v36  }
 0x40d   : > { %2631 = vperm.xlu1 %6414, %v7899_v8  }
 0x40e   : > { %2635 = vperm.xlu2 %6413, %v7902_v32   ;;  %v8124_v24 = vpop.permute.xlu0 %1761  ;;  %v8126_v29 = vpop.permute.xlu1 %2401  ;;  %v6513_v32 = vld [vmem:[%s6773_s17 + $0x158] sm:$0xff] }
 0x40f   : > { %13619 = vst [vmem:[#allocation314_spill] sm:$0xff] %v8124_v24  ;;  %v8128_v21 = vpop.permute.xlu2 %2441 }
 0x410   : > { %13620 = vst [vmem:[#allocation315_spill] sm:$0xff] %v8126_v29 }
 0x411   : > { %13621 = vst [vmem:[#allocation316_spill] sm:$0xff] %v8128_v21 }
 0x414   : > { %2469 = vperm.xlu0 %6441, %v6512_v6  }
 0x415   : > { %2643 = vperm.xlu1 %6414, %v7914_v44  }
 0x416   : > { %2647 = vperm.xlu2 %6413, %v7465_v18   ;;  %v8133_v0 = vpop.permute.xlu0 %1773  ;;  %v8135_v36 = vpop.permute.xlu1 %2413  ;;  %v6514_v18 = vld [vmem:[%s6773_s17 + $0x180] sm:$0xff] }
 0x417   : > { %13622 = vst [vmem:[#allocation317_spill] sm:$0xff] %v8133_v0  ;;  %v8137_v8 = vpop.permute.xlu2 %2453 }
 0x418   : > { %13623 = vst [vmem:[#allocation318_spill] sm:$0xff] %v8135_v36 }
 0x419   : > { %13624 = vst [vmem:[#allocation319_spill] sm:$0xff] %v8137_v8 }
 0x41c   : > { %2481 = vperm.xlu0 %6441, %v6513_v32  }
 0x41d   : > { %2655 = vperm.xlu1 %6414, %v7926_v27  }
 0x41e   : > { %2659 = vperm.xlu2 %6413, %v7481_v5   ;;  %v8142_v21 = vpop.permute.xlu0 %1785  ;;  %v8144_v6 = vpop.permute.xlu1 %2425  ;;  %v6515_v5 = vld [vmem:[%s6773_s17 + $0x21] sm:$0xff] }
 0x41f   : > { %13625 = vst [vmem:[#allocation320_spill] sm:$0xff] %v8142_v21  ;;  %v8146_v44 = vpop.permute.xlu2 %2465  ;;  %v6525_v21 = vld [vmem:[%s6773_s17 + $0x22] sm:$0xff] }
 0x420   : > { %13626 = vst [vmem:[#allocation321_spill] sm:$0xff] %v8144_v6  ;;  %v8200_v6 = vld [vmem:[%s6773_s17 + $0x51] sm:$0xff] }
 0x421   : > { %13627 = vst [vmem:[#allocation322_spill] sm:$0xff] %v8146_v44  ;;  %v6516_v44 = vld [vmem:[%s6773_s17 + $0x61] sm:$0xff] }
 0x424   : > { %2493 = vperm.xlu0 %6441, %v6514_v18  }
 0x425   : > { %2667 = vperm.xlu1 %6414, %v7938_v7  }
 0x426   : > { %2671 = vperm.xlu2 %6413, %v7499_v33   ;;  %v8151_v8 = vpop.permute.xlu0 %1797  ;;  %v8153_v32 = vpop.permute.xlu1 %2437 }
 0x427   : > { %13628 = vst [vmem:[#allocation323_spill] sm:$0xff] %v8151_v8  ;;  %v8155_v27 = vpop.permute.xlu2 %2477 }
 0x428   : > { %13629 = vst [vmem:[#allocation324_spill] sm:$0xff] %v8153_v32  ;;  %v8168_v32 = vld [vmem:[%s6773_s17 + $0x19] sm:$0xff] }
 0x429   : > { %13630 = vst [vmem:[#allocation325_spill] sm:$0xff] %v8155_v27  ;;  %v8196_v27 = vld [vmem:[%s6773_s17 + $0x49] sm:$0xff] }
 0x42c   : > { %3024 = vperm.xlu0 %6441, %v6515_v5  }
 0x42d   : > { %2679 = vperm.xlu1 %6414, %v7950_v16  }
 0x42e   : > { %2683 = vperm.xlu2 %6413, %v7514_v34   ;;  %v8160_v18 = vpop.permute.xlu0 %1809  ;;  %v8162_v7 = vpop.permute.xlu1 %2449 }
 0x42f   : > { %13631 = vst [vmem:[#allocation326_spill] sm:$0xff] %v8160_v18  ;;  %v8164_v33 = vpop.permute.xlu2 %2489  ;;  %v6523_v18 = vld [vmem:[%s6773_s17 + $0x159] sm:$0xff] }
 0x430   : > { %13632 = vst [vmem:[#allocation327_spill] sm:$0xff] %v8162_v7  ;;  %v8184_v7 = vld [vmem:[%s6773_s17 + $0x39] sm:$0xff] }
 0x431   : > { %13633 = vst [vmem:[#allocation328_spill] sm:$0xff] %v8164_v33  ;;  %v8180_v33 = vld [vmem:[%s6773_s17 + $0x31] sm:$0xff] }
 0x434   : > { %3044 = vperm.xlu0 %6441, %v6516_v44   ;;  %v6517_v44 = vld [vmem:[%s6773_s17 + $0x81] sm:$0xff] }
 0x435   : > { %2691 = vperm.xlu1 %6414, %v7962_v56  }
 0x436   : > { %6415 = vset.pattern.permute.xlu2 %v13337_v23  ;;  %v8172_v16 = vpop.permute.xlu0 %1821  ;;  %v8174_v34 = vpop.permute.xlu1 %2461 }
 0x437   : > { %13634 = vst [vmem:[#allocation329_spill] sm:$0xff] %v8172_v16  ;;  %2795 = vperm.xlu2 %6415, %v8168_v32  }
 0x438   : > { %13635 = vst [vmem:[#allocation330_spill] sm:$0xff] %v8174_v34  ;;  %v8177_v5 = vpop.permute.xlu2 %2567 }
 0x439   : > { %13636 = vst [vmem:[#allocation331_spill] sm:$0xff] %v8177_v5 }
 0x43c   : > { %3056 = vperm.xlu0 %6441, %v6517_v44   ;;  %v6518_v44 = vld [vmem:[%s6773_s17 + $0xa9] sm:$0xff] }
 0x43d   : > { %6416 = vset.pattern.permute.xlu1 %v13337_v23 }
 0x43e   : > { %v8187_v56 = vpop.permute.xlu0 %1833  ;;  %2805 = vperm.xlu1 %6416, %v8180_v33   ;;  %v8190_v34 = vpop.permute.xlu1 %2473 }
 0x43f   : > { %13637 = vst [vmem:[#allocation332_spill] sm:$0xff] %v8187_v56  ;;  %2810 = vperm.xlu2 %6415, %v8184_v7  }
 0x440   : > { %13638 = vst [vmem:[#allocation333_spill] sm:$0xff] %v8190_v34  ;;  %v8193_v5 = vpop.permute.xlu2 %2579 }
 0x441   : > { %13639 = vst [vmem:[#allocation334_spill] sm:$0xff] %v8193_v5  ;;  %v8211_v5 = vld [vmem:[%s6773_s17 + $0x69] sm:$0xff] }
 0x444   : > { %3068 = vperm.xlu0 %6441, %v6518_v44   ;;  %v8215_v44 = vld [vmem:[%s6773_s17 + $0x79] sm:$0xff] }
 0x446   : > { %v8202_v36 = vpop.permute.xlu0 %1845  ;;  %2815 = vperm.xlu1 %6416, %v8196_v27   ;;  %v8205_v29 = vpop.permute.xlu1 %2485 }
 0x447   : > { %13640 = vst [vmem:[#allocation335_spill] sm:$0xff] %v8202_v36  ;;  %2820 = vperm.xlu2 %6415, %v8200_v6   ;;  %v6521_v36 = vld [vmem:[%s6773_s17 + $0x111] sm:$0xff] }
 0x448   : > { %13641 = vst [vmem:[#allocation336_spill] sm:$0xff] %v8205_v29  ;;  %v8208_v34 = vpop.permute.xlu2 %2587 }
 0x449   : > { %13642 = vst [vmem:[#allocation337_spill] sm:$0xff] %v8208_v34  ;;  %v8226_v34 = vld [vmem:[%s6773_s17 + $0x91] sm:$0xff] }
 0x44c   : > { %3080 = vperm.xlu0 %6441, %v6519_v13   ;;  %v8230_v13 = vld [vmem:[%s6773_s17 + $0x99] sm:$0xff] }
 0x44e   : > { %v8217_v17 = vpop.permute.xlu0 %2377  ;;  %2830 = vperm.xlu1 %6416, %v8211_v5   ;;  %v8220_v2 = vpop.permute.xlu1 %2497 }
 0x44f   : > { %13643 = vst [vmem:[#allocation338_spill] sm:$0xff] %v8217_v17  ;;  %2835 = vperm.xlu2 %6415, %v8215_v44  }
 0x450   : > { %13644 = vst [vmem:[#allocation339_spill] sm:$0xff] %v8220_v2  ;;  %v8223_v29 = vpop.permute.xlu2 %2599 }
 0x451   : > { %13645 = vst [vmem:[#allocation340_spill] sm:$0xff] %v8223_v29  ;;  %v8241_v29 = vld [vmem:[%s6773_s17 + $0xb1] sm:$0xff] }
 0x454   : > { %3092 = vperm.xlu0 %6441, %v6520_v60   ;;  %v8245_v60 = vld [vmem:[%s6773_s17 + $0xc1] sm:$0xff] }
 0x456   : > { %v8232_v19 = vpop.permute.xlu0 %2397  ;;  %2845 = vperm.xlu1 %6416, %v8226_v34  }
 0x457   : > { %13646 = vst [vmem:[#allocation341_spill] sm:$0xff] %v8232_v19  ;;  %2850 = vperm.xlu2 %6415, %v8230_v13   ;;  %v8236_v2 = vpop.permute.xlu1 %2575 }
 0x458   : > { %13647 = vst [vmem:[#allocation342_spill] sm:$0xff] %v8236_v2  ;;  %v8238_v17 = vpop.permute.xlu2 %2611 }
 0x459   : > { %13648 = vst [vmem:[#allocation343_spill] sm:$0xff] %v8238_v17  ;;  %v8256_v17 = vld [vmem:[%s6773_s17 + $0xd9] sm:$0xff] }
 0x45c   : > { %3104 = vperm.xlu0 %6441, %v6521_v36   ;;  %v8260_v36 = vld [vmem:[%s6773_s17 + $0xe1] sm:$0xff] }
 0x45e   : > { %v8247_v52 = vpop.permute.xlu0 %2409  ;;  %2860 = vperm.xlu1 %6416, %v8241_v29  }
 0x45f   : > { %13649 = vst [vmem:[#allocation344_spill] sm:$0xff] %v8247_v52  ;;  %2865 = vperm.xlu2 %6415, %v8245_v60   ;;  %v8251_v56 = vpop.permute.xlu1 %2583 }
 0x460   : > { %13650 = vst [vmem:[#allocation345_spill] sm:$0xff] %v8251_v56  ;;  %v8253_v2 = vpop.permute.xlu2 %2623 }
 0x461   : > { %13651 = vst [vmem:[#allocation346_spill] sm:$0xff] %v8253_v2  ;;  %v8271_v2 = vld [vmem:[%s6773_s17 + $0xf9] sm:$0xff] }
 0x464   : > { %3116 = vperm.xlu0 %6441, %v6522_v1   ;;  %v8275_v1 = vld [vmem:[%s6773_s17 + $0x109] sm:$0xff] }
 0x466   : > { %v8262_v16 = vpop.permute.xlu0 %2421  ;;  %2875 = vperm.xlu1 %6416, %v8256_v17  }
 0x467   : > { %13652 = vst [vmem:[#allocation347_spill] sm:$0xff] %v8262_v16  ;;  %2880 = vperm.xlu2 %6415, %v8260_v36   ;;  %v8266_v28 = vpop.permute.xlu1 %2595 }
 0x468   : > { %13653 = vst [vmem:[#allocation348_spill] sm:$0xff] %v8266_v28  ;;  %v8268_v56 = vpop.permute.xlu2 %2635 }
 0x469   : > { %13654 = vst [vmem:[#allocation349_spill] sm:$0xff] %v8268_v56  ;;  %v8286_v56 = vld [vmem:[%s6773_s17 + $0x121] sm:$0xff] }
 0x46c   : > { %3128 = vperm.xlu0 %6441, %v6523_v18   ;;  %v8290_v18 = vld [vmem:[%s6773_s17 + $0x129] sm:$0xff] }
 0x46e   : > { %v8277_v20 = vpop.permute.xlu0 %2433  ;;  %2890 = vperm.xlu1 %6416, %v8271_v2  }
 0x46f   : > { %13655 = vst [vmem:[#allocation350_spill] sm:$0xff] %v8277_v20  ;;  %2895 = vperm.xlu2 %6415, %v8275_v1   ;;  %v8281_v8 = vpop.permute.xlu1 %2607 }
 0x470   : > { %13656 = vst [vmem:[#allocation351_spill] sm:$0xff] %v8281_v8  ;;  %v8283_v28 = vpop.permute.xlu2 %2647 }
 0x471   : > { %13657 = vst [vmem:[#allocation352_spill] sm:$0xff] %v8283_v28  ;;  %v8301_v28 = vld [vmem:[%s6773_s17 + $0x141] sm:$0xff] }
 0x474   : > { %3140 = vperm.xlu0 %6441, %v6524_v26   ;;  %v8305_v26 = vld [vmem:[%s6773_s17 + $0x151] sm:$0xff] }
 0x476   : > { %v8292_v16 = vpop.permute.xlu0 %2445  ;;  %2905 = vperm.xlu1 %6416, %v8286_v56  }
 0x477   : > { %13658 = vst [vmem:[#allocation353_spill] sm:$0xff] %v8292_v16  ;;  %2910 = vperm.xlu2 %6415, %v8290_v18   ;;  %v8296_v20 = vpop.permute.xlu1 %2619 }
 0x478   : > { %13659 = vst [vmem:[#allocation354_spill] sm:$0xff] %v8296_v20  ;;  %v8298_v8 = vpop.permute.xlu2 %2659  ;;  %v8316_v20 = vld [vmem:[%s6773_s17 + $0x169] sm:$0xff] }
 0x479   : > { %13660 = vst [vmem:[#allocation355_spill] sm:$0xff] %v8298_v8  ;;  %v6526_v8 = vld [vmem:[%s6773_s17 + $0x62] sm:$0xff] }
 0x47c   : > { %3671 = vperm.xlu0 %6441, %v6525_v21   ;;  %v8320_v21 = vld [vmem:[%s6773_s17 + $0x171] sm:$0xff] }
 0x47e   : > { %v8307_v14 = vpop.permute.xlu0 %2457  ;;  %2920 = vperm.xlu1 %6416, %v8301_v28  }
 0x47f   : > { %13661 = vst [vmem:[#allocation356_spill] sm:$0xff] %v8307_v14  ;;  %2925 = vperm.xlu2 %6415, %v8305_v26   ;;  %v8311_v16 = vpop.permute.xlu1 %2631 }
 0x480   : > { %13662 = vst [vmem:[#allocation357_spill] sm:$0xff] %v8311_v16  ;;  %v8313_v52 = vpop.permute.xlu2 %2671  ;;  %v8331_v16 = vld [vmem:[%s6773_s17 + $0x189] sm:$0xff] }
 0x481   : > { %13663 = vst [vmem:[#allocation358_spill] sm:$0xff] %v8313_v52  ;;  %v6527_v52 = vld [vmem:[%s6773_s17 + $0x82] sm:$0xff] }
 0x484   : > { %3691 = vperm.xlu0 %6441, %v6526_v8  }
 0x486   : > { %v8322_v0 = vpop.permute.xlu0 %2469  ;;  %2935 = vperm.xlu1 %6416, %v8316_v20  }
 0x487   : > { %13664 = vst [vmem:[#allocation359_spill] sm:$0xff] %v8322_v0  ;;  %2940 = vperm.xlu2 %6415, %v8320_v21   ;;  %v8326_v14 = vpop.permute.xlu1 %2643 }
 0x488   : > { %13665 = vst [vmem:[#allocation360_spill] sm:$0xff] %v8326_v14  ;;  %v8328_v25 = vpop.permute.xlu2 %2683  ;;  %v6528_v14 = vld [vmem:[%s6773_s17 + $0xaa] sm:$0xff] }
 0x489   : > { %13666 = vst [vmem:[#allocation361_spill] sm:$0xff] %v8328_v25 }
 0x48c   : > { %3703 = vperm.xlu0 %6441, %v6527_v52  }
 0x48e   : > { %v8334_v19 = vpop.permute.xlu0 %2481  ;;  %2950 = vperm.xlu1 %6416, %v8331_v16  }
 0x48f   : > { %13667 = vst [vmem:[#allocation362_spill] sm:$0xff] %v8334_v19  ;;  %6417 = vset.pattern.permute.xlu2 %v13372_v4  ;;  %v8338_v8 = vpop.permute.xlu1 %2655 }
 0x490   : > { %13668 = vst [vmem:[#allocation363_spill] sm:$0xff] %v8338_v8  ;;  %3020 = vperm.xlu2 %6417, %v8168_v32   ;;  %v6529_v8 = vld [vmem:[%s6773_s17 + $0xca] sm:$0xff] }
 0x491   : > { %v8341_v0 = vpop.permute.xlu2 %2795 }
 0x492   : > { %13669 = vst [vmem:[#allocation364_spill] sm:$0xff] %v8341_v0 }
 0x494   : > { %3715 = vperm.xlu0 %6441, %v6528_v14  }
 0x496   : > { %v8344_v25 = vpop.permute.xlu0 %2493  ;;  %6418 = vset.pattern.permute.xlu1 %v13372_v4 }
 0x497   : > { %13670 = vst [vmem:[#allocation365_spill] sm:$0xff] %v8344_v25  ;;  %3028 = vperm.xlu1 %6418, %v8180_v33   ;;  %v8348_v52 = vpop.permute.xlu1 %2667  ;;  %v6530_v25 = vld [vmem:[%s6773_s17 + $0xf2] sm:$0xff] }
 0x498   : > { %13671 = vst [vmem:[#allocation366_spill] sm:$0xff] %v8348_v52  ;;  %3032 = vperm.xlu2 %6417, %v8184_v7  }
 0x499   : > { %v8351_v19 = vpop.permute.xlu2 %2810 }
 0x49a   : > { %13672 = vst [vmem:[#allocation367_spill] sm:$0xff] %v8351_v19 }
 0x49c   : > { %3727 = vperm.xlu0 %6441, %v6529_v8  }
 0x49e   : > { %v8354_v24 = vpop.permute.xlu0 %3024 }
 0x49f   : > { %13673 = vst [vmem:[#allocation368_spill] sm:$0xff] %v8354_v24  ;;  %3036 = vperm.xlu1 %6418, %v8196_v27   ;;  %v8357_v14 = vpop.permute.xlu1 %2679  ;;  %v6531_v24 = vld [vmem:[%s6773_s17 + $0x112] sm:$0xff] }
 0x4a0   : > { %13674 = vst [vmem:[#allocation369_spill] sm:$0xff] %v8357_v14  ;;  %3040 = vperm.xlu2 %6417, %v8200_v6  }
 0x4a1   : > { %v8360_v0 = vpop.permute.xlu2 %2820 }
 0x4a2   : > { %13675 = vst [vmem:[#allocation370_spill] sm:$0xff] %v8360_v0 }
 0x4a4   : > { %3739 = vperm.xlu0 %6441, %v6530_v25  }
 0x4a6   : > { %v8363_v52 = vpop.permute.xlu0 %3044 }
 0x4a7   : > { %13676 = vst [vmem:[#allocation371_spill] sm:$0xff] %v8363_v52  ;;  %3048 = vperm.xlu1 %6418, %v8211_v5   ;;  %v8366_v19 = vpop.permute.xlu1 %2691  ;;  %v6532_v52 = vld [vmem:[%s6773_s17 + $0x13a] sm:$0xff] }
 0x4a8   : > { %13677 = vst [vmem:[#allocation372_spill] sm:$0xff] %v8366_v19  ;;  %3052 = vperm.xlu2 %6417, %v8215_v44  }
 0x4a9   : > { %v8369_v8 = vpop.permute.xlu2 %2835 }
 0x4aa   : > { %13678 = vst [vmem:[#allocation373_spill] sm:$0xff] %v8369_v8 }
 0x4ac   : > { %3751 = vperm.xlu0 %6441, %v6531_v24  }
 0x4ae   : > { %v8372_v14 = vpop.permute.xlu0 %3056 }
 0x4af   : > { %13679 = vst [vmem:[#allocation374_spill] sm:$0xff] %v8372_v14  ;;  %3060 = vperm.xlu1 %6418, %v8226_v34   ;;  %v6533_v14 = vld [vmem:[%s6773_s17 + $0x15a] sm:$0xff] }
 0x4b0   : > { %3064 = vperm.xlu2 %6417, %v8230_v13   ;;  %v8376_v25 = vpop.permute.xlu1 %2805 }
 0x4b1   : > { %13680 = vst [vmem:[#allocation375_spill] sm:$0xff] %v8376_v25  ;;  %v8378_v0 = vpop.permute.xlu2 %2850  ;;  %v6534_v25 = vld [vmem:[%s6773_s17 + $0x182] sm:$0xff] }
 0x4b2   : > { %13681 = vst [vmem:[#allocation376_spill] sm:$0xff] %v8378_v0 }
 0x4b4   : > { %3763 = vperm.xlu0 %6441, %v6532_v52  }
 0x4b6   : > { %v8381_v19 = vpop.permute.xlu0 %3068 }
 0x4b7   : > { %13682 = vst [vmem:[#allocation377_spill] sm:$0xff] %v8381_v19  ;;  %3072 = vperm.xlu1 %6418, %v8241_v29  }
 0x4b8   : > { %3076 = vperm.xlu2 %6417, %v8245_v60   ;;  %v8385_v24 = vpop.permute.xlu1 %2815 }
 0x4b9   : > { %13683 = vst [vmem:[#allocation378_spill] sm:$0xff] %v8385_v24  ;;  %v8387_v8 = vpop.permute.xlu2 %2865  ;;  %v6535_v24 = vld [vmem:[%s6773_s17 + $0x38] sm:$0xff] }
 0x4ba   : > { %13684 = vst [vmem:[#allocation379_spill] sm:$0xff] %v8387_v8 }
 0x4bc   : > { %3775 = vperm.xlu0 %6441, %v6533_v14  }
 0x4be   : > { %v8390_v48 = vpop.permute.xlu0 %3080 }
 0x4bf   : > { %13685 = vst [vmem:[#allocation380_spill] sm:$0xff] %v8390_v48  ;;  %3084 = vperm.xlu1 %6418, %v8256_v17  }
 0x4c0   : > { %3088 = vperm.xlu2 %6417, %v8260_v36   ;;  %v8394_v52 = vpop.permute.xlu1 %2830 }
 0x4c1   : > { %13686 = vst [vmem:[#allocation381_spill] sm:$0xff] %v8394_v52  ;;  %v8396_v0 = vpop.permute.xlu2 %2880  ;;  %v6536_v52 = vld [vmem:[%s6773_s17 + $0x78] sm:$0xff] }
 0x4c2   : > { %13687 = vst [vmem:[#allocation382_spill] sm:$0xff] %v8396_v0 }
 0x4c4   : > { %3787 = vperm.xlu0 %6441, %v6534_v25  }
 0x4c6   : > { %v8399_v19 = vpop.permute.xlu0 %3092 }
 0x4c7   : > { %13688 = vst [vmem:[#allocation383_spill] sm:$0xff] %v8399_v19  ;;  %3096 = vperm.xlu1 %6418, %v8271_v2  }
 0x4c8   : > { %3100 = vperm.xlu2 %6417, %v8275_v1   ;;  %v8403_v14 = vpop.permute.xlu1 %2845 }
 0x4c9   : > { %13689 = vst [vmem:[#allocation384_spill] sm:$0xff] %v8403_v14  ;;  %v8405_v8 = vpop.permute.xlu2 %2895  ;;  %v6537_v14 = vld [vmem:[%s6773_s17 + $0x98] sm:$0xff] }
 0x4ca   : > { %13690 = vst [vmem:[#allocation385_spill] sm:$0xff] %v8405_v8 }
 0x4cc   : > { %4319 = vperm.xlu0 %6441, %v6535_v24  }
 0x4ce   : > { %v8408_v48 = vpop.permute.xlu0 %3104 }
 0x4cf   : > { %13691 = vst [vmem:[#allocation386_spill] sm:$0xff] %v8408_v48  ;;  %3108 = vperm.xlu1 %6418, %v8286_v56  }
 0x4d0   : > { %3112 = vperm.xlu2 %6417, %v8290_v18   ;;  %v8412_v25 = vpop.permute.xlu1 %2860 }
 0x4d1   : > { %13692 = vst [vmem:[#allocation387_spill] sm:$0xff] %v8412_v25  ;;  %v8414_v0 = vpop.permute.xlu2 %2910  ;;  %v6538_v25 = vld [vmem:[%s6773_s17 + $0xc0] sm:$0xff] }
 0x4d2   : > { %13693 = vst [vmem:[#allocation388_spill] sm:$0xff] %v8414_v0 }
 0x4d4   : > { %4339 = vperm.xlu0 %6441, %v6536_v52  }
 0x4d6   : > { %v8417_v19 = vpop.permute.xlu0 %3116 }
 0x4d7   : > { %13694 = vst [vmem:[#allocation389_spill] sm:$0xff] %v8417_v19  ;;  %3120 = vperm.xlu1 %6418, %v8301_v28  }
 0x4d8   : > { %3124 = vperm.xlu2 %6417, %v8305_v26   ;;  %v8421_v24 = vpop.permute.xlu1 %2875 }
 0x4d9   : > { %13695 = vst [vmem:[#allocation390_spill] sm:$0xff] %v8421_v24  ;;  %v8423_v8 = vpop.permute.xlu2 %2925  ;;  %v6539_v24 = vld [vmem:[%s6773_s17 + $0xe0] sm:$0xff] }
 0x4da   : > { %13696 = vst [vmem:[#allocation391_spill] sm:$0xff] %v8423_v8 }
 0x4dc   : > { %4351 = vperm.xlu0 %6441, %v6537_v14  }
 0x4de   : > { %v8426_v48 = vpop.permute.xlu0 %3128 }
 0x4df   : > { %13697 = vst [vmem:[#allocation392_spill] sm:$0xff] %v8426_v48  ;;  %3132 = vperm.xlu1 %6418, %v8316_v20  }
 0x4e0   : > { %3136 = vperm.xlu2 %6417, %v8320_v21   ;;  %v8430_v52 = vpop.permute.xlu1 %2890 }
 0x4e1   : > { %13698 = vst [vmem:[#allocation393_spill] sm:$0xff] %v8430_v52  ;;  %v8432_v0 = vpop.permute.xlu2 %2940 }
 0x4e2   : > { %13699 = vst [vmem:[#allocation394_spill] sm:$0xff] %v8432_v0 }
 0x4e4   : > { %4363 = vperm.xlu0 %6441, %v6538_v25  }
 0x4e6   : > { %v8435_v19 = vpop.permute.xlu0 %3140 }
 0x4e7   : > { %13700 = vst [vmem:[#allocation395_spill] sm:$0xff] %v8435_v19  ;;  %3144 = vperm.xlu1 %6418, %v8331_v16  }
 0x4e8   : > { %6419 = vset.pattern.permute.xlu2 %v13406_v40  ;;  %v8439_v14 = vpop.permute.xlu1 %2905 }
 0x4e9   : > { %13701 = vst [vmem:[#allocation396_spill] sm:$0xff] %v8439_v14  ;;  %3214 = vperm.xlu2 %6419, %v8168_v32   ;;  %v6540_v14 = vld [vmem:[%s6773_s17 + $0x108] sm:$0xff] }
 0x4ea   : > { %v8442_v8 = vpop.permute.xlu2 %3020 }
 0x4eb   : > { %13702 = vst [vmem:[#allocation397_spill] sm:$0xff] %v8442_v8 }
 0x4ec   : > { %4375 = vperm.xlu0 %6441, %v6539_v24  }
 0x4ee   : > { %v8445_v52 = vpop.permute.xlu0 %3671 }
 0x4ef   : > { %13703 = vst [vmem:[#allocation398_spill] sm:$0xff] %v8445_v52  ;;  %6420 = vset.pattern.permute.xlu1 %v13406_v40 }
 0x4f0   : > { %3222 = vperm.xlu1 %6420, %v8180_v33   ;;  %v8449_v25 = vpop.permute.xlu1 %2920  ;;  %v6541_v33 = vld [vmem:[%s6773_s17 + $0x128] sm:$0xff] }
 0x4f1   : > { %13704 = vst [vmem:[#allocation399_spill] sm:$0xff] %v8449_v25  ;;  %3226 = vperm.xlu2 %6419, %v8184_v7  }
 0x4f2   : > { %v8452_v0 = vpop.permute.xlu2 %3032 }
 0x4f3   : > { %13705 = vst [vmem:[#allocation400_spill] sm:$0xff] %v8452_v0 }
 0x4f4   : > { %4387 = vperm.xlu0 %6441, %v6540_v14  }
 0x4f6   : > { %v8455_v32 = vpop.permute.xlu0 %3691 }
 0x4f7   : > { %13706 = vst [vmem:[#allocation401_spill] sm:$0xff] %v8455_v32 }
 0x4f8   : > { %3230 = vperm.xlu1 %6420, %v8196_v27   ;;  %v8458_v24 = vpop.permute.xlu1 %2935  ;;  %v6542_v27 = vld [vmem:[%s6773_s17 + $0x150] sm:$0xff] }
 0x4f9   : > { %13707 = vst [vmem:[#allocation402_spill] sm:$0xff] %v8458_v24  ;;  %3234 = vperm.xlu2 %6419, %v8200_v6  }
 0x4fa   : > { %v8461_v8 = vpop.permute.xlu2 %3040 }
 0x4fb   : > { %13708 = vst [vmem:[#allocation403_spill] sm:$0xff] %v8461_v8  ;;  %v8601_v8 = vld [vmem:[%s6773_s17 + $0x9a] sm:$0xff] }
 0x4fc   : > { %4399 = vperm.xlu0 %6441, %v6541_v33  }
 0x4fe   : > { %v8464_v25 = vpop.permute.xlu0 %3703 }
 0x4ff   : > { %13709 = vst [vmem:[#allocation404_spill] sm:$0xff] %v8464_v25 }
 0x500   : > { %3242 = vperm.xlu1 %6420, %v8211_v5   ;;  %v8467_v7 = vpop.permute.xlu1 %2950  ;;  %v6543_v5 = vld [vmem:[%s6773_s17 + $0x170] sm:$0xff] }
 0x501   : > { %13710 = vst [vmem:[#allocation405_spill] sm:$0xff] %v8467_v7  ;;  %3246 = vperm.xlu2 %6419, %v8215_v44  }
 0x502   : > { %v8470_v14 = vpop.permute.xlu2 %3052 }
 0x503   : > { %13711 = vst [vmem:[#allocation406_spill] sm:$0xff] %v8470_v14  ;;  %v8598_v14 = vld [vmem:[%s6773_s17 + $0x92] sm:$0xff] }
 0x504   : > { %4411 = vperm.xlu0 %6441, %v6542_v27  }
 0x506   : > { %v8473_v24 = vpop.permute.xlu0 %3715 }
 0x507   : > { %13712 = vst [vmem:[#allocation407_spill] sm:$0xff] %v8473_v24 }
 0x508   : > { %3254 = vperm.xlu1 %6420, %v8226_v34   ;;  %v6544_v34 = vld [vmem:[%s6773_s17 + $0x198] sm:$0xff] }
 0x509   : > { %3258 = vperm.xlu2 %6419, %v8230_v13   ;;  %v8477_v6 = vpop.permute.xlu1 %3028 }
 0x50a   : > { %13713 = vst [vmem:[#allocation408_spill] sm:$0xff] %v8477_v6  ;;  %v8479_v33 = vpop.permute.xlu2 %3064 }
 0x50b   : > { %13714 = vst [vmem:[#allocation409_spill] sm:$0xff] %v8479_v33 }
 0x50c   : > { %4423 = vperm.xlu0 %6441, %v6543_v5  }
 0x50e   : > { %v8482_v7 = vpop.permute.xlu0 %3727 }
 0x50f   : > { %13715 = vst [vmem:[#allocation410_spill] sm:$0xff] %v8482_v7 }
 0x510   : > { %3266 = vperm.xlu1 %6420, %v8241_v29   ;;  %v6545_v29 = vld [vmem:[%s6773_s17 + $0x39] sm:$0xff] }
 0x511   : > { %3270 = vperm.xlu2 %6419, %v8245_v60   ;;  %v8486_v44 = vpop.permute.xlu1 %3036 }
 0x512   : > { %13716 = vst [vmem:[#allocation411_spill] sm:$0xff] %v8486_v44  ;;  %v8488_v27 = vpop.permute.xlu2 %3076  ;;  %v8586_v44 = vld [vmem:[%s6773_s17 + $0x7a] sm:$0xff] }
 0x513   : > { %13717 = vst [vmem:[#allocation412_spill] sm:$0xff] %v8488_v27 }
 0x514   : > { %4435 = vperm.xlu0 %6441, %v6544_v34  }
 0x516   : > { %v8491_v13 = vpop.permute.xlu0 %3739 }
 0x517   : > { %13718 = vst [vmem:[#allocation413_spill] sm:$0xff] %v8491_v13 }
 0x518   : > { %3278 = vperm.xlu1 %6420, %v8256_v17   ;;  %v6546_v17 = vld [vmem:[%s6773_s17 + $0x79] sm:$0xff] }
 0x519   : > { %3282 = vperm.xlu2 %6419, %v8260_v36   ;;  %v8495_v5 = vpop.permute.xlu1 %3048 }
 0x51a   : > { %13719 = vst [vmem:[#allocation414_spill] sm:$0xff] %v8495_v5  ;;  %v8497_v33 = vpop.permute.xlu2 %3088  ;;  %v8583_v5 = vld [vmem:[%s6773_s17 + $0x6a] sm:$0xff] }
 0x51b   : > { %13720 = vst [vmem:[#allocation415_spill] sm:$0xff] %v8497_v33 }
 0x51c   : > { %4966 = vperm.xlu0 %6441, %v6545_v29  }
 0x51e   : > { %v8500_v60 = vpop.permute.xlu0 %3751 }
 0x51f   : > { %13721 = vst [vmem:[#allocation416_spill] sm:$0xff] %v8500_v60 }
 0x520   : > { %3290 = vperm.xlu1 %6420, %v8271_v2   ;;  %v6547_v2 = vld [vmem:[%s6773_s17 + $0x99] sm:$0xff] }
 0x521   : > { %3294 = vperm.xlu2 %6419, %v8275_v1   ;;  %v8504_v34 = vpop.permute.xlu1 %3060 }
 0x522   : > { %13722 = vst [vmem:[#allocation417_spill] sm:$0xff] %v8504_v34  ;;  %v8506_v27 = vpop.permute.xlu2 %3100 }
 0x523   : > { %13723 = vst [vmem:[#allocation418_spill] sm:$0xff] %v8506_v27 }
 0x524   : > { %4986 = vperm.xlu0 %6441, %v6546_v17  }
 0x526   : > { %v8509_v36 = vpop.permute.xlu0 %3763 }
 0x527   : > { %13724 = vst [vmem:[#allocation419_spill] sm:$0xff] %v8509_v36  ;;  %v8676_v36 = vld [vmem:[%s6773_s17 + $0x152] sm:$0xff] }
 0x528   : > { %3302 = vperm.xlu1 %6420, %v8286_v56   ;;  %v6548_v56 = vld [vmem:[%s6773_s17 + $0xc1] sm:$0xff] }
 0x529   : > { %3306 = vperm.xlu2 %6419, %v8290_v18   ;;  %v8513_v29 = vpop.permute.xlu1 %3072 }
 0x52a   : > { %13725 = vst [vmem:[#allocation420_spill] sm:$0xff] %v8513_v29  ;;  %v8515_v33 = vpop.permute.xlu2 %3112  ;;  %v8571_v29 = vld [vmem:[%s6773_s17 + $0x52] sm:$0xff] }
 0x52b   : > { %13726 = vst [vmem:[#allocation421_spill] sm:$0xff] %v8515_v33  ;;  %v8568_v33 = vld [vmem:[%s6773_s17 + $0x4a] sm:$0xff] }
 0x52c   : > { %4998 = vperm.xlu0 %6441, %v6547_v2  }
 0x52e   : > { %v8518_v1 = vpop.permute.xlu0 %3775 }
 0x52f   : > { %13727 = vst [vmem:[#allocation422_spill] sm:$0xff] %v8518_v1  ;;  %v8661_v1 = vld [vmem:[%s6773_s17 + $0x12a] sm:$0xff] }
 0x530   : > { %3314 = vperm.xlu1 %6420, %v8301_v28  }
 0x531   : > { %3318 = vperm.xlu2 %6419, %v8305_v26   ;;  %v8522_v17 = vpop.permute.xlu1 %3084  ;;  %v6549_v26 = vld [vmem:[%s6773_s17 + $0xe1] sm:$0xff] }
 0x532   : > { %13728 = vst [vmem:[#allocation423_spill] sm:$0xff] %v8522_v17  ;;  %v8524_v27 = vpop.permute.xlu2 %3124 }
 0x533   : > { %13729 = vst [vmem:[#allocation424_spill] sm:$0xff] %v8524_v27  ;;  %v8539_v27 = vld [vmem:[%s6773_s17 + $0x1a] sm:$0xff] }
 0x534   : > { %5010 = vperm.xlu0 %6441, %v6548_v56   ;;  %v6550_v56 = vld [vmem:[%s6773_s17 + $0x109] sm:$0xff] }
 0x536   : > { %v8527_v18 = vpop.permute.xlu0 %3787 }
 0x537   : > { %13730 = vst [vmem:[#allocation425_spill] sm:$0xff] %v8527_v18  ;;  %v8646_v18 = vld [vmem:[%s6773_s17 + $0x10a] sm:$0xff] }
 0x538   : > { %3326 = vperm.xlu1 %6420, %v8316_v20  }
 0x539   : > { %3330 = vperm.xlu2 %6419, %v8320_v21   ;;  %v8531_v2 = vpop.permute.xlu1 %3096 }
 0x53a   : > { %13731 = vst [vmem:[#allocation426_spill] sm:$0xff] %v8531_v2  ;;  %v8533_v28 = vpop.permute.xlu2 %3136  ;;  %v8555_v2 = vld [vmem:[%s6773_s17 + $0x3a] sm:$0xff] }
 0x53b   : > { %13732 = vst [vmem:[#allocation427_spill] sm:$0xff] %v8533_v28  ;;  %v8552_v28 = vld [vmem:[%s6773_s17 + $0x32] sm:$0xff] }
 0x53c   : > { %5022 = vperm.xlu0 %6441, %v6549_v26  }
 0x53e   : > { %v8536_v17 = vpop.permute.xlu0 %4319 }
 0x53f   : > { %13733 = vst [vmem:[#allocation428_spill] sm:$0xff] %v8536_v17 }
 0x540   : > { %3338 = vperm.xlu1 %6420, %v8331_v16  }
 0x541   : > { %6421 = vset.pattern.permute.xlu2 %v13337_v23  ;;  %v8543_v20 = vpop.permute.xlu1 %3108 }
 0x542   : > { %13734 = vst [vmem:[#allocation429_spill] sm:$0xff] %v8543_v20  ;;  %3442 = vperm.xlu2 %6421, %v8539_v27  }
 0x543   : > { %v8546_v21 = vpop.permute.xlu2 %3214 }
 0x544   : > { %13735 = vst [vmem:[#allocation430_spill] sm:$0xff] %v8546_v21  ;;  %5034 = vperm.xlu0 %6441, %v6550_v56   ;;  %v6551_v56 = vld [vmem:[%s6773_s17 + $0x129] sm:$0xff] }
 0x546   : > { %v8549_v26 = vpop.permute.xlu0 %4339 }
 0x547   : > { %13736 = vst [vmem:[#allocation431_spill] sm:$0xff] %v8549_v26  ;;  %v8631_v26 = vld [vmem:[%s6773_s17 + $0xe2] sm:$0xff] }
 0x548   : > { %6422 = vset.pattern.permute.xlu1 %v13337_v23 }
 0x549   : > { %3452 = vperm.xlu1 %6422, %v8552_v28   ;;  %v8559_v16 = vpop.permute.xlu1 %3120 }
 0x54a   : > { %13737 = vst [vmem:[#allocation432_spill] sm:$0xff] %v8559_v16  ;;  %3457 = vperm.xlu2 %6421, %v8555_v2  }
 0x54b   : > { %v8562_v21 = vpop.permute.xlu2 %3226 }
 0x54c   : > { %13738 = vst [vmem:[#allocation433_spill] sm:$0xff] %v8562_v21  ;;  %5046 = vperm.xlu0 %6441, %v6551_v56   ;;  %v6552_v21 = vld [vmem:[%s6773_s17 + $0x151] sm:$0xff] }
 0x54e   : > { %v8565_v20 = vpop.permute.xlu0 %4351 }
 0x54f   : > { %13739 = vst [vmem:[#allocation434_spill] sm:$0xff] %v8565_v20 }
 0x551   : > { %3462 = vperm.xlu1 %6422, %v8568_v33   ;;  %v8574_v34 = vpop.permute.xlu1 %3132 }
 0x552   : > { %13740 = vst [vmem:[#allocation435_spill] sm:$0xff] %v8574_v34  ;;  %3467 = vperm.xlu2 %6421, %v8571_v29  }
 0x553   : > { %v8577_v16 = vpop.permute.xlu2 %3234 }
 0x554   : > { %13741 = vst [vmem:[#allocation436_spill] sm:$0xff] %v8577_v16  ;;  %5058 = vperm.xlu0 %6441, %v6552_v21   ;;  %v6553_v16 = vld [vmem:[%s6773_s17 + $0x171] sm:$0xff] }
 0x556   : > { %v8580_v56 = vpop.permute.xlu0 %4363 }
 0x557   : > { %13742 = vst [vmem:[#allocation437_spill] sm:$0xff] %v8580_v56  ;;  %v8616_v56 = vld [vmem:[%s6773_s17 + $0xc2] sm:$0xff] }
 0x559   : > { %3477 = vperm.xlu1 %6422, %v8583_v5   ;;  %v8589_v6 = vpop.permute.xlu1 %3144 }
 0x55a   : > { %13743 = vst [vmem:[#allocation438_spill] sm:$0xff] %v8589_v6  ;;  %3482 = vperm.xlu2 %6421, %v8586_v44  }
 0x55b   : > { %v8592_v34 = vpop.permute.xlu2 %3246 }
 0x55c   : > { %13744 = vst [vmem:[#allocation439_spill] sm:$0xff] %v8592_v34  ;;  %5070 = vperm.xlu0 %6441, %v6553_v16   ;;  %v6554_v34 = vld [vmem:[%s6773_s17 + $0x199] sm:$0xff] }
 0x55e   : > { %v8595_v21 = vpop.permute.xlu0 %4375 }
 0x55f   : > { %13745 = vst [vmem:[#allocation440_spill] sm:$0xff] %v8595_v21  ;;  %v8613_v21 = vld [vmem:[%s6773_s17 + $0xb2] sm:$0xff] }
 0x561   : > { %3492 = vperm.xlu1 %6422, %v8598_v14  }
 0x562   : > { %3497 = vperm.xlu2 %6421, %v8601_v8   ;;  %v8605_v6 = vpop.permute.xlu1 %3222 }
 0x563   : > { %13746 = vst [vmem:[#allocation441_spill] sm:$0xff] %v8605_v6  ;;  %v8607_v0 = vpop.permute.xlu2 %3258 }
 0x564   : > { %13747 = vst [vmem:[#allocation442_spill] sm:$0xff] %v8607_v0  ;;  %5082 = vperm.xlu0 %6441, %v6554_v34   ;;  %v6555_v0 = vld [vmem:[%s6773_s17 + $0x3a] sm:$0xff] }
 0x566   : > { %v8610_v16 = vpop.permute.xlu0 %4387 }
 0x567   : > { %13748 = vst [vmem:[#allocation443_spill] sm:$0xff] %v8610_v16  ;;  %v8628_v16 = vld [vmem:[%s6773_s17 + $0xda] sm:$0xff] }
 0x569   : > { %3507 = vperm.xlu1 %6422, %v8613_v21  }
 0x56a   : > { %3512 = vperm.xlu2 %6421, %v8616_v56   ;;  %v8620_v20 = vpop.permute.xlu1 %3230 }
 0x56b   : > { %13749 = vst [vmem:[#allocation444_spill] sm:$0xff] %v8620_v20  ;;  %v8622_v6 = vpop.permute.xlu2 %3270 }
 0x56c   : > { %13750 = vst [vmem:[#allocation445_spill] sm:$0xff] %v8622_v6  ;;  %5613 = vperm.xlu0 %6441, %v6555_v0   ;;  %v6556_v6 = vld [vmem:[%s6773_s17 + $0x7a] sm:$0xff] }
 0x56e   : > { %v8625_v34 = vpop.permute.xlu0 %4399 }
 0x56f   : > { %13751 = vst [vmem:[#allocation446_spill] sm:$0xff] %v8625_v34  ;;  %v8643_v34 = vld [vmem:[%s6773_s17 + $0xfa] sm:$0xff] }
 0x571   : > { %3522 = vperm.xlu1 %6422, %v8628_v16  }
 0x572   : > { %3527 = vperm.xlu2 %6421, %v8631_v26   ;;  %v8635_v17 = vpop.permute.xlu1 %3242 }
 0x573   : > { %13752 = vst [vmem:[#allocation447_spill] sm:$0xff] %v8635_v17  ;;  %v8637_v20 = vpop.permute.xlu2 %3282 }
 0x574   : > { %13753 = vst [vmem:[#allocation448_spill] sm:$0xff] %v8637_v20  ;;  %5633 = vperm.xlu0 %6441, %v6556_v6   ;;  %v6557_v20 = vld [vmem:[%s6773_s17 + $0x9a] sm:$0xff] }
 0x576   : > { %v8640_v0 = vpop.permute.xlu0 %4411 }
 0x577   : > { %13754 = vst [vmem:[#allocation449_spill] sm:$0xff] %v8640_v0  ;;  %v8658_v0 = vld [vmem:[%s6773_s17 + $0x122] sm:$0xff] }
 0x579   : > { %3537 = vperm.xlu1 %6422, %v8643_v34  }
 0x57a   : > { %3542 = vperm.xlu2 %6421, %v8646_v18   ;;  %v8650_v52 = vpop.permute.xlu1 %3254 }
 0x57b   : > { %13755 = vst [vmem:[#allocation450_spill] sm:$0xff] %v8650_v52  ;;  %v8652_v17 = vpop.permute.xlu2 %3294 }
 0x57c   : > { %13756 = vst [vmem:[#allocation451_spill] sm:$0xff] %v8652_v17  ;;  %5645 = vperm.xlu0 %6441, %v6557_v20   ;;  %v6558_v17 = vld [vmem:[%s6773_s17 + $0xc2] sm:$0xff] }
 0x57e   : > { %v8655_v6 = vpop.permute.xlu0 %4423 }
 0x57f   : > { %13757 = vst [vmem:[#allocation452_spill] sm:$0xff] %v8655_v6  ;;  %v8673_v6 = vld [vmem:[%s6773_s17 + $0x142] sm:$0xff] }
 0x581   : > { %3552 = vperm.xlu1 %6422, %v8658_v0  }
 0x582   : > { %3557 = vperm.xlu2 %6421, %v8661_v1   ;;  %v8665_v19 = vpop.permute.xlu1 %3266 }
 0x583   : > { %13758 = vst [vmem:[#allocation453_spill] sm:$0xff] %v8665_v19  ;;  %v8667_v52 = vpop.permute.xlu2 %3306  ;;  %v6559_v19 = vld [vmem:[%s6773_s17 + $0xe2] sm:$0xff] }
 0x584   : > { %13759 = vst [vmem:[#allocation454_spill] sm:$0xff] %v8667_v52  ;;  %5657 = vperm.xlu0 %6441, %v6558_v17   ;;  %v8688_v17 = vld [vmem:[%s6773_s17 + $0x16a] sm:$0xff] }
 0x586   : > { %v8670_v20 = vpop.permute.xlu0 %4435 }
 0x587   : > { %13760 = vst [vmem:[#allocation455_spill] sm:$0xff] %v8670_v20  ;;  %v8691_v20 = vld [vmem:[%s6773_s17 + $0x172] sm:$0xff] }
 0x589   : > { %3567 = vperm.xlu1 %6422, %v8673_v6  }
 0x58a   : > { %3572 = vperm.xlu2 %6421, %v8676_v36   ;;  %v8680_v48 = vpop.permute.xlu1 %3278 }
 0x58b   : > { %13761 = vst [vmem:[#allocation456_spill] sm:$0xff] %v8680_v48  ;;  %v8682_v60 = vpop.permute.xlu2 %3318  ;;  %v6560_v48 = vld [vmem:[%s6773_s17 + $0x10a] sm:$0xff] }
 0x58c   : > { %13762 = vst [vmem:[#allocation457_spill] sm:$0xff] %v8682_v60  ;;  %5669 = vperm.xlu0 %6441, %v6559_v19   ;;  %v8703_v19 = vld [vmem:[%s6773_s17 + $0x18a] sm:$0xff] }
 0x58e   : > { %v8685_v52 = vpop.permute.xlu0 %4966 }
 0x58f   : > { %13763 = vst [vmem:[#allocation458_spill] sm:$0xff] %v8685_v52 }
 0x591   : > { %3582 = vperm.xlu1 %6422, %v8688_v17  }
 0x592   : > { %3587 = vperm.xlu2 %6421, %v8691_v20   ;;  %v8695_v13 = vpop.permute.xlu1 %3290 }
 0x593   : > { %13764 = vst [vmem:[#allocation459_spill] sm:$0xff] %v8695_v13  ;;  %v8697_v7 = vpop.permute.xlu2 %3330  ;;  %v6561_v13 = vld [vmem:[%s6773_s17 + $0x12a] sm:$0xff] }
 0x594   : > { %13765 = vst [vmem:[#allocation460_spill] sm:$0xff] %v8697_v7  ;;  %5681 = vperm.xlu0 %6441, %v6560_v48  }
 0x596   : > { %v8700_v60 = vpop.permute.xlu0 %4986 }
 0x597   : > { %13766 = vst [vmem:[#allocation461_spill] sm:$0xff] %v8700_v60 }
 0x599   : > { %3597 = vperm.xlu1 %6422, %v8703_v19  }
 0x59a   : > { %6423 = vset.pattern.permute.xlu2 %v13372_v4  ;;  %v8707_v52 = vpop.permute.xlu1 %3302 }
 0x59b   : > { %13767 = vst [vmem:[#allocation462_spill] sm:$0xff] %v8707_v52  ;;  %3667 = vperm.xlu2 %6423, %v8539_v27   ;;  %v6562_v52 = vld [vmem:[%s6773_s17 + $0x152] sm:$0xff] }
 0x59c   : > { %v8710_v24 = vpop.permute.xlu2 %3442  ;;  %5693 = vperm.xlu0 %6441, %v6561_v13  }
 0x59d   : > { %13768 = vst [vmem:[#allocation463_spill] sm:$0xff] %v8710_v24 }
 0x59e   : > { %v8713_v7 = vpop.permute.xlu0 %4998 }
 0x59f   : > { %13769 = vst [vmem:[#allocation464_spill] sm:$0xff] %v8713_v7  ;;  %v6563_v7 = vld [vmem:[%s6773_s17 + $0x172] sm:$0xff] }
 0x5a1   : > { %6424 = vset.pattern.permute.xlu1 %v13372_v4 }
 0x5a2   : > { %3675 = vperm.xlu1 %6424, %v8552_v28   ;;  %v8717_v48 = vpop.permute.xlu1 %3314 }
 0x5a3   : > { %13770 = vst [vmem:[#allocation465_spill] sm:$0xff] %v8717_v48  ;;  %3679 = vperm.xlu2 %6423, %v8555_v2  }
 0x5a4   : > { %v8720_v60 = vpop.permute.xlu2 %3457  ;;  %5705 = vperm.xlu0 %6441, %v6562_v52  }
 0x5a5   : > { %13771 = vst [vmem:[#allocation466_spill] sm:$0xff] %v8720_v60 }
 0x5a6   : > { %v8723_v25 = vpop.permute.xlu0 %5010 }
 0x5a7   : > { %13772 = vst [vmem:[#allocation467_spill] sm:$0xff] %v8723_v25  ;;  %v6564_v25 = vld [vmem:[%s6773_s17 + $0x19a] sm:$0xff] }
 0x5aa   : > { %3683 = vperm.xlu1 %6424, %v8568_v33   ;;  %v8726_v13 = vpop.permute.xlu1 %3326 }
 0x5ab   : > { %13773 = vst [vmem:[#allocation468_spill] sm:$0xff] %v8726_v13  ;;  %3687 = vperm.xlu2 %6423, %v8571_v29  }
 0x5ac   : > { %v8729_v24 = vpop.permute.xlu2 %3467  ;;  %5717 = vperm.xlu0 %6441, %v6563_v7  }
 0x5ad   : > { %13774 = vst [vmem:[#allocation469_spill] sm:$0xff] %v8729_v24 }
 0x5ae   : > { %v8732_v48 = vpop.permute.xlu0 %5022 }
 0x5af   : > { %13775 = vst [vmem:[#allocation470_spill] sm:$0xff] %v8732_v48 }
 0x5b2   : > { %3695 = vperm.xlu1 %6424, %v8583_v5   ;;  %v8735_v60 = vpop.permute.xlu1 %3338 }
 0x5b3   : > { %13776 = vst [vmem:[#allocation471_spill] sm:$0xff] %v8735_v60  ;;  %3699 = vperm.xlu2 %6423, %v8586_v44   ;;  %v6565_v60 = vld [vmem:[%s6773_s17 + $0x8] sm:$0xff] }
 0x5b4   : > { %v8738_v52 = vpop.permute.xlu2 %3482  ;;  %5729 = vperm.xlu0 %6441, %v6564_v25  }
 0x5b5   : > { %13777 = vst [vmem:[#allocation472_spill] sm:$0xff] %v8738_v52  ;;  %v6566_v52 = vld [vmem:[%s6773_s17 + $0x48] sm:$0xff] }
 0x5b6   : > { %v8741_v13 = vpop.permute.xlu0 %5034 }
 0x5b7   : > { %13778 = vst [vmem:[#allocation473_spill] sm:$0xff] %v8741_v13 }
 0x5ba   : > { %3707 = vperm.xlu1 %6424, %v8598_v14  }
 0x5bb   : > { %3711 = vperm.xlu2 %6423, %v8601_v8   ;;  %v8745_v7 = vpop.permute.xlu1 %3452 }
 0x5bc   : > { %13779 = vst [vmem:[#allocation474_spill] sm:$0xff] %v8745_v7  ;;  %v8747_v48 = vpop.permute.xlu2 %3497  ;;  %6444 = vset.pattern.permute.xlu0 %v13406_v40 }
 0x5bd   : > { %13780 = vst [vmem:[#allocation475_spill] sm:$0xff] %v8747_v48  ;;  %629 = vperm.xlu0 %6444, %v6565_v60   ;;  %v6567_v48 = vld [vmem:[%s6773_s17 + $0x68] sm:$0xff] }
 0x5be   : > { %v8751_v24 = vpop.permute.xlu0 %5046 }
 0x5bf   : > { %13781 = vst [vmem:[#allocation476_spill] sm:$0xff] %v8751_v24 }
 0x5c2   : > { %3719 = vperm.xlu1 %6424, %v8613_v21  }
 0x5c3   : > { %3723 = vperm.xlu2 %6423, %v8616_v56   ;;  %v8755_v25 = vpop.permute.xlu1 %3462 }
 0x5c4   : > { %13782 = vst [vmem:[#allocation477_spill] sm:$0xff] %v8755_v25  ;;  %v8757_v13 = vpop.permute.xlu2 %3512 }
 0x5c5   : > { %13783 = vst [vmem:[#allocation478_spill] sm:$0xff] %v8757_v13  ;;  %649 = vperm.xlu0 %6444, %v6566_v52   ;;  %v6568_v13 = vld [vmem:[%s6773_s17 + $0x90] sm:$0xff] }
 0x5c6   : > { %v8760_v7 = vpop.permute.xlu0 %5058 }
 0x5c7   : > { %13784 = vst [vmem:[#allocation479_spill] sm:$0xff] %v8760_v7 }
 0x5ca   : > { %3731 = vperm.xlu1 %6424, %v8628_v16  }
 0x5cb   : > { %3735 = vperm.xlu2 %6423, %v8631_v26   ;;  %v8764_v60 = vpop.permute.xlu1 %3477 }
 0x5cc   : > { %13785 = vst [vmem:[#allocation480_spill] sm:$0xff] %v8764_v60  ;;  %v8766_v24 = vpop.permute.xlu2 %3527 }
 0x5cd   : > { %13786 = vst [vmem:[#allocation481_spill] sm:$0xff] %v8766_v24  ;;  %661 = vperm.xlu0 %6444, %v6567_v48   ;;  %v6569_v24 = vld [vmem:[%s6773_s17 + $0xb0] sm:$0xff] }
 0x5ce   : > { %v8769_v32 = vpop.permute.xlu0 %5070 }
 0x5cf   : > { %13787 = vst [vmem:[#allocation482_spill] sm:$0xff] %v8769_v32 }
 0x5d2   : > { %3743 = vperm.xlu1 %6424, %v8643_v34  }
 0x5d3   : > { %3747 = vperm.xlu2 %6423, %v8646_v18   ;;  %v8773_v52 = vpop.permute.xlu1 %3492 }
 0x5d4   : > { %13788 = vst [vmem:[#allocation483_spill] sm:$0xff] %v8773_v52  ;;  %v8775_v7 = vpop.permute.xlu2 %3542 }
 0x5d5   : > { %13789 = vst [vmem:[#allocation484_spill] sm:$0xff] %v8775_v7  ;;  %673 = vperm.xlu0 %6444, %v6568_v13   ;;  %v6570_v7 = vld [vmem:[%s6773_s17 + $0xd8] sm:$0xff] }
 0x5d6   : > { %v8778_v25 = vpop.permute.xlu0 %5082 }
 0x5d7   : > { %13790 = vst [vmem:[#allocation485_spill] sm:$0xff] %v8778_v25 }
 0x5da   : > { %3755 = vperm.xlu1 %6424, %v8658_v0  }
 0x5db   : > { %3759 = vperm.xlu2 %6423, %v8661_v1   ;;  %v8782_v48 = vpop.permute.xlu1 %3507 }
 0x5dc   : > { %13791 = vst [vmem:[#allocation486_spill] sm:$0xff] %v8782_v48  ;;  %v8784_v32 = vpop.permute.xlu2 %3557 }
 0x5dd   : > { %13792 = vst [vmem:[#allocation487_spill] sm:$0xff] %v8784_v32  ;;  %685 = vperm.xlu0 %6444, %v6569_v24  }
 0x5de   : > { %v8787_v60 = vpop.permute.xlu0 %5613 }
 0x5df   : > { %13793 = vst [vmem:[#allocation488_spill] sm:$0xff] %v8787_v60  ;;  %v6571_v60 = vld [vmem:[%s6773_s17 + $0xf8] sm:$0xff] }
 0x5e2   : > { %3767 = vperm.xlu1 %6424, %v8673_v6  }
 0x5e3   : > { %3771 = vperm.xlu2 %6423, %v8676_v36   ;;  %v8791_v13 = vpop.permute.xlu1 %3522 }
 0x5e4   : > { %13794 = vst [vmem:[#allocation489_spill] sm:$0xff] %v8791_v13  ;;  %v8793_v25 = vpop.permute.xlu2 %3572 }
 0x5e5   : > { %13795 = vst [vmem:[#allocation490_spill] sm:$0xff] %v8793_v25  ;;  %697 = vperm.xlu0 %6444, %v6570_v7   ;;  %v6590_v25 = vld [vmem:[%s6773_s17 + $0xda] sm:$0xff] }
 0x5e6   : > { %v8796_v52 = vpop.permute.xlu0 %5633 }
 0x5e7   : > { %13796 = vst [vmem:[#allocation491_spill] sm:$0xff] %v8796_v52  ;;  %v6572_v52 = vld [vmem:[%s6773_s17 + $0x120] sm:$0xff] }
 0x5ea   : > { %3779 = vperm.xlu1 %6424, %v8688_v17  }
 0x5eb   : > { %3783 = vperm.xlu2 %6423, %v8691_v20   ;;  %v8800_v24 = vpop.permute.xlu1 %3537 }
 0x5ec   : > { %13797 = vst [vmem:[#allocation492_spill] sm:$0xff] %v8800_v24  ;;  %v8802_v48 = vpop.permute.xlu2 %3587 }
 0x5ed   : > { %13798 = vst [vmem:[#allocation493_spill] sm:$0xff] %v8802_v48  ;;  %709 = vperm.xlu0 %6444, %v6571_v60   ;;  %v9016_v48 = vld [vmem:[%s6773_s17 + $0x120] sm:$0xff] }
 0x5ee   : > { %v8805_v32 = vpop.permute.xlu0 %5645 }
 0x5ef   : > { %13799 = vst [vmem:[#allocation494_spill] sm:$0xff] %v8805_v32 }
 0x5f2   : > { %3791 = vperm.xlu1 %6424, %v8703_v19  }
 0x5f3   : > { %6425 = vset.pattern.permute.xlu2 %v13406_v40  ;;  %v8809_v7 = vpop.permute.xlu1 %3552 }
 0x5f4   : > { %13800 = vst [vmem:[#allocation495_spill] sm:$0xff] %v8809_v7  ;;  %3861 = vperm.xlu2 %6425, %v8539_v27   ;;  %v6573_v7 = vld [vmem:[%s6773_s17 + $0x140] sm:$0xff] }
 0x5f5   : > { %v8812_v13 = vpop.permute.xlu2 %3667  ;;  %721 = vperm.xlu0 %6444, %v6572_v52  }
 0x5f6   : > { %13801 = vst [vmem:[#allocation496_spill] sm:$0xff] %v8812_v13  ;;  %v8815_v24 = vpop.permute.xlu0 %5657  ;;  %v9013_v13 = vld [vmem:[%s6773_s17 + $0x110] sm:$0xff] }
 0x5f7   : > { %13802 = vst [vmem:[#allocation497_spill] sm:$0xff] %v8815_v24 }
 0x5fa   : > { %6426 = vset.pattern.permute.xlu1 %v13406_v40 }
 0x5fb   : > { %3869 = vperm.xlu1 %6426, %v8552_v28   ;;  %v8819_v60 = vpop.permute.xlu1 %3567  ;;  %v6574_v28 = vld [vmem:[%s6773_s17 + $0x168] sm:$0xff] }
 0x5fc   : > { %13803 = vst [vmem:[#allocation498_spill] sm:$0xff] %v8819_v60  ;;  %3873 = vperm.xlu2 %6425, %v8555_v2  }
 0x5fd   : > { %v8822_v32 = vpop.permute.xlu2 %3679  ;;  %733 = vperm.xlu0 %6444, %v6573_v7  }
 0x5fe   : > { %13804 = vst [vmem:[#allocation499_spill] sm:$0xff] %v8822_v32  ;;  %v8825_v27 = vpop.permute.xlu0 %5669  ;;  %v6589_v32 = vld [vmem:[%s6773_s17 + $0xb2] sm:$0xff] }
 0x5ff   : > { %13805 = vst [vmem:[#allocation500_spill] sm:$0xff] %v8825_v27 }
 0x603   : > { %3877 = vperm.xlu1 %6426, %v8568_v33   ;;  %v8828_v52 = vpop.permute.xlu1 %3582  ;;  %v6575_v33 = vld [vmem:[%s6773_s17 + $0x9] sm:$0xff] }
 0x604   : > { %13806 = vst [vmem:[#allocation501_spill] sm:$0xff] %v8828_v52  ;;  %3881 = vperm.xlu2 %6425, %v8571_v29   ;;  %v8998_v52 = vld [vmem:[%s6773_s17 + $0xf0] sm:$0xff] }
 0x605   : > { %v8831_v24 = vpop.permute.xlu2 %3687  ;;  %745 = vperm.xlu0 %6444, %v6574_v28  }
 0x606   : > { %13807 = vst [vmem:[#allocation502_spill] sm:$0xff] %v8831_v24  ;;  %v8834_v60 = vpop.permute.xlu0 %5681  ;;  %v6588_v24 = vld [vmem:[%s6773_s17 + $0x92] sm:$0xff] }
 0x607   : > { %13808 = vst [vmem:[#allocation503_spill] sm:$0xff] %v8834_v60 }
 0x60b   : > { %3889 = vperm.xlu1 %6426, %v8583_v5   ;;  %v8837_v2 = vpop.permute.xlu1 %3597  ;;  %v6576_v5 = vld [vmem:[%s6773_s17 + $0x49] sm:$0xff] }
 0x60c   : > { %13809 = vst [vmem:[#allocation504_spill] sm:$0xff] %v8837_v2  ;;  %3893 = vperm.xlu2 %6425, %v8586_v44   ;;  %v8986_v2 = vld [vmem:[%s6773_s17 + $0xd8] sm:$0xff] }
 0x60d   : > { %v8840_v7 = vpop.permute.xlu2 %3699  ;;  %1276 = vperm.xlu0 %6444, %v6575_v33  }
 0x60e   : > { %13810 = vst [vmem:[#allocation505_spill] sm:$0xff] %v8840_v7  ;;  %v8843_v27 = vpop.permute.xlu0 %5693  ;;  %v8983_v7 = vld [vmem:[%s6773_s17 + $0xc8] sm:$0xff] }
 0x60f   : > { %13811 = vst [vmem:[#allocation506_spill] sm:$0xff] %v8843_v27 }
 0x613   : > { %3901 = vperm.xlu1 %6426, %v8598_v14   ;;  %v6577_v14 = vld [vmem:[%s6773_s17 + $0x69] sm:$0xff] }
 0x614   : > { %3905 = vperm.xlu2 %6425, %v8601_v8   ;;  %v8847_v29 = vpop.permute.xlu1 %3675 }
 0x615   : > { %13812 = vst [vmem:[#allocation507_spill] sm:$0xff] %v8847_v29  ;;  %v8849_v28 = vpop.permute.xlu2 %3711  ;;  %1296 = vperm.xlu0 %6444, %v6576_v5  }
 0x616   : > { %13813 = vst [vmem:[#allocation508_spill] sm:$0xff] %v8849_v28  ;;  %v8852_v60 = vpop.permute.xlu0 %5705  ;;  %v8971_v28 = vld [vmem:[%s6773_s17 + $0xb0] sm:$0xff] }
 0x617   : > { %13814 = vst [vmem:[#allocation509_spill] sm:$0xff] %v8852_v60 }
 0x61b   : > { %3913 = vperm.xlu1 %6426, %v8613_v21   ;;  %v6578_v21 = vld [vmem:[%s6773_s17 + $0x91] sm:$0xff] }
 0x61c   : > { %3917 = vperm.xlu2 %6425, %v8616_v56   ;;  %v8856_v44 = vpop.permute.xlu1 %3683 }
 0x61d   : > { %13815 = vst [vmem:[#allocation510_spill] sm:$0xff] %v8856_v44  ;;  %v8858_v33 = vpop.permute.xlu2 %3723  ;;  %1308 = vperm.xlu0 %6444, %v6577_v14   ;;  %v8968_v44 = vld [vmem:[%s6773_s17 + $0xa8] sm:$0xff] }
 0x61e   : > { %13816 = vst [vmem:[#allocation511_spill] sm:$0xff] %v8858_v33  ;;  %v8861_v8 = vpop.permute.xlu0 %5717  ;;  %v8953_v33 = vld [vmem:[%s6773_s17 + $0x80] sm:$0xff] }
 0x61f   : > { %13817 = vst [vmem:[#allocation512_spill] sm:$0xff] %v8861_v8 }
 0x623   : > { %3925 = vperm.xlu1 %6426, %v8628_v16   ;;  %v6579_v16 = vld [vmem:[%s6773_s17 + $0xb1] sm:$0xff] }
 0x624   : > { %3929 = vperm.xlu2 %6425, %v8631_v26   ;;  %v8865_v5 = vpop.permute.xlu1 %3695 }
 0x625   : > { %13818 = vst [vmem:[#allocation513_spill] sm:$0xff] %v8865_v5  ;;  %v8867_v60 = vpop.permute.xlu2 %3735  ;;  %1320 = vperm.xlu0 %6444, %v6578_v21  }
 0x626   : > { %13819 = vst [vmem:[#allocation514_spill] sm:$0xff] %v8867_v60  ;;  %v8870_v56 = vpop.permute.xlu0 %5729  ;;  %v9001_v60 = vld [vmem:[%s6773_s17 + $0xf8] sm:$0xff] }
 0x627   : > { %13820 = vst [vmem:[#allocation515_spill] sm:$0xff] %v8870_v56 }
 0x62b   : > { %3937 = vperm.xlu1 %6426, %v8643_v34   ;;  %v6580_v34 = vld [vmem:[%s6773_s17 + $0xd9] sm:$0xff] }
 0x62c   : > { %3941 = vperm.xlu2 %6425, %v8646_v18   ;;  %v8874_v14 = vpop.permute.xlu1 %3707 }
 0x62d   : > { %13821 = vst [vmem:[#allocation516_spill] sm:$0xff] %v8874_v14  ;;  %v8876_v8 = vpop.permute.xlu2 %3747  ;;  %1332 = vperm.xlu0 %6444, %v6579_v16  }
 0x62e   : > { %13822 = vst [vmem:[#allocation517_spill] sm:$0xff] %v8876_v8  ;;  %v8956_v8 = vld [vmem:[%s6773_s17 + $0x90] sm:$0xff] }
 0x62f   : > { %v8879_v26 = vpop.permute.xlu0 %629 }
 0x630   : > { %13823 = vst [vmem:[#allocation518_spill] sm:$0xff] %v8879_v26  ;;  %v6591_v26 = vld [vmem:[%s6773_s17 + $0xfa] sm:$0xff] }
 0x633   : > { %3949 = vperm.xlu1 %6426, %v8658_v0  }
 0x634   : > { %3953 = vperm.xlu2 %6425, %v8661_v1   ;;  %v8883_v21 = vpop.permute.xlu1 %3719  ;;  %v6581_v1 = vld [vmem:[%s6773_s17 + $0xf9] sm:$0xff] }
 0x635   : > { %13824 = vst [vmem:[#allocation519_spill] sm:$0xff] %v8883_v21  ;;  %v8885_v56 = vpop.permute.xlu2 %3759  ;;  %1344 = vperm.xlu0 %6444, %v6580_v34   ;;  %v8909_v21 = vld [vmem:[%s6773_s17 + $0x30] sm:$0xff] }
 0x636   : > { %13825 = vst [vmem:[#allocation520_spill] sm:$0xff] %v8885_v56  ;;  %v8941_v56 = vld [vmem:[%s6773_s17 + $0x68] sm:$0xff] }
 0x637   : > { %v8888_v18 = vpop.permute.xlu0 %649 }
 0x63b   : > { %3961 = vperm.xlu1 %6426, %v8673_v6  }
 0x63c   : > { %3965 = vperm.xlu2 %6425, %v8676_v36   ;;  %v8892_v16 = vpop.permute.xlu1 %3731  ;;  %v6582_v36 = vld [vmem:[%s6773_s17 + $0x121] sm:$0xff] }
 0x63d   : > { %13826 = vst [vmem:[#allocation521_spill] sm:$0xff] %v8892_v16  ;;  %v8894_v14 = vpop.permute.xlu2 %3771  ;;  %1356 = vperm.xlu0 %6444, %v6581_v1  }
 0x63e   : > { %13827 = vst [vmem:[#allocation522_spill] sm:$0xff] %v8894_v14  ;;  %v8938_v14 = vld [vmem:[%s6773_s17 + $0x60] sm:$0xff] }
 0x63f   : > { %v8897_v0 = vpop.permute.xlu0 %661 }
 0x643   : > { %3973 = vperm.xlu1 %6426, %v8688_v17  }
 0x644   : > { %3977 = vperm.xlu2 %6425, %v8691_v20   ;;  %v8901_v34 = vpop.permute.xlu1 %3743  ;;  %v6583_v20 = vld [vmem:[%s6773_s17 + $0x141] sm:$0xff] }
 0x645   : > { %13828 = vst [vmem:[#allocation523_spill] sm:$0xff] %v8901_v34  ;;  %v8903_v6 = vpop.permute.xlu2 %3783  ;;  %1368 = vperm.xlu0 %6444, %v6582_v36   ;;  %v8925_v34 = vld [vmem:[%s6773_s17 + $0x50] sm:$0xff] }
 0x646   : > { %13829 = vst [vmem:[#allocation524_spill] sm:$0xff] %v8903_v6  ;;  %v8922_v6 = vld [vmem:[%s6773_s17 + $0x48] sm:$0xff] }
 0x647   : > { %v8906_v16 = vpop.permute.xlu0 %673 }
 0x64b   : > { %3985 = vperm.xlu1 %6426, %v8703_v19  }
 0x64c   : > { %6427 = vset.pattern.permute.xlu2 %v13337_v23  ;;  %v8913_v17 = vpop.permute.xlu1 %3755 }
 0x64d   : > { %13830 = vst [vmem:[#allocation525_spill] sm:$0xff] %v8913_v17  ;;  %4090 = vperm.xlu2 %6427, %v8909_v21   ;;  %1380 = vperm.xlu0 %6444, %v6583_v20   ;;  %v6584_v20 = vld [vmem:[%s6773_s17 + $0x169] sm:$0xff] }
 0x64e   : > { %v8917_v1 = vpop.permute.xlu2 %3861 }
 0x64f   : > { %13831 = vst [vmem:[#allocation526_spill] sm:$0xff] %v8917_v1  ;;  %v8919_v36 = vpop.permute.xlu0 %685 }
 0x650   : > { %13832 = vst [vmem:[#allocation527_spill] sm:$0xff] %v8919_v36  ;;  %v9061_v36 = vld [vmem:[%s6773_s17 + $0x188] sm:$0xff] }
 0x653   : > { %6428 = vset.pattern.permute.xlu1 %v13337_v23 }
 0x654   : > { %4100 = vperm.xlu1 %6428, %v8922_v6   ;;  %v8929_v19 = vpop.permute.xlu1 %3767 }
 0x655   : > { %13833 = vst [vmem:[#allocation528_spill] sm:$0xff] %v8929_v19  ;;  %4105 = vperm.xlu2 %6427, %v8925_v34   ;;  %1392 = vperm.xlu0 %6444, %v6584_v20   ;;  %v6585_v19 = vld [vmem:[%s6773_s17 + $0xa] sm:$0xff] }
 0x656   : > { %v8933_v1 = vpop.permute.xlu2 %3873 }
 0x657   : > { %13834 = vst [vmem:[#allocation529_spill] sm:$0xff] %v8933_v1  ;;  %v8935_v17 = vpop.permute.xlu0 %697 }
 0x658   : > { %13835 = vst [vmem:[#allocation530_spill] sm:$0xff] %v8935_v17 }
 0x65c   : > { %4110 = vperm.xlu1 %6428, %v8938_v14   ;;  %v8944_v5 = vpop.permute.xlu1 %3779 }
 0x65d   : > { %13836 = vst [vmem:[#allocation531_spill] sm:$0xff] %v8944_v5  ;;  %4115 = vperm.xlu2 %6427, %v8941_v56   ;;  %1923 = vperm.xlu0 %6444, %v6585_v19   ;;  %v6586_v5 = vld [vmem:[%s6773_s17 + $0x4a] sm:$0xff] }
 0x65e   : > { %v8948_v20 = vpop.permute.xlu2 %3881 }
 0x65f   : > { %13837 = vst [vmem:[#allocation532_spill] sm:$0xff] %v8948_v20  ;;  %v8950_v1 = vpop.permute.xlu0 %709 }
 0x660   : > { %13838 = vst [vmem:[#allocation533_spill] sm:$0xff] %v8950_v1  ;;  %v6592_v1 = vld [vmem:[%s6773_s17 + $0x122] sm:$0xff] }
 0x664   : > { %4125 = vperm.xlu1 %6428, %v8953_v33   ;;  %v8959_v27 = vpop.permute.xlu1 %3791 }
 0x665   : > { %13839 = vst [vmem:[#allocation534_spill] sm:$0xff] %v8959_v27  ;;  %4130 = vperm.xlu2 %6427, %v8956_v8   ;;  %1943 = vperm.xlu0 %6444, %v6586_v5   ;;  %v6587_v27 = vld [vmem:[%s6773_s17 + $0x6a] sm:$0xff] }
 0x666   : > { %v8963_v19 = vpop.permute.xlu2 %3893 }
 0x667   : > { %13840 = vst [vmem:[#allocation535_spill] sm:$0xff] %v8963_v19  ;;  %v8965_v20 = vpop.permute.xlu0 %721 }
 0x668   : > { %13841 = vst [vmem:[#allocation536_spill] sm:$0xff] %v8965_v20  ;;  %v9046_v20 = vld [vmem:[%s6773_s17 + $0x168] sm:$0xff] }
 0x66c   : > { %4140 = vperm.xlu1 %6428, %v8968_v44  }
 0x66d   : > { %4145 = vperm.xlu2 %6427, %v8971_v28   ;;  %1955 = vperm.xlu0 %6444, %v6587_v27   ;;  %v8976_v29 = vpop.permute.xlu1 %3869 }
 0x66e   : > { %13842 = vst [vmem:[#allocation537_spill] sm:$0xff] %v8976_v29  ;;  %v8978_v5 = vpop.permute.xlu2 %3905 }
 0x66f   : > { %13843 = vst [vmem:[#allocation538_spill] sm:$0xff] %v8978_v5  ;;  %v8980_v19 = vpop.permute.xlu0 %733 }
 0x670   : > { %13844 = vst [vmem:[#allocation539_spill] sm:$0xff] %v8980_v19  ;;  %v9043_v19 = vld [vmem:[%s6773_s17 + $0x158] sm:$0xff] }
 0x674   : > { %4155 = vperm.xlu1 %6428, %v8983_v7  }
 0x675   : > { %4160 = vperm.xlu2 %6427, %v8986_v2   ;;  %1967 = vperm.xlu0 %6444, %v6588_v24   ;;  %v8991_v27 = vpop.permute.xlu1 %3877 }
 0x676   : > { %13845 = vst [vmem:[#allocation540_spill] sm:$0xff] %v8991_v27  ;;  %v8993_v29 = vpop.permute.xlu2 %3917 }
 0x677   : > { %13846 = vst [vmem:[#allocation541_spill] sm:$0xff] %v8993_v29  ;;  %v8995_v5 = vpop.permute.xlu0 %745 }
 0x678   : > { %13847 = vst [vmem:[#allocation542_spill] sm:$0xff] %v8995_v5  ;;  %v9031_v5 = vld [vmem:[%s6773_s17 + $0x140] sm:$0xff] }
 0x67c   : > { %4170 = vperm.xlu1 %6428, %v8998_v52  }
 0x67d   : > { %4175 = vperm.xlu2 %6427, %v9001_v60   ;;  %1979 = vperm.xlu0 %6444, %v6589_v32   ;;  %v9006_v24 = vpop.permute.xlu1 %3889 }
 0x67e   : > { %13848 = vst [vmem:[#allocation543_spill] sm:$0xff] %v9006_v24  ;;  %v9008_v27 = vpop.permute.xlu2 %3929 }
 0x67f   : > { %13849 = vst [vmem:[#allocation544_spill] sm:$0xff] %v9008_v27  ;;  %v9010_v29 = vpop.permute.xlu0 %1276 }
 0x680   : > { %13850 = vst [vmem:[#allocation545_spill] sm:$0xff] %v9010_v29  ;;  %v9028_v29 = vld [vmem:[%s6773_s17 + $0x138] sm:$0xff] }
 0x684   : > { %4185 = vperm.xlu1 %6428, %v9013_v13  }
 0x685   : > { %4190 = vperm.xlu2 %6427, %v9016_v48   ;;  %1991 = vperm.xlu0 %6444, %v6590_v25   ;;  %v9021_v32 = vpop.permute.xlu1 %3901 }
 0x686   : > { %13851 = vst [vmem:[#allocation546_spill] sm:$0xff] %v9021_v32  ;;  %v9023_v24 = vpop.permute.xlu2 %3941 }
 0x687   : > { %13852 = vst [vmem:[#allocation547_spill] sm:$0xff] %v9023_v24  ;;  %v9025_v27 = vpop.permute.xlu0 %1296 }
 0x68c   : > { %4200 = vperm.xlu1 %6428, %v9028_v29  }
 0x68d   : > { %4205 = vperm.xlu2 %6427, %v9031_v5   ;;  %2003 = vperm.xlu0 %6444, %v6591_v26   ;;  %v9036_v25 = vpop.permute.xlu1 %3913 }
 0x68e   : > { %13853 = vst [vmem:[#allocation548_spill] sm:$0xff] %v9036_v25  ;;  %v9038_v32 = vpop.permute.xlu2 %3953 }
 0x68f   : > { %13854 = vst [vmem:[#allocation549_spill] sm:$0xff] %v9038_v32  ;;  %v9040_v24 = vpop.permute.xlu0 %1308  ;;  %v9058_v32 = vld [vmem:[%s6773_s17 + $0x180] sm:$0xff] }
 0x690   : > { %13855 = vst [vmem:[#allocation550_spill] sm:$0xff] %v9040_v24 }
 0x694   : > { %4215 = vperm.xlu1 %6428, %v9043_v19  }
 0x695   : > { %4220 = vperm.xlu2 %6427, %v9046_v20   ;;  %2015 = vperm.xlu0 %6444, %v6592_v1   ;;  %v9051_v26 = vpop.permute.xlu1 %3925 }
 0x696   : > { %13856 = vst [vmem:[#allocation551_spill] sm:$0xff] %v9051_v26  ;;  %v9053_v25 = vpop.permute.xlu2 %3965 }
 0x697   : > { %13857 = vst [vmem:[#allocation552_spill] sm:$0xff] %v9053_v25  ;;  %v9055_v17 = vpop.permute.xlu0 %1320  ;;  %v9073_v25 = vld [vmem:[%s6773_s17 + $0x1a0] sm:$0xff] }
 0x698   : > { %13858 = vst [vmem:[#allocation553_spill] sm:$0xff] %v9055_v17  ;;  %v6594_v17 = vld [vmem:[%s6773_s17 + $0x16a] sm:$0xff] }
 0x69c   : > { %4230 = vperm.xlu1 %6428, %v9058_v32  }
 0x69d   : > { %4235 = vperm.xlu2 %6427, %v9061_v36   ;;  %2027 = vperm.xlu0 %6444, %v6593_v31   ;;  %v9066_v15 = vpop.permute.xlu1 %3937 }
 0x69e   : > { %13859 = vst [vmem:[#allocation554_spill] sm:$0xff] %v9066_v15  ;;  %v9068_v1 = vpop.permute.xlu2 %3977 }
 0x69f   : > { %13860 = vst [vmem:[#allocation555_spill] sm:$0xff] %v9068_v1  ;;  %v9070_v26 = vpop.permute.xlu0 %1332  ;;  %v6595_v1 = vld [vmem:[%s6773_s17 + $0x20] sm:$0xff] }
 0x6a0   : > { %13861 = vst [vmem:[#allocation556_spill] sm:$0xff] %v9070_v26 }
 0x6a4   : > { %4245 = vperm.xlu1 %6428, %v9073_v25  }
 0x6a5   : > { %6429 = vset.pattern.permute.xlu2 %v13372_v4  ;;  %2039 = vperm.xlu0 %6444, %v6594_v17   ;;  %v9078_v24 = vpop.permute.xlu1 %3949 }
 0x6a6   : > { %13862 = vst [vmem:[#allocation557_spill] sm:$0xff] %v9078_v24  ;;  %4315 = vperm.xlu2 %6429, %v8909_v21  }
 0x6a7   : > { %v9081_v31 = vpop.permute.xlu2 %4090  ;;  %v9083_v15 = vpop.permute.xlu0 %1344 }
 0x6a8   : > { %13863 = vst [vmem:[#allocation558_spill] sm:$0xff] %v9081_v31 }
 0x6a9   : > { %13864 = vst [vmem:[#allocation559_spill] sm:$0xff] %v9083_v15 }
 0x6ac   : > { %6430 = vset.pattern.permute.xlu1 %v13372_v4  ;;  %v6600_v4 = vld [vmem:[%s6773_s17 + $0xf0] sm:$0xff] }
 0x6ad   : > { %2571 = vperm.xlu0 %6444, %v6595_v1   ;;  %4323 = vperm.xlu1 %6430, %v8922_v6   ;;  %v9088_v26 = vpop.permute.xlu1 %3961 }
 0x6ae   : > { %13865 = vst [vmem:[#allocation560_spill] sm:$0xff] %v9088_v26  ;;  %4327 = vperm.xlu2 %6429, %v8925_v34   ;;  %v6597_v26 = vld [vmem:[%s6773_s17 + $0x80] sm:$0xff] }
 0x6af   : > { %v9091_v17 = vpop.permute.xlu2 %4105  ;;  %v9093_v24 = vpop.permute.xlu0 %1356 }
 0x6b0   : > { %13866 = vst [vmem:[#allocation561_spill] sm:$0xff] %v9091_v17 }
 0x6b1   : > { %13867 = vst [vmem:[#allocation562_spill] sm:$0xff] %v9093_v24 }
 0x6b5   : > { %2591 = vperm.xlu0 %6444, %v6596_v12   ;;  %4331 = vperm.xlu1 %6430, %v8938_v14   ;;  %v9097_v31 = vpop.permute.xlu1 %3973 }
 0x6b6   : > { %13868 = vst [vmem:[#allocation563_spill] sm:$0xff] %v9097_v31  ;;  %4335 = vperm.xlu2 %6429, %v8941_v56   ;;  %v6598_v31 = vld [vmem:[%s6773_s17 + $0xa8] sm:$0xff] }
 0x6b7   : > { %v9100_v1 = vpop.permute.xlu2 %4115  ;;  %v9102_v15 = vpop.permute.xlu0 %1368 }
 0x6b8   : > { %13869 = vst [vmem:[#allocation564_spill] sm:$0xff] %v9100_v1 }
 0x6b9   : > { %13870 = vst [vmem:[#allocation565_spill] sm:$0xff] %v9102_v15 }
 0x6bd   : > { %2603 = vperm.xlu0 %6444, %v6597_v26   ;;  %4343 = vperm.xlu1 %6430, %v8953_v33   ;;  %v9106_v17 = vpop.permute.xlu1 %3985 }
 0x6be   : > { %13871 = vst [vmem:[#allocation566_spill] sm:$0xff] %v9106_v17  ;;  %4347 = vperm.xlu2 %6429, %v8956_v8   ;;  %v6599_v17 = vld [vmem:[%s6773_s17 + $0xc8] sm:$0xff] }
 0x6bf   : > { %v9109_v12 = vpop.permute.xlu2 %4130  ;;  %v9111_v24 = vpop.permute.xlu0 %1380 }
 0x6c0   : > { %13872 = vst [vmem:[#allocation567_spill] sm:$0xff] %v9109_v12 }
 0x6c1   : > { %13873 = vst [vmem:[#allocation568_spill] sm:$0xff] %v9111_v24 }
 0x6c5   : > { %2615 = vperm.xlu0 %6444, %v6598_v31   ;;  %4355 = vperm.xlu1 %6430, %v8968_v44  }
 0x6c6   : > { %4359 = vperm.xlu2 %6429, %v8971_v28   ;;  %v9116_v1 = vpop.permute.xlu1 %4100 }
 0x6c7   : > { %13874 = vst [vmem:[#allocation569_spill] sm:$0xff] %v9116_v1  ;;  %v9118_v26 = vpop.permute.xlu2 %4145  ;;  %v9120_v15 = vpop.permute.xlu0 %1392 }
 0x6c8   : > { %13875 = vst [vmem:[#allocation570_spill] sm:$0xff] %v9118_v26 }
 0x6c9   : > { %13876 = vst [vmem:[#allocation571_spill] sm:$0xff] %v9120_v15  ;;  %v6601_v15 = vld [vmem:[%s6773_s17 + $0x110] sm:$0xff] }
 0x6cd   : > { %2627 = vperm.xlu0 %6444, %v6599_v17   ;;  %4367 = vperm.xlu1 %6430, %v8983_v7  }
 0x6ce   : > { %4371 = vperm.xlu2 %6429, %v8986_v2   ;;  %v9125_v12 = vpop.permute.xlu1 %4110 }
 0x6cf   : > { %13877 = vst [vmem:[#allocation572_spill] sm:$0xff] %v9125_v12  ;;  %v9127_v31 = vpop.permute.xlu2 %4160  ;;  %v9129_v24 = vpop.permute.xlu0 %1923 }
 0x6d0   : > { %13878 = vst [vmem:[#allocation573_spill] sm:$0xff] %v9127_v31 }
 0x6d1   : > { %13879 = vst [vmem:[#allocation574_spill] sm:$0xff] %v9129_v24  ;;  %v6602_v24 = vld [vmem:[%s6773_s17 + $0x138] sm:$0xff] }
 0x6d5   : > { %2639 = vperm.xlu0 %6444, %v6600_v4   ;;  %4379 = vperm.xlu1 %6430, %v8998_v52  }
 0x6d6   : > { %4383 = vperm.xlu2 %6429, %v9001_v60   ;;  %v9134_v26 = vpop.permute.xlu1 %4125 }
 0x6d7   : > { %13880 = vst [vmem:[#allocation575_spill] sm:$0xff] %v9134_v26  ;;  %v9136_v17 = vpop.permute.xlu2 %4175  ;;  %v9138_v1 = vpop.permute.xlu0 %1943 }
 0x6d8   : > { %13881 = vst [vmem:[#allocation576_spill] sm:$0xff] %v9136_v17 }
 0x6d9   : > { %13882 = vst [vmem:[#allocation577_spill] sm:$0xff] %v9138_v1  ;;  %v6603_v1 = vld [vmem:[%s6773_s17 + $0x158] sm:$0xff] }
 0x6dd   : > { %2651 = vperm.xlu0 %6444, %v6601_v15   ;;  %4391 = vperm.xlu1 %6430, %v9013_v13  }
 0x6de   : > { %4395 = vperm.xlu2 %6429, %v9016_v48   ;;  %v9143_v31 = vpop.permute.xlu1 %4140 }
 0x6df   : > { %13883 = vst [vmem:[#allocation578_spill] sm:$0xff] %v9143_v31  ;;  %v9145_v4 = vpop.permute.xlu2 %4190  ;;  %v9147_v12 = vpop.permute.xlu0 %1955 }
 0x6e0   : > { %13884 = vst [vmem:[#allocation579_spill] sm:$0xff] %v9145_v4 }
 0x6e1   : > { %13885 = vst [vmem:[#allocation580_spill] sm:$0xff] %v9147_v12  ;;  %v6604_v12 = vld [vmem:[%s6773_s17 + $0x180] sm:$0xff] }
 0x6e5   : > { %2663 = vperm.xlu0 %6444, %v6602_v24   ;;  %4403 = vperm.xlu1 %6430, %v9028_v29  }
 0x6e6   : > { %4407 = vperm.xlu2 %6429, %v9031_v5   ;;  %v9152_v26 = vpop.permute.xlu1 %4155 }
 0x6e7   : > { %13886 = vst [vmem:[#allocation581_spill] sm:$0xff] %v9152_v26  ;;  %v9154_v15 = vpop.permute.xlu2 %4205  ;;  %v9156_v17 = vpop.permute.xlu0 %1967 }
 0x6e8   : > { %13887 = vst [vmem:[#allocation582_spill] sm:$0xff] %v9154_v15 }
 0x6e9   : > { %13888 = vst [vmem:[#allocation583_spill] sm:$0xff] %v9156_v17  ;;  %v6605_v17 = vld [vmem:[%s6773_s17 + $0x21] sm:$0xff] }
 0x6ed   : > { %2675 = vperm.xlu0 %6444, %v6603_v1   ;;  %4415 = vperm.xlu1 %6430, %v9043_v19  }
 0x6ee   : > { %4419 = vperm.xlu2 %6429, %v9046_v20   ;;  %v9161_v31 = vpop.permute.xlu1 %4170 }
 0x6ef   : > { %13889 = vst [vmem:[#allocation584_spill] sm:$0xff] %v9161_v31  ;;  %v9163_v24 = vpop.permute.xlu2 %4220  ;;  %v9165_v4 = vpop.permute.xlu0 %1979 }
 0x6f0   : > { %13890 = vst [vmem:[#allocation585_spill] sm:$0xff] %v9163_v24 }
 0x6f1   : > { %13891 = vst [vmem:[#allocation586_spill] sm:$0xff] %v9165_v4 }
 0x6f5   : > { %2687 = vperm.xlu0 %6444, %v6604_v12   ;;  %4427 = vperm.xlu1 %6430, %v9058_v32  }
 0x6f6   : > { %4431 = vperm.xlu2 %6429, %v9061_v36   ;;  %v9170_v26 = vpop.permute.xlu1 %4185 }
 0x6f7   : > { %13892 = vst [vmem:[#allocation587_spill] sm:$0xff] %v9170_v26  ;;  %v9172_v1 = vpop.permute.xlu2 %4235  ;;  %v9174_v15 = vpop.permute.xlu0 %1991  ;;  %v6606_v26 = vld [vmem:[%s6773_s17 + $0x61] sm:$0xff] }
 0x6f8   : > { %13893 = vst [vmem:[#allocation588_spill] sm:$0xff] %v9172_v1 }
 0x6f9   : > { %13894 = vst [vmem:[#allocation589_spill] sm:$0xff] %v9174_v15 }
 0x6fd   : > { %3218 = vperm.xlu0 %6444, %v6605_v17   ;;  %4439 = vperm.xlu1 %6430, %v9073_v25  }
 0x6fe   : > { %6431 = vset.pattern.permute.xlu2 %v13406_v40  ;;  %v9179_v31 = vpop.permute.xlu1 %4200 }
 0x6ff   : > { %13895 = vst [vmem:[#allocation590_spill] sm:$0xff] %v9179_v31  ;;  %4509 = vperm.xlu2 %6431, %v8909_v21   ;;  %v9182_v12 = vpop.permute.xlu0 %2003  ;;  %v6607_v21 = vld [vmem:[%s6773_s17 + $0x81] sm:$0xff] }
 0x700   : > { %13896 = vst [vmem:[#allocation591_spill] sm:$0xff] %v9182_v12  ;;  %v9184_v24 = vpop.permute.xlu2 %4315 }
 0x701   : > { %13897 = vst [vmem:[#allocation592_spill] sm:$0xff] %v9184_v24 }
 0x705   : > { %3238 = vperm.xlu0 %6444, %v6606_v26   ;;  %6432 = vset.pattern.permute.xlu1 %v13406_v40 }
 0x706   : > { %4517 = vperm.xlu1 %6432, %v8922_v6   ;;  %v9189_v17 = vpop.permute.xlu1 %4215 }
 0x707   : > { %13898 = vst [vmem:[#allocation593_spill] sm:$0xff] %v9189_v17  ;;  %4521 = vperm.xlu2 %6431, %v8925_v34   ;;  %v9192_v1 = vpop.permute.xlu0 %2015  ;;  %v6608_v17 = vld [vmem:[%s6773_s17 + $0xa9] sm:$0xff] }
 0x708   : > { %13899 = vst [vmem:[#allocation594_spill] sm:$0xff] %v9192_v1  ;;  %v9194_v31 = vpop.permute.xlu2 %4327 }
 0x709   : > { %13900 = vst [vmem:[#allocation595_spill] sm:$0xff] %v9194_v31  ;;  %v9307_v31 = vld [vmem:[%s6773_s17 + $0x61] sm:$0xff] }
 0x70a   : > { %13937 = vst [vmem:[#allocation632_spill] sm:$0xff] %v9307_v31 }
 0x70d   : > { %3250 = vperm.xlu0 %6444, %v6607_v21  }
 0x70e   : > { %4525 = vperm.xlu1 %6432, %v8938_v14   ;;  %v9198_v24 = vpop.permute.xlu1 %4230 }
 0x70f   : > { %13901 = vst [vmem:[#allocation596_spill] sm:$0xff] %v9198_v24  ;;  %4529 = vperm.xlu2 %6431, %v8941_v56   ;;  %v9201_v26 = vpop.permute.xlu0 %2027  ;;  %v6609_v24 = vld [vmem:[%s6773_s17 + $0xc9] sm:$0xff] }
 0x710   : > { %13902 = vst [vmem:[#allocation597_spill] sm:$0xff] %v9201_v26  ;;  %v9203_v6 = vpop.permute.xlu2 %4335  ;;  %v13955_v26 = vld [vmem:[#allocation6_spill] sm:$0xff] }
 0x711   : > { %13903 = vst [vmem:[#allocation598_spill] sm:$0xff] %v9203_v6 }
 0x715   : > { %3262 = vperm.xlu0 %6444, %v6608_v17  }
 0x716   : > { %4537 = vperm.xlu1 %6432, %v8953_v33   ;;  %v9207_v34 = vpop.permute.xlu1 %4245 }
 0x717   : > { %13904 = vst [vmem:[#allocation599_spill] sm:$0xff] %v9207_v34  ;;  %4541 = vperm.xlu2 %6431, %v8956_v8   ;;  %v9210_v21 = vpop.permute.xlu0 %2039  ;;  %v6610_v34 = vld [vmem:[%s6773_s17 + $0xf1] sm:$0xff] }
 0x718   : > { %13905 = vst [vmem:[#allocation600_spill] sm:$0xff] %v9210_v21  ;;  %v9212_v14 = vpop.permute.xlu2 %4347  ;;  %v13953_v21 = vld [vmem:[#allocation5_spill] sm:$0xff] }
 0x719   : > { %13906 = vst [vmem:[#allocation601_spill] sm:$0xff] %v9212_v14 }
 0x71d   : > { %3274 = vperm.xlu0 %6444, %v6609_v24  }
 0x71e   : > { %4549 = vperm.xlu1 %6432, %v8968_v44  }
 0x71f   : > { %4553 = vperm.xlu2 %6431, %v8971_v28   ;;  %v9217_v56 = vpop.permute.xlu0 %2571  ;;  %v9219_v17 = vpop.permute.xlu1 %4323  ;;  %v6611_v28 = vld [vmem:[%s6773_s17 + $0x111] sm:$0xff] }
 0x720   : > { %13907 = vst [vmem:[#allocation602_spill] sm:$0xff] %v9217_v56  ;;  %v9221_v33 = vpop.permute.xlu2 %4359 }
 0x721   : > { %13908 = vst [vmem:[#allocation603_spill] sm:$0xff] %v9219_v17  ;;  %v9295_v17 = vld [vmem:[%s6773_s17 + $0x51] sm:$0xff] }
 0x722   : > { %13909 = vst [vmem:[#allocation604_spill] sm:$0xff] %v9221_v33 }
 0x723   : > { %13933 = vst [vmem:[#allocation628_spill] sm:$0xff] %v9295_v17 }
 0x725   : > { %3286 = vperm.xlu0 %6444, %v6610_v34  }
 0x726   : > { %4561 = vperm.xlu1 %6432, %v8983_v7  }
 0x727   : > { %4565 = vperm.xlu2 %6431, %v8986_v2   ;;  %v9226_v8 = vpop.permute.xlu0 %2591  ;;  %v9228_v24 = vpop.permute.xlu1 %4331  ;;  %v6612_v2 = vld [vmem:[%s6773_s17 + $0x139] sm:$0xff] }
 0x728   : > { %13910 = vst [vmem:[#allocation605_spill] sm:$0xff] %v9226_v8  ;;  %v9230_v44 = vpop.permute.xlu2 %4371 }
 0x729   : > { %13911 = vst [vmem:[#allocation606_spill] sm:$0xff] %v9228_v24  ;;  %v9291_v24 = vld [vmem:[%s6773_s17 + $0x49] sm:$0xff] }
 0x72a   : > { %13912 = vst [vmem:[#allocation607_spill] sm:$0xff] %v9230_v44 }
 0x72b   : > { %13932 = vst [vmem:[#allocation627_spill] sm:$0xff] %v9291_v24 }
 0x72d   : > { %3298 = vperm.xlu0 %6444, %v6611_v28  }
 0x72e   : > { %4573 = vperm.xlu1 %6432, %v8998_v52  }
 0x72f   : > { %4577 = vperm.xlu2 %6431, %v9001_v60   ;;  %v9235_v33 = vpop.permute.xlu0 %2603  ;;  %v9237_v34 = vpop.permute.xlu1 %4343  ;;  %v6613_v60 = vld [vmem:[%s6773_s17 + $0x159] sm:$0xff] }
 0x730   : > { %13913 = vst [vmem:[#allocation608_spill] sm:$0xff] %v9235_v33  ;;  %v9239_v7 = vpop.permute.xlu2 %4383 }
 0x731   : > { %13914 = vst [vmem:[#allocation609_spill] sm:$0xff] %v9237_v34 }
 0x732   : > { %13915 = vst [vmem:[#allocation610_spill] sm:$0xff] %v9239_v7 }
 0x735   : > { %3310 = vperm.xlu0 %6444, %v6612_v2  }
 0x736   : > { %4585 = vperm.xlu1 %6432, %v9013_v13  }
 0x737   : > { %4589 = vperm.xlu2 %6431, %v9016_v48   ;;  %v9244_v44 = vpop.permute.xlu0 %2615  ;;  %v9246_v28 = vpop.permute.xlu1 %4355  ;;  %v6614_v48 = vld [vmem:[%s6773_s17 + $0x181] sm:$0xff] }
 0x738   : > { %13916 = vst [vmem:[#allocation611_spill] sm:$0xff] %v9244_v44  ;;  %v9248_v52 = vpop.permute.xlu2 %4395  ;;  %v9462_v44 = vld [vmem:[%s6773_s17 + $0xb1] sm:$0xff] }
 0x739   : > { %13917 = vst [vmem:[#allocation612_spill] sm:$0xff] %v9246_v28 }
 0x73a   : > { %13918 = vst [vmem:[#allocation613_spill] sm:$0xff] %v9248_v52 }
 0x73d   : > { %3322 = vperm.xlu0 %6444, %v6613_v60  }
 0x73e   : > { %4597 = vperm.xlu1 %6432, %v9028_v29  }
 0x73f   : > { %4601 = vperm.xlu2 %6431, %v9031_v5   ;;  %v9253_v34 = vpop.permute.xlu0 %2627  ;;  %v9255_v2 = vpop.permute.xlu1 %4367  ;;  %v6615_v5 = vld [vmem:[%s6773_s17 + $0x22] sm:$0xff] }
 0x740   : > { %13919 = vst [vmem:[#allocation614_spill] sm:$0xff] %v9253_v34  ;;  %v9257_v13 = vpop.permute.xlu2 %4407  ;;  %v13964_v34 = vld [vmem:[#allocation18_spill] sm:$0xff] }
 0x741   : > { %13920 = vst [vmem:[#allocation615_spill] sm:$0xff] %v9255_v2  ;;  %v6616_v2 = vld [vmem:[%s6773_s17 + $0x62] sm:$0xff] }
 0x742   : > { %13921 = vst [vmem:[#allocation616_spill] sm:$0xff] %v9257_v13 }
 0x745   : > { %3334 = vperm.xlu0 %6444, %v6614_v48  }
 0x746   : > { %4609 = vperm.xlu1 %6432, %v9043_v19  }
 0x747   : > { %4613 = vperm.xlu2 %6431, %v9046_v20   ;;  %v9262_v28 = vpop.permute.xlu0 %2639  ;;  %v9264_v60 = vpop.permute.xlu1 %4379 }
 0x748   : > { %13922 = vst [vmem:[#allocation617_spill] sm:$0xff] %v9262_v28  ;;  %v9266_v29 = vpop.permute.xlu2 %4419 }
 0x749   : > { %13923 = vst [vmem:[#allocation618_spill] sm:$0xff] %v9264_v60  ;;  %v9279_v60 = vld [vmem:[%s6773_s17 + $0x31] sm:$0xff] }
 0x74a   : > { %13924 = vst [vmem:[#allocation619_spill] sm:$0xff] %v9266_v29 }
 0x74b   : > { %13928 = vst [vmem:[#allocation623_spill] sm:$0xff] %v9279_v60 }
 0x74d   : > { %3865 = vperm.xlu0 %6444, %v6615_v5  }
 0x74e   : > { %4621 = vperm.xlu1 %6432, %v9058_v32  }
 0x74f   : > { %4625 = vperm.xlu2 %6431, %v9061_v36   ;;  %v9271_v48 = vpop.permute.xlu0 %2651  ;;  %v9273_v19 = vpop.permute.xlu1 %4391 }
 0x750   : > { %13925 = vst [vmem:[#allocation620_spill] sm:$0xff] %v9271_v48  ;;  %v9275_v20 = vpop.permute.xlu2 %4431  ;;  %v13956_v48 = vld [vmem:[#allocation13_spill] sm:$0xff] }
 0x751   : > { %13926 = vst [vmem:[#allocation621_spill] sm:$0xff] %v9273_v19 }
 0x752   : > { %13927 = vst [vmem:[#allocation622_spill] sm:$0xff] %v9275_v20 }
 0x755   : > { %3885 = vperm.xlu0 %6444, %v6616_v2   ;;  %v6617_v2 = vld [vmem:[%s6773_s17 + $0x82] sm:$0xff] }
 0x756   : > { %4633 = vperm.xlu1 %6432, %v9073_v25  }
 0x757   : > { %6433 = vset.pattern.permute.xlu2 %v13337_v23  ;;  %v9283_v32 = vpop.permute.xlu0 %2663  ;;  %v9285_v36 = vpop.permute.xlu1 %4403 }
 0x758   : > { %13929 = vst [vmem:[#allocation624_spill] sm:$0xff] %v9283_v32  ;;  %4737 = vperm.xlu2 %6433, %v9279_v60   ;;  %v14091_v60 = vld [vmem:[#allocation102_spill] sm:$0xff] }
 0x759   : > { %13930 = vst [vmem:[#allocation625_spill] sm:$0xff] %v9285_v36  ;;  %v9288_v5 = vpop.permute.xlu2 %4509  ;;  %v9311_v36 = vld [vmem:[%s6773_s17 + $0x69] sm:$0xff] }
 0x75a   : > { %13931 = vst [vmem:[#allocation626_spill] sm:$0xff] %v9288_v5  ;;  %v6618_v5 = vld [vmem:[%s6773_s17 + $0xaa] sm:$0xff] }
 0x75b   : > { %13938 = vst [vmem:[#allocation633_spill] sm:$0xff] %v9311_v36 }
 0x75d   : > { %3897 = vperm.xlu0 %6444, %v6617_v2  }
 0x75e   : > { %6434 = vset.pattern.permute.xlu1 %v13337_v23  ;;  %v9342_v23 = vld [vmem:[%s6773_s17 + $0x81] sm:$0xff] }
 0x75f   : > { %v9298_v25 = vpop.permute.xlu0 %2675  ;;  %4747 = vperm.xlu1 %6434, %v9291_v24   ;;  %v9301_v14 = vpop.permute.xlu1 %4415  ;;  %13942 = vst [vmem:[#allocation637_spill] sm:$0xff] %v9342_v23  ;;  %v14030_v24 = vld [vmem:[#allocation63_spill] sm:$0xff] }
 0x760   : > { %13934 = vst [vmem:[#allocation629_spill] sm:$0xff] %v9298_v25  ;;  %4752 = vperm.xlu2 %6433, %v9295_v17   ;;  %v13951_v25 = vld [vmem:[#allocation10_spill] sm:$0xff] }
 0x761   : > { %13935 = vst [vmem:[#allocation630_spill] sm:$0xff] %v9301_v14  ;;  %v9304_v6 = vpop.permute.xlu2 %4521  ;;  %v6447_v14 = vld [vmem:[%s13246_s1] ss:$0 sm:$0xff] }
 0x762   : > { %13936 = vst [vmem:[#allocation631_spill] sm:$0xff] %v9304_v6  ;;  %v370_v19 = vmul.f32 %v6447_v14, %v6884_v37  ;;  %v373_v29 = vmul.f32 %v6447_v14, %v6889_v39  ;;  %v376_v13 = vmul.f32 %v6447_v14, %v6894_v41  ;;  %v367_v52 = vmul.f32 %v6447_v14, %v6896_v42 }
 0x763   : > { %v365_v7 = vmul.f32 %v6447_v14, %v6898_v43  ;;  %v9345_v37 = vmul.f32 %v6447_v14, %v6907_v47  ;;  %v9348_v39 = vmul.f32 %v6447_v14, %v6912_v49  ;;  %v9351_v41 = vmul.f32 %v6447_v14, %v6914_v50  ;;  %v6619_v43 = vld [vmem:[%s6773_s17 + $0xca] sm:$0xff] }
 0x764   : > { %v9354_v42 = vmul.f32 %v6447_v14, %v6916_v51  ;;  %v9364_v40 = vmul.f32 %v6447_v14, %v6923_v54  ;;  %v9367_v47 = vmul.f32 %v6447_v14, %v6925_v55  ;;  %v9372_v50 = vmul.f32 %v6447_v14, %v6930_v57 }
 0x765   : > { %3909 = vperm.xlu0 %6444, %v6618_v5   ;;  %v9325_v5 = vmul.f32 %v6447_v14, %v6879_v35  ;;  %v368_v35 = vmul.f32 %v6447_v14, %v6905_v46  ;;  %13943 = vst [vmem:[#allocation638_spill] sm:$0xff] %v9345_v37  ;;  %v9361_v46 = vmul.f32 %v6447_v14, %v6921_v53  ;;  %v13961_v37 = vld [vmem:[#allocation8_spill] sm:$0xff] }
 0x766   : > { %v9375_v51 = vmul.f32 %v6447_v14, %v6932_v58  ;;  %v9391_v57 = vmul.f32 %v6447_v14, %v6941_v62  ;;  %v9394_v58 = vmul.f32 %v6447_v14, %v6943_v63  ;;  %v9438_v28 = vmul.f32 %v6447_v14, %v13961_v37  ;;  %v13970_v37 = vld [vmem:[#allocation21_spill] sm:$0xff] }
 0x767   : > { %v9313_v2 = vpop.permute.xlu0 %2687  ;;  %4757 = vperm.xlu1 %6434, %v9307_v31   ;;  %v9316_v20 = vpop.permute.xlu1 %4427 }
 0x768   : > { %13939 = vst [vmem:[#allocation634_spill] sm:$0xff] %v9313_v2  ;;  %4762 = vperm.xlu2 %6433, %v9311_v36   ;;  %v13948_v2 = vld [vmem:[#allocation3_spill] sm:$0xff] }
 0x769   : > { %13940 = vst [vmem:[#allocation635_spill] sm:$0xff] %v9316_v20  ;;  %v9322_v6 = vpop.permute.xlu2 %4529  ;;  %v9333_v20 = vld [vmem:[%s13246_s1 + $0x1] ss:$0 sm:$0xff]  ;;  %v9404_v56 = vmul.f32 %v6447_v14, %v13948_v2 }
 0x76a   : > { %13941 = vst [vmem:[#allocation636_spill] sm:$0xff] %v9322_v6  ;;  %v9338_v6 = vmul.f32 %v6447_v14, %v6903_v45  ;;  %v9358_v45 = vld [vmem:[%s6773_s17 + $0x91] sm:$0xff]  ;;  %v559_v49 = vmul.f32 %v9333_v20, %v6962_v30  ;;  %v562_v53 = vmul.f32 %v9333_v20, %v6972_v38  ;;  %v9388_v30 = vmul.f32 %v6447_v14, %v6939_v61  ;;  %v13947_v38 = vld [vmem:[#allocation2_spill] sm:$0xff] }
 0x76b   : > { %13944 = vst [vmem:[#allocation639_spill] sm:$0xff] %v9358_v45  ;;  %v564_v62 = vmul.f32 %v9333_v20, %v13951_v25  ;;  %v567_v2 = vmul.f32 %v9333_v20, %v13956_v48  ;;  %v13957_v25 = vld [vmem:[#allocation7_spill] sm:$0xff]  ;;  %v13962_v48 = vld [vmem:[#allocation9_spill] sm:$0xff] }
 0x76c   : > { %13949 = vst [vmem:[#allocation2_spill] sm:$0xff] %v9404_v56  ;;  %v9416_v32 = vadd.f32 %v559_v49, %v365_v7  ;;  %v13959_v7 = vld [vmem:[#allocation15_spill] sm:$0xff]  ;;  %v9441_v12 = vmul.f32 %v6447_v14, %v13962_v48  ;;  %v566_v48 = vmul.f32 %v9333_v20, %v13970_v37  ;;  %v13976_v37 = vld [vmem:[#allocation17_spill] sm:$0xff] }
 0x76d   : > { %3921 = vperm.xlu0 %6444, %v6619_v43   ;;  %v9378_v43 = vmul.f32 %v6447_v14, %v6934_v59  ;;  %v9397_v59 = vmul.f32 %v6447_v14, %v6948_v9  ;;  %v9414_v9 = vmul.f32 %v6447_v14, %v13953_v21  ;;  %v9431_v21 = vadd.f32 %v562_v53, %v368_v35  ;;  %v9448_v35 = vld [vmem:[%s6773_s17 + $0xa9] sm:$0xff] }
 0x76e   : > { %v561_v49 = vmul.f32 %v9333_v20, %v13959_v7  ;;  %13963 = vst [vmem:[#allocation5_spill] sm:$0xff] %v9441_v12  ;;  %v9450_v53 = vadd.f32 %v564_v62, %v370_v19  ;;  %v13967_v7 = vld [vmem:[#allocation11_spill] sm:$0xff]  ;;  %v6620_v12 = vld [vmem:[%s6773_s17 + $0xf2] sm:$0xff]  ;;  %v13974_v19 = vld [vmem:[#allocation22_spill] sm:$0xff] }
 0x76f   : > { %v9382_v54 = vpop.permute.xlu0 %3218  ;;  %4772 = vperm.xlu1 %6434, %v9342_v23   ;;  %v9385_v55 = vpop.permute.xlu1 %4439  ;;  %v13965_v23 = vld [vmem:[#allocation19_spill] sm:$0xff]  ;;  %13966 = vst [vmem:[#allocation6_spill] sm:$0xff] %v9448_v35  ;;  %v9453_v15 = vmul.f32 %v6447_v14, %v13967_v7  ;;  %v576_v62 = vmul.f32 %v9333_v20, %v13974_v19  ;;  %v13975_v7 = vld [vmem:[#allocation24_spill] sm:$0xff] }
 0x770   : > { %13945 = vst [vmem:[#allocation640_spill] sm:$0xff] %v9382_v54  ;;  %4777 = vperm.xlu2 %6433, %v9358_v45   ;;  %v9401_v54 = vmul.f32 %v6447_v14, %v13947_v38  ;;  %v9419_v38 = vmul.f32 %v6447_v14, %v13955_v26  ;;  %v13960_v26 = vld [vmem:[#allocation16_spill] sm:$0xff]  ;;  %v563_v45 = vmul.f32 %v9333_v20, %v13964_v34 }
 0x771   : > { %13946 = vst [vmem:[#allocation641_spill] sm:$0xff] %v9385_v55  ;;  %v13950_v55 = vld [vmem:[#allocation4_spill] sm:$0xff]  ;;  %v9411_v63 = vpop.permute.xlu2 %4541  ;;  %v570_v1 = vmul.f32 %v9333_v20, %v13960_v26  ;;  %v9464_v34 = vadd.f32 %v567_v2, %v373_v29  ;;  %v13977_v29 = vld [vmem:[#allocation25_spill] sm:$0xff] }
 0x772   : > { %v9407_v61 = vmul.f32 %v6447_v14, %v13950_v55  ;;  %13952 = vst [vmem:[#allocation3_spill] sm:$0xff] %v9411_v63  ;;  %v9426_v55 = vld [vmem:[%s13246_s1 + $0x4] ss:$0 sm:$0xff]  ;;  %v9429_v63 = vmul.f32 %v6447_v14, %v13957_v25  ;;  %v573_v25 = vmul.f32 %v9333_v20, %v13965_v23  ;;  %v13968_v26 = vld [vmem:[#allocation12_spill] sm:$0xff]  ;;  %v579_v2 = vmul.f32 %v9333_v20, %v13977_v29 }
 0x773   : > { %13954 = vst [vmem:[#allocation4_spill] sm:$0xff] %v9414_v9  ;;  %v13972_v23 = vld [vmem:[#allocation14_spill] sm:$0xff]  ;;  %v9554_v9 = vld [vmem:[%s6773_s17 + $0xc9] sm:$0xff] }
 0x774   : > { %13958 = vst [vmem:[#allocation10_spill] sm:$0xff] %v9429_v63  ;;  %v9456_v63 = vmul.f32 %v6447_v14, %v13968_v26  ;;  %v9468_v36 = vmul.f32 %v9426_v55, %v13972_v23  ;;  %v569_v14 = vmul.f32 %v9333_v20, %v13975_v7  ;;  %v9474_v26 = vadd.f32 %v561_v49, %v367_v52  ;;  %v13979_v52 = vld [vmem:[#allocation27_spill] sm:$0xff]  ;;  %v9500_v7 = vld [vmem:[%s13246_s1 + $0x2] ss:$0 sm:$0xff] }
 0x775   : > { %3933 = vperm.xlu0 %6444, %v6620_v12   ;;  %13971 = vst [vmem:[#allocation7_spill] sm:$0xff] %v9462_v44  ;;  %v9480_v12 = vmul.f32 %v9426_v55, %v13976_v37  ;;  %v9488_v23 = vadd.f32 %v563_v45, %v9325_v5  ;;  %v9491_v19 = vadd.f32 %v573_v25, %v9338_v6  ;;  %v13982_v5 = vld [vmem:[#allocation20_spill] sm:$0xff]  ;;  %v13983_v25 = vld [vmem:[#allocation30_spill] sm:$0xff] }
 0x776   : > { %13969 = vst [vmem:[#allocation13_spill] sm:$0xff] %v9456_v63  ;;  %v9476_v63 = vadd.f32 %v570_v1, %v376_v13  ;;  %v572_v1 = vmul.f32 %v9333_v20, %v13979_v52  ;;  %v13980_v13 = vld [vmem:[#allocation28_spill] sm:$0xff]  ;;  %v9507_v45 = vmul.f32 %v9426_v55, %v13982_v5  ;;  %v9510_v6 = vadd.f32 %v566_v48, %v9351_v41  ;;  %v13984_v52 = vld [vmem:[#allocation31_spill] sm:$0xff]  ;;  %v13987_v48 = vld [vmem:[#allocation33_spill] sm:$0xff] }
 0x777   : > { %13973 = vst [vmem:[#allocation15_spill] sm:$0xff] %v9468_v36  ;;  %v9484_v31 = vpop.permute.xlu0 %3238  ;;  %4787 = vperm.xlu1 %6434, %v9448_v35   ;;  %v582_v49 = vmul.f32 %v9333_v20, %v13980_v13  ;;  %v575_v29 = vmul.f32 %v9333_v20, %v13983_v25  ;;  %v585_v13 = vmul.f32 %v9333_v20, %v13984_v52  ;;  %v13988_v52 = vld [vmem:[#allocation26_spill] sm:$0xff] }
 0x778   : > { %13978 = vst [vmem:[#allocation16_spill] sm:$0xff] %v9484_v31  ;;  %4792 = vperm.xlu2 %6433, %v9462_v44   ;;  %v9503_v37 = vpop.permute.xlu1 %4517  ;;  %v9519_v44 = vadd.f32 %v576_v62, %v9348_v39  ;;  %v9526_v41 = vadd.f32 %v569_v14, %v9364_v40  ;;  %v578_v5 = vmul.f32 %v9333_v20, %v13987_v48  ;;  %v13990_v39 = vld [vmem:[#allocation34_spill] sm:$0xff]  ;;  %v13992_v48 = vld [vmem:[#allocation29_spill] sm:$0xff] }
 0x779   : > { %13981 = vst [vmem:[#allocation8_spill] sm:$0xff] %v9503_v37  ;;  %v9516_v36 = vpop.permute.xlu2 %4553  ;;  %v13986_v37 = vld [vmem:[#allocation23_spill] sm:$0xff]  ;;  %v9531_v25 = vadd.f32 %v579_v2, %v9361_v46  ;;  %v588_v62 = vmul.f32 %v9333_v20, %v13990_v39  ;;  %v9542_v40 = vadd.f32 %v572_v1, %v9375_v51  ;;  %v9545_v14 = vadd.f32 %v582_v49, %v9372_v50  ;;  %v13994_v2 = vld [vmem:[#allocation37_spill] sm:$0xff]  ;;  %v13997_v50 = vld [vmem:[#allocation40_spill] sm:$0xff] }
 0x77a   : > { %13985 = vst [vmem:[#allocation9_spill] sm:$0xff] %v9516_v36  ;;  %v9523_v35 = vmul.f32 %v9426_v55, %v13986_v37  ;;  %v9535_v36 = vmul.f32 %v9426_v55, %v13988_v52  ;;  %v13991_v37 = vld [vmem:[#allocation36_spill] sm:$0xff]  ;;  %v9549_v46 = vmul.f32 %v9426_v55, %v13992_v48  ;;  %v753_v52 = vmul.f32 %v9500_v7, %v13994_v2  ;;  %v13996_v51 = vld [vmem:[#allocation39_spill] sm:$0xff]  ;;  %v9568_v48 = vld [vmem:[%s6773_s17 + $0xd9] sm:$0xff] }
 0x77b   : > { %v581_v4 = vmul.f32 %v9333_v20, %v13991_v37  ;;  %13995 = vst [vmem:[#allocation11_spill] sm:$0xff] %v9554_v9  ;;  %v9557_v39 = vadd.f32 %v575_v29, %v9391_v57  ;;  %v9560_v37 = vadd.f32 %v585_v13, %v9388_v30  ;;  %v584_v1 = vmul.f32 %v9333_v20, %v13996_v51  ;;  %v6621_v31 = vld [vmem:[%s6773_s17 + $0x112] sm:$0xff]  ;;  %v14001_v29 = vld [vmem:[#allocation42_spill] sm:$0xff]  ;;  %v14002_v13 = vld [vmem:[#allocation43_spill] sm:$0xff] }
 0x77c   : > { %13989 = vst [vmem:[#allocation18_spill] sm:$0xff] %v9535_v36  ;;  %v756_v49 = vmul.f32 %v9500_v7, %v13997_v50  ;;  %v9575_v57 = vadd.f32 %v578_v5, %v9401_v54  ;;  %v587_v30 = vmul.f32 %v9333_v20, %v14001_v29  ;;  %v758_v51 = vmul.f32 %v9500_v7, %v14002_v13  ;;  %v14003_v50 = vld [vmem:[#allocation35_spill] sm:$0xff]  ;;  %v14005_v5 = vld [vmem:[#allocation45_spill] sm:$0xff] }
 0x77d   : > { %13993 = vst [vmem:[#allocation19_spill] sm:$0xff] %v9549_v46  ;;  %3945 = vperm.xlu0 %6444, %v6621_v31   ;;  %v13999_v46 = vld [vmem:[#allocation32_spill] sm:$0xff]  ;;  %v9582_v33 = vadd.f32 %v588_v62, %v9397_v59  ;;  %v9586_v31 = vmul.f32 %v9426_v55, %v14003_v50  ;;  %v9589_v17 = vadd.f32 %v581_v4, %v9407_v61  ;;  %v9594_v54 = vld [vmem:[%s13246_s1 + $0x8] ss:$0 sm:$0xff]  ;;  %v14007_v62 = vld [vmem:[#allocation38_spill] sm:$0xff] }
 0x77e   : > { %13998 = vst [vmem:[#allocation12_spill] sm:$0xff] %v9568_v48  ;;  %v9572_v2 = vmul.f32 %v9426_v55, %v13999_v46  ;;  %v590_v46 = vmul.f32 %v9333_v20, %v14005_v5  ;;  %v9602_v59 = vadd.f32 %v753_v52, %v9416_v32  ;;  %v9606_v13 = vmul.f32 %v9426_v55, %v14007_v62  ;;  %v14009_v4 = vld [vmem:[#allocation46_spill] sm:$0xff]  ;;  %v14010_v50 = vld [vmem:[#allocation48_spill] sm:$0xff]  ;;  %v14012_v52 = vld [vmem:[#allocation41_spill] sm:$0xff] }
 0x77f   : > { %14004 = vst [vmem:[#allocation14_spill] sm:$0xff] %v9586_v31  ;;  %v9598_v29 = vpop.permute.xlu0 %3250  ;;  %4802 = vperm.xlu1 %6434, %v9554_v9   ;;  %v761_v61 = vmul.f32 %v9500_v7, %v14009_v4  ;;  %v755_v31 = vmul.f32 %v9500_v7, %v14010_v50  ;;  %v9619_v32 = vadd.f32 %v756_v49, %v9431_v21  ;;  %v14014_v9 = vld [vmem:[#allocation49_spill] sm:$0xff] }
 0x780   : > { %14000 = vst [vmem:[#allocation21_spill] sm:$0xff] %v9572_v2  ;;  %4807 = vperm.xlu2 %6433, %v9568_v48   ;;  %v9613_v5 = vpop.permute.xlu1 %4525  ;;  %v9623_v62 = vmul.f32 %v9426_v55, %v14012_v52  ;;  %v764_v4 = vmul.f32 %v9500_v7, %v14014_v9  ;;  %v9630_v50 = vadd.f32 %v587_v30, %v9438_v28  ;;  %v14018_v52 = vld [vmem:[#allocation44_spill] sm:$0xff]  ;;  %v14020_v28 = vld [vmem:[#allocation54_spill] sm:$0xff] }
 0x781   : > { %14006 = vst [vmem:[#allocation22_spill] sm:$0xff] %v9598_v29  ;;  %v9616_v29 = vadd.f32 %v584_v1, %v9419_v38  ;;  %v14016_v38 = vld [vmem:[#allocation51_spill] sm:$0xff]  ;;  %v14017_v1 = vld [vmem:[#allocation52_spill] sm:$0xff]  ;;  %v9644_v9 = vadd.f32 %v590_v46, %v9453_v15  ;;  %v760_v30 = vmul.f32 %v9500_v7, %v14020_v28  ;;  %v9658_v48 = vadd.f32 %v755_v31, %v9474_v26  ;;  %v6622_v26 = vld [vmem:[%s6773_s17 + $0x13a] sm:$0xff] }
 0x782   : > { %14008 = vst [vmem:[#allocation24_spill] sm:$0xff] %v9606_v13  ;;  %v9627_v13 = vpop.permute.xlu2 %4565  ;;  %v757_v21 = vmul.f32 %v9500_v7, %v14016_v38  ;;  %v767_v49 = vmul.f32 %v9500_v7, %v14017_v1  ;;  %v14022_v38 = vld [vmem:[#allocation47_spill] sm:$0xff]  ;;  %v9663_v46 = vld [vmem:[%s6773_s17 + $0xf1] sm:$0xff]  ;;  %v9666_v28 = vadd.f32 %v764_v4, %v9476_v63  ;;  %v9678_v31 = vld [vmem:[%s6773_s17 + $0xf9] sm:$0xff]  ;;  %v769_v56 = vmul.f32 %v9500_v7, %v14030_v24 }
 0x783   : > { %14011 = vst [vmem:[#allocation17_spill] sm:$0xff] %v9613_v5  ;;  %v9633_v5 = vadd.f32 %v758_v51, %v9450_v53  ;;  %v14021_v53 = vld [vmem:[#allocation55_spill] sm:$0xff]  ;;  %v9655_v1 = vmul.f32 %v9594_v54, %v14022_v38  ;;  %v14027_v38 = vld [vmem:[#allocation60_spill] sm:$0xff]  ;;  %v14029_v4 = vld [vmem:[#allocation61_spill] sm:$0xff] }
 0x784   : > { %14013 = vst [vmem:[#allocation25_spill] sm:$0xff] %v9623_v62  ;;  %v9641_v62 = vmul.f32 %v9594_v54, %v14018_v52  ;;  %v770_v51 = vmul.f32 %v9500_v7, %v14021_v53  ;;  %v14023_v52 = vld [vmem:[#allocation57_spill] sm:$0xff]  ;;  %v766_v2 = vmul.f32 %v9500_v7, %v14027_v38  ;;  %v9684_v63 = vadd.f32 %v767_v49, %v9491_v19  ;;  %v14035_v49 = vld [vmem:[#allocation56_spill] sm:$0xff] }
 0x785   : > { %14015 = vst [vmem:[#allocation27_spill] sm:$0xff] %v9627_v13  ;;  %v9651_v13 = vadd.f32 %v761_v61, %v9464_v34  ;;  %v763_v15 = vmul.f32 %v9500_v7, %v14023_v52  ;;  %v14026_v34 = vld [vmem:[#allocation58_spill] sm:$0xff]  ;;  %3957 = vperm.xlu0 %6444, %v6622_v26   ;;  %v9681_v52 = vadd.f32 %v757_v21, %v9488_v23  ;;  %v14033_v23 = vld [vmem:[#allocation64_spill] sm:$0xff] }
 0x786   : > { %14019 = vst [vmem:[#allocation28_spill] sm:$0xff] %v9641_v62  ;;  %v14025_v62 = vld [vmem:[#allocation50_spill] sm:$0xff]  ;;  %v773_v61 = vmul.f32 %v9500_v7, %v14026_v34  ;;  %v14031_v34 = vld [vmem:[#allocation53_spill] sm:$0xff]  ;;  %v9695_v38 = vadd.f32 %v760_v30, %v9510_v6  ;;  %v9698_v26 = vadd.f32 %v770_v51, %v9519_v44  ;;  %v779_v19 = vmul.f32 %v9500_v7, %v14033_v23  ;;  %v14038_v30 = vld [vmem:[#allocation67_spill] sm:$0xff] }
 0x787   : > { %14024 = vst [vmem:[#allocation20_spill] sm:$0xff] %v9663_v46  ;;  %v9670_v53 = vmul.f32 %v9594_v54, %v14025_v62  ;;  %v776_v62 = vmul.f32 %v9500_v7, %v14029_v4  ;;  %v9692_v36 = vmul.f32 %v9594_v54, %v14031_v34  ;;  %v9702_v21 = vpop.permute.xlu0 %3262  ;;  %4817 = vperm.xlu1 %6434, %v9663_v46   ;;  %v14037_v34 = vld [vmem:[#allocation66_spill] sm:$0xff]  ;;  %v14040_v46 = vld [vmem:[#allocation59_spill] sm:$0xff] }
 0x788   : > { %14028 = vst [vmem:[#allocation30_spill] sm:$0xff] %v9678_v31  ;;  %v9707_v24 = vmul.f32 %v9594_v54, %v14035_v49  ;;  %v9710_v4 = vadd.f32 %v763_v15, %v9526_v41  ;;  %v772_v6 = vmul.f32 %v9500_v7, %v14037_v34  ;;  %v782_v44 = vmul.f32 %v9500_v7, %v14038_v30  ;;  %v9717_v51 = vpop.permute.xlu1 %4537  ;;  %v14042_v15 = vld [vmem:[#allocation69_spill] sm:$0xff] }
 0x789   : > { %14032 = vst [vmem:[#allocation31_spill] sm:$0xff] %v9692_v36  ;;  %4822 = vperm.xlu2 %6433, %v9678_v31   ;;  %v9720_v23 = vadd.f32 %v773_v61, %v9531_v25  ;;  %v9724_v49 = vmul.f32 %v9594_v54, %v14040_v46  ;;  %v9727_v41 = vadd.f32 %v766_v2, %v9542_v40  ;;  %v14046_v46 = vld [vmem:[#allocation70_spill] sm:$0xff]  ;;  %v14059_v36 = vld [vmem:[#allocation71_spill] sm:$0xff] }
 0x78a   : > { %14034 = vst [vmem:[#allocation23_spill] sm:$0xff] %v9702_v21  ;;  %v775_v34 = vmul.f32 %v9500_v7, %v14042_v15  ;;  %v9731_v21 = vpop.permute.xlu2 %4577  ;;  %v9734_v30 = vadd.f32 %v776_v62, %v9545_v14  ;;  %v9741_v61 = vadd.f32 %v769_v56, %v9557_v39  ;;  %v1012_v40 = vmul.f32 %v9426_v55, %v14046_v46  ;;  %v14047_v15 = vld [vmem:[#allocation65_spill] sm:$0xff]  ;;  %v14049_v14 = vld [vmem:[#allocation72_spill] sm:$0xff]  ;;  %v9759_v56 = vld [vmem:[%s13246_s1 + $0xc] ss:$0 sm:$0xff] }
 0x78b   : > { %14036 = vst [vmem:[#allocation33_spill] sm:$0xff] %v9707_v24  ;;  %v9746_v2 = vadd.f32 %v779_v19, %v9560_v37  ;;  %v778_v62 = vmul.f32 %v9500_v7, %v14049_v14  ;;  %v9762_v39 = vadd.f32 %v772_v6, %v9575_v57  ;;  %v9765_v37 = vadd.f32 %v782_v44, %v9582_v33  ;;  %v14051_v19 = vld [vmem:[#allocation75_spill] sm:$0xff]  ;;  %v14056_v57 = vld [vmem:[#allocation78_spill] sm:$0xff] }
 0x78c   : > { %14039 = vst [vmem:[#allocation26_spill] sm:$0xff] %v9717_v51  ;;  %v14044_v51 = vld [vmem:[#allocation62_spill] sm:$0xff]  ;;  %v781_v46 = vmul.f32 %v9500_v7, %v14051_v19  ;;  %v784_v6 = vmul.f32 %v9500_v7, %v14056_v57  ;;  %v14057_v33 = vld [vmem:[#allocation79_spill] sm:$0xff] }
 0x78d   : > { %14041 = vst [vmem:[#allocation34_spill] sm:$0xff] %v9724_v49  ;;  %v9738_v25 = vmul.f32 %v9594_v54, %v14044_v51  ;;  %v14050_v51 = vld [vmem:[#allocation73_spill] sm:$0xff]  ;;  %v9779_v49 = vadd.f32 %v775_v34, %v9589_v17  ;;  %v1020_v44 = vmul.f32 %v9426_v55, %v14057_v33  ;;  %v9787_v19 = vld [vmem:[%s6773_s17 + $0x121] sm:$0xff]  ;;  %v9801_v8 = vadd.f32 %v778_v62, %v9616_v29 }
 0x78e   : > { %14043 = vst [vmem:[#allocation36_spill] sm:$0xff] %v9731_v21  ;;  %v9750_v21 = vmul.f32 %v9594_v54, %v14047_v15  ;;  %v1015_v31 = vmul.f32 %v9426_v55, %v14050_v51  ;;  %v14052_v15 = vld [vmem:[#allocation76_spill] sm:$0xff]  ;;  %v6623_v24 = vld [vmem:[%s6773_s17 + $0x15a] sm:$0xff] }
 0x78f   : > { %14045 = vst [vmem:[#allocation29_spill] sm:$0xff] %v9738_v25  ;;  %v1017_v14 = vmul.f32 %v9426_v55, %v14052_v15  ;;  %v14054_v51 = vld [vmem:[#allocation68_spill] sm:$0xff]  ;;  %3969 = vperm.xlu0 %6444, %v6623_v24   ;;  %v9790_v15 = vadd.f32 %v1012_v40, %v9602_v59  ;;  %v14062_v34 = vld [vmem:[#allocation82_spill] sm:$0xff]  ;;  %v14067_v62 = vld [vmem:[#allocation77_spill] sm:$0xff] }
 0x790   : > { %14048 = vst [vmem:[#allocation37_spill] sm:$0xff] %v9750_v21  ;;  %v9772_v21 = vld [vmem:[%s6773_s17 + $0x111] sm:$0xff]  ;;  %v9776_v25 = vmul.f32 %v9594_v54, %v14054_v51  ;;  %v9794_v51 = vmul.f32 %v9594_v54, %v14059_v36  ;;  %v1023_v57 = vmul.f32 %v9426_v55, %v14062_v34  ;;  %v9804_v24 = vadd.f32 %v1015_v31, %v9619_v32  ;;  %v14063_v33 = vld [vmem:[#allocation74_spill] sm:$0xff]  ;;  %v9812_v54 = vpop.permute.xlu0 %3274 }
 0x791   : > { %14053 = vst [vmem:[#allocation39_spill] sm:$0xff] %v9772_v21  ;;  %v9808_v59 = vmul.f32 %v9759_v56, %v14063_v33  ;;  %v14065_v40 = vld [vmem:[#allocation84_spill] sm:$0xff]  ;;  %4832 = vperm.xlu1 %6434, %v9772_v21   ;;  %v9819_v29 = vadd.f32 %v1017_v14, %v9633_v5  ;;  %v9823_v32 = vmul.f32 %v9759_v56, %v14067_v62  ;;  %v14068_v31 = vld [vmem:[#allocation85_spill] sm:$0xff]  ;;  %v9828_v33 = vpop.permute.xlu1 %4549 }
 0x792   : > { %14055 = vst [vmem:[#allocation40_spill] sm:$0xff] %v9776_v25  ;;  %v14061_v25 = vld [vmem:[#allocation81_spill] sm:$0xff]  ;;  %v1016_v36 = vmul.f32 %v9426_v55, %v14065_v40  ;;  %v1026_v34 = vmul.f32 %v9426_v55, %v14068_v31  ;;  %4837 = vperm.xlu2 %6433, %v9787_v19   ;;  %v9831_v40 = vadd.f32 %v784_v6, %v9644_v9  ;;  %v14071_v14 = vld [vmem:[#allocation88_spill] sm:$0xff]  ;;  %v14075_v6 = vld [vmem:[#allocation83_spill] sm:$0xff] }
 0x793   : > { %14058 = vst [vmem:[#allocation32_spill] sm:$0xff] %v9787_v19  ;;  %v1014_v17 = vmul.f32 %v9426_v55, %v14061_v25  ;;  %v9816_v25 = vadd.f32 %v781_v46, %v9630_v50  ;;  %v9834_v50 = vadd.f32 %v1020_v44, %v9651_v13  ;;  %v14070_v46 = vld [vmem:[#allocation87_spill] sm:$0xff]  ;;  %v1029_v62 = vmul.f32 %v9426_v55, %v14071_v14  ;;  %v14073_v31 = vld [vmem:[#allocation80_spill] sm:$0xff]  ;;  %v14077_v14 = vld [vmem:[#allocation90_spill] sm:$0xff] }
 0x794   : > { %14060 = vst [vmem:[#allocation42_spill] sm:$0xff] %v9794_v51  ;;  %v1019_v5 = vmul.f32 %v9426_v55, %v14070_v46  ;;  %v9844_v19 = vmul.f32 %v9759_v56, %v14073_v31  ;;  %v9850_v9 = vadd.f32 %v1023_v57, %v9666_v28  ;;  %v565_v13 = vmul.f32 %v9333_v20, %v7923_v3  ;;  %v14079_v57 = vld [vmem:[#allocation86_spill] sm:$0xff] }
 0x795   : > { %14064 = vst [vmem:[#allocation43_spill] sm:$0xff] %v9808_v59  ;;  %v9840_v59 = vpop.permute.xlu2 %4589  ;;  %v9856_v44 = vmul.f32 %v9759_v56, %v14075_v6  ;;  %v9859_v46 = vadd.f32 %v1016_v36, %v9681_v52  ;;  %v1022_v31 = vmul.f32 %v9426_v55, %v14077_v14  ;;  %v9866_v28 = vadd.f32 %v1026_v34, %v9684_v63  ;;  %v9877_v52 = vld [vmem:[%s13246_s1 + $0x5] ss:$0 sm:$0xff]  ;;  %v9882_v14 = vld [vmem:[%s6773_s17 + $0x139] sm:$0xff] }
 0x796   : > { %14066 = vst [vmem:[#allocation35_spill] sm:$0xff] %v9812_v54  ;;  %v9870_v3 = vmul.f32 %v9759_v56, %v14079_v57  ;;  %v759_v36 = vmul.f32 %v9500_v7, %v8888_v18  ;;  %v9885_v63 = vadd.f32 %v1019_v5, %v9695_v38  ;;  %v9888_v34 = vadd.f32 %v1029_v62, %v9698_v26  ;;  %v6624_v51 = vld [vmem:[%s6773_s17 + $0x182] sm:$0xff] }
 0x797   : > { %14069 = vst [vmem:[#allocation45_spill] sm:$0xff] %v9828_v33  ;;  %v9847_v33 = vadd.f32 %v1014_v17, %v9658_v48  ;;  %v14078_v48 = vld [vmem:[#allocation91_spill] sm:$0xff]  ;;  %3981 = vperm.xlu0 %6444, %v6624_v51   ;;  %v597_v62 = vadd.f32 %v565_v13, %v9354_v42  ;;  %v14090_v51 = vld [vmem:[#allocation100_spill] sm:$0xff] }
 0x798   : > { %14072 = vst [vmem:[#allocation38_spill] sm:$0xff] %v9840_v59  ;;  %v1032_v17 = vmul.f32 %v9426_v55, %v14078_v48  ;;  %v14081_v59 = vld [vmem:[#allocation93_spill] sm:$0xff]  ;;  %v14083_v48 = vld [vmem:[#allocation94_spill] sm:$0xff]  ;;  %v14089_v5 = vld [vmem:[#allocation99_spill] sm:$0xff] }
 0x799   : > { %14074 = vst [vmem:[#allocation46_spill] sm:$0xff] %v9844_v19  ;;  %v1025_v6 = vmul.f32 %v9426_v55, %v14081_v59  ;;  %v1035_v57 = vmul.f32 %v9426_v55, %v14083_v48  ;;  %v14084_v59 = vld [vmem:[#allocation96_spill] sm:$0xff]  ;;  %v9896_v54 = vld [vmem:[%s6773_s17 + $0x141] sm:$0xff]  ;;  %v1031_v26 = vmul.f32 %v9426_v55, %v14089_v5  ;;  %v9908_v48 = vadd.f32 %v1022_v31, %v9710_v4  ;;  %v9930_v31 = vpop.permute.xlu1 %4561 }
 0x79a   : > { %14076 = vst [vmem:[#allocation48_spill] sm:$0xff] %v9856_v44  ;;  %v1028_v21 = vmul.f32 %v9426_v55, %v14084_v59  ;;  %v14088_v44 = vld [vmem:[#allocation97_spill] sm:$0xff]  ;;  %v9911_v59 = vadd.f32 %v1032_v17, %v9720_v23  ;;  %v1041_v19 = vmul.f32 %v9426_v55, %v14090_v51  ;;  %4847 = vperm.xlu1 %6434, %v9882_v14   ;;  %v14093_v4 = vld [vmem:[#allocation103_spill] sm:$0xff] }
 0x79b   : > { %14080 = vst [vmem:[#allocation41_spill] sm:$0xff] %v9870_v3  ;;  %v14086_v3 = vld [vmem:[#allocation89_spill] sm:$0xff]  ;;  %v1038_v38 = vmul.f32 %v9426_v55, %v14088_v44  ;;  %v14092_v44 = vld [vmem:[#allocation92_spill] sm:$0xff]  ;;  %v9925_v42 = vadd.f32 %v1025_v6, %v9727_v41  ;;  %v1206_v23 = vmul.f32 %v9877_v52, %v14093_v4  ;;  %v791_v13 = vadd.f32 %v759_v36, %v597_v62  ;;  %v14095_v17 = vld [vmem:[#allocation95_spill] sm:$0xff] }
 0x79c   : > { %14082 = vst [vmem:[#allocation49_spill] sm:$0xff] %v9882_v14  ;;  %v9900_v18 = vmul.f32 %v9759_v56, %v14086_v3  ;;  %v1034_v3 = vmul.f32 %v9426_v55, %v14091_v60  ;;  %v9922_v5 = vmul.f32 %v9759_v56, %v14092_v44  ;;  %4852 = vperm.xlu2 %6433, %v9896_v54   ;;  %v9945_v41 = vld [vmem:[%s13246_s1 + $0x10] ss:$0 sm:$0xff]  ;;  %v14096_v6 = vld [vmem:[#allocation105_spill] sm:$0xff] }
 0x79d   : > { %14085 = vst [vmem:[#allocation51_spill] sm:$0xff] %v9896_v54  ;;  %v9933_v60 = vadd.f32 %v1035_v57, %v9734_v30  ;;  %v9937_v51 = vmul.f32 %v9759_v56, %v14095_v17  ;;  %v9940_v44 = vadd.f32 %v1028_v21, %v9741_v61  ;;  %v1037_v36 = vmul.f32 %v9426_v55, %v14096_v6  ;;  %v9949_v62 = vpop.permute.xlu2 %4601  ;;  %v14098_v57 = vld [vmem:[#allocation98_spill] sm:$0xff]  ;;  %v14100_v6 = vld [vmem:[#allocation101_spill] sm:$0xff] }
 0x79e   : > { %14087 = vst [vmem:[#allocation52_spill] sm:$0xff] %v9900_v18  ;;  %v9917_v18 = vpop.permute.xlu0 %3286  ;;  %v9952_v30 = vadd.f32 %v1038_v38, %v9746_v2  ;;  %v9956_v4 = vmul.f32 %v9759_v56, %v14098_v57  ;;  %v9959_v21 = vadd.f32 %v1031_v26, %v9762_v39  ;;  %v568_v61 = vmul.f32 %v9333_v20, %v7935_v11  ;;  %v14102_v38 = vld [vmem:[#allocation106_spill] sm:$0xff]  ;;  %v14103_v26 = vld [vmem:[#allocation108_spill] sm:$0xff]  ;;  %v6625_v54 = vld [vmem:[%s6773_s17 + $0x38] sm:$0xff] }
 0x79f   : > { %14094 = vst [vmem:[#allocation44_spill] sm:$0xff] %v9930_v31  ;;  %v9964_v17 = vadd.f32 %v1041_v19, %v9765_v37  ;;  %v9968_v31 = vmul.f32 %v9759_v56, %v14100_v6  ;;  %v9971_v2 = vadd.f32 %v1034_v3, %v9779_v49  ;;  %v1209_v57 = vmul.f32 %v9877_v52, %v14102_v38  ;;  %v9983_v37 = vld [vmem:[%s13246_s1 + $0x6] ss:$0 sm:$0xff]  ;;  %v9989_v19 = vld [vmem:[%s6773_s17 + $0x159] sm:$0xff]  ;;  %v14105_v3 = vld [vmem:[#allocation104_spill] sm:$0xff] }
 0x7a0   : > { %14097 = vst [vmem:[#allocation54_spill] sm:$0xff] %v9949_v62  ;;  %v9976_v39 = vadd.f32 %v1206_v23, %v9790_v15  ;;  %v1040_v11 = vmul.f32 %v9426_v55, %v14103_v26  ;;  %v1050_v56 = vadd.f32 %v9480_v12, %v791_v13  ;;  %v762_v49 = vmul.f32 %v9500_v7, %v8897_v0  ;;  %v14107_v23 = vld [vmem:[#allocation109_spill] sm:$0xff]  ;;  %v14108_v26 = vld [vmem:[#allocation111_spill] sm:$0xff]  ;;  %v14110_v0 = vld [vmem:[#allocation112_spill] sm:$0xff] }
 0x7a1   : > { %14099 = vst [vmem:[#allocation55_spill] sm:$0xff] %v9956_v4  ;;  %v9993_v6 = vmul.f32 %v9945_v41, %v14105_v3  ;;  %v9996_v15 = vadd.f32 %v1037_v36, %v9801_v8  ;;  %v1211_v38 = vmul.f32 %v9877_v52, %v14107_v23  ;;  %v1043_v62 = vmul.f32 %v9426_v55, %v14108_v26  ;;  %v10004_v12 = vld [vmem:[%s6773_s17 + $0x169] sm:$0xff] }
 0x7a2   : > { %14101 = vst [vmem:[#allocation47_spill] sm:$0xff] %v9968_v31  ;;  %4513 = vperm.xlu0 %6444, %v6625_v54   ;;  %v1214_v13 = vmul.f32 %v9877_v52, %v14110_v0  ;;  %v600_v14 = vadd.f32 %v568_v61, %v9367_v47  ;;  %v1212_v3 = vmul.f32 %v9877_v52, %v8027_v10  ;;  %v14111_v23 = vld [vmem:[#allocation107_spill] sm:$0xff]  ;;  %v14112_v54 = vld [vmem:[#allocation114_spill] sm:$0xff] }
 0x7a3   : > { %14104 = vst [vmem:[#allocation57_spill] sm:$0xff] %v9989_v19  ;;  %v1406_v8 = vmul.f32 %v9983_v37, %v9025_v27  ;;  %v10014_v36 = vadd.f32 %v1209_v57, %v9804_v24  ;;  %v10018_v55 = vmul.f32 %v9945_v41, %v14111_v23  ;;  %v1208_v26 = vmul.f32 %v9877_v52, %v14112_v54  ;;  %v14115_v27 = vld [vmem:[#allocation117_spill] sm:$0xff]  ;;  %v10033_v23 = vpop.permute.xlu1 %4573 }
 0x7a4   : > { %14106 = vst [vmem:[#allocation50_spill] sm:$0xff] %v9993_v6  ;;  %v14113_v6 = vld [vmem:[#allocation115_spill] sm:$0xff]  ;;  %4862 = vperm.xlu1 %6434, %v9989_v19   ;;  %v10028_v10 = vadd.f32 %v1040_v11, %v9816_v25  ;;  %v1210_v24 = vmul.f32 %v9877_v52, %v14115_v27  ;;  %v794_v61 = vadd.f32 %v762_v49, %v600_v14  ;;  %v14118_v11 = vld [vmem:[#allocation118_spill] sm:$0xff]  ;;  %v14120_v49 = vld [vmem:[#allocation113_spill] sm:$0xff] }
 0x7a5   : > { %14109 = vst [vmem:[#allocation58_spill] sm:$0xff] %v10004_v12  ;;  %v1217_v0 = vmul.f32 %v9877_v52, %v14113_v6  ;;  %v1244_v57 = vadd.f32 %v1212_v3, %v1050_v56  ;;  %4867 = vperm.xlu2 %6433, %v10004_v12   ;;  %v10036_v54 = vadd.f32 %v1211_v38, %v9819_v29  ;;  %v14117_v6 = vld [vmem:[#allocation110_spill] sm:$0xff]  ;;  %v10047_v14 = vpop.permute.xlu2 %4613 }
 0x7a6   : > { %v10024_v47 = vpop.permute.xlu0 %3298  ;;  %14116 = vst [vmem:[#allocation61_spill] sm:$0xff] %v10033_v23  ;;  %v10040_v31 = vmul.f32 %v9945_v41, %v14117_v6  ;;  %v10043_v25 = vadd.f32 %v1043_v62, %v9831_v40  ;;  %v1220_v27 = vmul.f32 %v9877_v52, %v14118_v11  ;;  %v10050_v56 = vadd.f32 %v1214_v13, %v9834_v50  ;;  %v14121_v6 = vld [vmem:[#allocation120_spill] sm:$0xff]  ;;  %v14122_v13 = vld [vmem:[#allocation121_spill] sm:$0xff]  ;;  %v14131_v19 = vld [vmem:[#allocation126_spill] sm:$0xff] }
 0x7a7   : > { %14114 = vst [vmem:[#allocation60_spill] sm:$0xff] %v10024_v47  ;;  %v10054_v29 = vmul.f32 %v9945_v41, %v14120_v49  ;;  %v571_v38 = vmul.f32 %v9333_v20, %v7947_v22  ;;  %v1438_v3 = vadd.f32 %v1406_v8, %v1244_v57  ;;  %v10059_v40 = vadd.f32 %v1208_v26, %v9847_v33  ;;  %v14123_v49 = vld [vmem:[#allocation116_spill] sm:$0xff]  ;;  %v14132_v47 = vld [vmem:[#allocation127_spill] sm:$0xff] }
 0x7a8   : > { %14119 = vst [vmem:[#allocation63_spill] sm:$0xff] %v10047_v14  ;;  %v10062_v62 = vadd.f32 %v1217_v0, %v9850_v9  ;;  %v1213_v50 = vmul.f32 %v9877_v52, %v14121_v6  ;;  %v1223_v11 = vmul.f32 %v9877_v52, %v14122_v13  ;;  %v10070_v23 = vmul.f32 %v9945_v41, %v14123_v49  ;;  %v10079_v9 = vld [vmem:[%s6773_s17 + $0x181] sm:$0xff]  ;;  %v14127_v49 = vld [vmem:[#allocation124_spill] sm:$0xff] }
 0x7a9   : > { %v10073_v22 = vadd.f32 %v1210_v24, %v9859_v46  ;;  %v1053_v8 = vadd.f32 %v9507_v45, %v794_v61  ;;  %v765_v33 = vmul.f32 %v9500_v7, %v8906_v16  ;;  %14124 = vst [vmem:[#allocation53_spill] sm:$0xff] %v10079_v9  ;;  %v10082_v26 = vadd.f32 %v1220_v27, %v9866_v28  ;;  %v14125_v0 = vld [vmem:[#allocation119_spill] sm:$0xff]  ;;  %v6626_v24 = vld [vmem:[%s6773_s17 + $0x78] sm:$0xff]  ;;  %v14129_v27 = vld [vmem:[#allocation286_spill] sm:$0xff] }
 0x7aa   : > { %v10086_v57 = vmul.f32 %v9945_v41, %v14125_v0  ;;  %v14126_v6 = vld [vmem:[#allocation123_spill] sm:$0xff]  ;;  %v1226_v46 = vmul.f32 %v9877_v52, %v14127_v49  ;;  %4533 = vperm.xlu0 %6444, %v6626_v24   ;;  %v603_v61 = vadd.f32 %v571_v38, %v9378_v43  ;;  %v1215_v0 = vmul.f32 %v9877_v52, %v14129_v27  ;;  %v14130_v49 = vld [vmem:[#allocation550_spill] sm:$0xff] }
 0x7ab   : > { %v1216_v13 = vmul.f32 %v9877_v52, %v14126_v6  ;;  %v10094_v45 = vld [vmem:[%s6773_s17 + $0x189] sm:$0xff]  ;;  %v1697_v6 = vadd.f32 %v9655_v1, %v1438_v3  ;;  %v1409_v24 = vmul.f32 %v9983_v37, %v14130_v49  ;;  %v10113_v14 = vadd.f32 %v1213_v50, %v9885_v63  ;;  %v14135_v63 = vld [vmem:[#allocation577_spill] sm:$0xff] }
 0x7ac   : > { %14128 = vst [vmem:[#allocation64_spill] sm:$0xff] %v10094_v45  ;;  %v10099_v16 = vld [vmem:[%s13246_s1 + $0x9] ss:$0 sm:$0xff]  ;;  %v10104_v28 = vld [vmem:[%s13246_s1 + $0xa] ss:$0 sm:$0xff]  ;;  %v10116_v12 = vadd.f32 %v1223_v11, %v9888_v34  ;;  %v1219_v4 = vmul.f32 %v9877_v52, %v14131_v19  ;;  %v1229_v43 = vmul.f32 %v9877_v52, %v14132_v47  ;;  %4877 = vperm.xlu1 %6434, %v10079_v9   ;;  %v10130_v34 = vpop.permute.xlu1 %4585  ;;  %v14137_v19 = vld [vmem:[#allocation122_spill] sm:$0xff] }
 0x7ad   : > { %v14134_v1 = vld [vmem:[#allocation311_spill] sm:$0xff]  ;;  %v797_v27 = vadd.f32 %v765_v33, %v603_v61  ;;  %v1247_v49 = vadd.f32 %v1215_v0, %v1053_v8  ;;  %v2053_v50 = vmul.f32 %v10104_v28, %v14135_v63  ;;  %4882 = vperm.xlu2 %6433, %v10094_v45   ;;  %14136 = vst [vmem:[#allocation66_spill] sm:$0xff] %v10130_v34  ;;  %v14138_v9 = vld [vmem:[#allocation129_spill] sm:$0xff]  ;;  %v14139_v33 = vld [vmem:[#allocation130_spill] sm:$0xff]  ;;  %v10143_v61 = vpop.permute.xlu2 %4625 }
 0x7ae   : > { %v10122_v38 = vpop.permute.xlu0 %3310  ;;  %v1859_v3 = vmul.f32 %v10099_v16, %v14134_v1  ;;  %v10134_v11 = vmul.f32 %v9945_v41, %v14137_v19  ;;  %v10137_v47 = vadd.f32 %v1216_v13, %v9908_v48  ;;  %v1222_v1 = vmul.f32 %v9877_v52, %v14138_v9  ;;  %14140 = vst [vmem:[#allocation67_spill] sm:$0xff] %v10143_v61  ;;  %v14141_v63 = vld [vmem:[#allocation263_spill] sm:$0xff]  ;;  %v14142_v48 = vld [vmem:[#allocation125_spill] sm:$0xff]  ;;  %v14143_v61 = vld [vmem:[#allocation132_spill] sm:$0xff] }
 0x7af   : > { %14133 = vst [vmem:[#allocation56_spill] sm:$0xff] %v10122_v38  ;;  %v1232_v8 = vmul.f32 %v9877_v52, %v14139_v33  ;;  %v10146_v0 = vadd.f32 %v1226_v46, %v9911_v59  ;;  %v574_v34 = vmul.f32 %v9333_v20, %v14141_v63  ;;  %v1441_v19 = vadd.f32 %v1409_v24, %v1247_v49  ;;  %v14144_v46 = vld [vmem:[#allocation128_spill] sm:$0xff]  ;;  %v10170_v63 = vld [vmem:[%s6773_s17 + $0x1a1] sm:$0xff] }
 0x7b0   : > { %v1891_v45 = vadd.f32 %v1859_v3, %v1697_v6  ;;  %v10152_v13 = vmul.f32 %v9945_v41, %v14142_v48  ;;  %v10155_v9 = vadd.f32 %v1219_v4, %v9925_v42  ;;  %v10158_v33 = vadd.f32 %v1229_v43, %v9933_v60  ;;  %v14146_v6 = vld [vmem:[#allocation527_spill] sm:$0xff]  ;;  %14147 = vst [vmem:[#allocation69_spill] sm:$0xff] %v10170_v63 }
 0x7b1   : > { %v1225_v59 = vmul.f32 %v9877_v52, %v14143_v61  ;;  %v10164_v38 = vmul.f32 %v9945_v41, %v14144_v46  ;;  %v1056_v24 = vadd.f32 %v9523_v35, %v797_v27  ;;  %v768_v3 = vmul.f32 %v9500_v7, %v14146_v6  ;;  %v14150_v4 = vld [vmem:[#allocation131_spill] sm:$0xff]  ;;  %v14152_v61 = vld [vmem:[#allocation133_spill] sm:$0xff]  ;;  %v10187_v35 = vld [vmem:[%s13246_s1 + $0x14] ss:$0 sm:$0xff] }
 0x7b2   : > { %v2085_v49 = vadd.f32 %v2053_v50, %v1891_v45  ;;  %v10173_v42 = vadd.f32 %v1222_v1, %v9940_v44  ;;  %v10176_v60 = vadd.f32 %v1232_v8, %v9952_v30  ;;  %v10180_v43 = vmul.f32 %v9945_v41, %v14150_v4  ;;  %v6627_v45 = vld [vmem:[%s6773_s17 + $0x98] sm:$0xff]  ;;  %v14156_v46 = vld [vmem:[#allocation135_spill] sm:$0xff]  ;;  %v14157_v4 = vld [vmem:[#allocation136_spill] sm:$0xff] }
 0x7b3   : > { %14145 = vst [vmem:[#allocation59_spill] sm:$0xff] %v10164_v38  ;;  %v1235_v48 = vmul.f32 %v9877_v52, %v14152_v61  ;;  %4545 = vperm.xlu0 %6444, %v6627_v45   ;;  %v606_v44 = vadd.f32 %v574_v34, %v9394_v58  ;;  %v14153_v27 = vld [vmem:[#allocation289_spill] sm:$0xff]  ;;  %v1700_v50 = vadd.f32 %v9670_v53, %v1441_v19  ;;  %v14158_v45 = vld [vmem:[#allocation314_spill] sm:$0xff]  ;;  %v10211_v53 = vld [vmem:[%s13246_s1 + $0xd] ss:$0 sm:$0xff] }
 0x7b4   : > { %14148 = vst [vmem:[#allocation62_spill] sm:$0xff] %v10173_v42  ;;  %v1218_v30 = vmul.f32 %v9877_v52, %v14153_v27  ;;  %v14154_v1 = vld [vmem:[#allocation553_spill] sm:$0xff]  ;;  %v10197_v8 = vadd.f32 %v1225_v59, %v9959_v21  ;;  %v1228_v6 = vmul.f32 %v9877_v52, %v14156_v46  ;;  %v1400_v61 = vmul.f32 %v9983_v37, %v14157_v4  ;;  %v10216_v21 = vld [vmem:[%s13246_s1 + $0xe] ss:$0 sm:$0xff]  ;;  %v14217_v42 = vld [vmem:[#allocation48_spill] sm:$0xff] }
 0x7b5   : > { %14149 = vst [vmem:[#allocation70_spill] sm:$0xff] %v10176_v60  ;;  %v1412_v41 = vmul.f32 %v9983_v37, %v14154_v1  ;;  %v1862_v58 = vmul.f32 %v10099_v16, %v14158_v45  ;;  %4892 = vperm.xlu1 %6434, %v10170_v63   ;;  %v800_v19 = vadd.f32 %v768_v3, %v606_v44  ;;  %v14160_v1 = vld [vmem:[#allocation580_spill] sm:$0xff]  ;;  %v14161_v4 = vmov 1   ;;  %v10222_v45 = vpop.permute.xlu1 %4597  ;;  %v14169_v44 = vld [vmem:[#allocation341_spill] sm:$0xff]  ;;  %v14175_v60 = vld [vmem:[#allocation530_spill] sm:$0xff] }
 0x7b6   : > { %14151 = vst [vmem:[#allocation65_spill] sm:$0xff] %v10180_v43  ;;  %v10205_v34 = vpop.permute.xlu0 %3322  ;;  %v1250_v59 = vadd.f32 %v1218_v30, %v1056_v24  ;;  %v2345_v27 = vadd.f32 %v9823_v32, %v2085_v49  ;;  %v2056_v46 = vmul.f32 %v10104_v28, %v14160_v1  ;;  %6435 = vset.pattern.permute.xlu2 %v14161_v4  ;;  %v14164_v43 = vld [vmem:[#allocation134_spill] sm:$0xff]  ;;  %v14168_v49 = vld [vmem:[#allocation623_spill] sm:$0xff] }
 0x7b7   : > { %14155 = vst [vmem:[#allocation72_spill] sm:$0xff] %v10197_v8  ;;  %v10225_v63 = vadd.f32 %v1235_v48, %v9964_v17  ;;  %v10229_v8 = vmul.f32 %v10187_v35, %v14164_v43  ;;  %v14167_v24 = vld [vmem:[#allocation266_spill] sm:$0xff]  ;;  %4962 = vperm.xlu2 %6435, %v14168_v49   ;;  %v2507_v30 = vmul.f32 %v10211_v53, %v14169_v44  ;;  %v14170_v17 = vld [vmem:[#allocation605_spill] sm:$0xff] }
 0x7b8   : > { %14159 = vst [vmem:[#allocation73_spill] sm:$0xff] %v10205_v34  ;;  %v14166_v34 = vld [vmem:[#allocation138_spill] sm:$0xff]  ;;  %v577_v32 = vmul.f32 %v9333_v20, %v14167_v24  ;;  %v1444_v1 = vadd.f32 %v1412_v41, %v1250_v59  ;;  %v2701_v48 = vmul.f32 %v10216_v21, %v14170_v17  ;;  %v10243_v43 = vadd.f32 %v1228_v6, %v9971_v2  ;;  %v14174_v24 = vld [vmem:[#allocation141_spill] sm:$0xff] }
 0x7b9   : > { %14162 = vst [vmem:[#allocation75_spill] sm:$0xff] %v10222_v45  ;;  %v1231_v3 = vmul.f32 %v9877_v52, %v14166_v34  ;;  %v1894_v45 = vadd.f32 %v1862_v58, %v1700_v50  ;;  %v14173_v34 = vld [vmem:[#allocation139_spill] sm:$0xff]  ;;  %v1234_v49 = vmul.f32 %v9877_v52, %v14174_v24  ;;  %v771_v44 = vmul.f32 %v9500_v7, %v14175_v60  ;;  %v14177_v50 = vld [vmem:[#allocation18_spill] sm:$0xff] }
 0x7ba   : > { %14163 = vst [vmem:[#allocation76_spill] sm:$0xff] %v10225_v63  ;;  %v10240_v63 = vpop.permute.xlu2 %4737  ;;  %v10252_v41 = vadd.f32 %v1400_v61, %v9976_v39  ;;  %v1059_v58 = vadd.f32 %v14177_v50, %v800_v19  ;;  %v2539_v17 = vadd.f32 %v2507_v30, %v2345_v27  ;;  %v6628_v60 = vld [vmem:[%s6773_s17 + $0xc0] sm:$0xff]  ;;  %v14182_v39 = vld [vmem:[#allocation292_spill] sm:$0xff]  ;;  %v14183_v19 = vld [vmem:[#allocation31_spill] sm:$0xff] }
 0x7bb   : > { %14165 = vst [vmem:[#allocation68_spill] sm:$0xff] %v10229_v8  ;;  %v1403_v8 = vmul.f32 %v9983_v37, %v14173_v34  ;;  %v2088_v59 = vadd.f32 %v2056_v46, %v1894_v45  ;;  %v10260_v6 = vadd.f32 %v1231_v3, %v9996_v15  ;;  %v14180_v34 = vld [vmem:[#allocation142_spill] sm:$0xff]  ;;  %4557 = vperm.xlu0 %6444, %v6628_v60   ;;  %v14184_v27 = vld [vmem:[#allocation556_spill] sm:$0xff] }
 0x7bc   : > { %14171 = vst [vmem:[#allocation78_spill] sm:$0xff] %v10240_v63  ;;  %v14178_v63 = vld [vmem:[#allocation137_spill] sm:$0xff]  ;;  %v1405_v24 = vmul.f32 %v9983_v37, %v14180_v34  ;;  %v1221_v61 = vmul.f32 %v9877_v52, %v14182_v39  ;;  %v1703_v46 = vadd.f32 %v14183_v19, %v1444_v1  ;;  %v1415_v45 = vmul.f32 %v9983_v37, %v14184_v27  ;;  %v14186_v15 = vld [vmem:[#allocation140_spill] sm:$0xff]  ;;  %v14192_v39 = vld [vmem:[#allocation627_spill] sm:$0xff] }
 0x7bd   : > { %14172 = vst [vmem:[#allocation79_spill] sm:$0xff] %v10243_v43  ;;  %v10257_v2 = vmul.f32 %v10187_v35, %v14178_v63  ;;  %v14181_v43 = vld [vmem:[#allocation2_spill] sm:$0xff]  ;;  %v2733_v63 = vadd.f32 %v2701_v48, %v2539_v17  ;;  %v10272_v30 = vadd.f32 %v1403_v8, %v10014_v36  ;;  %v10276_v3 = vmul.f32 %v10187_v35, %v14186_v15  ;;  %v14189_v1 = vld [vmem:[#allocation317_spill] sm:$0xff]  ;;  %v14191_v36 = vld [vmem:[#allocation583_spill] sm:$0xff]  ;;  %v10290_v19 = vpop.permute.xlu1 %4609 }
 0x7be   : > { %14176 = vst [vmem:[#allocation71_spill] sm:$0xff] %v10252_v41  ;;  %v609_v38 = vadd.f32 %v577_v32, %v14181_v43  ;;  %v10279_v32 = vadd.f32 %v1234_v49, %v10028_v10  ;;  %v10281_v50 = vpop.permute.xlu0 %3334  ;;  %6436 = vset.pattern.permute.xlu1 %v14161_v4  ;;  %v1865_v34 = vmul.f32 %v10099_v16, %v14189_v1  ;;  %v14190_v48 = vld [vmem:[#allocation46_spill] sm:$0xff]  ;;  %v14197_v15 = vld [vmem:[#allocation344_spill] sm:$0xff] }
 0x7bf   : > { %14179 = vst [vmem:[#allocation81_spill] sm:$0xff] %v10260_v6  ;;  %v1253_v60 = vadd.f32 %v1221_v61, %v1059_v58  ;;  %v2348_v17 = vadd.f32 %v14190_v48, %v2088_v59  ;;  %v2059_v8 = vmul.f32 %v10104_v28, %v14191_v36  ;;  %4970 = vperm.xlu1 %6436, %v14192_v39   ;;  %v14198_v59 = vld [vmem:[#allocation628_spill] sm:$0xff]  ;;  %v14209_v6 = vld [vmem:[#allocation295_spill] sm:$0xff] }
 0x7c0   : > { %14185 = vst [vmem:[#allocation82_spill] sm:$0xff] %v10272_v30  ;;  %v803_v43 = vadd.f32 %v771_v44, %v609_v38  ;;  %v10293_v10 = vadd.f32 %v1405_v24, %v10036_v54  ;;  %v14195_v38 = vld [vmem:[#allocation144_spill] sm:$0xff]  ;;  %v14196_v44 = vld [vmem:[#allocation269_spill] sm:$0xff]  ;;  %v2510_v58 = vmul.f32 %v10211_v53, %v14197_v15  ;;  %4974 = vperm.xlu2 %6435, %v14198_v59  }
 0x7c1   : > { %14187 = vst [vmem:[#allocation74_spill] sm:$0xff] %v10279_v32  ;;  %v1237_v49 = vmul.f32 %v9877_v52, %v14195_v38  ;;  %v580_v27 = vmul.f32 %v9333_v20, %v14196_v44  ;;  %v10305_v61 = vld [vmem:[%s13246_s1 + $0x11] ss:$0 sm:$0xff]  ;;  %v10310_v54 = vld [vmem:[%s13246_s1 + $0x12] ss:$0 sm:$0xff]  ;;  %v1447_v24 = vadd.f32 %v1415_v45, %v1253_v60  ;;  %v1897_v1 = vadd.f32 %v1865_v34, %v1703_v46  ;;  %v14201_v44 = vld [vmem:[#allocation143_spill] sm:$0xff] }
 0x7c2   : > { %14188 = vst [vmem:[#allocation84_spill] sm:$0xff] %v10281_v50  ;;  %v2992_v48 = vadd.f32 %v10018_v55, %v2733_v63  ;;  %v14199_v36 = vld [vmem:[#allocation608_spill] sm:$0xff]  ;;  %v10315_v38 = vpop.permute.xlu2 %4752  ;;  %v10319_v15 = vmul.f32 %v10187_v35, %v14201_v44  ;;  %v14202_v59 = vld [vmem:[#allocation145_spill] sm:$0xff]  ;;  %v14205_v45 = vld [vmem:[#allocation371_spill] sm:$0xff]  ;;  %v2542_v34 = vadd.f32 %v2510_v58, %v2348_v17 }
 0x7c3   : > { %14193 = vst [vmem:[#allocation77_spill] sm:$0xff] %v10290_v19  ;;  %v2704_v39 = vmul.f32 %v10216_v21, %v14199_v36  ;;  %v1408_v4 = vmul.f32 %v9983_v37, %v14202_v59  ;;  %v14203_v19 = vld [vmem:[#allocation19_spill] sm:$0xff]  ;;  %v14204_v50 = vld [vmem:[#allocation533_spill] sm:$0xff]  ;;  %v3154_v55 = vmul.f32 %v10305_v61, %v14205_v45  ;;  %v2091_v63 = vadd.f32 %v2059_v8, %v1897_v1  ;;  %v14206_v60 = vld [vmem:[#allocation16_spill] sm:$0xff] }
 0x7c4   : > { %14194 = vst [vmem:[#allocation85_spill] sm:$0xff] %v10293_v10  ;;  %v1062_v10 = vadd.f32 %v14203_v19, %v803_v43  ;;  %v774_v46 = vmul.f32 %v9500_v7, %v14204_v50  ;;  %v3348_v36 = vmul.f32 %v10310_v54, %v14206_v60  ;;  %v14208_v32 = vld [vmem:[#allocation4_spill] sm:$0xff]  ;;  %v1224_v59 = vmul.f32 %v9877_v52, %v14209_v6  ;;  %v14210_v43 = vld [vmem:[#allocation559_spill] sm:$0xff]  ;;  %v6629_v50 = vld [vmem:[%s6773_s17 + $0xe0] sm:$0xff] }
 0x7c5   : > { %14200 = vst [vmem:[#allocation87_spill] sm:$0xff] %v10315_v38  ;;  %v14207_v38 = vld [vmem:[#allocation147_spill] sm:$0xff]  ;;  %v612_v30 = vadd.f32 %v580_v27, %v14208_v32  ;;  %v1418_v19 = vmul.f32 %v9983_v37, %v14210_v43  ;;  %4569 = vperm.xlu0 %6444, %v6629_v50   ;;  %v10339_v45 = vadd.f32 %v1237_v49, %v10043_v25  ;;  %v14212_v17 = vld [vmem:[#allocation33_spill] sm:$0xff]  ;;  %v14216_v43 = vld [vmem:[#allocation320_spill] sm:$0xff] }
 0x7c6   : > { %v1402_v44 = vmul.f32 %v9983_v37, %v14207_v38  ;;  %v1706_v8 = vadd.f32 %v14212_v17, %v1447_v24  ;;  %v2736_v58 = vadd.f32 %v2704_v39, %v2542_v34  ;;  %v3186_v1 = vadd.f32 %v3154_v55, %v2992_v48  ;;  %v14214_v38 = vld [vmem:[#allocation148_spill] sm:$0xff]  ;;  %v10347_v41 = vpop.permute.xlu0 %3865  ;;  %v14218_v49 = vld [vmem:[#allocation586_spill] sm:$0xff] }
 0x7c7   : > { %14211 = vst [vmem:[#allocation88_spill] sm:$0xff] %v10339_v45  ;;  %v10343_v60 = vadd.f32 %v1408_v4, %v10050_v56  ;;  %v1411_v32 = vmul.f32 %v9983_v37, %v14214_v38  ;;  %v806_v27 = vadd.f32 %v774_v46, %v612_v30  ;;  %v1256_v6 = vadd.f32 %v1224_v59, %v1062_v10  ;;  %v14219_v48 = vld [vmem:[#allocation632_spill] sm:$0xff]  ;;  %v10355_v56 = vpop.permute.xlu1 %4621  ;;  %v14221_v4 = vld [vmem:[#allocation146_spill] sm:$0xff] }
 0x7c8   : > { %14215 = vst [vmem:[#allocation83_spill] sm:$0xff] %v10347_v41  ;;  %v1868_v50 = vmul.f32 %v10099_v16, %v14216_v43  ;;  %v2351_v25 = vadd.f32 %v14217_v42, %v2091_v63  ;;  %v2062_v24 = vmul.f32 %v10104_v28, %v14218_v49  ;;  %v3380_v39 = vadd.f32 %v3348_v36, %v3186_v1  ;;  %v14223_v10 = vld [vmem:[#allocation272_spill] sm:$0xff]  ;;  %v14224_v42 = vld [vmem:[#allocation633_spill] sm:$0xff]  ;;  %v14225_v63 = vld [vmem:[#allocation347_spill] sm:$0xff] }
 0x7c9   : > { %14213 = vst [vmem:[#allocation80_spill] sm:$0xff] %v10343_v60  ;;  %4978 = vperm.xlu1 %6436, %v14219_v48   ;;  %v10359_v55 = vmul.f32 %v10187_v35, %v14221_v4  ;;  %v10362_v30 = vadd.f32 %v1402_v44, %v10059_v40  ;;  %v583_v46 = vmul.f32 %v9333_v20, %v14223_v10  ;;  %v14226_v1 = vld [vmem:[#allocation611_spill] sm:$0xff]  ;;  %v14229_v44 = vld [vmem:[#allocation374_spill] sm:$0xff]  ;;  %v14231_v48 = vld [vmem:[#allocation536_spill] sm:$0xff] }
 0x7ca   : > { %14220 = vst [vmem:[#allocation90_spill] sm:$0xff] %v10355_v56  ;;  %v1450_v34 = vadd.f32 %v1418_v19, %v1256_v6  ;;  %4982 = vperm.xlu2 %6435, %v14224_v42   ;;  %v2513_v36 = vmul.f32 %v10211_v53, %v14225_v63  ;;  %v1900_v59 = vadd.f32 %v1868_v50, %v1706_v8  ;;  %v10372_v43 = vpop.permute.xlu2 %4762  ;;  %v14230_v6 = vld [vmem:[#allocation21_spill] sm:$0xff]  ;;  %v14232_v10 = vld [vmem:[#allocation22_spill] sm:$0xff] }
 0x7cb   : > { %14222 = vst [vmem:[#allocation91_spill] sm:$0xff] %v10362_v30  ;;  %v2995_v17 = vadd.f32 %v10040_v31, %v2736_v58  ;;  %v2707_v38 = vmul.f32 %v10216_v21, %v14226_v1  ;;  %v10375_v40 = vadd.f32 %v1411_v32, %v10062_v62  ;;  %v3157_v19 = vmul.f32 %v10305_v61, %v14229_v44  ;;  %v10385_v31 = vld [vmem:[%s13246_s1 + $0x15] ss:$0 sm:$0xff]  ;;  %v14233_v32 = vld [vmem:[#allocation149_spill] sm:$0xff] }
 0x7cc   : > { %14227 = vst [vmem:[#allocation86_spill] sm:$0xff] %v10372_v43  ;;  %v1065_v49 = vadd.f32 %v14230_v6, %v806_v27  ;;  %v777_v4 = vmul.f32 %v9500_v7, %v14231_v48  ;;  %v2094_v8 = vadd.f32 %v2062_v24, %v1900_v59  ;;  %v2545_v58 = vadd.f32 %v2513_v36, %v2351_v25  ;;  %v14234_v27 = vld [vmem:[#allocation10_spill] sm:$0xff]  ;;  %v14235_v1 = vld [vmem:[#allocation297_spill] sm:$0xff]  ;;  %v6630_v43 = vld [vmem:[%s6773_s17 + $0x108] sm:$0xff] }
 0x7cd   : > { %14228 = vst [vmem:[#allocation93_spill] sm:$0xff] %v10375_v40  ;;  %v3639_v50 = vadd.f32 %v10257_v2, %v3380_v39  ;;  %v3351_v62 = vmul.f32 %v10310_v54, %v14232_v10  ;;  %v10392_v42 = vmul.f32 %v10187_v35, %v14233_v32  ;;  %v615_v63 = vadd.f32 %v583_v46, %v14234_v27  ;;  %v14236_v6 = vld [vmem:[#allocation34_spill] sm:$0xff]  ;;  %v14237_v24 = vld [vmem:[#allocation401_spill] sm:$0xff]  ;;  %v10404_v2 = vld [vmem:[%s13246_s1 + $0x16] ss:$0 sm:$0xff] }
 0x7ce   : > { %v1227_v44 = vmul.f32 %v9877_v52, %v14235_v1  ;;  %v1709_v48 = vadd.f32 %v14236_v6, %v1450_v34  ;;  %4581 = vperm.xlu0 %6444, %v6630_v43   ;;  %v3801_v25 = vmul.f32 %v10385_v31, %v14237_v24  ;;  %v14238_v39 = vld [vmem:[#allocation562_spill] sm:$0xff]  ;;  %v2739_v59 = vadd.f32 %v2707_v38, %v2545_v58  ;;  %v14239_v10 = vld [vmem:[#allocation323_spill] sm:$0xff]  ;;  %v14240_v1 = vld [vmem:[#allocation589_spill] sm:$0xff]  ;;  %v3886_v6 = vpop.permute.xlu0 %3885 }
 0x7cf   : > { %v1421_v36 = vmul.f32 %v9983_v37, %v14238_v39  ;;  %v3189_v46 = vadd.f32 %v3157_v19, %v2995_v17  ;;  %v1871_v32 = vmul.f32 %v10099_v16, %v14239_v10  ;;  %v809_v27 = vadd.f32 %v777_v4, %v615_v63  ;;  %v14241_v24 = vld [vmem:[#allocation41_spill] sm:$0xff]  ;;  %v10415_v39 = vpop.permute.xlu1 %4633  ;;  %v14244_v17 = vld [vmem:[#allocation150_spill] sm:$0xff]  ;;  %v14245_v19 = vld [vmem:[#allocation275_spill] sm:$0xff] }
 0x7d0   : > { %v1259_v34 = vadd.f32 %v1227_v44, %v1065_v49  ;;  %v2065_v43 = vmul.f32 %v10104_v28, %v14240_v1  ;;  %v2354_v56 = vadd.f32 %v14241_v24, %v2094_v8  ;;  %v3833_v40 = vadd.f32 %v3801_v25, %v3639_v50  ;;  %v14242_v60 = vld [vmem:[#allocation637_spill] sm:$0xff]  ;;  %14243 = vst [vmem:[#allocation94_spill] sm:$0xff] %v10415_v39  ;;  %v14246_v4 = vld [vmem:[#allocation350_spill] sm:$0xff]  ;;  %v14247_v8 = vld [vmem:[#allocation639_spill] sm:$0xff] }
 0x7d1   : > { %v3383_v41 = vadd.f32 %v3351_v62, %v3189_v46  ;;  %v3995_v30 = vmul.f32 %v10404_v2, %v3886_v6  ;;  %4990 = vperm.xlu1 %6436, %v14242_v60   ;;  %v10419_v38 = vmul.f32 %v9983_v37, %v14244_v17  ;;  %v586_v49 = vmul.f32 %v9333_v20, %v14245_v19  ;;  %v14248_v44 = vld [vmem:[#allocation614_spill] sm:$0xff]  ;;  %v14251_v10 = vld [vmem:[#allocation151_spill] sm:$0xff] }
 0x7d2   : > { %v2516_v58 = vmul.f32 %v10211_v53, %v14246_v4  ;;  %v1903_v63 = vadd.f32 %v1871_v32, %v1709_v48  ;;  %4994 = vperm.xlu2 %6435, %v14247_v8   ;;  %v1453_v50 = vadd.f32 %v1421_v36, %v1259_v34  ;;  %v2998_v62 = vadd.f32 %v10054_v29, %v2739_v59  ;;  %v10431_v46 = vpop.permute.xlu2 %4777  ;;  %v14252_v6 = vld [vmem:[#allocation14_spill] sm:$0xff]  ;;  %v14253_v48 = vld [vmem:[#allocation539_spill] sm:$0xff]  ;;  %v14254_v34 = vld [vmem:[#allocation377_spill] sm:$0xff] }
 0x7d3   : > { %v2710_v60 = vmul.f32 %v10216_v21, %v14248_v44  ;;  %v10429_v25 = vadd.f32 %v3995_v30, %v3833_v40  ;;  %14250 = vst [vmem:[#allocation89_spill] sm:$0xff] %v10431_v46  ;;  %v10435_v1 = vmul.f32 %v9983_v37, %v14251_v10  ;;  %v1068_v24 = vadd.f32 %v14252_v6, %v809_v27  ;;  %v14255_v30 = vld [vmem:[#allocation23_spill] sm:$0xff]  ;;  %v14256_v19 = vld [vmem:[#allocation254_spill] sm:$0xff]  ;;  %v14257_v8 = vld [vmem:[#allocation5_spill] sm:$0xff] }
 0x7d4   : > { %v780_v32 = vmul.f32 %v9500_v7, %v14253_v48  ;;  %v2097_v36 = vadd.f32 %v2065_v43, %v1903_v63  ;;  %v3160_v29 = vmul.f32 %v10305_v61, %v14254_v34  ;;  %v2548_v59 = vadd.f32 %v2516_v58, %v2354_v56  ;;  %v14258_v10 = vld [vmem:[#allocation300_spill] sm:$0xff]  ;;  %v14259_v6 = vld [vmem:[#allocation565_spill] sm:$0xff]  ;;  %v6631_v63 = vld [vmem:[%s6773_s17 + $0x128] sm:$0xff] }
 0x7d5   : > { %14249 = vst [vmem:[#allocation96_spill] sm:$0xff] %v10429_v25  ;;  %v3642_v17 = vadd.f32 %v10276_v3, %v3383_v41  ;;  %v3354_v40 = vmul.f32 %v10310_v54, %v14255_v30  ;;  %v560_v4 = vmul.f32 %v9333_v20, %v14256_v19  ;;  %v618_v44 = vadd.f32 %v586_v49, %v14257_v8  ;;  %v14260_v48 = vld [vmem:[#allocation404_spill] sm:$0xff]  ;;  %v14261_v41 = vld [vmem:[#allocation29_spill] sm:$0xff]  ;;  %v14262_v30 = vld [vmem:[#allocation326_spill] sm:$0xff] }
 0x7d6   : > { %v1230_v27 = vmul.f32 %v9877_v52, %v14258_v10  ;;  %v1424_v43 = vmul.f32 %v9983_v37, %v14259_v6  ;;  %4593 = vperm.xlu0 %6444, %v6631_v63   ;;  %v3804_v56 = vmul.f32 %v10385_v31, %v14260_v48  ;;  %v1712_v3 = vadd.f32 %v14261_v41, %v1453_v50  ;;  %v14263_v8 = vld [vmem:[#allocation52_spill] sm:$0xff]  ;;  %v3898_v10 = vpop.permute.xlu0 %3897  ;;  %v14264_v39 = vld [vmem:[#allocation591_spill] sm:$0xff]  ;;  %v14265_v48 = vld [vmem:[#allocation6_spill] sm:$0xff] }
 0x7d7   : > { %v2742_v58 = vadd.f32 %v2710_v60, %v2548_v59  ;;  %v3192_v34 = vadd.f32 %v3160_v29, %v2998_v62  ;;  %v1874_v20 = vmul.f32 %v10099_v16, %v14262_v30  ;;  %v812_v19 = vadd.f32 %v780_v32, %v618_v44  ;;  %v6632_v50 = vld [vmem:[%s13246_s1 + $0x1] ss:$0 sm:$0xff]  ;;  %v14267_v32 = vld [vmem:[#allocation353_spill] sm:$0xff] }
 0x7d8   : > { %v1262_v49 = vadd.f32 %v1230_v27, %v1068_v24  ;;  %v2357_v46 = vadd.f32 %v14263_v8, %v2097_v36  ;;  %v2068_v6 = vmul.f32 %v10104_v28, %v14264_v39  ;;  %v3836_v63 = vadd.f32 %v3804_v56, %v3642_v17  ;;  %v14266_v62 = vld [vmem:[#allocation278_spill] sm:$0xff]  ;;  %v14269_v39 = vld [vmem:[#allocation7_spill] sm:$0xff]  ;;  %v10472_v17 = vpop.permute.xlu1 %4747  ;;  %v14271_v27 = vld [vmem:[#allocation617_spill] sm:$0xff] }
 0x7d9   : > { %v3386_v25 = vadd.f32 %v3354_v40, %v3192_v34  ;;  %v3998_v45 = vmul.f32 %v10404_v2, %v3898_v10  ;;  %5002 = vperm.xlu1 %6436, %v14265_v48   ;;  %v589_v60 = vmul.f32 %v6632_v50, %v14266_v62  ;;  %v2519_v24 = vmul.f32 %v10211_v53, %v14267_v32  ;;  %v14268_v36 = vld [vmem:[#allocation518_spill] sm:$0xff]  ;;  %v14274_v10 = vld [vmem:[#allocation380_spill] sm:$0xff]  ;;  %v14277_v62 = vld [vmem:[#allocation35_spill] sm:$0xff] }
 0x7da   : > { %v754_v29 = vmul.f32 %v9500_v7, %v14268_v36  ;;  %v1456_v59 = vadd.f32 %v1424_v43, %v1262_v49  ;;  %5006 = vperm.xlu2 %6435, %v14269_v39   ;;  %14270 = vst [vmem:[#allocation97_spill] sm:$0xff] %v10472_v17  ;;  %v1906_v40 = vadd.f32 %v1874_v20, %v1712_v3  ;;  %v10479_v34 = vpop.permute.xlu2 %4792  ;;  %v14273_v30 = vld [vmem:[#allocation638_spill] sm:$0xff]  ;;  %v14275_v49 = vld [vmem:[#allocation24_spill] sm:$0xff]  ;;  %v14279_v36 = vld [vmem:[#allocation303_spill] sm:$0xff] }
 0x7db   : > { %v3001_v44 = vadd.f32 %v10070_v23, %v2742_v58  ;;  %v2713_v56 = vmul.f32 %v10216_v21, %v14271_v27  ;;  %v10477_v41 = vadd.f32 %v3998_v45, %v3836_v63  ;;  %14272 = vst [vmem:[#allocation99_spill] sm:$0xff] %v10479_v34  ;;  %v592_v8 = vadd.f32 %v560_v4, %v14273_v30  ;;  %v14276_v50 = vld [vmem:[#allocation542_spill] sm:$0xff]  ;;  %v14278_v63 = vld [vmem:[#allocation13_spill] sm:$0xff] }
 0x7dc   : > { %v3163_v43 = vmul.f32 %v10305_v61, %v14274_v10  ;;  %v1071_v48 = vadd.f32 %v14275_v49, %v812_v19  ;;  %v783_v3 = vmul.f32 %v9500_v7, %v14276_v50  ;;  %v2100_v20 = vadd.f32 %v2068_v6, %v1906_v40  ;;  %v14280_v27 = vld [vmem:[#allocation37_spill] sm:$0xff]  ;;  %v6633_v10 = vld [vmem:[%s6773_s17 + $0x150] sm:$0xff]  ;;  %v14281_v19 = vld [vmem:[#allocation407_spill] sm:$0xff] }
 0x7dd   : > { %v2551_v23 = vadd.f32 %v2519_v24, %v2357_v46  ;;  %v3645_v58 = vadd.f32 %v10319_v15, %v3386_v25  ;;  %v3357_v45 = vmul.f32 %v10310_v54, %v14277_v62  ;;  %v621_v32 = vadd.f32 %v589_v60, %v14278_v63  ;;  %v14282_v6 = vld [vmem:[#allocation568_spill] sm:$0xff]  ;;  %v14283_v24 = vld [vmem:[#allocation329_spill] sm:$0xff]  ;;  %v14284_v50 = vld [vmem:[#allocation594_spill] sm:$0xff] }
 0x7de   : > { %v1233_v4 = vmul.f32 %v9877_v52, %v14279_v36  ;;  %v786_v39 = vadd.f32 %v754_v29, %v592_v8  ;;  %v1715_v30 = vadd.f32 %v14280_v27, %v1456_v59  ;;  %4605 = vperm.xlu0 %6444, %v6633_v10   ;;  %v3807_v7 = vmul.f32 %v10385_v31, %v14281_v19  ;;  %v3910_v8 = vpop.permute.xlu0 %3909  ;;  %v14285_v27 = vld [vmem:[#allocation11_spill] sm:$0xff] }
 0x7df   : > { %v1427_v46 = vmul.f32 %v9983_v37, %v14282_v6  ;;  %v2745_v15 = vadd.f32 %v2713_v56, %v2551_v23  ;;  %v3195_v25 = vadd.f32 %v3163_v43, %v3001_v44  ;;  %v1877_v40 = vmul.f32 %v10099_v16, %v14283_v24  ;;  %v14286_v56 = vld [vmem:[#allocation356_spill] sm:$0xff] }
 0x7e0   : > { %v815_v60 = vadd.f32 %v783_v3, %v621_v32  ;;  %v1265_v49 = vadd.f32 %v1233_v4, %v1071_v48  ;;  %v2071_v29 = vmul.f32 %v10104_v28, %v14284_v50  ;;  %v2360_v59 = vadd.f32 %v9922_v5, %v2100_v20  ;;  %v14287_v48 = vld [vmem:[#allocation15_spill] sm:$0xff]  ;;  %v14288_v32 = vld [vmem:[#allocation12_spill] sm:$0xff]  ;;  %v10514_v4 = vpop.permute.xlu1 %4757 }
 0x7e1   : > { %v3389_v62 = vadd.f32 %v3357_v45, %v3195_v25  ;;  %v3839_v63 = vadd.f32 %v3807_v7, %v3645_v58  ;;  %v4001_v36 = vmul.f32 %v10404_v2, %v3910_v8  ;;  %5014 = vperm.xlu1 %6436, %v14285_v27   ;;  %v10508_v44 = vadd.f32 %v10419_v38, %v10073_v22  ;;  %v14290_v58 = vld [vmem:[#allocation620_spill] sm:$0xff]  ;;  %v14292_v38 = vld [vmem:[#allocation281_spill] sm:$0xff]  ;;  %v14297_v8 = vld [vmem:[#allocation306_spill] sm:$0xff] }
 0x7e2   : > { %v2522_v43 = vmul.f32 %v10211_v53, %v14286_v56  ;;  %v1045_v3 = vadd.f32 %v14287_v48, %v786_v39  ;;  %v1909_v23 = vadd.f32 %v1877_v40, %v1715_v30  ;;  %5018 = vperm.xlu2 %6435, %v14288_v32   ;;  %14289 = vst [vmem:[#allocation100_spill] sm:$0xff] %v10514_v4  ;;  %v10521_v22 = vpop.permute.xlu2 %4807  ;;  %v14293_v39 = vld [vmem:[#allocation25_spill] sm:$0xff]  ;;  %v14299_v56 = vld [vmem:[#allocation410_spill] sm:$0xff] }
 0x7e3   : > { %v1459_v5 = vadd.f32 %v1427_v46, %v1265_v49  ;;  %v3004_v20 = vadd.f32 %v10086_v57, %v2745_v15  ;;  %v2716_v45 = vmul.f32 %v10216_v21, %v14290_v58  ;;  %v10519_v10 = vadd.f32 %v4001_v36, %v3839_v63  ;;  %14291 = vst [vmem:[#allocation102_spill] sm:$0xff] %v10521_v22  ;;  %v14294_v7 = vld [vmem:[#allocation545_spill] sm:$0xff]  ;;  %v14295_v46 = vld [vmem:[#allocation383_spill] sm:$0xff] }
 0x7e4   : > { %v1207_v19 = vmul.f32 %v9877_v52, %v14292_v38  ;;  %v1074_v30 = vadd.f32 %v14293_v39, %v815_v60  ;;  %v1401_v6 = vmul.f32 %v9983_v37, %v14294_v7  ;;  %v2103_v25 = vadd.f32 %v2071_v29, %v1909_v23  ;;  %v14296_v49 = vld [vmem:[#allocation153_spill] sm:$0xff]  ;;  %v14298_v36 = vld [vmem:[#allocation571_spill] sm:$0xff]  ;;  %v6634_v29 = vld [vmem:[%s6773_s17 + $0x170] sm:$0xff] }
 0x7e5   : > { %v3166_v57 = vmul.f32 %v10305_v61, %v14295_v46  ;;  %v2554_v15 = vadd.f32 %v2522_v43, %v2360_v59  ;;  %v3648_v24 = vadd.f32 %v10359_v55, %v3389_v62  ;;  %v3360_v40 = vmul.f32 %v10310_v54, %v9917_v18  ;;  %v14300_v43 = vld [vmem:[#allocation40_spill] sm:$0xff]  ;;  %v14302_v38 = vld [vmem:[#allocation597_spill] sm:$0xff] }
 0x7e6   : > { %v1407_v50 = vmul.f32 %v9983_v37, %v14296_v49  ;;  %v1236_v63 = vmul.f32 %v9877_v52, %v14297_v8  ;;  %v1239_v60 = vadd.f32 %v1207_v19, %v1045_v3  ;;  %v1430_v27 = vmul.f32 %v9983_v37, %v14298_v36  ;;  %4617 = vperm.xlu0 %6444, %v6634_v29   ;;  %v14301_v18 = vld [vmem:[#allocation332_spill] sm:$0xff]  ;;  %v3922_v3 = vpop.permute.xlu0 %3921 }
 0x7e7   : > { %v3810_v59 = vmul.f32 %v10385_v31, %v14299_v56  ;;  %v1718_v55 = vadd.f32 %v14300_v43, %v1459_v5  ;;  %v2748_v62 = vadd.f32 %v2716_v45, %v2554_v15  ;;  %v3198_v48 = vadd.f32 %v3166_v57, %v3004_v20  ;;  %v14303_v49 = vld [vmem:[#allocation20_spill] sm:$0xff]  ;;  %v14304_v20 = vld [vmem:[#allocation154_spill] sm:$0xff] }
 0x7e8   : > { %v1880_v23 = vmul.f32 %v10099_v16, %v14301_v18  ;;  %v1433_v32 = vadd.f32 %v1401_v6, %v1239_v60  ;;  %v1268_v58 = vadd.f32 %v1236_v63, %v1074_v30  ;;  %v2363_v52 = vadd.f32 %v9937_v51, %v2103_v25  ;;  %v14305_v30 = vld [vmem:[#allocation359_spill] sm:$0xff]  ;;  %v14306_v25 = vld [vmem:[#allocation30_spill] sm:$0xff]  ;;  %v10559_v57 = vpop.permute.xlu1 %4772  ;;  %v14310_v63 = vld [vmem:[#allocation152_spill] sm:$0xff] }
 0x7e9   : > { %v2074_v19 = vmul.f32 %v10104_v28, %v14302_v38  ;;  %v3392_v39 = vadd.f32 %v3360_v40, %v3198_v48  ;;  %v3842_v7 = vadd.f32 %v3810_v59, %v3648_v24  ;;  %v4004_v46 = vmul.f32 %v10404_v2, %v3922_v3  ;;  %5026 = vperm.xlu1 %6436, %v14303_v49   ;;  %v14308_v40 = vld [vmem:[#allocation624_spill] sm:$0xff]  ;;  %v14316_v3 = vld [vmem:[#allocation42_spill] sm:$0xff] }
 0x7ea   : > { %v10552_v5 = vadd.f32 %v10435_v1, %v10082_v26  ;;  %v1417_v45 = vmul.f32 %v9983_v37, %v14304_v20  ;;  %v2525_v51 = vmul.f32 %v10211_v53, %v14305_v30  ;;  %v1462_v6 = vadd.f32 %v1430_v27, %v1268_v58  ;;  %5030 = vperm.xlu2 %6435, %v14306_v25   ;;  %v10566_v1 = vpop.permute.xlu2 %4822  ;;  %v14311_v27 = vld [vmem:[#allocation386_spill] sm:$0xff]  ;;  %v14312_v56 = vld [vmem:[#allocation28_spill] sm:$0xff]  ;;  %v14320_v20 = vld [vmem:[#allocation335_spill] sm:$0xff] }
 0x7eb   : > { %14307 = vst [vmem:[#allocation92_spill] sm:$0xff] %v10559_v57  ;;  %v1912_v15 = vadd.f32 %v1880_v23, %v1718_v55  ;;  %v3007_v24 = vadd.f32 %v10134_v11, %v2748_v62  ;;  %v2719_v8 = vmul.f32 %v10216_v21, %v14308_v40  ;;  %v10564_v26 = vadd.f32 %v4004_v46, %v3842_v7  ;;  %v14313_v62 = vld [vmem:[#allocation60_spill] sm:$0xff]  ;;  %v6635_v7 = vld [vmem:[%s6773_s17 + $0x198] sm:$0xff] }
 0x7ec   : > { %14309 = vst [vmem:[#allocation103_spill] sm:$0xff] %v10566_v1  ;;  %v3622_v60 = vmul.f32 %v10187_v35, %v14310_v63  ;;  %v10571_v36 = vadd.f32 %v1407_v50, %v10113_v14  ;;  %v3169_v29 = vmul.f32 %v10305_v61, %v14311_v27  ;;  %v1692_v59 = vadd.f32 %v14312_v56, %v1433_v32  ;;  %v14314_v23 = vld [vmem:[#allocation156_spill] sm:$0xff]  ;;  %v14317_v32 = vld [vmem:[#allocation413_spill] sm:$0xff]  ;;  %v14421_v1 = vld [vmem:[#allocation199_spill] sm:$0xff] }
 0x7ed   : > { %v2106_v11 = vadd.f32 %v2074_v19, %v1912_v15  ;;  %v2557_v43 = vadd.f32 %v2525_v51, %v2363_v52  ;;  %v3651_v55 = vadd.f32 %v10392_v42, %v3392_v39  ;;  %v3363_v48 = vmul.f32 %v10310_v54, %v14313_v62  ;;  %v14315_v14 = vld [vmem:[#allocation308_spill] sm:$0xff]  ;;  %v14318_v42 = vld [vmem:[#allocation574_spill] sm:$0xff]  ;;  %v14322_v15 = vld [vmem:[#allocation55_spill] sm:$0xff] }
 0x7ee   : > { %v10580_v18 = vadd.f32 %v1417_v45, %v10116_v12  ;;  %v1410_v58 = vmul.f32 %v9983_v37, %v14314_v23  ;;  %v1854_v50 = vmul.f32 %v10099_v16, %v14315_v14  ;;  %v1721_v38 = vadd.f32 %v14316_v3, %v1462_v6  ;;  %4629 = vperm.xlu0 %6444, %v6635_v7   ;;  %v14319_v12 = vld [vmem:[#allocation157_spill] sm:$0xff]  ;;  %v14321_v51 = vld [vmem:[#allocation600_spill] sm:$0xff]  ;;  %v3934_v25 = vpop.permute.xlu0 %3933  ;;  %v14323_v62 = vld [vmem:[#allocation39_spill] sm:$0xff] }
 0x7ef   : > { %v3813_v52 = vmul.f32 %v10385_v31, %v14317_v32  ;;  %v2048_v19 = vmul.f32 %v10104_v28, %v14318_v42  ;;  %v2751_v39 = vadd.f32 %v2719_v8, %v2557_v43  ;;  %v3201_v46 = vadd.f32 %v3169_v29, %v3007_v24  ;;  %v14324_v24 = vld [vmem:[#allocation159_spill] sm:$0xff]  ;;  %v14325_v29 = vld [vmem:[#allocation160_spill] sm:$0xff]  ;;  %v14326_v23 = vld [vmem:[#allocation362_spill] sm:$0xff] }
 0x7f0   : > { %v1420_v49 = vmul.f32 %v9983_v37, %v14319_v12  ;;  %v1883_v45 = vmul.f32 %v10099_v16, %v14320_v20  ;;  %v1886_v30 = vadd.f32 %v1854_v50, %v1692_v59  ;;  %v2077_v6 = vmul.f32 %v10104_v28, %v14321_v51  ;;  %v14327_v28 = vld [vmem:[#allocation32_spill] sm:$0xff]  ;;  %v10608_v50 = vpop.permute.xlu1 %4787  ;;  %v14332_v12 = vld [vmem:[#allocation389_spill] sm:$0xff]  ;;  %v14334_v51 = vld [vmem:[#allocation158_spill] sm:$0xff] }
 0x7f1   : > { %v2366_v40 = vadd.f32 %v14322_v15, %v2106_v11  ;;  %v3395_v63 = vadd.f32 %v3363_v48, %v3201_v46  ;;  %v3845_v27 = vadd.f32 %v3813_v52, %v3651_v55  ;;  %v4007_v56 = vmul.f32 %v10404_v2, %v3934_v25  ;;  %5038 = vperm.xlu1 %6436, %v14323_v62   ;;  %v14329_v48 = vld [vmem:[#allocation629_spill] sm:$0xff]  ;;  %v14331_v52 = vld [vmem:[#allocation155_spill] sm:$0xff] }
 0x7f2   : > { %v1413_v8 = vmul.f32 %v9983_v37, %v14324_v24  ;;  %v1423_v43 = vmul.f32 %v9983_v37, %v14325_v29  ;;  %v2528_v59 = vmul.f32 %v10211_v53, %v14326_v23  ;;  %v1915_v14 = vadd.f32 %v1883_v45, %v1721_v38  ;;  %5042 = vperm.xlu2 %6435, %v14327_v28   ;;  %v10615_v32 = vpop.permute.xlu2 %4837  ;;  %v14333_v45 = vld [vmem:[#allocation56_spill] sm:$0xff]  ;;  %v14338_v62 = vld [vmem:[#allocation161_spill] sm:$0xff] }
 0x7f3   : > { %14328 = vst [vmem:[#allocation95_spill] sm:$0xff] %v10608_v50  ;;  %v2080_v11 = vadd.f32 %v2048_v19, %v1886_v30  ;;  %v3010_v55 = vadd.f32 %v10152_v13, %v2751_v39  ;;  %v2722_v3 = vmul.f32 %v10216_v21, %v14329_v48  ;;  %v10613_v7 = vadd.f32 %v4007_v56, %v3845_v27  ;;  %v14385_v50 = vld [vmem:[#allocation84_spill] sm:$0xff] }
 0x7f4   : > { %14330 = vst [vmem:[#allocation105_spill] sm:$0xff] %v10615_v32  ;;  %v3625_v42 = vmul.f32 %v10187_v35, %v14331_v52  ;;  %v10620_v38 = vadd.f32 %v1410_v58, %v10137_v47  ;;  %v10623_v46 = vadd.f32 %v1420_v49, %v10146_v0  ;;  %v2109_v19 = vadd.f32 %v2077_v6, %v1915_v14  ;;  %v14335_v0 = vld [vmem:[#allocation162_spill] sm:$0xff]  ;;  %v14336_v6 = vld [vmem:[#allocation416_spill] sm:$0xff] }
 0x7f5   : > { %v3172_v13 = vmul.f32 %v10305_v61, %v14332_v12  ;;  %v2560_v39 = vadd.f32 %v2528_v59, %v2366_v40  ;;  %v3654_v20 = vadd.f32 %v3622_v60, %v3395_v63  ;;  %v3366_v30 = vmul.f32 %v10310_v54, %v14333_v45  ;;  %v6636_v49 = vld [vmem:[%s6773_s17 + $0x39] sm:$0xff]  ;;  %v14337_v40 = vld [vmem:[#allocation43_spill] sm:$0xff]  ;;  %v10664_v12 = vld [vmem:[%s13246_s1 + $0x18] ss:$0 sm:$0xff] }
 0x7f6   : > { %v10631_v25 = vmul.f32 %v10187_v35, %v14334_v51  ;;  %v10634_v15 = vadd.f32 %v1413_v8, %v10155_v9  ;;  %v10637_v47 = vadd.f32 %v1423_v43, %v10158_v33  ;;  %v1416_v58 = vmul.f32 %v9983_v37, %v14335_v0  ;;  %5160 = vperm.xlu0 %6444, %v6636_v49   ;;  %v14339_v9 = vld [vmem:[#allocation163_spill] sm:$0xff]  ;;  %v14340_v8 = vld [vmem:[#allocation338_spill] sm:$0xff]  ;;  %v3946_v59 = vpop.permute.xlu0 %3945 }
 0x7f7   : > { %v3816_v60 = vmul.f32 %v10385_v31, %v14336_v6  ;;  %v2340_v63 = vadd.f32 %v14337_v40, %v2080_v11  ;;  %v2754_v27 = vadd.f32 %v2722_v3, %v2560_v39  ;;  %v3204_v56 = vadd.f32 %v3172_v13, %v3010_v55  ;;  %v14341_v43 = vld [vmem:[#allocation47_spill] sm:$0xff]  ;;  %v14342_v14 = vld [vmem:[#allocation602_spill] sm:$0xff]  ;;  %v14343_v3 = vld [vmem:[#allocation49_spill] sm:$0xff] }
 0x7f8   : > { %v10647_v24 = vmul.f32 %v10187_v35, %v14338_v62  ;;  %v1426_v33 = vmul.f32 %v9983_v37, %v14339_v9  ;;  %v2502_v29 = vmul.f32 %v10211_v53, %v14340_v8  ;;  %v2369_v23 = vadd.f32 %v14341_v43, %v2109_v19  ;;  %v14344_v35 = vld [vmem:[#allocation62_spill] sm:$0xff]  ;;  %v14345_v13 = vld [vmem:[#allocation165_spill] sm:$0xff]  ;;  %v14348_v51 = vld [vmem:[#allocation51_spill] sm:$0xff]  ;;  %v10673_v0 = vpop.permute.xlu1 %4802 }
 0x7f9   : > { %v2696_v28 = vmul.f32 %v10216_v21, %v14342_v14  ;;  %v3398_v48 = vadd.f32 %v3366_v30, %v3204_v56  ;;  %v3848_v11 = vadd.f32 %v3816_v60, %v3654_v20  ;;  %v4010_v55 = vmul.f32 %v10404_v2, %v3946_v59  ;;  %5050 = vperm.xlu1 %6436, %v14343_v3   ;;  %v14346_v39 = vld [vmem:[#allocation166_spill] sm:$0xff]  ;;  %v14347_v30 = vld [vmem:[#allocation365_spill] sm:$0xff]  ;;  %v14350_v49 = vld [vmem:[#allocation59_spill] sm:$0xff] }
 0x7fa   : > { %v10659_v52 = vadd.f32 %v1416_v58, %v14344_v35  ;;  %v1419_v19 = vmul.f32 %v9983_v37, %v14345_v13  ;;  %v1429_v45 = vmul.f32 %v9983_v37, %v14346_v39  ;;  %v2531_v20 = vmul.f32 %v10211_v53, %v14347_v30  ;;  %5054 = vperm.xlu2 %6435, %v14348_v51   ;;  %v14351_v60 = vld [vmem:[#allocation634_spill] sm:$0xff]  ;;  %v10680_v62 = vpop.permute.xlu2 %4852  ;;  %v14354_v43 = vld [vmem:[#allocation168_spill] sm:$0xff]  ;;  %v14357_v3 = vld [vmem:[#allocation73_spill] sm:$0xff] }
 0x7fb   : > { %14349 = vst [vmem:[#allocation98_spill] sm:$0xff] %v10673_v0  ;;  %v2534_v58 = vadd.f32 %v2502_v29, %v2340_v63  ;;  %v3013_v6 = vadd.f32 %v14350_v49, %v2754_v27  ;;  %v2725_v40 = vmul.f32 %v10216_v21, %v14351_v60  ;;  %v10678_v56 = vadd.f32 %v4010_v55, %v3848_v11  ;;  %v14353_v9 = vld [vmem:[#allocation70_spill] sm:$0xff]  ;;  %v10690_v63 = vld [vmem:[%s13246_s1 + $0x8] ss:$0 sm:$0xff]  ;;  %v14355_v27 = vld [vmem:[#allocation169_spill] sm:$0xff] }
 0x7fc   : > { %14352 = vst [vmem:[#allocation101_spill] sm:$0xff] %v10680_v62  ;;  %v10683_v8 = vadd.f32 %v1426_v33, %v14353_v9  ;;  %v1422_v53 = vmul.f32 %v9983_v37, %v14354_v43  ;;  %v1659_v29 = vmul.f32 %v10690_v63, %v14355_v27  ;;  %v14356_v21 = vld [vmem:[#allocation392_spill] sm:$0xff]  ;;  %v2563_v11 = vadd.f32 %v2531_v20, %v2369_v23  ;;  %v14360_v51 = vld [vmem:[#allocation171_spill] sm:$0xff]  ;;  %v6638_v43 = vld [vmem:[%s6773_s17 + $0x79] sm:$0xff] }
 0x7fd   : > { %v3175_v59 = vmul.f32 %v10305_v61, %v14356_v21  ;;  %v2728_v14 = vadd.f32 %v2696_v28, %v2534_v58  ;;  %v3657_v55 = vadd.f32 %v3625_v42, %v3398_v48  ;;  %v3369_v33 = vmul.f32 %v10310_v54, %v14357_v3  ;;  %v14358_v35 = vld [vmem:[#allocation164_spill] sm:$0xff]  ;;  %v14363_v28 = vld [vmem:[#allocation419_spill] sm:$0xff]  ;;  %v14420_v32 = vld [vmem:[#allocation198_spill] sm:$0xff] }
 0x7fe   : > { %v10700_v13 = vmul.f32 %v10664_v12, %v14358_v35  ;;  %v14359_v39 = vld [vmem:[#allocation72_spill] sm:$0xff]  ;;  %v1425_v49 = vmul.f32 %v9983_v37, %v14360_v51  ;;  %5180 = vperm.xlu0 %6444, %v6638_v43   ;;  %v3819_v48 = vmul.f32 %v10385_v31, %v14363_v28  ;;  %v2757_v20 = vadd.f32 %v2725_v40, %v2563_v11  ;;  %v14364_v27 = vld [vmem:[#allocation167_spill] sm:$0xff]  ;;  %v14367_v51 = vld [vmem:[#allocation174_spill] sm:$0xff] }
 0x7ff   : > { %v10703_v30 = vadd.f32 %v1419_v19, %v14359_v39  ;;  %v14361_v60 = vld [vmem:[#allocation172_spill] sm:$0xff]  ;;  %v3207_v58 = vadd.f32 %v3175_v59, %v3013_v6  ;;  %v10717_v19 = vmul.f32 %v10664_v12, %v14364_v27  ;;  %v14365_v21 = vld [vmem:[#allocation79_spill] sm:$0xff]  ;;  %v14368_v43 = vld [vmem:[#allocation50_spill] sm:$0xff]  ;;  %v3372_v57 = vmul.f32 %v10310_v54, %v14385_v50 }
 0x800   : > { %v1662_v9 = vmul.f32 %v10690_v63, %v14361_v60  ;;  %v14362_v23 = vld [vmem:[#allocation76_spill] sm:$0xff]  ;;  %v10720_v3 = vadd.f32 %v1422_v53, %v14365_v21  ;;  %v14366_v35 = vld [vmem:[#allocation71_spill] sm:$0xff]  ;;  %v1428_v60 = vmul.f32 %v9983_v37, %v14367_v51  ;;  %v3851_v28 = vadd.f32 %v3819_v48, %v3657_v55  ;;  %v14369_v40 = vld [vmem:[#allocation57_spill] sm:$0xff]  ;;  %v10743_v55 = vpop.permute.xlu1 %4817 }
 0x801   : > { %v10711_v42 = vadd.f32 %v1429_v45, %v14362_v23  ;;  %v10723_v39 = vadd.f32 %v1659_v29, %v14366_v35  ;;  %v3958_v45 = vpop.permute.xlu0 %3957  ;;  %v2987_v23 = vadd.f32 %v14368_v43, %v2728_v14  ;;  %v3401_v0 = vadd.f32 %v3369_v33, %v3207_v58  ;;  %5062 = vperm.xlu1 %6436, %v14369_v40   ;;  %v14370_v59 = vld [vmem:[#allocation170_spill] sm:$0xff]  ;;  %v14371_v53 = vld [vmem:[#allocation81_spill] sm:$0xff]  ;;  %v14373_v35 = vld [vmem:[#allocation175_spill] sm:$0xff] }
 0x802   : > { %v4013_v6 = vmul.f32 %v10404_v2, %v3958_v45  ;;  %v10732_v11 = vmul.f32 %v10664_v12, %v14370_v59  ;;  %v10735_v27 = vadd.f32 %v1425_v49, %v14371_v53  ;;  %v14372_v29 = vld [vmem:[#allocation82_spill] sm:$0xff]  ;;  %v1664_v51 = vmul.f32 %v10690_v63, %v14373_v35  ;;  %14375 = vst [vmem:[#allocation106_spill] sm:$0xff] %v10743_v55  ;;  %v14376_v33 = vld [vmem:[#allocation368_spill] sm:$0xff]  ;;  %v14377_v58 = vld [vmem:[#allocation65_spill] sm:$0xff] }
 0x803   : > { %v10738_v21 = vadd.f32 %v1662_v9, %v14372_v29  ;;  %v14374_v14 = vld [vmem:[#allocation58_spill] sm:$0xff]  ;;  %v3149_v48 = vmul.f32 %v10305_v61, %v14376_v33  ;;  %v3016_v45 = vadd.f32 %v14377_v58, %v2757_v20  ;;  %v14378_v43 = vld [vmem:[#allocation640_spill] sm:$0xff]  ;;  %v10752_v9 = vpop.permute.xlu2 %4867  ;;  %v14380_v59 = vld [vmem:[#allocation173_spill] sm:$0xff] }
 0x804   : > { %5066 = vperm.xlu2 %6435, %v14374_v14   ;;  %v3343_v49 = vmul.f32 %v10310_v54, %v14378_v43  ;;  %v10750_v40 = vadd.f32 %v4013_v6, %v3851_v28  ;;  %14379 = vst [vmem:[#allocation108_spill] sm:$0xff] %v10752_v9  ;;  %v10756_v53 = vmul.f32 %v10664_v12, %v14380_v59  ;;  %v14381_v29 = vld [vmem:[#allocation74_spill] sm:$0xff]  ;;  %v14382_v14 = vld [vmem:[#allocation177_spill] sm:$0xff]  ;;  %v14384_v58 = vld [vmem:[#allocation395_spill] sm:$0xff] }
 0x805   : > { %v10759_v35 = vadd.f32 %v1428_v60, %v14381_v29  ;;  %v1431_v33 = vmul.f32 %v9983_v37, %v14382_v14  ;;  %v14383_v55 = vld [vmem:[#allocation178_spill] sm:$0xff]  ;;  %v3178_v43 = vmul.f32 %v10305_v61, %v14384_v58  ;;  %v3181_v28 = vadd.f32 %v3149_v48, %v2987_v23  ;;  %v14386_v59 = vld [vmem:[#allocation85_spill] sm:$0xff]  ;;  %v14387_v60 = vld [vmem:[#allocation176_spill] sm:$0xff] }
 0x806   : > { %v1667_v20 = vmul.f32 %v10690_v63, %v14383_v55  ;;  %v3660_v6 = vadd.f32 %v10631_v25, %v3401_v0  ;;  %v10771_v22 = vadd.f32 %v1664_v51, %v14386_v59  ;;  %v10775_v29 = vmul.f32 %v10664_v12, %v14387_v60  ;;  %v14388_v37 = vld [vmem:[#allocation180_spill] sm:$0xff]  ;;  %v14389_v55 = vld [vmem:[#allocation181_spill] sm:$0xff]  ;;  %v14390_v23 = vld [vmem:[#allocation183_spill] sm:$0xff] }
 0x807   : > { %v1661_v14 = vmul.f32 %v10690_v63, %v14388_v37  ;;  %v1670_v4 = vmul.f32 %v10690_v63, %v14389_v55  ;;  %v6639_v61 = vld [vmem:[%s6773_s17 + $0x99] sm:$0xff]  ;;  %v1663_v25 = vmul.f32 %v10690_v63, %v14390_v23  ;;  %v3375_v50 = vadd.f32 %v3343_v49, %v3181_v28  ;;  %v14392_v48 = vld [vmem:[#allocation88_spill] sm:$0xff]  ;;  %v14396_v9 = vld [vmem:[#allocation187_spill] sm:$0xff] }
 0x808   : > { %5192 = vperm.xlu0 %6444, %v6639_v61   ;;  %v14391_v0 = vld [vmem:[#allocation422_spill] sm:$0xff]  ;;  %v3210_v51 = vadd.f32 %v3178_v43, %v3016_v45  ;;  %v10787_v58 = vadd.f32 %v1431_v33, %v14392_v48  ;;  %v14393_v59 = vld [vmem:[#allocation80_spill] sm:$0xff]  ;;  %v1676_v23 = vmul.f32 %v10690_v63, %v14396_v9  ;;  %v14397_v49 = vld [vmem:[#allocation53_spill] sm:$0xff] }
 0x809   : > { %v3822_v54 = vmul.f32 %v10385_v31, %v14391_v0  ;;  %v10790_v60 = vadd.f32 %v1667_v20, %v14393_v59  ;;  %v14394_v37 = vld [vmem:[#allocation184_spill] sm:$0xff]  ;;  %v14395_v55 = vld [vmem:[#allocation186_spill] sm:$0xff]  ;;  %v3970_v17 = vpop.permute.xlu0 %3969  ;;  %5074 = vperm.xlu1 %6436, %v14397_v49   ;;  %v14398_v33 = vld [vmem:[#allocation179_spill] sm:$0xff] }
 0x80a   : > { %v1673_v34 = vmul.f32 %v10690_v63, %v14394_v37  ;;  %v1666_v61 = vmul.f32 %v10690_v63, %v14395_v55  ;;  %v3404_v62 = vadd.f32 %v3372_v57, %v3210_v51  ;;  %v4016_v45 = vmul.f32 %v10404_v2, %v3970_v17  ;;  %v14399_v43 = vld [vmem:[#allocation91_spill] sm:$0xff]  ;;  %v14400_v48 = vld [vmem:[#allocation93_spill] sm:$0xff]  ;;  %v14402_v9 = vld [vmem:[#allocation64_spill] sm:$0xff]  ;;  %v10813_v57 = vpop.permute.xlu1 %4832 }
 0x80b   : > { %v3854_v0 = vadd.f32 %v3822_v54, %v3660_v6  ;;  %v10802_v20 = vmul.f32 %v10664_v12, %v14398_v33  ;;  %v10805_v28 = vadd.f32 %v1661_v14, %v14399_v43  ;;  %v10808_v59 = vadd.f32 %v1670_v4, %v14400_v48  ;;  %v14401_v37 = vld [vmem:[#allocation189_spill] sm:$0xff]  ;;  %14403 = vst [vmem:[#allocation104_spill] sm:$0xff] %v10813_v57  ;;  %v14404_v17 = vld [vmem:[#allocation182_spill] sm:$0xff]  ;;  %v14405_v51 = vld [vmem:[#allocation68_spill] sm:$0xff]  ;;  %v10825_v4 = vpop.permute.xlu2 %4882 }
 0x80c   : > { %v1669_v55 = vmul.f32 %v10690_v63, %v14401_v37  ;;  %5078 = vperm.xlu2 %6435, %v14402_v9   ;;  %v10817_v6 = vmul.f32 %v10664_v12, %v14404_v17  ;;  %v10820_v54 = vadd.f32 %v1663_v25, %v10508_v44  ;;  %v3634_v14 = vadd.f32 %v14405_v51, %v3375_v50  ;;  %v14408_v43 = vld [vmem:[#allocation185_spill] sm:$0xff]  ;;  %v14409_v9 = vld [vmem:[#allocation190_spill] sm:$0xff]  ;;  %v14412_v17 = vld [vmem:[#allocation188_spill] sm:$0xff] }
 0x80d   : > { %v10823_v49 = vadd.f32 %v4016_v45, %v3854_v0  ;;  %14407 = vst [vmem:[#allocation111_spill] sm:$0xff] %v10825_v4  ;;  %v10828_v33 = vadd.f32 %v1673_v34, %v10552_v5  ;;  %v10832_v48 = vmul.f32 %v10664_v12, %v14408_v43  ;;  %v10835_v37 = vadd.f32 %v1666_v61, %v10571_v36  ;;  %v14410_v50 = vld [vmem:[#allocation398_spill] sm:$0xff]  ;;  %v14411_v34 = vld [vmem:[#allocation83_spill] sm:$0xff]  ;;  %v14414_v61 = vld [vmem:[#allocation192_spill] sm:$0xff] }
 0x80e   : > { %v1679_v44 = vmul.f32 %v10690_v63, %v14409_v9  ;;  %v10840_v25 = vadd.f32 %v1676_v23, %v10580_v18  ;;  %v3796_v0 = vmul.f32 %v10385_v31, %v14410_v50  ;;  %v3663_v45 = vadd.f32 %v10647_v24, %v3404_v62  ;;  %v14415_v18 = vld [vmem:[#allocation193_spill] sm:$0xff]  ;;  %v6640_v62 = vld [vmem:[%s6773_s17 + $0xc1] sm:$0xff] }
 0x80f   : > { %14406 = vst [vmem:[#allocation109_spill] sm:$0xff] %v10823_v49  ;;  %v3990_v5 = vmul.f32 %v10404_v2, %v14411_v34  ;;  %v10849_v51 = vmul.f32 %v10664_v12, %v14412_v17  ;;  %v10852_v36 = vadd.f32 %v1669_v55, %v10620_v38  ;;  %v1672_v43 = vmul.f32 %v10690_v63, %v14414_v61  ;;  %v10861_v24 = vld [vmem:[%s13246_s1 + $0x1c] ss:$0 sm:$0xff]  ;;  %v14416_v9 = vld [vmem:[#allocation195_spill] sm:$0xff]  ;;  %v14417_v34 = vld [vmem:[#allocation196_spill] sm:$0xff] }
 0x810   : > { %v1682_v23 = vmul.f32 %v10690_v63, %v14415_v18  ;;  %5204 = vperm.xlu0 %6444, %v6640_v62   ;;  %v1675_v50 = vmul.f32 %v10690_v63, %v14416_v9  ;;  %v1685_v38 = vmul.f32 %v10690_v63, %v14417_v34  ;;  %v14418_v55 = vld [vmem:[#allocation425_spill] sm:$0xff]  ;;  %v3828_v61 = vadd.f32 %v3796_v0, %v3634_v14  ;;  %v14419_v18 = vld [vmem:[#allocation191_spill] sm:$0xff] }
 0x811   : > { %14413 = vst [vmem:[#allocation112_spill] sm:$0xff] %v10849_v51  ;;  %v3825_v17 = vmul.f32 %v10385_v31, %v14418_v55  ;;  %v10871_v4 = vadd.f32 %v1679_v44, %v10623_v46  ;;  %v10875_v57 = vmul.f32 %v10664_v12, %v14419_v18  ;;  %v1678_v62 = vmul.f32 %v10690_v63, %v14420_v32  ;;  %v3982_v51 = vpop.permute.xlu0 %3981  ;;  %v14422_v49 = vld [vmem:[#allocation201_spill] sm:$0xff]  ;;  %v14424_v32 = vld [vmem:[#allocation194_spill] sm:$0xff] }
 0x812   : > { %v1688_v9 = vmul.f32 %v10690_v63, %v14421_v1  ;;  %v1681_v34 = vmul.f32 %v10690_v63, %v14422_v49  ;;  %v4022_v31 = vadd.f32 %v3990_v5, %v3828_v61  ;;  %v4019_v46 = vmul.f32 %v10404_v2, %v3982_v51  ;;  %v14423_v44 = vld [vmem:[#allocation69_spill] sm:$0xff]  ;;  %v14426_v55 = vld [vmem:[#allocation202_spill] sm:$0xff]  ;;  %v14429_v5 = vld [vmem:[#allocation204_spill] sm:$0xff] }
 0x813   : > { %v3857_v14 = vadd.f32 %v3825_v17, %v3663_v45  ;;  %5086 = vperm.xlu1 %6436, %v14423_v44   ;;  %v10886_v12 = vadd.f32 %v1672_v43, %v10634_v15  ;;  %v10889_v0 = vadd.f32 %v1682_v23, %v10637_v47  ;;  %v10893_v1 = vmul.f32 %v10861_v24, %v14424_v32  ;;  %v10898_v45 = vpop.permute.xlu1 %4847  ;;  %v10911_v51 = vld [vmem:[%s13246_s1 + $0x19] ss:$0 sm:$0xff]  ;;  %v6641_v23 = vld [vmem:[%s6773_s17 + $0x31] sm:$0xff]  ;;  %v14433_v61 = vld [vmem:[#allocation207_spill] sm:$0xff]  ;;  %v10927_v32 = vpop.permute.xlu2 %4962 }
 0x814   : > { %v1853_v49 = vmul.f32 %v10099_v16, %v14426_v55  ;;  %v14427_v18 = vmov 2   ;;  %14428 = vst [vmem:[#allocation114_spill] sm:$0xff] %v10898_v45  ;;  %v10901_v2 = vadd.f32 %v1675_v50, %v10659_v52  ;;  %v10904_v15 = vadd.f32 %v1685_v38, %v10683_v8  ;;  %v14430_v17 = vld [vmem:[#allocation197_spill] sm:$0xff] }
 0x815   : > { %14425 = vst [vmem:[#allocation107_spill] sm:$0xff] %v10893_v1  ;;  %6437 = vset.pattern.permute.xlu2 %v14427_v18  ;;  %v1684_v47 = vmul.f32 %v10690_v63, %v14429_v5  ;;  %v10913_v43 = vadd.f32 %v4019_v46, %v3857_v14  ;;  %v10918_v52 = vmul.f32 %v10861_v24, %v14430_v17  ;;  %v14432_v50 = vld [vmem:[#allocation205_spill] sm:$0xff]  ;;  %v14435_v46 = vld [vmem:[#allocation200_spill] sm:$0xff] }
 0x816   : > { %5156 = vperm.xlu2 %6437, %v6641_v23   ;;  %v10921_v8 = vadd.f32 %v1678_v62, %v10703_v30  ;;  %v1856_v38 = vmul.f32 %v10099_v16, %v14432_v50  ;;  %v1687_v44 = vmul.f32 %v10690_v63, %v14433_v61  ;;  %14434 = vst [vmem:[#allocation117_spill] sm:$0xff] %v10927_v32  ;;  %v14437_v23 = vld [vmem:[#allocation203_spill] sm:$0xff]  ;;  %v14439_v50 = vld [vmem:[#allocation208_spill] sm:$0xff]  ;;  %v14448_v45 = vld [vmem:[#allocation217_spill] sm:$0xff] }
 0x817   : > { %14431 = vst [vmem:[#allocation115_spill] sm:$0xff] %v10918_v52  ;;  %v10930_v14 = vadd.f32 %v1688_v9, %v10711_v42  ;;  %v10934_v55 = vmul.f32 %v10861_v24, %v14435_v46  ;;  %v10937_v5 = vadd.f32 %v1681_v34, %v10720_v3  ;;  %v4282_v30 = vadd.f32 %v10700_v13, %v4022_v31  ;;  %v14440_v9 = vld [vmem:[#allocation210_spill] sm:$0xff]  ;;  %v14443_v31 = vld [vmem:[#allocation211_spill] sm:$0xff] }
 0x818   : > { %v10941_v62 = vadd.f32 %v1853_v49, %v10723_v39  ;;  %v10945_v17 = vmul.f32 %v10861_v24, %v14437_v23  ;;  %v1858_v42 = vmul.f32 %v10099_v16, %v14439_v50  ;;  %v1690_v61 = vmul.f32 %v10690_v63, %v14440_v9  ;;  %v6642_v46 = vld [vmem:[%s6773_s17 + $0xe1] sm:$0xff]  ;;  %v10962_v39 = vld [vmem:[%s13246_s1 + $0x9] ss:$0 sm:$0xff]  ;;  %v14444_v49 = vld [vmem:[#allocation428_spill] sm:$0xff] }
 0x819   : > { %14436 = vst [vmem:[#allocation110_spill] sm:$0xff] %v10934_v55  ;;  %5216 = vperm.xlu0 %6444, %v6642_v46   ;;  %v10953_v3 = vadd.f32 %v1684_v47, %v10735_v27  ;;  %v14441_v34 = vld [vmem:[#allocation206_spill] sm:$0xff]  ;;  %v1861_v16 = vmul.f32 %v10962_v39, %v14443_v31  ;;  %v4444_v63 = vmul.f32 %v10911_v51, %v14444_v49  ;;  %v10971_v27 = vld [vmem:[%s13246_s1 + $0x1a] ss:$0 sm:$0xff]  ;;  %v4514_v31 = vpop.permute.xlu0 %4513  ;;  %v14447_v49 = vld [vmem:[#allocation216_spill] sm:$0xff] }
 0x81a   : > { %14438 = vst [vmem:[#allocation118_spill] sm:$0xff] %v10945_v17  ;;  %v10957_v13 = vmul.f32 %v10861_v24, %v14441_v34  ;;  %v10974_v47 = vadd.f32 %v1856_v38, %v10738_v21  ;;  %v10977_v23 = vadd.f32 %v1687_v44, %v10759_v35  ;;  %v14445_v50 = vld [vmem:[#allocation213_spill] sm:$0xff]  ;;  %v14446_v46 = vld [vmem:[#allocation214_spill] sm:$0xff]  ;;  %v1857_v32 = vmul.f32 %v10962_v39, %v14447_v49  ;;  %v6644_v55 = vld [vmem:[%s6773_s17 + $0x49] sm:$0xff] }
 0x81b   : > { %v1855_v9 = vmul.f32 %v10962_v39, %v14445_v50  ;;  %v1864_v34 = vmul.f32 %v10962_v39, %v14446_v46  ;;  %v4476_v17 = vadd.f32 %v4444_v63, %v4282_v30  ;;  %v4638_v21 = vmul.f32 %v10971_v27, %v4514_v31  ;;  %6438 = vset.pattern.permute.xlu1 %v14427_v18  ;;  %v14449_v38 = vld [vmem:[#allocation209_spill] sm:$0xff]  ;;  %v14451_v46 = vld [vmem:[#allocation219_spill] sm:$0xff]  ;;  %v14453_v63 = vld [vmem:[#allocation212_spill] sm:$0xff] }
 0x81c   : > { %14442 = vst [vmem:[#allocation113_spill] sm:$0xff] %v10957_v13  ;;  %v1867_v13 = vmul.f32 %v10962_v39, %v14448_v45  ;;  %v10990_v35 = vadd.f32 %v1858_v42, %v10771_v22  ;;  %v10994_v44 = vmul.f32 %v10861_v24, %v14449_v38  ;;  %v10997_v50 = vadd.f32 %v1690_v61, %v10787_v58  ;;  %v11002_v45 = vpop.permute.xlu1 %4862  ;;  %v14455_v42 = vld [vmem:[#allocation220_spill] sm:$0xff]  ;;  %v6651_v52 = vld [vmem:[%s6773_s17 + $0x81] sm:$0xff] }
 0x81d   : > { %v1860_v49 = vmul.f32 %v10962_v39, %v14451_v46  ;;  %5164 = vperm.xlu1 %6438, %v6644_v55   ;;  %14452 = vst [vmem:[#allocation121_spill] sm:$0xff] %v11002_v45  ;;  %v11005_v30 = vadd.f32 %v1861_v16, %v10790_v60  ;;  %v11009_v22 = vmul.f32 %v10861_v24, %v14453_v63  ;;  %v6645_v58 = vld [vmem:[%s6773_s17 + $0x51] sm:$0xff]  ;;  %v14456_v60 = vld [vmem:[#allocation215_spill] sm:$0xff]  ;;  %v14458_v46 = vld [vmem:[#allocation222_spill] sm:$0xff] }
 0x81e   : > { %14450 = vst [vmem:[#allocation120_spill] sm:$0xff] %v10994_v44  ;;  %v1870_v31 = vmul.f32 %v10962_v39, %v14455_v42  ;;  %v11013_v38 = vadd.f32 %v4638_v21, %v4476_v17  ;;  %5168 = vperm.xlu2 %6437, %v6645_v58   ;;  %v11017_v61 = vadd.f32 %v1855_v9, %v10805_v28  ;;  %v11031_v17 = vld [vmem:[%s13246_s1 + $0x20] ss:$0 sm:$0xff]  ;;  %v11033_v21 = vpop.permute.xlu2 %4974  ;;  %v14462_v42 = vld [vmem:[#allocation96_spill] sm:$0xff] }
 0x81f   : > { %14454 = vst [vmem:[#allocation116_spill] sm:$0xff] %v11009_v22  ;;  %v11020_v55 = vadd.f32 %v1864_v34, %v10808_v59  ;;  %v11024_v16 = vmul.f32 %v10861_v24, %v14456_v60  ;;  %v1863_v63 = vmul.f32 %v10962_v39, %v14458_v46  ;;  %v11036_v28 = vadd.f32 %v1857_v32, %v10820_v54  ;;  %v14460_v9 = vld [vmem:[#allocation218_spill] sm:$0xff]  ;;  %v14463_v46 = vld [vmem:[#allocation221_spill] sm:$0xff]  ;;  %v14478_v22 = vld [vmem:[#allocation235_spill] sm:$0xff] }
 0x820   : > { %14459 = vst [vmem:[#allocation123_spill] sm:$0xff] %v11033_v21  ;;  %v11039_v59 = vadd.f32 %v1867_v13, %v10828_v33  ;;  %v11043_v34 = vmul.f32 %v10861_v24, %v14460_v9  ;;  %v4287_v58 = vadd.f32 %v10717_v19, %v14462_v42  ;;  %v11048_v60 = vadd.f32 %v1860_v49, %v10835_v37  ;;  %v14465_v21 = vld [vmem:[#allocation223_spill] sm:$0xff]  ;;  %v14466_v32 = vld [vmem:[#allocation225_spill] sm:$0xff]  ;;  %v14467_v45 = vld [vmem:[#allocation226_spill] sm:$0xff] }
 0x821   : > { %14457 = vst [vmem:[#allocation119_spill] sm:$0xff] %v11024_v16  ;;  %v11052_v18 = vmul.f32 %v10861_v24, %v14463_v46  ;;  %v1873_v54 = vmul.f32 %v10962_v39, %v14465_v21  ;;  %v1866_v33 = vmul.f32 %v10962_v39, %v14466_v32  ;;  %v6646_v13 = vld [vmem:[%s6773_s17 + $0x109] sm:$0xff]  ;;  %v11060_v9 = vadd.f32 %v1870_v31, %v10840_v25  ;;  %v14475_v16 = vld [vmem:[#allocation234_spill] sm:$0xff] }
 0x822   : > { %14461 = vst [vmem:[#allocation124_spill] sm:$0xff] %v11043_v34  ;;  %5228 = vperm.xlu0 %6444, %v6646_v13   ;;  %v1876_v19 = vmul.f32 %v10962_v39, %v14467_v45  ;;  %v14468_v37 = vld [vmem:[#allocation228_spill] sm:$0xff]  ;;  %v14469_v42 = vld [vmem:[#allocation431_spill] sm:$0xff]  ;;  %v11069_v21 = vadd.f32 %v1863_v63, %v10852_v36  ;;  %v14472_v13 = vld [vmem:[#allocation229_spill] sm:$0xff] }
 0x823   : > { %14464 = vst [vmem:[#allocation286_spill] sm:$0xff] %v11052_v18  ;;  %v1869_v49 = vmul.f32 %v10962_v39, %v14468_v37  ;;  %v4449_v24 = vmul.f32 %v10911_v51, %v14469_v42  ;;  %v14470_v46 = vld [vmem:[#allocation224_spill] sm:$0xff]  ;;  %v1879_v25 = vmul.f32 %v10962_v39, %v14472_v13  ;;  %v14473_v31 = vld [vmem:[#allocation231_spill] sm:$0xff]  ;;  %v4534_v18 = vpop.permute.xlu0 %4533  ;;  %v1875_v42 = vmul.f32 %v10962_v39, %v14475_v16  ;;  %v14502_v44 = vld [vmem:[#allocation242_spill] sm:$0xff] }
 0x824   : > { %v11073_v32 = vmul.f32 %v11031_v17, %v14470_v46  ;;  %v1872_v45 = vmul.f32 %v10962_v39, %v14473_v31  ;;  %v14474_v34 = vld [vmem:[#allocation232_spill] sm:$0xff]  ;;  %v4643_v63 = vmul.f32 %v10971_v27, %v4534_v18  ;;  %v11085_v46 = vadd.f32 %v1873_v54, %v10871_v4  ;;  %v14476_v13 = vld [vmem:[#allocation227_spill] sm:$0xff]  ;;  %v11102_v18 = vpop.permute.xlu1 %4877  ;;  %v14480_v54 = vld [vmem:[#allocation237_spill] sm:$0xff] }
 0x825   : > { %v1882_v37 = vmul.f32 %v10962_v39, %v14474_v34  ;;  %v4481_v36 = vadd.f32 %v4449_v24, %v4287_v58  ;;  %v11092_v31 = vmul.f32 %v11031_v17, %v14476_v13  ;;  %v11097_v34 = vld [vmem:[%s13246_s1 + $0xa] ss:$0 sm:$0xff]  ;;  %v6648_v58 = vld [vmem:[%s6773_s17 + $0x61] sm:$0xff]  ;;  %14479 = vst [vmem:[#allocation127_spill] sm:$0xff] %v11102_v18  ;;  %v11105_v4 = vadd.f32 %v1876_v19, %v10889_v0 }
 0x826   : > { %14471 = vst [vmem:[#allocation550_spill] sm:$0xff] %v11073_v32  ;;  %v11088_v32 = vadd.f32 %v1866_v33, %v10886_v12  ;;  %v2047_v16 = vmul.f32 %v11097_v34, %v14478_v22  ;;  %5172 = vperm.xlu1 %6438, %v6648_v58   ;;  %v11108_v12 = vadd.f32 %v1869_v49, %v10901_v2  ;;  %v6649_v13 = vld [vmem:[%s6773_s17 + $0x69] sm:$0xff]  ;;  %v14482_v58 = vld [vmem:[#allocation230_spill] sm:$0xff]  ;;  %v14484_v2 = vld [vmem:[#allocation233_spill] sm:$0xff]  ;;  %v11129_v49 = vpop.permute.xlu2 %4982 }
 0x827   : > { %14477 = vst [vmem:[#allocation126_spill] sm:$0xff] %v11092_v31  ;;  %v1878_v33 = vmul.f32 %v10962_v39, %v14480_v54  ;;  %v11112_v24 = vadd.f32 %v4643_v63, %v4481_v36  ;;  %5176 = vperm.xlu2 %6437, %v6649_v13   ;;  %v11116_v22 = vadd.f32 %v1879_v25, %v10904_v15  ;;  %v14487_v15 = vld [vmem:[#allocation236_spill] sm:$0xff]  ;;  %v14489_v54 = vld [vmem:[#allocation238_spill] sm:$0xff] }
 0x828   : > { %v11120_v18 = vmul.f32 %v11031_v17, %v14482_v58  ;;  %v11123_v0 = vadd.f32 %v1872_v45, %v10921_v8  ;;  %v11127_v19 = vmul.f32 %v11031_v17, %v14484_v2  ;;  %14486 = vst [vmem:[#allocation129_spill] sm:$0xff] %v11129_v49  ;;  %v11132_v36 = vadd.f32 %v1882_v37, %v10930_v14  ;;  %v14490_v58 = vld [vmem:[#allocation240_spill] sm:$0xff]  ;;  %v14491_v37 = vld [vmem:[#allocation241_spill] sm:$0xff]  ;;  %v14498_v49 = vld [vmem:[#allocation247_spill] sm:$0xff] }
 0x829   : > { %14481 = vst [vmem:[#allocation311_spill] sm:$0xff] %v11112_v24  ;;  %v11135_v63 = vadd.f32 %v1875_v42, %v10937_v5  ;;  %v11139_v25 = vmul.f32 %v11031_v17, %v14487_v15  ;;  %v4290_v8 = vadd.f32 %v10732_v11, %v10477_v41  ;;  %v11144_v45 = vadd.f32 %v2047_v16, %v10941_v62  ;;  %v6650_v42 = vld [vmem:[%s6773_s17 + $0x129] sm:$0xff]  ;;  %v14494_v16 = vld [vmem:[#allocation434_spill] sm:$0xff] }
 0x82a   : > { %14483 = vst [vmem:[#allocation577_spill] sm:$0xff] %v11120_v18  ;;  %v2050_v13 = vmul.f32 %v11097_v34, %v14489_v54  ;;  %v1881_v14 = vmul.f32 %v10962_v39, %v14490_v58  ;;  %v2052_v5 = vmul.f32 %v11097_v34, %v14491_v37  ;;  %5240 = vperm.xlu0 %6444, %v6650_v42   ;;  %v14492_v15 = vld [vmem:[#allocation243_spill] sm:$0xff]  ;;  %v14493_v11 = vld [vmem:[#allocation244_spill] sm:$0xff]  ;;  %v14497_v37 = vld [vmem:[#allocation246_spill] sm:$0xff] }
 0x82b   : > { %14485 = vst [vmem:[#allocation122_spill] sm:$0xff] %v11127_v19  ;;  %v11154_v2 = vadd.f32 %v1878_v33, %v10953_v3  ;;  %v1884_v41 = vmul.f32 %v10962_v39, %v14492_v15  ;;  %v2055_v62 = vmul.f32 %v11097_v34, %v14493_v11  ;;  %v4452_v54 = vmul.f32 %v10911_v51, %v14494_v16  ;;  %v14499_v33 = vld [vmem:[#allocation249_spill] sm:$0xff]  ;;  %v4546_v15 = vpop.permute.xlu0 %4545  ;;  %v14500_v19 = vld [vmem:[#allocation250_spill] sm:$0xff]  ;;  %v14501_v18 = vld [vmem:[#allocation252_spill] sm:$0xff] }
 0x82c   : > { %14488 = vst [vmem:[#allocation130_spill] sm:$0xff] %v11139_v25  ;;  %v14495_v25 = vld [vmem:[#allocation239_spill] sm:$0xff]  ;;  %v2049_v42 = vmul.f32 %v11097_v34, %v14497_v37  ;;  %v2058_v3 = vmul.f32 %v11097_v34, %v14498_v49  ;;  %v2051_v39 = vmul.f32 %v11097_v34, %v14499_v33  ;;  %v2061_v11 = vmul.f32 %v11097_v34, %v14500_v19  ;;  %v11187_v19 = vpop.permute.xlu1 %4892 }
 0x82d   : > { %v11164_v58 = vmul.f32 %v11031_v17, %v14495_v25  ;;  %v2054_v16 = vmul.f32 %v11097_v34, %v14501_v18  ;;  %v4484_v31 = vadd.f32 %v4452_v54, %v4290_v8  ;;  %v4646_v25 = vmul.f32 %v10971_v27, %v4546_v15  ;;  %14504 = vst [vmem:[#allocation132_spill] sm:$0xff] %v11187_v19  ;;  %v14512_v54 = vld [vmem:[#allocation255_spill] sm:$0xff] }
 0x82e   : > { %v1913_v37 = vadd.f32 %v1881_v14, %v10977_v23  ;;  %v11180_v49 = vadd.f32 %v2052_v5, %v10990_v35  ;;  %v11184_v33 = vmul.f32 %v11031_v17, %v14502_v44  ;;  %5184 = vperm.xlu1 %6438, %v6651_v52   ;;  %v11190_v18 = vadd.f32 %v1884_v41, %v10997_v50  ;;  %v14508_v50 = vld [vmem:[#allocation248_spill] sm:$0xff]  ;;  %v11215_v5 = vpop.permute.xlu2 %4994 }
 0x82f   : > { %14496 = vst [vmem:[#allocation263_spill] sm:$0xff] %v11164_v58  ;;  %v2082_v58 = vadd.f32 %v2050_v13, %v10974_v47  ;;  %v11193_v8 = vadd.f32 %v2055_v62, %v11005_v30  ;;  %v14505_v47 = vld [vmem:[#allocation245_spill] sm:$0xff]  ;;  %v11199_v35 = vadd.f32 %v4646_v25, %v4484_v31  ;;  %v11203_v44 = vadd.f32 %v2049_v42, %v11017_v61  ;;  %v14513_v42 = vld [vmem:[#allocation256_spill] sm:$0xff] }
 0x830   : > { %14503 = vst [vmem:[#allocation125_spill] sm:$0xff] %v11184_v33  ;;  %v11197_v23 = vmul.f32 %v11031_v17, %v14505_v47  ;;  %v6652_v13 = vld [vmem:[%s6773_s17 + $0x91] sm:$0xff]  ;;  %v11206_v52 = vadd.f32 %v2058_v3, %v11020_v55  ;;  %v11210_v14 = vmul.f32 %v11031_v17, %v14508_v50  ;;  %v11213_v30 = vadd.f32 %v2051_v39, %v11036_v28 }
 0x831   : > { %14507 = vst [vmem:[#allocation527_spill] sm:$0xff] %v11199_v35  ;;  %5188 = vperm.xlu2 %6437, %v6652_v13   ;;  %v11218_v31 = vadd.f32 %v2061_v11, %v11039_v59  ;;  %v11221_v41 = vadd.f32 %v2054_v16, %v11048_v60  ;;  %v14511_v61 = vld [vmem:[#allocation253_spill] sm:$0xff]  ;;  %v4293_v55 = vadd.f32 %v10756_v53, %v10519_v10  ;;  %v14515_v59 = vld [vmem:[#allocation258_spill] sm:$0xff]  ;;  %v14516_v11 = vld [vmem:[#allocation259_spill] sm:$0xff] }
 0x832   : > { %14506 = vst [vmem:[#allocation128_spill] sm:$0xff] %v11197_v23  ;;  %v2064_v62 = vmul.f32 %v11097_v34, %v14511_v61  ;;  %v2057_v17 = vmul.f32 %v11097_v34, %v14512_v54  ;;  %v2067_v28 = vmul.f32 %v11097_v34, %v14513_v42  ;;  %v14514_v3 = vld [vmem:[#allocation257_spill] sm:$0xff]  ;;  %v2070_v15 = vmul.f32 %v11097_v34, %v14515_v59  ;;  %v14517_v25 = vld [vmem:[#allocation260_spill] sm:$0xff]  ;;  %v14520_v61 = vld [vmem:[#allocation262_spill] sm:$0xff] }
 0x833   : > { %14509 = vst [vmem:[#allocation131_spill] sm:$0xff] %v11210_v14  ;;  %v2060_v39 = vmul.f32 %v11097_v34, %v14514_v3  ;;  %v6653_v60 = vld [vmem:[%s6773_s17 + $0x151] sm:$0xff]  ;;  %v2063_v16 = vmul.f32 %v11097_v34, %v14516_v11  ;;  %v2073_v10 = vmul.f32 %v11097_v34, %v14517_v25  ;;  %v2076_v54 = vmul.f32 %v11097_v34, %v14520_v61  ;;  %v11251_v59 = vld [vmem:[%s13246_s1 + $0xc] ss:$0 sm:$0xff]  ;;  %v4558_v14 = vpop.permute.xlu0 %4557  ;;  %v14525_v61 = vld [vmem:[#allocation270_spill] sm:$0xff] }
 0x834   : > { %14510 = vst [vmem:[#allocation133_spill] sm:$0xff] %v11215_v5  ;;  %5252 = vperm.xlu0 %6444, %v6653_v60   ;;  %v14518_v53 = vld [vmem:[#allocation261_spill] sm:$0xff]  ;;  %v14521_v42 = vld [vmem:[#allocation264_spill] sm:$0xff]  ;;  %v14523_v25 = vld [vmem:[#allocation267_spill] sm:$0xff]  ;;  %v2075_v33 = vmul.f32 %v11097_v34, %v14525_v61  ;;  %v4649_v5 = vmul.f32 %v10971_v27, %v4558_v14  ;;  %v2096_v19 = vadd.f32 %v2064_v62, %v11060_v9  ;;  %v11277_v9 = vpop.permute.xlu1 %4970 }
 0x835   : > { %v2066_v47 = vmul.f32 %v11097_v34, %v14518_v53  ;;  %v14519_v13 = vld [vmem:[#allocation437_spill] sm:$0xff]  ;;  %v2069_v3 = vmul.f32 %v11097_v34, %v14521_v42  ;;  %v2072_v53 = vmul.f32 %v11097_v34, %v14523_v25  ;;  %v2089_v35 = vadd.f32 %v2057_v17, %v11069_v21  ;;  %v6655_v25 = vld [vmem:[%s6773_s17 + $0xa9] sm:$0xff]  ;;  %14526 = vst [vmem:[#allocation289_spill] sm:$0xff] %v11277_v9 }
 0x836   : > { %v4455_v50 = vmul.f32 %v10911_v51, %v14519_v13  ;;  %v14522_v60 = vld [vmem:[#allocation265_spill] sm:$0xff]  ;;  %v14524_v13 = vld [vmem:[#allocation268_spill] sm:$0xff]  ;;  %v2092_v24 = vadd.f32 %v2060_v39, %v11088_v32  ;;  %5196 = vperm.xlu1 %6438, %v6655_v25   ;;  %v2102_v1 = vadd.f32 %v2070_v15, %v11105_v4  ;;  %v11272_v61 = vadd.f32 %v2073_v10, %v11116_v22 }
 0x837   : > { %v2307_v11 = vmul.f32 %v11251_v59, %v14522_v60  ;;  %v2310_v23 = vmul.f32 %v11251_v59, %v14524_v13  ;;  %v2099_v60 = vadd.f32 %v2067_v28, %v11085_v46  ;;  %v11269_v13 = vadd.f32 %v2063_v16, %v11108_v12  ;;  %v6656_v14 = vld [vmem:[%s6773_s17 + $0xb1] sm:$0xff]  ;;  %v11291_v12 = vpop.permute.xlu2 %5006 }
 0x838   : > { %v4487_v42 = vadd.f32 %v4455_v50, %v4293_v55  ;;  %v11280_v21 = vadd.f32 %v2066_v47, %v11123_v0  ;;  %v11283_v32 = vadd.f32 %v2076_v54, %v11132_v36  ;;  %v11286_v46 = vadd.f32 %v2069_v3, %v11135_v63  ;;  %14527 = vst [vmem:[#allocation553_spill] sm:$0xff] %v11291_v12  ;;  %v14528_v36 = vld [vmem:[#allocation271_spill] sm:$0xff]  ;;  %v14529_v63 = vld [vmem:[#allocation273_spill] sm:$0xff]  ;;  %v14531_v15 = vld [vmem:[#allocation276_spill] sm:$0xff] }
 0x839   : > { %5200 = vperm.xlu2 %6437, %v6656_v14   ;;  %v11289_v4 = vadd.f32 %v2307_v11, %v11144_v45  ;;  %v11294_v22 = vadd.f32 %v2072_v53, %v11154_v2  ;;  %v11298_v62 = vadd.f32 %v2075_v33, %v1913_v37  ;;  %v4296_v0 = vadd.f32 %v10775_v29, %v10564_v26  ;;  %v14530_v45 = vld [vmem:[#allocation274_spill] sm:$0xff]  ;;  %v6657_v16 = vld [vmem:[%s6773_s17 + $0x171] sm:$0xff]  ;;  %v14533_v33 = vld [vmem:[#allocation279_spill] sm:$0xff] }
 0x83a   : > { %v11274_v55 = vadd.f32 %v4649_v5, %v4487_v42  ;;  %v11296_v5 = vadd.f32 %v2310_v23, %v2082_v58  ;;  %v2312_v17 = vmul.f32 %v11251_v59, %v14528_v36  ;;  %v2078_v28 = vmul.f32 %v11097_v34, %v14529_v63  ;;  %v14532_v58 = vld [vmem:[#allocation277_spill] sm:$0xff]  ;;  %v14534_v29 = vld [vmem:[#allocation280_spill] sm:$0xff]  ;;  %v14536_v47 = vld [vmem:[#allocation282_spill] sm:$0xff] }
 0x83b   : > { %v2315_v39 = vmul.f32 %v11251_v59, %v14530_v45  ;;  %v2309_v2 = vmul.f32 %v11251_v59, %v14531_v15  ;;  %v2318_v37 = vmul.f32 %v11251_v59, %v14532_v58  ;;  %v2311_v26 = vmul.f32 %v11251_v59, %v14533_v33  ;;  %v14535_v10 = vld [vmem:[#allocation440_spill] sm:$0xff]  ;;  %v14537_v54 = vld [vmem:[#allocation283_spill] sm:$0xff]  ;;  %v14539_v42 = vld [vmem:[#allocation285_spill] sm:$0xff]  ;;  %v4570_v14 = vpop.permute.xlu0 %4569 }
 0x83c   : > { %5264 = vperm.xlu0 %6444, %v6657_v16   ;;  %v2321_v23 = vmul.f32 %v11251_v59, %v14534_v29  ;;  %v4458_v34 = vmul.f32 %v10911_v51, %v14535_v10  ;;  %v2314_v50 = vmul.f32 %v11251_v59, %v14536_v47  ;;  %v2324_v3 = vmul.f32 %v11251_v59, %v14537_v54  ;;  %v14538_v11 = vld [vmem:[#allocation284_spill] sm:$0xff]  ;;  %v14540_v36 = vld [vmem:[#allocation287_spill] sm:$0xff]  ;;  %v6673_v12 = vld [vmem:[%s6773_s17 + $0x159] sm:$0xff] }
 0x83d   : > { %v2317_v53 = vmul.f32 %v11251_v59, %v14538_v11  ;;  %v2327_v25 = vmul.f32 %v11251_v59, %v14539_v42  ;;  %v2320_v63 = vmul.f32 %v11251_v59, %v14540_v36  ;;  %v14541_v45 = vld [vmem:[#allocation288_spill] sm:$0xff]  ;;  %v4652_v58 = vmul.f32 %v10971_v27, %v4570_v14 }
 0x83e   : > { %v2330_v15 = vmul.f32 %v11251_v59, %v14541_v45  ;;  %v4490_v16 = vadd.f32 %v4458_v34, %v4296_v0  ;;  %v2344_v33 = vadd.f32 %v2312_v17, %v11180_v49  ;;  %v2110_v29 = vadd.f32 %v2078_v28, %v11190_v18  ;;  %v6658_v54 = vld [vmem:[%s6773_s17 + $0xc9] sm:$0xff]  ;;  %v6659_v34 = vld [vmem:[%s6773_s17 + $0xd9] sm:$0xff]  ;;  %v11347_v49 = vpop.permute.xlu1 %4978 }
 0x83f   : > { %v2347_v10 = vadd.f32 %v2315_v39, %v11193_v8  ;;  %v2341_v47 = vadd.f32 %v2309_v2, %v11203_v44  ;;  %5208 = vperm.xlu1 %6438, %v6658_v54   ;;  %v2350_v11 = vadd.f32 %v2318_v37, %v11206_v52  ;;  %v11339_v42 = vadd.f32 %v2311_v26, %v11213_v30  ;;  %v11358_v30 = vpop.permute.xlu2 %5018  ;;  %v14544_v28 = vld [vmem:[#allocation290_spill] sm:$0xff]  ;;  %v14546_v37 = vld [vmem:[#allocation293_spill] sm:$0xff] }
 0x840   : > { %v11342_v36 = vadd.f32 %v2321_v23, %v11218_v31  ;;  %v11344_v0 = vadd.f32 %v4652_v58, %v4490_v16  ;;  %14542 = vst [vmem:[#allocation135_spill] sm:$0xff] %v11347_v49  ;;  %v11350_v18 = vadd.f32 %v2314_v50, %v11221_v41  ;;  %v11352_v8 = vadd.f32 %v2324_v3, %v2096_v19  ;;  %v14545_v41 = vld [vmem:[#allocation291_spill] sm:$0xff]  ;;  %v14548_v23 = vld [vmem:[#allocation296_spill] sm:$0xff] }
 0x841   : > { %5212 = vperm.xlu2 %6437, %v6659_v34   ;;  %v11354_v44 = vadd.f32 %v2317_v53, %v2089_v35  ;;  %v11356_v52 = vadd.f32 %v2327_v25, %v2099_v60  ;;  %14543 = vst [vmem:[#allocation136_spill] sm:$0xff] %v11358_v30  ;;  %v11360_v31 = vadd.f32 %v2320_v63, %v2092_v24  ;;  %v14547_v60 = vld [vmem:[#allocation294_spill] sm:$0xff]  ;;  %v11380_v50 = vld [vmem:[%s13246_s1 + $0xd] ss:$0 sm:$0xff]  ;;  %v14551_v25 = vld [vmem:[#allocation301_spill] sm:$0xff] }
 0x842   : > { %v11362_v17 = vadd.f32 %v2330_v15, %v2102_v1  ;;  %v2323_v39 = vmul.f32 %v11251_v59, %v14544_v28  ;;  %v4299_v2 = vadd.f32 %v10802_v20, %v10613_v7  ;;  %v2333_v19 = vmul.f32 %v11251_v59, %v14545_v41  ;;  %v6660_v1 = vld [vmem:[%s6773_s17 + $0x199] sm:$0xff]  ;;  %v14550_v3 = vld [vmem:[#allocation299_spill] sm:$0xff]  ;;  %v14554_v58 = vld [vmem:[#allocation304_spill] sm:$0xff] }
 0x843   : > { %v2326_v35 = vmul.f32 %v11251_v59, %v14546_v37  ;;  %v2336_v26 = vmul.f32 %v11251_v59, %v14547_v60  ;;  %v2329_v24 = vmul.f32 %v11251_v59, %v14548_v23  ;;  %v14549_v7 = vld [vmem:[#allocation298_spill] sm:$0xff]  ;;  %v2332_v53 = vmul.f32 %v11251_v59, %v14550_v3  ;;  %v14552_v63 = vld [vmem:[#allocation443_spill] sm:$0xff]  ;;  %v14555_v34 = vld [vmem:[#allocation305_spill] sm:$0xff]  ;;  %v4582_v60 = vpop.permute.xlu0 %4581 }
 0x844   : > { %5276 = vperm.xlu0 %6444, %v6660_v1   ;;  %v2501_v20 = vmul.f32 %v11380_v50, %v14549_v7  ;;  %v2504_v14 = vmul.f32 %v11380_v50, %v14551_v25  ;;  %v4461_v45 = vmul.f32 %v10911_v51, %v14552_v63  ;;  %v14553_v15 = vld [vmem:[#allocation302_spill] sm:$0xff]  ;;  %v2506_v54 = vmul.f32 %v11380_v50, %v14554_v58  ;;  %v14556_v41 = vld [vmem:[#allocation307_spill] sm:$0xff]  ;;  %v14557_v23 = vld [vmem:[#allocation309_spill] sm:$0xff] }
 0x845   : > { %v2335_v16 = vmul.f32 %v11251_v59, %v14553_v15  ;;  %v2338_v28 = vmul.f32 %v11251_v59, %v14555_v34  ;;  %v2509_v37 = vmul.f32 %v11380_v50, %v14556_v41  ;;  %v2503_v1 = vmul.f32 %v11380_v50, %v14557_v23  ;;  %v14558_v7 = vld [vmem:[#allocation310_spill] sm:$0xff]  ;;  %v6662_v41 = vld [vmem:[%s6773_s17 + $0xf1] sm:$0xff] }
 0x846   : > { %v2512_v3 = vmul.f32 %v11380_v50, %v14558_v7  ;;  %v4493_v25 = vadd.f32 %v4461_v45, %v4299_v2  ;;  %v4655_v63 = vmul.f32 %v10971_v27, %v4582_v60  ;;  %v2355_v15 = vadd.f32 %v2323_v39, %v11269_v13  ;;  %v6663_v45 = vld [vmem:[%s6773_s17 + $0xf9] sm:$0xff]  ;;  %v11416_v13 = vpop.permute.xlu1 %4990 }
 0x847   : > { %v2365_v58 = vadd.f32 %v2333_v19, %v11272_v61  ;;  %v2358_v59 = vadd.f32 %v2326_v35, %v11280_v21  ;;  %v2368_v34 = vadd.f32 %v2336_v26, %v11283_v32  ;;  %5220 = vperm.xlu1 %6438, %v6662_v41   ;;  %v2361_v30 = vadd.f32 %v2329_v24, %v11286_v46  ;;  %v14562_v24 = vld [vmem:[#allocation315_spill] sm:$0xff] }
 0x848   : > { %v2533_v23 = vadd.f32 %v2501_v20, %v11289_v4  ;;  %v11411_v49 = vadd.f32 %v2332_v53, %v11294_v22  ;;  %v11413_v2 = vadd.f32 %v4655_v63, %v4493_v25  ;;  %14559 = vst [vmem:[#allocation314_spill] sm:$0xff] %v11416_v13  ;;  %v11419_v61 = vadd.f32 %v2504_v14, %v11296_v5  ;;  %v11428_v4 = vpop.permute.xlu2 %5030  ;;  %v14560_v5 = vld [vmem:[#allocation312_spill] sm:$0xff]  ;;  %v6664_v53 = vld [vmem:[%s6773_s17 + $0x3a] sm:$0xff]  ;;  %v14565_v14 = vld [vmem:[#allocation319_spill] sm:$0xff] }
 0x849   : > { %5224 = vperm.xlu2 %6437, %v6663_v45   ;;  %v11422_v21 = vadd.f32 %v2335_v16, %v11298_v62  ;;  %v11424_v32 = vadd.f32 %v2506_v54, %v2344_v33  ;;  %v11426_v46 = vadd.f32 %v2338_v28, %v2110_v29  ;;  %v11430_v22 = vadd.f32 %v2509_v37, %v2347_v10  ;;  %v14561_v62 = vld [vmem:[#allocation313_spill] sm:$0xff]  ;;  %v14563_v20 = vld [vmem:[#allocation316_spill] sm:$0xff]  ;;  %v14567_v54 = vld [vmem:[#allocation446_spill] sm:$0xff] }
 0x84a   : > { %v11432_v39 = vadd.f32 %v2503_v1, %v2341_v47  ;;  %v11434_v19 = vadd.f32 %v2512_v3, %v2350_v11  ;;  %v4302_v35 = vadd.f32 %v10817_v6, %v10678_v56  ;;  %v2505_v26 = vmul.f32 %v11380_v50, %v14560_v5  ;;  %v14564_v47 = vld [vmem:[#allocation318_spill] sm:$0xff]  ;;  %v14566_v6 = vld [vmem:[#allocation321_spill] sm:$0xff]  ;;  %v14569_v1 = vld [vmem:[#allocation324_spill] sm:$0xff] }
 0x84b   : > { %v2515_v33 = vmul.f32 %v11380_v50, %v14561_v62  ;;  %v2508_v29 = vmul.f32 %v11380_v50, %v14562_v24  ;;  %v2518_v10 = vmul.f32 %v11380_v50, %v14563_v20  ;;  %v2511_v11 = vmul.f32 %v11380_v50, %v14564_v47  ;;  %v14568_v37 = vld [vmem:[#allocation322_spill] sm:$0xff]  ;;  %v14570_v3 = vld [vmem:[#allocation325_spill] sm:$0xff]  ;;  %v14571_v63 = vld [vmem:[#allocation327_spill] sm:$0xff]  ;;  %v4594_v45 = vpop.permute.xlu0 %4593 }
 0x84c   : > { %5807 = vperm.xlu0 %6444, %v6664_v53   ;;  %v2521_v56 = vmul.f32 %v11380_v50, %v14565_v14  ;;  %v2514_v16 = vmul.f32 %v11380_v50, %v14566_v6  ;;  %v4464_v28 = vmul.f32 %v10911_v51, %v14567_v54  ;;  %v2524_v60 = vmul.f32 %v11380_v50, %v14568_v37  ;;  %v14572_v5 = vld [vmem:[#allocation328_spill] sm:$0xff]  ;;  %v14573_v24 = vld [vmem:[#allocation330_spill] sm:$0xff]  ;;  %v11474_v37 = vld [vmem:[%s13246_s1 + $0xe] ss:$0 sm:$0xff] }
 0x84d   : > { %v2517_v7 = vmul.f32 %v11380_v50, %v14569_v1  ;;  %v2527_v25 = vmul.f32 %v11380_v50, %v14570_v3  ;;  %v2520_v41 = vmul.f32 %v11380_v50, %v14571_v63  ;;  %v2530_v62 = vmul.f32 %v11380_v50, %v14572_v5  ;;  %v14574_v1 = vld [vmem:[#allocation331_spill] sm:$0xff]  ;;  %v6666_v63 = vld [vmem:[%s6773_s17 + $0x111] sm:$0xff] }
 0x84e   : > { %v2523_v20 = vmul.f32 %v11380_v50, %v14573_v24  ;;  %v4496_v53 = vadd.f32 %v4464_v28, %v4302_v35  ;;  %v4658_v47 = vmul.f32 %v10971_v27, %v4594_v45  ;;  %v2537_v14 = vadd.f32 %v2505_v26, %v11339_v42  ;;  %v11487_v26 = vpop.permute.xlu1 %5002  ;;  %v14607_v13 = vld [vmem:[#allocation372_spill] sm:$0xff] }
 0x84f   : > { %v2547_v6 = vadd.f32 %v2515_v33, %v11342_v36  ;;  %v2540_v54 = vadd.f32 %v2508_v29, %v11350_v18  ;;  %v2695_v3 = vmul.f32 %v11474_v37, %v14574_v1  ;;  %5232 = vperm.xlu1 %6438, %v6666_v63   ;;  %v2550_v35 = vadd.f32 %v2518_v10, %v11352_v8  ;;  %v6667_v18 = vld [vmem:[%s6773_s17 + $0x121] sm:$0xff] }
 0x850   : > { %v2543_v28 = vadd.f32 %v2511_v11, %v11354_v44  ;;  %v11482_v42 = vadd.f32 %v2521_v56, %v11356_v52  ;;  %v11484_v36 = vadd.f32 %v4658_v47, %v4496_v53  ;;  %14575 = vst [vmem:[#allocation580_spill] sm:$0xff] %v11487_v26  ;;  %v11490_v33 = vadd.f32 %v2514_v16, %v11360_v31  ;;  %v11499_v44 = vpop.permute.xlu2 %5042  ;;  %v14576_v16 = vld [vmem:[#allocation333_spill] sm:$0xff] }
 0x851   : > { %5236 = vperm.xlu2 %6437, %v6667_v18   ;;  %v11493_v29 = vadd.f32 %v2524_v60, %v11362_v17  ;;  %v11495_v45 = vadd.f32 %v2517_v7, %v2355_v15  ;;  %v11497_v8 = vadd.f32 %v2527_v25, %v2365_v58  ;;  %v11501_v52 = vadd.f32 %v2520_v41, %v2358_v59  ;;  %v14577_v15 = vld [vmem:[#allocation334_spill] sm:$0xff]  ;;  %v14578_v60 = vld [vmem:[#allocation336_spill] sm:$0xff]  ;;  %v14580_v25 = vld [vmem:[#allocation339_spill] sm:$0xff] }
 0x852   : > { %v11503_v10 = vadd.f32 %v2530_v62, %v2368_v34  ;;  %v11505_v11 = vadd.f32 %v2523_v20, %v2361_v30  ;;  %v4305_v56 = vadd.f32 %v10832_v48, %v10750_v40  ;;  %v11509_v31 = vadd.f32 %v2695_v3, %v2533_v23  ;;  %v6668_v59 = vld [vmem:[%s6773_s17 + $0x7a] sm:$0xff]  ;;  %v14581_v40 = vld [vmem:[#allocation340_spill] sm:$0xff]  ;;  %v14584_v20 = vld [vmem:[#allocation343_spill] sm:$0xff] }
 0x853   : > { %v2526_v17 = vmul.f32 %v11380_v50, %v14576_v16  ;;  %v2698_v58 = vmul.f32 %v11474_v37, %v14577_v15  ;;  %v2529_v7 = vmul.f32 %v11380_v50, %v14578_v60  ;;  %v14579_v34 = vld [vmem:[#allocation337_spill] sm:$0xff]  ;;  %v2532_v41 = vmul.f32 %v11380_v50, %v14580_v25  ;;  %v14583_v62 = vld [vmem:[#allocation342_spill] sm:$0xff]  ;;  %v4606_v50 = vpop.permute.xlu0 %4605  ;;  %v14587_v18 = vld [vmem:[#allocation348_spill] sm:$0xff] }
 0x854   : > { %5827 = vperm.xlu0 %6444, %v6668_v59   ;;  %v2700_v30 = vmul.f32 %v11474_v37, %v14579_v34  ;;  %v2703_v48 = vmul.f32 %v11474_v37, %v14581_v40  ;;  %v14582_v23 = vld [vmem:[#allocation449_spill] sm:$0xff]  ;;  %v2697_v24 = vmul.f32 %v11474_v37, %v14583_v62  ;;  %v2706_v53 = vmul.f32 %v11474_v37, %v14584_v20  ;;  %v14586_v3 = vld [vmem:[#allocation346_spill] sm:$0xff]  ;;  %v14589_v62 = vld [vmem:[#allocation351_spill] sm:$0xff] }
 0x855   : > { %v4467_v5 = vmul.f32 %v10911_v51, %v14582_v23  ;;  %v14585_v47 = vld [vmem:[#allocation345_spill] sm:$0xff]  ;;  %v2709_v63 = vmul.f32 %v11474_v37, %v14586_v3  ;;  %v2702_v16 = vmul.f32 %v11474_v37, %v14587_v18  ;;  %v4661_v34 = vmul.f32 %v10971_v27, %v4606_v50 }
 0x856   : > { %v2699_v1 = vmul.f32 %v11474_v37, %v14585_v47  ;;  %v14588_v15 = vld [vmem:[#allocation349_spill] sm:$0xff]  ;;  %v2558_v25 = vadd.f32 %v2526_v17, %v11411_v49  ;;  %v2730_v40 = vadd.f32 %v2698_v58, %v11419_v61  ;;  %v2561_v23 = vadd.f32 %v2529_v7, %v11422_v21  ;;  %v11553_v49 = vpop.permute.xlu1 %5014  ;;  %v14591_v7 = vld [vmem:[#allocation352_spill] sm:$0xff] }
 0x857   : > { %v2712_v60 = vmul.f32 %v11474_v37, %v14588_v15  ;;  %v4499_v59 = vadd.f32 %v4467_v5, %v4305_v56  ;;  %v2705_v20 = vmul.f32 %v11474_v37, %v14589_v62  ;;  %v6669_v47 = vld [vmem:[%s6773_s17 + $0x139] sm:$0xff]  ;;  %v2732_v3 = vadd.f32 %v2700_v30, %v11424_v32  ;;  %v6670_v5 = vld [vmem:[%s6773_s17 + $0x141] sm:$0xff]  ;;  %14590 = vst [vmem:[#allocation134_spill] sm:$0xff] %v11553_v49 }
 0x858   : > { %5244 = vperm.xlu1 %6438, %v6669_v47   ;;  %v2564_v18 = vadd.f32 %v2532_v41, %v11426_v46  ;;  %v11548_v15 = vadd.f32 %v2703_v48, %v11430_v22  ;;  %v11556_v61 = vadd.f32 %v2697_v24, %v11432_v39  ;;  %v11559_v21 = vadd.f32 %v2706_v53, %v11434_v19  ;;  %v11565_v46 = vpop.permute.xlu2 %5054  ;;  %v14592_v41 = vld [vmem:[#allocation109_spill] sm:$0xff]  ;;  %v14593_v48 = vld [vmem:[#allocation112_spill] sm:$0xff]  ;;  %v14594_v19 = vld [vmem:[#allocation354_spill] sm:$0xff] }
 0x859   : > { %v11550_v56 = vadd.f32 %v4661_v34, %v4499_v59  ;;  %5248 = vperm.xlu2 %6437, %v6670_v5   ;;  %v11561_v17 = vadd.f32 %v2699_v1, %v2537_v14  ;;  %v11563_v32 = vadd.f32 %v2709_v63, %v2547_v6  ;;  %v11567_v22 = vadd.f32 %v2702_v16, %v2540_v54  ;;  %v14595_v53 = vld [vmem:[#allocation355_spill] sm:$0xff]  ;;  %v14596_v1 = vld [vmem:[#allocation357_spill] sm:$0xff]  ;;  %v14598_v16 = vld [vmem:[#allocation360_spill] sm:$0xff] }
 0x85a   : > { %v11569_v58 = vadd.f32 %v2712_v60, %v2550_v35  ;;  %v2715_v30 = vmul.f32 %v11474_v37, %v14591_v7  ;;  %v4308_v39 = vadd.f32 %v14593_v48, %v14592_v41  ;;  %v11575_v24 = vadd.f32 %v2705_v20, %v2543_v28  ;;  %v6671_v63 = vld [vmem:[%s6773_s17 + $0x9a] sm:$0xff]  ;;  %v14600_v34 = vld [vmem:[#allocation452_spill] sm:$0xff]  ;;  %v14601_v20 = vld [vmem:[#allocation363_spill] sm:$0xff] }
 0x85b   : > { %v2708_v14 = vmul.f32 %v11474_v37, %v14594_v19  ;;  %v2718_v6 = vmul.f32 %v11474_v37, %v14595_v53  ;;  %v2711_v54 = vmul.f32 %v11474_v37, %v14596_v1  ;;  %v14597_v35 = vld [vmem:[#allocation358_spill] sm:$0xff]  ;;  %v2714_v60 = vmul.f32 %v11474_v37, %v14598_v16  ;;  %v14599_v59 = vld [vmem:[#allocation361_spill] sm:$0xff]  ;;  %v11597_v5 = vld [vmem:[%s13246_s1 + $0x10] ss:$0 sm:$0xff] }
 0x85c   : > { %5839 = vperm.xlu0 %6444, %v6671_v63   ;;  %v2721_v50 = vmul.f32 %v11474_v37, %v14597_v35  ;;  %v2724_v28 = vmul.f32 %v11474_v37, %v14599_v59  ;;  %v4470_v62 = vmul.f32 %v10911_v51, %v14600_v34  ;;  %v2717_v47 = vmul.f32 %v11474_v37, %v14601_v20  ;;  %v14602_v7 = vld [vmem:[#allocation364_spill] sm:$0xff]  ;;  %v14603_v48 = vld [vmem:[#allocation366_spill] sm:$0xff]  ;;  %v14604_v53 = vld [vmem:[#allocation367_spill] sm:$0xff]  ;;  %v4618_v63 = vpop.permute.xlu0 %4617 }
 0x85d   : > { %v2954_v41 = vmul.f32 %v11597_v5, %v14602_v7  ;;  %v2720_v19 = vmul.f32 %v11474_v37, %v14603_v48  ;;  %v2957_v1 = vmul.f32 %v11597_v5, %v14604_v53  ;;  %v14605_v35 = vld [vmem:[#allocation369_spill] sm:$0xff]  ;;  %v14606_v59 = vld [vmem:[#allocation370_spill] sm:$0xff]  ;;  %v4664_v49 = vmul.f32 %v10971_v27, %v4618_v63 }
 0x85e   : > { %v2723_v16 = vmul.f32 %v11474_v37, %v14605_v35  ;;  %v2959_v34 = vmul.f32 %v11597_v5, %v14606_v59  ;;  %v4502_v20 = vadd.f32 %v4470_v62, %v4308_v39  ;;  %v2747_v26 = vadd.f32 %v2715_v30, %v11482_v42  ;;  %v6674_v62 = vld [vmem:[%s6773_s17 + $0x169] sm:$0xff]  ;;  %v11624_v42 = vpop.permute.xlu1 %5026 }
 0x85f   : > { %v2740_v7 = vadd.f32 %v2708_v14, %v11490_v33  ;;  %v2750_v48 = vadd.f32 %v2718_v6, %v11493_v29  ;;  %v2726_v53 = vmul.f32 %v11474_v37, %v14607_v13  ;;  %v2743_v9 = vadd.f32 %v2711_v54, %v11495_v45  ;;  %14608 = vst [vmem:[#allocation138_spill] sm:$0xff] %v11624_v42  ;;  %v14611_v14 = vld [vmem:[#allocation376_spill] sm:$0xff]  ;;  %v14613_v54 = vld [vmem:[#allocation379_spill] sm:$0xff] }
 0x860   : > { %5256 = vperm.xlu1 %6438, %v6673_v12   ;;  %v2753_v35 = vadd.f32 %v2721_v50, %v11497_v8  ;;  %v11619_v59 = vadd.f32 %v2714_v60, %v11501_v52  ;;  %v11621_v39 = vadd.f32 %v4664_v49, %v4502_v20  ;;  %v11627_v33 = vadd.f32 %v2724_v28, %v11503_v10  ;;  %v11637_v29 = vpop.permute.xlu2 %5066  ;;  %v14616_v28 = vld [vmem:[#allocation382_spill] sm:$0xff]  ;;  %v11844_v42 = vld [vmem:[%s6773_s17 + $0x52] sm:$0xff] }
 0x861   : > { %5260 = vperm.xlu2 %6437, %v6674_v62   ;;  %v11630_v13 = vadd.f32 %v2717_v47, %v11505_v11  ;;  %v11633_v12 = vadd.f32 %v2954_v41, %v11509_v31  ;;  %v11635_v37 = vadd.f32 %v2720_v19, %v2558_v25  ;;  %v11639_v45 = vadd.f32 %v2957_v1, %v2730_v40  ;;  %v14609_v11 = vld [vmem:[#allocation373_spill] sm:$0xff]  ;;  %v14610_v31 = vld [vmem:[#allocation375_spill] sm:$0xff]  ;;  %v14617_v41 = vld [vmem:[#allocation384_spill] sm:$0xff] }
 0x862   : > { %v11641_v8 = vadd.f32 %v2723_v16, %v2561_v23  ;;  %v11643_v52 = vadd.f32 %v2959_v34, %v2732_v3  ;;  %v4311_v10 = vadd.f32 %v10875_v57, %v10913_v43  ;;  %v11647_v49 = vadd.f32 %v2726_v53, %v2564_v18  ;;  %v6675_v40 = vld [vmem:[%s6773_s17 + $0xc2] sm:$0xff]  ;;  %v14614_v57 = vld [vmem:[#allocation381_spill] sm:$0xff]  ;;  %v14620_v53 = vld [vmem:[#allocation388_spill] sm:$0xff]  ;;  %14659 = vst [vmem:[#allocation141_spill] sm:$0xff] %v11844_v42 }
 0x863   : > { %v2962_v30 = vmul.f32 %v11597_v5, %v14609_v11  ;;  %v2956_v25 = vmul.f32 %v11597_v5, %v14610_v31  ;;  %v2965_v6 = vmul.f32 %v11597_v5, %v14611_v14  ;;  %v14612_v23 = vld [vmem:[#allocation378_spill] sm:$0xff]  ;;  %v2968_v50 = vmul.f32 %v11597_v5, %v14613_v54  ;;  %v14615_v18 = vld [vmem:[#allocation455_spill] sm:$0xff]  ;;  %v14618_v1 = vld [vmem:[#allocation385_spill] sm:$0xff] }
 0x864   : > { %5851 = vperm.xlu0 %6444, %v6675_v40   ;;  %v2958_v3 = vmul.f32 %v11597_v5, %v14612_v23  ;;  %v2961_v43 = vmul.f32 %v11597_v5, %v14614_v57  ;;  %v4473_v60 = vmul.f32 %v10911_v51, %v14615_v18  ;;  %v2971_v47 = vmul.f32 %v11597_v5, %v14616_v28  ;;  %v14619_v16 = vld [vmem:[#allocation387_spill] sm:$0xff]  ;;  %v4630_v20 = vpop.permute.xlu0 %4629  ;;  %v14621_v11 = vld [vmem:[#allocation390_spill] sm:$0xff] }
 0x865   : > { %v2964_v19 = vmul.f32 %v11597_v5, %v14617_v41  ;;  %v2974_v63 = vmul.f32 %v11597_v5, %v14618_v1  ;;  %v2967_v34 = vmul.f32 %v11597_v5, %v14619_v16  ;;  %v2977_v62 = vmul.f32 %v11597_v5, %v14620_v53  ;;  %v14622_v57 = vld [vmem:[#allocation391_spill] sm:$0xff]  ;;  %v14623_v16 = vld [vmem:[#allocation393_spill] sm:$0xff]  ;;  %v14630_v53 = vld [vmem:[#allocation400_spill] sm:$0xff] }
 0x866   : > { %v2970_v51 = vmul.f32 %v11597_v5, %v14621_v11  ;;  %v4505_v31 = vadd.f32 %v4473_v60, %v4311_v10  ;;  %v4667_v14 = vmul.f32 %v10971_v27, %v4630_v20  ;;  %v2994_v40 = vadd.f32 %v2962_v30, %v11548_v15  ;;  %v6676_v28 = vld [vmem:[%s6773_s17 + $0x181] sm:$0xff]  ;;  %v11692_v27 = vld [vmem:[%s13246_s1 + $0x1d] ss:$0 sm:$0xff] }
 0x867   : > { %v2988_v23 = vadd.f32 %v2956_v25, %v11556_v61  ;;  %v2997_v54 = vadd.f32 %v2965_v6, %v11559_v21  ;;  %v2980_v18 = vmul.f32 %v11597_v5, %v14622_v57  ;;  %v2990_v41 = vadd.f32 %v2958_v3, %v11561_v17  ;;  %v6677_v61 = vld [vmem:[%s6773_s17 + $0x189] sm:$0xff]  ;;  %v11697_v21 = vpop.permute.xlu1 %5038  ;;  %v14631_v11 = vld [vmem:[#allocation458_spill] sm:$0xff] }
 0x868   : > { %5268 = vperm.xlu1 %6438, %v6676_v28   ;;  %v11685_v1 = vadd.f32 %v2968_v50, %v11563_v32  ;;  %v2973_v10 = vmul.f32 %v11597_v5, %v14623_v16  ;;  %v11694_v15 = vadd.f32 %v4667_v14, %v4505_v31  ;;  %v11700_v17 = vadd.f32 %v2961_v43, %v11567_v22  ;;  %v11710_v6 = vpop.permute.xlu2 %5078  ;;  %v14625_v20 = vld [vmem:[#allocation107_spill] sm:$0xff]  ;;  %v14632_v31 = vld [vmem:[#allocation402_spill] sm:$0xff]  ;;  %v14634_v28 = vld [vmem:[#allocation405_spill] sm:$0xff] }
 0x869   : > { %5272 = vperm.xlu2 %6437, %v6677_v61   ;;  %v11703_v32 = vadd.f32 %v2971_v47, %v11569_v58  ;;  %v11706_v30 = vadd.f32 %v2964_v19, %v11575_v24  ;;  %v11708_v25 = vadd.f32 %v2974_v63, %v2747_v26  ;;  %v11712_v3 = vadd.f32 %v2967_v34, %v2740_v7  ;;  %v11723_v58 = vld [vmem:[%s13246_s1 + $0x1e] ss:$0 sm:$0xff]  ;;  %v14626_v26 = vld [vmem:[#allocation394_spill] sm:$0xff]  ;;  %v14627_v47 = vld [vmem:[#allocation396_spill] sm:$0xff] }
 0x86a   : > { %v11714_v50 = vadd.f32 %v2977_v62, %v2750_v48  ;;  %v11716_v60 = vadd.f32 %v2970_v51, %v2743_v9  ;;  %v4929_v22 = vadd.f32 %v14625_v20, %v11013_v38  ;;  %v11725_v24 = vadd.f32 %v2980_v18, %v2753_v35  ;;  %v11734_v9 = vld [vmem:[%s13246_s1 + $0x11] ss:$0 sm:$0xff]  ;;  %v14628_v48 = vld [vmem:[#allocation397_spill] sm:$0xff]  ;;  %v6679_v19 = vld [vmem:[%s6773_s17 + $0xe2] sm:$0xff] }
 0x86b   : > { %v2983_v43 = vmul.f32 %v11597_v5, %v14626_v26  ;;  %v2976_v7 = vmul.f32 %v11597_v5, %v14627_v47  ;;  %v3148_v38 = vmul.f32 %v11734_v9, %v14628_v48  ;;  %v11740_v35 = vadd.f32 %v2973_v10, %v11619_v59  ;;  %v14629_v63 = vld [vmem:[#allocation399_spill] sm:$0xff]  ;;  %v14635_v16 = vld [vmem:[#allocation406_spill] sm:$0xff]  ;;  %v14636_v20 = vld [vmem:[#allocation408_spill] sm:$0xff] }
 0x86c   : > { %14624 = vst [vmem:[#allocation266_spill] sm:$0xff] %v11716_v60  ;;  %5863 = vperm.xlu0 %6444, %v6679_v19   ;;  %v2979_v34 = vmul.f32 %v11597_v5, %v14629_v63  ;;  %v3151_v62 = vmul.f32 %v11734_v9, %v14630_v53  ;;  %v5091_v51 = vmul.f32 %v11692_v27, %v14631_v11  ;;  %v14633_v57 = vld [vmem:[#allocation403_spill] sm:$0xff]  ;;  %v5161_v61 = vpop.permute.xlu0 %5160  ;;  %v14637_v47 = vld [vmem:[#allocation409_spill] sm:$0xff] }
 0x86d   : > { %v2982_v14 = vmul.f32 %v11597_v5, %v14632_v31  ;;  %v3153_v18 = vmul.f32 %v11734_v9, %v14633_v57  ;;  %v2985_v59 = vmul.f32 %v11597_v5, %v14634_v28  ;;  %v3156_v10 = vmul.f32 %v11734_v9, %v14635_v16  ;;  %v11762_v53 = vld [vmem:[%s6773_s17 + $0x32] sm:$0xff]  ;;  %v14639_v57 = vld [vmem:[#allocation411_spill] sm:$0xff] }
 0x86e   : > { %v3150_v26 = vmul.f32 %v11734_v9, %v14636_v20  ;;  %v3159_v48 = vmul.f32 %v11734_v9, %v14637_v47  ;;  %v5123_v19 = vadd.f32 %v5091_v51, %v4929_v22  ;;  %v5285_v63 = vmul.f32 %v11723_v58, %v5161_v61  ;;  %14638 = vst [vmem:[#allocation623_spill] sm:$0xff] %v11762_v53  ;;  %v6680_v16 = vld [vmem:[%s6773_s17 + $0x1a1] sm:$0xff]  ;;  %v14640_v22 = vld [vmem:[#allocation412_spill] sm:$0xff] }
 0x86f   : > { %v3015_v11 = vadd.f32 %v2983_v43, %v11627_v33  ;;  %v3008_v31 = vadd.f32 %v2976_v7, %v11630_v13  ;;  %v3180_v5 = vadd.f32 %v3148_v38, %v11633_v12  ;;  %v3152_v28 = vmul.f32 %v11734_v9, %v14639_v57  ;;  %v11779_v13 = vpop.permute.xlu1 %5050 }
 0x870   : > { %5280 = vperm.xlu1 %6438, %v6680_v16   ;;  %v3011_v20 = vadd.f32 %v2979_v34, %v11635_v37  ;;  %v11772_v47 = vadd.f32 %v3151_v62, %v11639_v45  ;;  %v3162_v51 = vmul.f32 %v11734_v9, %v14640_v22  ;;  %v11776_v61 = vadd.f32 %v5285_v63, %v5123_v19  ;;  %v14643_v45 = vld [vmem:[#allocation414_spill] sm:$0xff]  ;;  %v14644_v19 = vld [vmem:[#allocation311_spill] sm:$0xff]  ;;  %v11801_v63 = vpop.permute.xlu2 %5156  ;;  %v14652_v16 = vld [vmem:[#allocation461_spill] sm:$0xff] }
 0x871   : > { %v14641_v33 = vmov 0   ;;  %14642 = vst [vmem:[#allocation341_spill] sm:$0xff] %v11779_v13  ;;  %v11782_v12 = vadd.f32 %v2982_v14, %v11641_v8  ;;  %v11785_v43 = vadd.f32 %v3153_v18, %v11643_v52  ;;  %v11788_v37 = vadd.f32 %v2985_v59, %v11647_v49  ;;  %v14645_v8 = vld [vmem:[#allocation115_spill] sm:$0xff]  ;;  %v14648_v59 = vld [vmem:[#allocation417_spill] sm:$0xff] }
 0x872   : > { %6439 = vset.pattern.permute.xlu2 %v14641_v33  ;;  %v3155_v7 = vmul.f32 %v11734_v9, %v14643_v45  ;;  %v11793_v38 = vadd.f32 %v3156_v10, %v2994_v40  ;;  %v11795_v34 = vadd.f32 %v3150_v26, %v2988_v23  ;;  %v11797_v62 = vadd.f32 %v3159_v48, %v2997_v54  ;;  %v14647_v49 = vld [vmem:[#allocation415_spill] sm:$0xff]  ;;  %v14649_v40 = vld [vmem:[#allocation418_spill] sm:$0xff]  ;;  %v14650_v26 = vld [vmem:[#allocation420_spill] sm:$0xff] }
 0x873   : > { %5384 = vperm.xlu2 %6439, %v11762_v53   ;;  %v4934_v14 = vadd.f32 %v14645_v8, %v14644_v19  ;;  %14646 = vst [vmem:[#allocation605_spill] sm:$0xff] %v11801_v63  ;;  %v11803_v52 = vadd.f32 %v3152_v28, %v2990_v41  ;;  %v3165_v18 = vmul.f32 %v11734_v9, %v14647_v49  ;;  %v6681_v10 = vld [vmem:[%s6773_s17 + $0x10a] sm:$0xff]  ;;  %v14651_v41 = vld [vmem:[#allocation421_spill] sm:$0xff]  ;;  %v14654_v49 = vld [vmem:[#allocation426_spill] sm:$0xff] }
 0x874   : > { %v3158_v57 = vmul.f32 %v11734_v9, %v14648_v59  ;;  %v3168_v23 = vmul.f32 %v11734_v9, %v14649_v40  ;;  %5875 = vperm.xlu0 %6444, %v6681_v10   ;;  %v11813_v54 = vadd.f32 %v3162_v51, %v11685_v1  ;;  %v3161_v48 = vmul.f32 %v11734_v9, %v14650_v26  ;;  %v14653_v19 = vld [vmem:[#allocation424_spill] sm:$0xff]  ;;  %v14655_v1 = vld [vmem:[#allocation427_spill] sm:$0xff]  ;;  %v5181_v40 = vpop.permute.xlu0 %5180  ;;  %v14657_v26 = vld [vmem:[#allocation429_spill] sm:$0xff] }
 0x875   : > { %v3171_v28 = vmul.f32 %v11734_v9, %v14651_v41  ;;  %v5096_v22 = vmul.f32 %v11692_v27, %v14652_v16  ;;  %v11822_v45 = vadd.f32 %v3155_v7, %v11700_v17  ;;  %v3174_v8 = vmul.f32 %v11734_v9, %v14653_v19  ;;  %v11831_v10 = vld [vmem:[%s6773_s17 + $0x4a] sm:$0xff]  ;;  %v11838_v17 = vld [vmem:[%s13246_s1 + $0x12] ss:$0 sm:$0xff]  ;;  %v14658_v7 = vld [vmem:[#allocation430_spill] sm:$0xff] }
 0x876   : > { %v3167_v59 = vmul.f32 %v11734_v9, %v14654_v49  ;;  %v3177_v51 = vmul.f32 %v11734_v9, %v14655_v1  ;;  %14656 = vst [vmem:[#allocation139_spill] sm:$0xff] %v11831_v10  ;;  %v3170_v41 = vmul.f32 %v11734_v9, %v14657_v26  ;;  %v3342_v16 = vmul.f32 %v11838_v17, %v14658_v7  ;;  %v14660_v26 = vld [vmem:[#allocation432_spill] sm:$0xff] }
 0x877   : > { %v5128_v19 = vadd.f32 %v5096_v22, %v4934_v14  ;;  %v5290_v49 = vmul.f32 %v11723_v58, %v5181_v40  ;;  %v3197_v1 = vadd.f32 %v3165_v18, %v11703_v32  ;;  %v3190_v60 = vadd.f32 %v3158_v57, %v11706_v30  ;;  %v14662_v22 = vld [vmem:[#allocation433_spill] sm:$0xff]  ;;  %v11863_v32 = vpop.permute.xlu1 %5062  ;;  %v14664_v30 = vld [vmem:[#allocation423_spill] sm:$0xff] }
 0x878   : > { %v3200_v53 = vadd.f32 %v3168_v23, %v11708_v25  ;;  %v3173_v63 = vmul.f32 %v11734_v9, %v14660_v26  ;;  %6440 = vset.pattern.permute.xlu1 %v14641_v33  ;;  %v11853_v13 = vadd.f32 %v3161_v48, %v11712_v3  ;;  %v11856_v14 = vadd.f32 %v3171_v28, %v11714_v50  ;;  %v14666_v50 = vld [vmem:[#allocation435_spill] sm:$0xff]  ;;  %v11882_v26 = vpop.permute.xlu2 %5168 }
 0x879   : > { %v3345_v40 = vmul.f32 %v11838_v17, %v14662_v22  ;;  %v11860_v7 = vadd.f32 %v5290_v49, %v5128_v19  ;;  %5394 = vperm.xlu1 %6440, %v11831_v10   ;;  %14663 = vst [vmem:[#allocation18_spill] sm:$0xff] %v11863_v32  ;;  %v11867_v25 = vmul.f32 %v11734_v9, %v14664_v30  ;;  %v14667_v28 = vld [vmem:[#allocation527_spill] sm:$0xff]  ;;  %v14668_v19 = vld [vmem:[#allocation110_spill] sm:$0xff]  ;;  %v14675_v30 = vld [vmem:[#allocation464_spill] sm:$0xff] }
 0x87a   : > { %14661 = vst [vmem:[#allocation530_spill] sm:$0xff] %v11853_v13  ;;  %v3206_v3 = vadd.f32 %v3174_v8, %v11725_v24  ;;  %v3199_v33 = vadd.f32 %v3167_v59, %v11740_v35  ;;  %v3176_v18 = vmul.f32 %v11734_v9, %v14666_v50  ;;  %v11874_v57 = vadd.f32 %v3177_v51, %v3015_v11  ;;  %v14670_v35 = vld [vmem:[#allocation436_spill] sm:$0xff]  ;;  %v14671_v59 = vld [vmem:[#allocation438_spill] sm:$0xff]  ;;  %v14672_v11 = vld [vmem:[#allocation439_spill] sm:$0xff] }
 0x87b   : > { %14665 = vst [vmem:[#allocation137_spill] sm:$0xff] %v11867_v25  ;;  %5399 = vperm.xlu2 %6439, %v11844_v42   ;;  %v11876_v23 = vadd.f32 %v3170_v41, %v3008_v31  ;;  %v11878_v48 = vadd.f32 %v3342_v16, %v3180_v5  ;;  %v4937_v49 = vadd.f32 %v14668_v19, %v14667_v28  ;;  %v6683_v51 = vld [vmem:[%s6773_s17 + $0x12a] sm:$0xff]  ;;  %v14673_v41 = vld [vmem:[#allocation441_spill] sm:$0xff]  ;;  %v14681_v13 = vld [vmem:[#allocation450_spill] sm:$0xff] }
 0x87c   : > { %14669 = vst [vmem:[#allocation142_spill] sm:$0xff] %v11882_v26  ;;  %v11884_v24 = vadd.f32 %v3173_v63, %v3011_v20  ;;  %v3347_v8 = vmul.f32 %v11838_v17, %v14670_v35  ;;  %v3179_v22 = vmul.f32 %v11734_v9, %v14671_v59  ;;  %v3350_v31 = vmul.f32 %v11838_v17, %v14672_v11  ;;  %v14674_v20 = vld [vmem:[#allocation442_spill] sm:$0xff]  ;;  %v14676_v28 = vld [vmem:[#allocation444_spill] sm:$0xff]  ;;  %v14677_v35 = vld [vmem:[#allocation445_spill] sm:$0xff]  ;;  %v5193_v11 = vpop.permute.xlu0 %5192 }
 0x87d   : > { %5887 = vperm.xlu0 %6444, %v6683_v51   ;;  %v11894_v5 = vadd.f32 %v3345_v40, %v11772_v47  ;;  %v3344_v16 = vmul.f32 %v11838_v17, %v14673_v41  ;;  %v3353_v63 = vmul.f32 %v11838_v17, %v14674_v20  ;;  %v5099_v50 = vmul.f32 %v11692_v27, %v14675_v30  ;;  %v14678_v47 = vld [vmem:[#allocation447_spill] sm:$0xff]  ;;  %v14680_v41 = vld [vmem:[#allocation448_spill] sm:$0xff] }
 0x87e   : > { %v11903_v9 = vadd.f32 %v3176_v18, %v11782_v12  ;;  %v3346_v19 = vmul.f32 %v11838_v17, %v14676_v28  ;;  %v3356_v59 = vmul.f32 %v11838_v17, %v14677_v35  ;;  %v3349_v40 = vmul.f32 %v11838_v17, %v14678_v47  ;;  %v11912_v51 = vld [vmem:[%s6773_s17 + $0x62] sm:$0xff]  ;;  %v11920_v25 = vld [vmem:[%s6773_s17 + $0x6a] sm:$0xff] }
 0x87f   : > { %14679 = vst [vmem:[#allocation2_spill] sm:$0xff] %v11912_v51  ;;  %v3359_v20 = vmul.f32 %v11838_v17, %v14680_v41  ;;  %v3352_v30 = vmul.f32 %v11838_v17, %v14681_v13  ;;  %v5131_v12 = vadd.f32 %v5099_v50, %v4937_v49  ;;  %v5293_v18 = vmul.f32 %v11723_v58, %v5193_v11  ;;  %v14683_v42 = vld [vmem:[#allocation451_spill] sm:$0xff]  ;;  %v14684_v13 = vld [vmem:[#allocation454_spill] sm:$0xff]  ;;  %v14755_v32 = vld [vmem:[#allocation576_spill] sm:$0xff] }
 0x880   : > { %14682 = vst [vmem:[#allocation292_spill] sm:$0xff] %v11920_v25  ;;  %v3379_v28 = vadd.f32 %v3347_v8, %v11785_v43  ;;  %v3211_v35 = vadd.f32 %v3179_v22, %v11788_v37  ;;  %v3382_v47 = vadd.f32 %v3350_v31, %v11793_v38  ;;  %v3362_v10 = vmul.f32 %v11838_v17, %v14683_v42  ;;  %v11938_v43 = vpop.permute.xlu1 %5074  ;;  %v14687_v38 = vld [vmem:[#allocation457_spill] sm:$0xff]  ;;  %v14688_v8 = vld [vmem:[#allocation459_spill] sm:$0xff] }
 0x881   : > { %v11928_v26 = vadd.f32 %v3344_v16, %v11795_v34  ;;  %v11931_v41 = vadd.f32 %v3353_v63, %v11797_v62  ;;  %v3365_v49 = vmul.f32 %v11838_v17, %v14684_v13  ;;  %v11935_v50 = vadd.f32 %v5293_v18, %v5131_v12  ;;  %5404 = vperm.xlu1 %6440, %v11912_v51   ;;  %v14689_v63 = vld [vmem:[#allocation118_spill] sm:$0xff]  ;;  %v14697_v13 = vld [vmem:[#allocation467_spill] sm:$0xff] }
 0x882   : > { %14686 = vst [vmem:[#allocation556_spill] sm:$0xff] %v11938_v43  ;;  %v3378_v37 = vadd.f32 %v3346_v19, %v11803_v52  ;;  %v3388_v42 = vadd.f32 %v3356_v59, %v11813_v54  ;;  %v3368_v34 = vmul.f32 %v11838_v17, %v14687_v38  ;;  %v3361_v62 = vmul.f32 %v11838_v17, %v14688_v8  ;;  %v11956_v19 = vpop.permute.xlu2 %5176  ;;  %v14691_v59 = vld [vmem:[#allocation460_spill] sm:$0xff]  ;;  %v14692_v12 = vld [vmem:[#allocation462_spill] sm:$0xff] }
 0x883   : > { %14685 = vst [vmem:[#allocation31_spill] sm:$0xff] %v11935_v50  ;;  %5409 = vperm.xlu2 %6439, %v11920_v25   ;;  %v11948_v22 = vadd.f32 %v3349_v40, %v11822_v45  ;;  %v11950_v31 = vadd.f32 %v3359_v20, %v3197_v1  ;;  %v11952_v16 = vadd.f32 %v3352_v30, %v3190_v60  ;;  %v11967_v45 = vld [vmem:[%s13246_s1 + $0x14] ss:$0 sm:$0xff]  ;;  %v14693_v60 = vld [vmem:[#allocation463_spill] sm:$0xff]  ;;  %v14696_v20 = vld [vmem:[#allocation465_spill] sm:$0xff] }
 0x884   : > { %v4940_v52 = vadd.f32 %v14689_v63, %v11274_v55  ;;  %14690 = vst [vmem:[#allocation140_spill] sm:$0xff] %v11956_v19  ;;  %v11958_v54 = vadd.f32 %v3362_v10, %v3200_v53  ;;  %v3371_v11 = vmul.f32 %v11838_v17, %v14691_v59  ;;  %v3364_v18 = vmul.f32 %v11838_v17, %v14692_v12  ;;  %v6685_v55 = vld [vmem:[%s6773_s17 + $0x152] sm:$0xff]  ;;  %v14698_v59 = vld [vmem:[#allocation466_spill] sm:$0xff] }
 0x885   : > { %v3601_v1 = vmul.f32 %v11967_v45, %v14693_v60  ;;  %5899 = vperm.xlu0 %6444, %v6685_v55   ;;  %v14694_v53 = vld [vmem:[#allocation453_spill] sm:$0xff]  ;;  %v11977_v40 = vadd.f32 %v3365_v49, %v11856_v14  ;;  %v3367_v30 = vmul.f32 %v11838_v17, %v14696_v20  ;;  %v5102_v38 = vmul.f32 %v11692_v27, %v14697_v13  ;;  %v14699_v60 = vld [vmem:[#allocation468_spill] sm:$0xff]  ;;  %v14702_v20 = vld [vmem:[#allocation471_spill] sm:$0xff] }
 0x886   : > { %v11974_v10 = vmul.f32 %v11838_v17, %v14694_v53  ;;  %v11983_v8 = vadd.f32 %v3368_v34, %v3206_v3  ;;  %v11985_v63 = vadd.f32 %v3361_v62, %v3199_v33  ;;  %v3604_v12 = vmul.f32 %v11967_v45, %v14698_v59  ;;  %v5205_v53 = vpop.permute.xlu0 %5204  ;;  %v14701_v14 = vld [vmem:[#allocation469_spill] sm:$0xff] }
 0x887   : > { %v3370_v55 = vmul.f32 %v11838_v17, %v14699_v60  ;;  %v3606_v49 = vmul.f32 %v11967_v45, %v14701_v14  ;;  %v3373_v25 = vmul.f32 %v11838_v17, %v14702_v20  ;;  %v5134_v13 = vadd.f32 %v5102_v38, %v4940_v52  ;;  %v12000_v33 = vld [vmem:[%s6773_s17 + $0x92] sm:$0xff]  ;;  %v14705_v17 = vld [vmem:[#allocation474_spill] sm:$0xff]  ;;  %v14706_v38 = vld [vmem:[#allocation475_spill] sm:$0xff] }
 0x888   : > { %14695 = vst [vmem:[#allocation317_spill] sm:$0xff] %v11974_v10  ;;  %v11992_v10 = vld [vmem:[%s6773_s17 + $0x82] sm:$0xff]  ;;  %v5296_v3 = vmul.f32 %v11723_v58, %v5205_v53  ;;  %v12003_v34 = vadd.f32 %v3371_v11, %v11874_v57  ;;  %v12006_v62 = vadd.f32 %v3364_v18, %v11876_v23  ;;  %v12009_v59 = vadd.f32 %v3601_v1, %v11878_v48  ;;  %v14704_v60 = vld [vmem:[#allocation472_spill] sm:$0xff]  ;;  %v12023_v23 = vpop.permute.xlu1 %5086 }
 0x889   : > { %14700 = vst [vmem:[#allocation46_spill] sm:$0xff] %v11992_v10  ;;  %v3609_v14 = vmul.f32 %v11967_v45, %v14704_v60  ;;  %v12014_v51 = vadd.f32 %v3367_v30, %v11884_v24  ;;  %v3603_v52 = vmul.f32 %v11967_v45, %v14705_v17  ;;  %v3612_v53 = vmul.f32 %v11967_v45, %v14706_v38  ;;  %v14709_v24 = vld [vmem:[#allocation477_spill] sm:$0xff]  ;;  %v14710_v1 = vld [vmem:[#allocation478_spill] sm:$0xff] }
 0x88a   : > { %14703 = vst [vmem:[#allocation583_spill] sm:$0xff] %v12000_v33  ;;  %v12020_v57 = vadd.f32 %v5296_v3, %v5134_v13  ;;  %5419 = vperm.xlu1 %6440, %v11992_v10   ;;  %v12026_v48 = vadd.f32 %v3604_v12, %v11894_v5  ;;  %v12029_v11 = vadd.f32 %v3370_v55, %v11903_v9  ;;  %v14711_v13 = vld [vmem:[#allocation470_spill] sm:$0xff]  ;;  %v14712_v5 = vld [vmem:[#allocation113_spill] sm:$0xff] }
 0x88b   : > { %14708 = vst [vmem:[#allocation144_spill] sm:$0xff] %v12023_v23  ;;  %v3605_v18 = vmul.f32 %v11967_v45, %v14709_v24  ;;  %v3615_v30 = vmul.f32 %v11967_v45, %v14710_v1  ;;  %5424 = vperm.xlu2 %6439, %v12000_v33   ;;  %v12036_v20 = vadd.f32 %v3606_v49, %v3379_v28  ;;  %v12044_v9 = vpop.permute.xlu2 %5188  ;;  %v14714_v17 = vld [vmem:[#allocation473_spill] sm:$0xff]  ;;  %v14715_v24 = vld [vmem:[#allocation480_spill] sm:$0xff]  ;;  %v14722_v33 = vld [vmem:[#allocation487_spill] sm:$0xff] }
 0x88c   : > { %14707 = vst [vmem:[#allocation627_spill] sm:$0xff] %v12020_v57  ;;  %v5105_v3 = vmul.f32 %v11692_v27, %v14711_v13  ;;  %v12040_v60 = vadd.f32 %v3373_v25, %v3211_v35  ;;  %v4943_v12 = vadd.f32 %v14712_v5, %v11344_v0  ;;  %v12046_v55 = vadd.f32 %v3609_v14, %v3382_v47  ;;  %v14716_v49 = vld [vmem:[#allocation481_spill] sm:$0xff]  ;;  %v14717_v35 = vld [vmem:[#allocation476_spill] sm:$0xff]  ;;  %v14718_v14 = vld [vmem:[#allocation483_spill] sm:$0xff] }
 0x88d   : > { %14713 = vst [vmem:[#allocation269_spill] sm:$0xff] %v12044_v9  ;;  %v5108_v38 = vmul.f32 %v11692_v27, %v14714_v17  ;;  %v3608_v28 = vmul.f32 %v11967_v45, %v14715_v24  ;;  %v3618_v1 = vmul.f32 %v11967_v45, %v14716_v49  ;;  %v6686_v13 = vld [vmem:[%s6773_s17 + $0x172] sm:$0xff]  ;;  %v12056_v25 = vadd.f32 %v3603_v52, %v11928_v26  ;;  %v14719_v49 = vld [vmem:[#allocation479_spill] sm:$0xff]  ;;  %v14726_v9 = vld [vmem:[#allocation482_spill] sm:$0xff] }
 0x88e   : > { %5911 = vperm.xlu0 %6444, %v6686_v13   ;;  %v12059_v0 = vadd.f32 %v3612_v53, %v11931_v41  ;;  %v12063_v47 = vmul.f32 %v11692_v27, %v14717_v35  ;;  %v3611_v5 = vmul.f32 %v11967_v45, %v14718_v14  ;;  %v12067_v17 = vadd.f32 %v3605_v18, %v3378_v37  ;;  %v14720_v26 = vld [vmem:[#allocation484_spill] sm:$0xff]  ;;  %v5217_v41 = vpop.permute.xlu0 %5216  ;;  %v12085_v37 = vld [vmem:[%s13246_s1 + $0x21] ss:$0 sm:$0xff] }
 0x88f   : > { %v12069_v24 = vadd.f32 %v3615_v30, %v3388_v42  ;;  %v12073_v13 = vmul.f32 %v11692_v27, %v14719_v49  ;;  %v3621_v52 = vmul.f32 %v11967_v45, %v14720_v26  ;;  %v12078_v53 = vld [vmem:[%s6773_s17 + $0xaa] sm:$0xff]  ;;  %v3624_v35 = vmul.f32 %v11967_v45, %v14722_v33  ;;  %14723 = vst [vmem:[#allocation628_spill] sm:$0xff] %v12085_v37  ;;  %v14724_v42 = vld [vmem:[#allocation490_spill] sm:$0xff]  ;;  %v12091_v49 = vld [vmem:[%s6773_s17 + $0xb2] sm:$0xff] }
 0x890   : > { %14721 = vst [vmem:[#allocation344_spill] sm:$0xff] %v12078_v53  ;;  %v3627_v18 = vmul.f32 %v11967_v45, %v14724_v42  ;;  %v5137_v30 = vadd.f32 %v5105_v3, %v4943_v12  ;;  %v5299_v14 = vmul.f32 %v11723_v58, %v5217_v41  ;;  %v12094_v26 = vadd.f32 %v3608_v28, %v11948_v22  ;;  %v14727_v23 = vld [vmem:[#allocation492_spill] sm:$0xff]  ;;  %v14729_v3 = vld [vmem:[#allocation493_spill] sm:$0xff]  ;;  %v14730_v41 = vld [vmem:[#allocation495_spill] sm:$0xff] }
 0x891   : > { %14725 = vst [vmem:[#allocation608_spill] sm:$0xff] %v12091_v49  ;;  %v3650_v10 = vadd.f32 %v3618_v1, %v11950_v31  ;;  %v12099_v33 = vmul.f32 %v11692_v27, %v14726_v9  ;;  %v3620_v19 = vmul.f32 %v11967_v45, %v14727_v23  ;;  %v12104_v43 = vadd.f32 %v3611_v5, %v11952_v16  ;;  %v14732_v9 = vld [vmem:[#allocation485_spill] sm:$0xff]  ;;  %v12123_v16 = vld [vmem:[%s13246_s1 + $0x15] ss:$0 sm:$0xff]  ;;  %v14734_v5 = vld [vmem:[#allocation498_spill] sm:$0xff] }
 0x892   : > { %v3630_v12 = vmul.f32 %v11967_v45, %v14729_v3  ;;  %v3623_v42 = vmul.f32 %v11967_v45, %v14730_v41  ;;  %v12110_v22 = vadd.f32 %v5299_v14, %v5137_v30  ;;  %5434 = vperm.xlu1 %6440, %v12078_v53   ;;  %v12114_v31 = vadd.f32 %v3621_v52, %v11958_v54  ;;  %v14733_v28 = vld [vmem:[#allocation496_spill] sm:$0xff]  ;;  %v12130_v54 = vpop.permute.xlu1 %5164  ;;  %v14742_v53 = vld [vmem:[#allocation514_spill] sm:$0xff] }
 0x893   : > { %14728 = vst [vmem:[#allocation143_spill] sm:$0xff] %v12104_v43  ;;  %v12118_v23 = vmul.f32 %v11692_v27, %v14732_v9  ;;  %v3795_v1 = vmul.f32 %v12123_v16, %v14733_v28  ;;  %v3626_v30 = vmul.f32 %v11967_v45, %v14734_v5  ;;  %5439 = vperm.xlu2 %6439, %v12091_v49   ;;  %v14736_v14 = vld [vmem:[#allocation488_spill] sm:$0xff]  ;;  %v12144_v43 = vpop.permute.xlu2 %5200  ;;  %v14739_v5 = vld [vmem:[#allocation491_spill] sm:$0xff] }
 0x894   : > { %14731 = vst [vmem:[#allocation145_spill] sm:$0xff] %v12110_v22  ;;  %v12133_v52 = vadd.f32 %v3624_v35, %v11977_v40  ;;  %v12137_v3 = vmul.f32 %v12085_v37, %v14736_v14  ;;  %v12140_v41 = vadd.f32 %v3627_v18, %v11983_v8  ;;  %v14737_v9 = vld [vmem:[#allocation120_spill] sm:$0xff]  ;;  %v12148_v49 = vmul.f32 %v12085_v37, %v14739_v5  ;;  %v14741_v35 = vld [vmem:[#allocation499_spill] sm:$0xff]  ;;  %v6688_v18 = vld [vmem:[%s6773_s17 + $0x19a] sm:$0xff] }
 0x895   : > { %14735 = vst [vmem:[#allocation19_spill] sm:$0xff] %v12130_v54  ;;  %v4946_v28 = vadd.f32 %v14737_v9, %v11413_v2  ;;  %v12151_v40 = vadd.f32 %v3620_v19, %v11985_v63  ;;  %v3798_v14 = vmul.f32 %v12123_v16, %v14741_v35  ;;  %v3812_v8 = vmul.f32 %v12123_v16, %v14742_v53  ;;  %v14743_v9 = vld [vmem:[#allocation494_spill] sm:$0xff]  ;;  %v14745_v19 = vld [vmem:[#allocation497_spill] sm:$0xff]  ;;  %v14753_v57 = vld [vmem:[#allocation500_spill] sm:$0xff] }
 0x896   : > { %14738 = vst [vmem:[#allocation533_spill] sm:$0xff] %v12144_v43  ;;  %5923 = vperm.xlu0 %6444, %v6688_v18   ;;  %v12159_v2 = vadd.f32 %v3630_v12, %v12003_v34  ;;  %v12163_v5 = vmul.f32 %v12085_v37, %v14743_v9  ;;  %v12166_v43 = vadd.f32 %v3623_v42, %v12006_v62  ;;  %v14747_v18 = vld [vmem:[#allocation501_spill] sm:$0xff]  ;;  %v12183_v12 = vld [vmem:[%s13246_s1 + $0x16] ss:$0 sm:$0xff]  ;;  %v5229_v9 = vpop.permute.xlu0 %5228  ;;  %v14750_v54 = vld [vmem:[#allocation502_spill] sm:$0xff] }
 0x897   : > { %14740 = vst [vmem:[#allocation371_spill] sm:$0xff] %v12148_v49  ;;  %v12170_v63 = vmul.f32 %v12085_v37, %v14745_v19  ;;  %v12173_v35 = vadd.f32 %v3795_v1, %v12009_v59  ;;  %v12176_v53 = vadd.f32 %v3626_v30, %v12014_v51  ;;  %v3629_v34 = vmul.f32 %v11967_v45, %v14747_v18  ;;  %v14748_v62 = vld [vmem:[#allocation544_spill] sm:$0xff]  ;;  %v12196_v22 = vld [vmem:[%s6773_s17 + $0xda] sm:$0xff] }
 0x898   : > { %14744 = vst [vmem:[#allocation16_spill] sm:$0xff] %v12163_v5  ;;  %v4006_v42 = vmul.f32 %v12183_v12, %v14748_v62  ;;  %v12188_v19 = vld [vmem:[%s6773_s17 + $0xca] sm:$0xff]  ;;  %v3800_v59 = vmul.f32 %v12123_v16, %v14750_v54  ;;  %v5140_v30 = vadd.f32 %v5108_v38, %v4946_v28  ;;  %v5302_v18 = vmul.f32 %v11723_v58, %v5229_v9  ;;  %v12208_v54 = vld [vmem:[%s13246_s1 + $0x18] ss:$0 sm:$0xff] }
 0x899   : > { %14746 = vst [vmem:[#allocation147_spill] sm:$0xff] %v12170_v63  ;;  %v14751_v1 = vld [vmem:[#allocation504_spill] sm:$0xff]  ;;  %v12199_v63 = vadd.f32 %v3798_v14, %v12026_v48  ;;  %v12203_v62 = vmul.f32 %v12085_v37, %v14753_v57  ;;  %v3844_v5 = vadd.f32 %v3812_v8, %v3650_v10  ;;  %v14756_v38 = vld [vmem:[#allocation505_spill] sm:$0xff]  ;;  %v14757_v9 = vld [vmem:[#allocation507_spill] sm:$0xff]  ;;  %v12222_v10 = vadd.f32 %v3629_v34, %v12029_v11 }
 0x89a   : > { %14749 = vst [vmem:[#allocation4_spill] sm:$0xff] %v12188_v19  ;;  %v3632_v51 = vmul.f32 %v11967_v45, %v14751_v1  ;;  %v4266_v45 = vmul.f32 %v12208_v54, %v14755_v32  ;;  %v3803_v28 = vmul.f32 %v12123_v16, %v14756_v38  ;;  %v3797_v48 = vmul.f32 %v12123_v16, %v14757_v9  ;;  %v14758_v14 = vld [vmem:[#allocation508_spill] sm:$0xff]  ;;  %v14760_v8 = vld [vmem:[#allocation503_spill] sm:$0xff]  ;;  %v12231_v38 = vld [vmem:[%s13246_s1 + $0x19] ss:$0 sm:$0xff] }
 0x89b   : > { %14752 = vst [vmem:[#allocation295_spill] sm:$0xff] %v12196_v22  ;;  %v3806_v1 = vmul.f32 %v12123_v16, %v14758_v14  ;;  %v12218_v57 = vadd.f32 %v5302_v18, %v5140_v30  ;;  %5449 = vperm.xlu1 %6440, %v12188_v19   ;;  %v4038_v32 = vadd.f32 %v4006_v42, %v3844_v5  ;;  %v14762_v9 = vld [vmem:[#allocation610_spill] sm:$0xff]  ;;  %v12236_v30 = vpop.permute.xlu1 %5172  ;;  %v14765_v42 = vld [vmem:[#allocation116_spill] sm:$0xff]  ;;  %v12248_v19 = vpop.permute.xlu2 %5212 }
 0x89c   : > { %14754 = vst [vmem:[#allocation559_spill] sm:$0xff] %v12203_v62  ;;  %v12226_v62 = vmul.f32 %v12085_v37, %v14760_v8  ;;  %v4460_v14 = vmul.f32 %v12231_v38, %v14762_v9  ;;  %5454 = vperm.xlu2 %6439, %v12196_v22   ;;  %v12239_v11 = vadd.f32 %v3800_v59, %v12036_v20  ;;  %v14764_v18 = vld [vmem:[#allocation510_spill] sm:$0xff]  ;;  %v14769_v22 = vld [vmem:[#allocation517_spill] sm:$0xff] }
 0x89d   : > { %14759 = vst [vmem:[#allocation33_spill] sm:$0xff] %v12218_v57  ;;  %v12242_v34 = vadd.f32 %v3632_v51, %v12040_v60  ;;  %v3799_v5 = vmul.f32 %v12123_v16, %v14764_v18  ;;  %v4949_v8 = vadd.f32 %v14765_v42, %v11484_v36  ;;  %v3815_v20 = vmul.f32 %v12123_v16, %v14769_v22  ;;  %v12259_v60 = vld [vmem:[%s13246_s1 + $0x1a] ss:$0 sm:$0xff]  ;;  %v14770_v51 = vld [vmem:[#allocation36_spill] sm:$0xff]  ;;  %v14771_v22 = vld [vmem:[#allocation511_spill] sm:$0xff] }
 0x89e   : > { %14761 = vst [vmem:[#allocation148_spill] sm:$0xff] %v12226_v62  ;;  %v14767_v62 = vld [vmem:[#allocation506_spill] sm:$0xff]  ;;  %v4298_v59 = vadd.f32 %v4266_v45, %v4038_v32  ;;  %v4654_v18 = vmul.f32 %v12259_v60, %v14770_v51  ;;  %v12264_v36 = vadd.f32 %v3803_v28, %v12046_v55  ;;  %v12267_v42 = vadd.f32 %v3797_v48, %v12056_v25  ;;  %v14772_v32 = vld [vmem:[#allocation513_spill] sm:$0xff]  ;;  %v14774_v25 = vld [vmem:[#allocation103_spill] sm:$0xff] }
 0x89f   : > { %14763 = vst [vmem:[#allocation320_spill] sm:$0xff] %v12236_v30  ;;  %v12252_v9 = vmul.f32 %v12085_v37, %v14767_v62  ;;  %v12270_v62 = vadd.f32 %v3806_v1, %v12059_v0  ;;  %v3809_v45 = vmul.f32 %v12123_v16, %v14771_v22  ;;  %v3802_v37 = vmul.f32 %v12123_v16, %v14772_v32  ;;  %v12281_v55 = vld [vmem:[%s13246_s1 + $0x1c] ss:$0 sm:$0xff]  ;;  %v5241_v0 = vpop.permute.xlu0 %5240  ;;  %v12286_v48 = vld [vmem:[%s6773_s17 + $0xf2] sm:$0xff]  ;;  %v14777_v57 = vld [vmem:[#allocation579_spill] sm:$0xff] }
 0x8a0   : > { %14766 = vst [vmem:[#allocation48_spill] sm:$0xff] %v12248_v19  ;;  %v14773_v19 = vld [vmem:[#allocation547_spill] sm:$0xff]  ;;  %v4492_v51 = vadd.f32 %v4460_v14, %v4298_v59  ;;  %v4913_v28 = vmul.f32 %v12281_v55, %v14774_v25  ;;  %v12289_v1 = vadd.f32 %v3799_v5, %v12067_v17  ;;  %v14775_v22 = vld [vmem:[#allocation520_spill] sm:$0xff]  ;;  %v5305_v14 = vmul.f32 %v11723_v58, %v5241_v0  ;;  %v12296_v59 = vld [vmem:[%s6773_s17 + $0xfa] sm:$0xff] }
 0x8a1   : > { %14768 = vst [vmem:[#allocation586_spill] sm:$0xff] %v12252_v9  ;;  %v4009_v30 = vmul.f32 %v12183_v12, %v14773_v19  ;;  %v3818_v32 = vmul.f32 %v12123_v16, %v14775_v22  ;;  %v5143_v19 = vadd.f32 %v12063_v47, %v4949_v8  ;;  %v3847_v9 = vadd.f32 %v3815_v20, %v12114_v31  ;;  %v14778_v5 = vld [vmem:[#allocation522_spill] sm:$0xff]  ;;  %v14779_v47 = vld [vmem:[#allocation523_spill] sm:$0xff]  ;;  %v14780_v20 = vld [vmem:[#allocation613_spill] sm:$0xff] }
 0x8a2   : > { %14776 = vst [vmem:[#allocation632_spill] sm:$0xff] %v12296_v59  ;;  %v4269_v25 = vmul.f32 %v12208_v54, %v14777_v57  ;;  %v4686_v50 = vadd.f32 %v4654_v18, %v4492_v51  ;;  %v5107_v49 = vmul.f32 %v11692_v27, %v11428_v4  ;;  %v12304_v17 = vadd.f32 %v3809_v45, %v12069_v24  ;;  %v14781_v51 = vld [vmem:[#allocation524_spill] sm:$0xff] }
 0x8a3   : > { %v3821_v22 = vmul.f32 %v12123_v16, %v14778_v5  ;;  %v3814_v8 = vmul.f32 %v12123_v16, %v14779_v47  ;;  %v12310_v0 = vadd.f32 %v5305_v14, %v5143_v19  ;;  %5464 = vperm.xlu1 %6440, %v12286_v48   ;;  %v12314_v31 = vadd.f32 %v3802_v37, %v12094_v26  ;;  %v12319_v24 = vpop.permute.xlu1 %5184  ;;  %v14782_v14 = vld [vmem:[#allocation525_spill] sm:$0xff]  ;;  %v14783_v37 = vld [vmem:[#allocation119_spill] sm:$0xff]  ;;  %v14784_v47 = vld [vmem:[#allocation38_spill] sm:$0xff] }
 0x8a4   : > { %v4041_v57 = vadd.f32 %v4009_v30, %v3847_v9  ;;  %v4463_v4 = vmul.f32 %v12231_v38, %v14780_v20  ;;  %v4945_v18 = vadd.f32 %v4913_v28, %v4686_v50  ;;  %5469 = vperm.xlu2 %6439, %v12296_v59   ;;  %v3850_v45 = vadd.f32 %v3818_v32, %v12133_v52  ;;  %v5225_v30 = vpop.permute.xlu2 %5224  ;;  %v14786_v59 = vld [vmem:[#allocation528_spill] sm:$0xff] }
 0x8a5   : > { %v3824_v19 = vmul.f32 %v12123_v16, %v14781_v51  ;;  %v3817_v5 = vmul.f32 %v12123_v16, %v14782_v14  ;;  %v4952_v26 = vadd.f32 %v14783_v37, %v11550_v56  ;;  %v4657_v50 = vmul.f32 %v12259_v60, %v14784_v47  ;;  %v14785_v51 = vld [vmem:[#allocation526_spill] sm:$0xff] }
 0x8a6   : > { %v4301_v9 = vadd.f32 %v4269_v25, %v4041_v57  ;;  %v5139_v28 = vadd.f32 %v5107_v49, %v4945_v18  ;;  %v5301_v20 = vmul.f32 %v11723_v58, %v5225_v30  ;;  %v12332_v52 = vadd.f32 %v3821_v22, %v12140_v41  ;;  %v14787_v25 = vld [vmem:[#allocation549_spill] sm:$0xff] }
 0x8a7   : > { %v12335_v32 = vadd.f32 %v3814_v8, %v12151_v40  ;;  %v3989_v14 = vmul.f32 %v12183_v12, %v14785_v51  ;;  %v3820_v56 = vmul.f32 %v12123_v16, %v14786_v59  ;;  %v4012_v57 = vmul.f32 %v12183_v12, %v14787_v25  ;;  %v14788_v49 = vld [vmem:[#allocation105_spill] sm:$0xff]  ;;  %v5253_v41 = vpop.permute.xlu0 %5252  ;;  %v12358_v25 = vld [vmem:[%s6773_s17 + $0x122] sm:$0xff] }
 0x8a8   : > { %v4495_v37 = vadd.f32 %v4463_v4, %v4301_v9  ;;  %v4916_v18 = vmul.f32 %v12281_v55, %v14788_v49  ;;  %v12345_v30 = vadd.f32 %v5301_v20, %v5139_v28  ;;  %v12348_v22 = vld [vmem:[%s6773_s17 + $0x112] sm:$0xff]  ;;  %v12351_v40 = vadd.f32 %v3824_v19, %v12159_v2  ;;  %14790 = vst [vmem:[#allocation146_spill] sm:$0xff] %v12358_v25  ;;  %v14791_v9 = vld [vmem:[#allocation582_spill] sm:$0xff]  ;;  %v14792_v49 = vld [vmem:[#allocation531_spill] sm:$0xff] }
 0x8a9   : > { %v14789_v8 = vld [vmem:[#allocation529_spill] sm:$0xff]  ;;  %v5146_v59 = vadd.f32 %v12073_v13, %v4952_v26  ;;  %v5308_v51 = vmul.f32 %v11723_v58, %v5253_v41  ;;  %v12361_v4 = vadd.f32 %v3817_v5, %v12166_v43  ;;  %v4272_v28 = vmul.f32 %v12208_v54, %v14791_v9  ;;  %v14793_v26 = vld [vmem:[#allocation532_spill] sm:$0xff]  ;;  %v14795_v9 = vld [vmem:[#allocation534_spill] sm:$0xff] }
 0x8aa   : > { %v3992_v47 = vmul.f32 %v12183_v12, %v14789_v8  ;;  %v4689_v20 = vadd.f32 %v4657_v50, %v4495_v37  ;;  %v5110_v2 = vmul.f32 %v11692_v27, %v11499_v44  ;;  %v12368_v19 = vadd.f32 %v3989_v14, %v12173_v35  ;;  %v14794_v50 = vld [vmem:[#allocation616_spill] sm:$0xff] }
 0x8ab   : > { %v3823_v13 = vmul.f32 %v12123_v16, %v14792_v49  ;;  %v3994_v41 = vmul.f32 %v12183_v12, %v14793_v26  ;;  %v12374_v8 = vadd.f32 %v5308_v51, %v5146_v59  ;;  %5479 = vperm.xlu1 %6440, %v12348_v22   ;;  %v12378_v43 = vadd.f32 %v3820_v56, %v12176_v53  ;;  %v12383_v35 = vpop.permute.xlu1 %5196  ;;  %v14796_v51 = vld [vmem:[#allocation535_spill] sm:$0xff]  ;;  %v14797_v53 = vld [vmem:[#allocation124_spill] sm:$0xff] }
 0x8ac   : > { %v4044_v5 = vadd.f32 %v4012_v57, %v3850_v45  ;;  %v4466_v44 = vmul.f32 %v12231_v38, %v14794_v50  ;;  %v4948_v37 = vadd.f32 %v4916_v18, %v4689_v20  ;;  %5484 = vperm.xlu2 %6439, %v12358_v25   ;;  %v12386_v14 = vadd.f32 %v3992_v47, %v12199_v63  ;;  %v5237_v56 = vpop.permute.xlu2 %5236  ;;  %v14798_v18 = vld [vmem:[#allocation54_spill] sm:$0xff] }
 0x8ad   : > { %v3826_v59 = vmul.f32 %v12123_v16, %v14795_v9  ;;  %v3997_v49 = vmul.f32 %v12183_v12, %v14796_v51  ;;  %v4955_v45 = vadd.f32 %v14797_v53, %v11621_v39  ;;  %v4660_v20 = vmul.f32 %v12259_v60, %v14798_v18  ;;  %v14799_v9 = vld [vmem:[#allocation537_spill] sm:$0xff]  ;;  %v14800_v25 = vld [vmem:[#allocation538_spill] sm:$0xff] }
 0x8ae   : > { %v4304_v57 = vadd.f32 %v4272_v28, %v4044_v5  ;;  %v5142_v26 = vadd.f32 %v5110_v2, %v4948_v37  ;;  %v5304_v63 = vmul.f32 %v11723_v58, %v5237_v56  ;;  %v12398_v47 = vadd.f32 %v3823_v13, %v12222_v10  ;;  %v14801_v28 = vld [vmem:[#allocation552_spill] sm:$0xff]  ;;  %v14802_v2 = vld [vmem:[#allocation101_spill] sm:$0xff] }
 0x8af   : > { %v12401_v50 = vadd.f32 %v3994_v41, %v12239_v11  ;;  %v3991_v51 = vmul.f32 %v12183_v12, %v14799_v9  ;;  %v4000_v39 = vmul.f32 %v12183_v12, %v14800_v25  ;;  %v4015_v5 = vmul.f32 %v12183_v12, %v14801_v28  ;;  %v5265_v10 = vpop.permute.xlu0 %5264  ;;  %v12414_v13 = vld [vmem:[%s6773_s17 + $0x13a] sm:$0xff]  ;;  %v14804_v41 = vld [vmem:[#allocation540_spill] sm:$0xff]  ;;  %v12424_v28 = vld [vmem:[%s6773_s17 + $0x142] sm:$0xff] }
 0x8b0   : > { %v4498_v53 = vadd.f32 %v4466_v44, %v4304_v57  ;;  %v4919_v37 = vmul.f32 %v12281_v55, %v14802_v2  ;;  %v12411_v56 = vadd.f32 %v5304_v63, %v5142_v26  ;;  %14803 = vst [vmem:[#allocation272_spill] sm:$0xff] %v12414_v13  ;;  %v12417_v11 = vadd.f32 %v3826_v59, %v12242_v34  ;;  %v14806_v57 = vld [vmem:[#allocation585_spill] sm:$0xff] }
 0x8b1   : > { %v3993_v18 = vmul.f32 %v12183_v12, %v14804_v41  ;;  %v5149_v25 = vadd.f32 %v12099_v33, %v4955_v45  ;;  %v5311_v9 = vmul.f32 %v11723_v58, %v5265_v10  ;;  %14805 = vst [vmem:[#allocation633_spill] sm:$0xff] %v12424_v28  ;;  %v12427_v44 = vadd.f32 %v3997_v49, %v12264_v36  ;;  %v14807_v2 = vld [vmem:[#allocation541_spill] sm:$0xff]  ;;  %v14808_v45 = vld [vmem:[#allocation554_spill] sm:$0xff] }
 0x8b2   : > { %v4275_v26 = vmul.f32 %v12208_v54, %v14806_v57  ;;  %v4692_v63 = vadd.f32 %v4660_v20, %v4498_v53  ;;  %v5113_v34 = vmul.f32 %v11692_v27, %v11565_v46  ;;  %v12434_v59 = vadd.f32 %v3991_v51, %v12267_v42  ;;  %v14809_v20 = vld [vmem:[#allocation619_spill] sm:$0xff]  ;;  %v14811_v57 = vld [vmem:[#allocation557_spill] sm:$0xff] }
 0x8b3   : > { %v4003_v33 = vmul.f32 %v12183_v12, %v14807_v2  ;;  %v4008_v10 = vmul.f32 %v12183_v12, %v14808_v45  ;;  %v12440_v41 = vadd.f32 %v5311_v9, %v5149_v25  ;;  %5494 = vperm.xlu1 %6440, %v12414_v13   ;;  %v12444_v36 = vadd.f32 %v4000_v39, %v12270_v62  ;;  %v12450_v51 = vpop.permute.xlu1 %5208  ;;  %v14810_v25 = vld [vmem:[#allocation555_spill] sm:$0xff]  ;;  %v14812_v39 = vld [vmem:[#allocation286_spill] sm:$0xff] }
 0x8b4   : > { %v4047_v49 = vadd.f32 %v4015_v5, %v12332_v52  ;;  %v4469_v46 = vmul.f32 %v12231_v38, %v14809_v20  ;;  %v4951_v42 = vadd.f32 %v4919_v37, %v4692_v63  ;;  %5499 = vperm.xlu2 %6439, %v12424_v28   ;;  %v12453_v53 = vadd.f32 %v3993_v18, %v12289_v1  ;;  %v5249_v5 = vpop.permute.xlu2 %5248  ;;  %v14813_v37 = vld [vmem:[#allocation63_spill] sm:$0xff]  ;;  %v14815_v28 = vld [vmem:[#allocation558_spill] sm:$0xff] }
 0x8b5   : > { %v4018_v9 = vmul.f32 %v12183_v12, %v14810_v25  ;;  %v4011_v62 = vmul.f32 %v12183_v12, %v14811_v57  ;;  %v4958_v52 = vadd.f32 %v14812_v39, %v11694_v15  ;;  %v4663_v63 = vmul.f32 %v12259_v60, %v14813_v37  ;;  %v14814_v20 = vld [vmem:[#allocation543_spill] sm:$0xff] }
 0x8b6   : > { %v4307_v2 = vadd.f32 %v4275_v26, %v4047_v49  ;;  %v5145_v45 = vadd.f32 %v5113_v34, %v4951_v42  ;;  %v5307_v1 = vmul.f32 %v11723_v58, %v5249_v5  ;;  %v12465_v18 = vadd.f32 %v4003_v33, %v12304_v17  ;;  %v14816_v26 = vld [vmem:[#allocation560_spill] sm:$0xff]  ;;  %v12481_v33 = vld [vmem:[%s6773_s17 + $0x15a] sm:$0xff] }
 0x8b7   : > { %v12469_v25 = vmul.f32 %v12183_v12, %v14814_v20  ;;  %v4040_v57 = vadd.f32 %v4008_v10, %v12335_v32  ;;  %v4249_v15 = vmul.f32 %v12208_v54, %v14815_v28  ;;  %v4014_v49 = vmul.f32 %v12183_v12, %v14816_v26  ;;  %v14817_v34 = vld [vmem:[#allocation108_spill] sm:$0xff]  ;;  %v5277_v17 = vpop.permute.xlu0 %5276  ;;  %14819 = vst [vmem:[#allocation611_spill] sm:$0xff] %v12481_v33  ;;  %v14820_v20 = vld [vmem:[#allocation587_spill] sm:$0xff] }
 0x8b8   : > { %v4501_v39 = vadd.f32 %v4469_v46, %v4307_v2  ;;  %v4922_v42 = vmul.f32 %v12281_v55, %v14817_v34  ;;  %v12478_v5 = vadd.f32 %v5307_v1, %v5145_v45  ;;  %v4050_v37 = vadd.f32 %v4018_v9, %v12351_v40  ;;  %v12489_v13 = vld [vmem:[%s6773_s17 + $0x16a] sm:$0xff]  ;;  %v14823_v9 = vld [vmem:[#allocation561_spill] sm:$0xff] }
 0x8b9   : > { %v4268_v32 = vmul.f32 %v12208_v54, %v14820_v20  ;;  %v5152_v10 = vadd.f32 %v12118_v23, %v4958_v52  ;;  %v5314_v28 = vmul.f32 %v11723_v58, %v5277_v17  ;;  %14821 = vst [vmem:[#allocation374_spill] sm:$0xff] %v12489_v13  ;;  %v4043_v46 = vadd.f32 %v4011_v62, %v12361_v4  ;;  %v14822_v2 = vld [vmem:[#allocation588_spill] sm:$0xff]  ;;  %v14824_v20 = vld [vmem:[#allocation621_spill] sm:$0xff]  ;;  %v14825_v62 = vld [vmem:[#allocation563_spill] sm:$0xff] }
 0x8ba   : > { %14818 = vst [vmem:[#allocation347_spill] sm:$0xff] %v12478_v5  ;;  %v4278_v45 = vmul.f32 %v12208_v54, %v14822_v2  ;;  %v4695_v1 = vadd.f32 %v4663_v63, %v4501_v39  ;;  %v5116_v26 = vmul.f32 %v11692_v27, %v11637_v29  ;;  %v4281_v40 = vadd.f32 %v4249_v15, %v12368_v19  ;;  %v14826_v39 = vld [vmem:[#allocation622_spill] sm:$0xff]  ;;  %v14828_v17 = vld [vmem:[#allocation564_spill] sm:$0xff]  ;;  %v14835_v5 = vld [vmem:[#allocation111_spill] sm:$0xff] }
 0x8bb   : > { %v4252_v34 = vmul.f32 %v12208_v54, %v14823_v9  ;;  %v4462_v23 = vmul.f32 %v12231_v38, %v14824_v20  ;;  %v12501_v52 = vadd.f32 %v5314_v28, %v5152_v10  ;;  %5509 = vperm.xlu1 %6440, %v12481_v33   ;;  %v12505_v4 = vadd.f32 %v4014_v49, %v12378_v43  ;;  %v12512_v15 = vpop.permute.xlu1 %5220  ;;  %v14829_v2 = vld [vmem:[#allocation66_spill] sm:$0xff] }
 0x8bc   : > { %v4017_v63 = vmul.f32 %v12183_v12, %v14825_v62  ;;  %v4472_v29 = vmul.f32 %v12231_v38, %v14826_v39  ;;  %v4954_v19 = vadd.f32 %v4922_v42, %v4695_v1  ;;  %5514 = vperm.xlu2 %6439, %v12489_v13   ;;  %14827 = vst [vmem:[#allocation21_spill] sm:$0xff] %v12512_v15  ;;  %v14830_v43 = vld [vmem:[#allocation550_spill] sm:$0xff]  ;;  %v5261_v20 = vpop.permute.xlu2 %5260  ;;  %v14831_v62 = vld [vmem:[#allocation67_spill] sm:$0xff]  ;;  %v14834_v15 = vld [vmem:[#allocation592_spill] sm:$0xff] }
 0x8bd   : > { %v4254_v10 = vmul.f32 %v12208_v54, %v14828_v17  ;;  %v4300_v28 = vadd.f32 %v4268_v32, %v4040_v57  ;;  %v4656_v9 = vmul.f32 %v12259_v60, %v14829_v2  ;;  %v5576_v49 = vadd.f32 %v14830_v43, %v11776_v61  ;;  %v12523_v42 = vld [vmem:[%s13246_s1 + $0x22] ss:$0 sm:$0xff]  ;;  %v14833_v43 = vld [vmem:[#allocation104_spill] sm:$0xff] }
 0x8be   : > { %v4310_v1 = vadd.f32 %v4278_v45, %v4050_v37  ;;  %v4666_v39 = vmul.f32 %v12259_v60, %v14831_v62  ;;  %v5148_v13 = vadd.f32 %v5116_v26, %v4954_v19  ;;  %v5310_v57 = vmul.f32 %v11723_v58, %v5261_v20  ;;  %v14832_v17 = vld [vmem:[#allocation590_spill] sm:$0xff] }
 0x8bf   : > { %v12529_v32 = vadd.f32 %v4252_v34, %v12386_v14  ;;  %v4271_v61 = vmul.f32 %v12208_v54, %v14832_v17  ;;  %v4494_v2 = vadd.f32 %v4462_v23, %v4300_v28  ;;  %v4915_v33 = vmul.f32 %v12281_v55, %v14833_v43  ;;  %v5808_v20 = vpop.permute.xlu0 %5807  ;;  %v12542_v14 = vld [vmem:[%s6773_s17 + $0x182] sm:$0xff] }
 0x8c0   : > { %v4443_v37 = vmul.f32 %v12231_v38, %v14834_v15  ;;  %v4504_v45 = vadd.f32 %v4472_v29, %v4310_v1  ;;  %v4925_v26 = vmul.f32 %v12281_v55, %v14835_v5  ;;  %v12539_v19 = vadd.f32 %v5310_v57, %v5148_v13  ;;  %v12550_v15 = vld [vmem:[%s13247_s2] ss:$0 sm:$0xff]  ;;  %v12554_v5 = vld [vmem:[%s6773_s17 + $0x18a] sm:$0xff] }
 0x8c1   : > { %v4688_v34 = vadd.f32 %v4656_v9, %v4494_v2  ;;  %v5109_v23 = vmul.f32 %v11692_v27, %v11697_v21  ;;  %v5770_v28 = vadd.f32 %v12137_v3, %v5576_v49  ;;  %v5932_v29 = vmul.f32 %v12523_v42, %v5808_v20  ;;  %v14836_v49 = vld [vmem:[#allocation625_spill] sm:$0xff]  ;;  %v14837_v43 = vld [vmem:[#allocation626_spill] sm:$0xff] }
 0x8c2   : > { %v12557_v13 = vadd.f32 %v4017_v63, %v12398_v47  ;;  %v12560_v1 = vadd.f32 %v4254_v10, %v12401_v50  ;;  %v4698_v9 = vadd.f32 %v4666_v39, %v4504_v45  ;;  %v5119_v21 = vmul.f32 %v11692_v27, %v11710_v6  ;;  %v14838_v63 = vld [vmem:[#allocation75_spill] sm:$0xff]  ;;  %v14839_v39 = vld [vmem:[#allocation126_spill] sm:$0xff] }
 0x8c3   : > { %v4303_v3 = vadd.f32 %v4271_v61, %v4043_v46  ;;  %v4465_v62 = vmul.f32 %v12231_v38, %v14836_v49  ;;  %v4947_v57 = vadd.f32 %v4915_v33, %v4688_v34  ;;  %v5964_v17 = vadd.f32 %v5932_v29, %v5770_v28  ;;  %5524 = vperm.xlu1 %6440, %v12542_v14   ;;  %v5233_v6 = vpop.permute.xlu1 %5232  ;;  %v14842_v49 = vld [vmem:[#allocation593_spill] sm:$0xff] }
 0x8c4   : > { %v4475_v2 = vadd.f32 %v4443_v37, %v4281_v40  ;;  %v4637_v47 = vmul.f32 %v12259_v60, %v14837_v43  ;;  %v4659_v50 = vmul.f32 %v12259_v60, %v14838_v63  ;;  %v4957_v10 = vadd.f32 %v4925_v26, %v4698_v9  ;;  %5529 = vperm.xlu2 %6439, %v12554_v5   ;;  %v5273_v40 = vpop.permute.xlu2 %5272  ;;  %v14840_v37 = vld [vmem:[#allocation78_spill] sm:$0xff] }
 0x8c5   : > { %v5141_v46 = vadd.f32 %v5109_v23, %v4947_v57  ;;  %v5581_v61 = vadd.f32 %v14839_v39, %v11860_v7  ;;  %v6000_v33 = vadd.f32 %v12550_v15, %v5964_v17  ;;  %v5303_v45 = vmul.f32 %v11723_v58, %v5233_v6  ;;  %v14841_v23 = vld [vmem:[#allocation114_spill] sm:$0xff]  ;;  %v14843_v17 = vld [vmem:[#allocation117_spill] sm:$0xff] }
 0x8c6   : > { %v4896_v20 = vmul.f32 %v12281_v55, %v14840_v37  ;;  %v5151_v34 = vadd.f32 %v5119_v21, %v4957_v10  ;;  %v5313_v26 = vmul.f32 %v11723_v58, %v5273_v40  ;;  %v4497_v7 = vadd.f32 %v4465_v62, %v4303_v3  ;;  %v12596_v6 = vld [vmem:[%s6773_s17 + $0x1a2] sm:$0xff]  ;;  %v14846_v3 = vld [vmem:[#allocation341_spill] sm:$0xff] }
 0x8c7   : > { %v4918_v28 = vmul.f32 %v12281_v55, %v14841_v23  ;;  %v6032_v29 = vmax.f32 %v6000_v33, 0.0  ;;  %v12587_v9 = vadd.f32 %v5303_v45, %v5141_v46  ;;  %v4274_v57 = vmul.f32 %v12208_v54, %v14842_v49  ;;  %v5828_v10 = vpop.permute.xlu0 %5827  ;;  %14845 = vst [vmem:[#allocation22_spill] sm:$0xff] %v12596_v6  ;;  %v14847_v46 = vld [vmem:[#allocation371_spill] sm:$0xff]  ;;  %v14848_v40 = vld [vmem:[#allocation566_spill] sm:$0xff] }
 0x8c8   : > { %v4669_v21 = vadd.f32 %v4637_v47, %v4475_v2  ;;  %v5090_v43 = vmul.f32 %v11692_v27, %v14843_v17  ;;  %v12593_v63 = vadd.f32 %v5313_v26, %v5151_v34  ;;  %v4691_v39 = vadd.f32 %v4659_v50, %v4497_v7  ;;  %v14849_v47 = vld [vmem:[#allocation595_spill] sm:$0xff]  ;;  %v14850_v34 = vld [vmem:[#allocation630_spill] sm:$0xff]  ;;  %v14852_v17 = vld [vmem:[#allocation605_spill] sm:$0xff] }
 0x8c9   : > { %v5112_v62 = vmul.f32 %v11692_v27, %v14846_v3  ;;  %6065 = vst.msk [vmem:[%s12582_s11 + $0x8] sm:$0xff] %vm6063_vm0, %v6032_v29  ;;  %v5775_v33 = vadd.f32 %v14847_v46, %v5581_v61  ;;  %v5937_v45 = vmul.f32 %v12523_v42, %v5828_v10  ;;  %v4020_v2 = vmul.f32 %v12183_v12, %v14848_v40  ;;  %v14851_v50 = vld [vmem:[#allocation567_spill] sm:$0xff]  ;;  %v14854_v40 = vld [vmem:[#allocation77_spill] sm:$0xff] }
 0x8ca   : > { %14844 = vst [vmem:[#allocation536_spill] sm:$0xff] %v12593_v63  ;;  %v4446_v37 = vmul.f32 %v12231_v38, %v14849_v47  ;;  %v4468_v26 = vmul.f32 %v12231_v38, %v14850_v34  ;;  %v4928_v23 = vadd.f32 %v4896_v20, %v4669_v21  ;;  %v4257_v7 = vmul.f32 %v12208_v54, %v14851_v50  ;;  %v14853_v3 = vld [vmem:[#allocation631_spill] sm:$0xff] }
 0x8cb   : > { %v4950_v49 = vadd.f32 %v4918_v28, %v4691_v39  ;;  %v5284_v29 = vmul.f32 %v11723_v58, %v14852_v17  ;;  %v5969_v61 = vadd.f32 %v5937_v45, %v5775_v33  ;;  %5539 = vperm.xlu1 %6440, %v12596_v6   ;;  %v4306_v10 = vadd.f32 %v4274_v57, %v12505_v4  ;;  %v5245_v21 = vpop.permute.xlu1 %5244  ;;  %v14856_v28 = vld [vmem:[#allocation31_spill] sm:$0xff]  ;;  %v14857_v39 = vld [vmem:[#allocation577_spill] sm:$0xff] }
 0x8cc   : > { %v4640_v46 = vmul.f32 %v12259_v60, %v14853_v3  ;;  %v4662_v47 = vmul.f32 %v12259_v60, %v14854_v40  ;;  %v5122_v34 = vadd.f32 %v5090_v43, %v4928_v23  ;;  %v14855_v20 = vmov 1   ;;  %v14858_v17 = vld [vmem:[#allocation623_spill] sm:$0xff]  ;;  %v14860_v23 = vld [vmem:[#allocation121_spill] sm:$0xff] }
 0x8cd   : > { %6442 = vset.pattern.permute.xlu2 %v14855_v20  ;;  %v5144_v50 = vadd.f32 %v5112_v62, %v4950_v49  ;;  %v5584_v63 = vadd.f32 %v14857_v39, %v14856_v28  ;;  %v6005_v33 = vadd.f32 %v12550_v15, %v5969_v61  ;;  %v5306_v45 = vmul.f32 %v11723_v58, %v5245_v21  ;;  %v14859_v3 = vld [vmem:[#allocation87_spill] sm:$0xff]  ;;  %v5385_v62 = vpop.permute.xlu2 %5384  ;;  %v12636_v61 = vld [vmem:[%s13246_s1 + $0x20] ss:$0 sm:$0xff] }
 0x8ce   : > { %5609 = vperm.xlu2 %6442, %v14858_v17   ;;  %v4478_v4 = vadd.f32 %v4446_v37, %v12529_v32  ;;  %v4500_v57 = vadd.f32 %v4468_v26, %v4306_v10  ;;  %v4899_v43 = vmul.f32 %v12281_v55, %v14859_v3  ;;  %v4921_v40 = vmul.f32 %v12281_v55, %v14860_v23  ;;  %v14861_v37 = vld [vmem:[#allocation596_spill] sm:$0xff]  ;;  %v14862_v39 = vld [vmem:[#allocation123_spill] sm:$0xff] }
 0x8cf   : > { %v5316_v49 = vadd.f32 %v5284_v29, %v5122_v34  ;;  %v6037_v6 = vmax.f32 %v6005_v33, 0.0  ;;  %v12631_v28 = vadd.f32 %v5306_v45, %v5144_v50  ;;  %v5543_v32 = vmul.f32 %v12636_v61, %v5385_v62  ;;  %v5840_v3 = vpop.permute.xlu0 %5839  ;;  %v14863_v29 = vld [vmem:[#allocation18_spill] sm:$0xff]  ;;  %v14864_v33 = vld [vmem:[#allocation16_spill] sm:$0xff] }
 0x8d0   : > { %v4277_v26 = vmul.f32 %v12208_v54, %v14861_v37  ;;  %v4672_v10 = vadd.f32 %v4640_v46, %v4478_v4  ;;  %v4694_v21 = vadd.f32 %v4662_v47, %v4500_v57  ;;  %v5093_v17 = vmul.f32 %v11692_v27, %v14862_v39  ;;  %v14865_v37 = vld [vmem:[#allocation598_spill] sm:$0xff]  ;;  %v14866_v47 = vld [vmem:[#allocation635_spill] sm:$0xff] }
 0x8d1   : > { %v5115_v34 = vmul.f32 %v11692_v27, %v14863_v29  ;;  %6070 = vst.msk [vmem:[%s12582_s11 + $0x30] sm:$0xff] %vm6063_vm0, %v6037_v6  ;;  %v12647_v50 = vadd.f32 %v5543_v32, %v5316_v49  ;;  %v5778_v45 = vadd.f32 %v14864_v33, %v5584_v63  ;;  %v5940_v23 = vmul.f32 %v12523_v42, %v5840_v3  ;;  %v14867_v29 = vld [vmem:[#allocation142_spill] sm:$0xff]  ;;  %v14868_v32 = vld [vmem:[#allocation636_spill] sm:$0xff] }
 0x8d2   : > { %v4052_v62 = vadd.f32 %v4020_v2, %v12417_v11  ;;  %v4448_v46 = vmul.f32 %v12231_v38, %v14865_v37  ;;  %v4471_v4 = vmul.f32 %v12231_v38, %v14866_v47  ;;  %v4931_v57 = vadd.f32 %v4899_v43, %v4672_v10  ;;  %v14869_v2 = vld [vmem:[#allocation90_spill] sm:$0xff]  ;;  %v14870_v37 = vld [vmem:[#allocation139_spill] sm:$0xff] }
 0x8d3   : > { %v4289_v39 = vadd.f32 %v4257_v7, %v12427_v44  ;;  %v4953_v27 = vadd.f32 %v4921_v40, %v4694_v21  ;;  %v5287_v6 = vmul.f32 %v11723_v58, %v14867_v29  ;;  %v5972_v49 = vadd.f32 %v5940_v23, %v5778_v45  ;;  %6443 = vset.pattern.permute.xlu1 %v14855_v20  ;;  %v5257_v43 = vpop.permute.xlu1 %5256  ;;  %v14871_v7 = vld [vmem:[#allocation627_spill] sm:$0xff]  ;;  %v14872_v40 = vld [vmem:[#allocation122_spill] sm:$0xff] }
 0x8d4   : > { %v4309_v63 = vadd.f32 %v4277_v26, %v12557_v13  ;;  %v4642_v11 = vmul.f32 %v12259_v60, %v14868_v32  ;;  %v4665_v3 = vmul.f32 %v12259_v60, %v14869_v2  ;;  %v5125_v33 = vadd.f32 %v5093_v17, %v4931_v57  ;;  %5617 = vperm.xlu1 %6443, %v14870_v37   ;;  %v12672_v13 = vld [vmem:[%s13246_s1 + $0x1e] ss:$0 sm:$0xff]  ;;  %v14874_v45 = vld [vmem:[#allocation86_spill] sm:$0xff]  ;;  %v14875_v23 = vld [vmem:[#allocation127_spill] sm:$0xff] }
 0x8d5   : > { %v5147_v44 = vadd.f32 %v5115_v34, %v4953_v27  ;;  %v5587_v10 = vadd.f32 %v14872_v40, %v14871_v7  ;;  %v6008_v58 = vadd.f32 %v12550_v15, %v5972_v49  ;;  %v5309_v20 = vmul.f32 %v12672_v13, %v5257_v43  ;;  %v14873_v26 = vld [vmem:[#allocation141_spill] sm:$0xff]  ;;  %v5400_v57 = vpop.permute.xlu2 %5399  ;;  %v14877_v2 = vld [vmem:[#allocation599_spill] sm:$0xff] }
 0x8d6   : > { %5621 = vperm.xlu2 %6442, %v14873_v26   ;;  %v4480_v21 = vadd.f32 %v4448_v46, %v12560_v1  ;;  %v4503_v17 = vadd.f32 %v4471_v4, %v4309_v63  ;;  %v4901_v34 = vmul.f32 %v12281_v55, %v14874_v45  ;;  %v4924_v47 = vmul.f32 %v12281_v55, %v14875_v23  ;;  %v12689_v46 = vld [vmem:[%s13246_s1 + $0x1d] ss:$0 sm:$0xff]  ;;  %v14881_v40 = vld [vmem:[#allocation147_spill] sm:$0xff] }
 0x8d7   : > { %v5319_v27 = vadd.f32 %v5287_v6, %v5125_v33  ;;  %v6040_v29 = vmax.f32 %v6008_v58, 0.0  ;;  %v12681_v49 = vadd.f32 %v5309_v20, %v5147_v44  ;;  %v5546_v32 = vmul.f32 %v12636_v61, %v5400_v57  ;;  %v14878_v4 = vld [vmem:[#allocation129_spill] sm:$0xff]  ;;  %v5852_v7 = vpop.permute.xlu0 %5851  ;;  %v14879_v6 = vld [vmem:[#allocation556_spill] sm:$0xff]  ;;  %v14885_v57 = vld [vmem:[#allocation570_spill] sm:$0xff] }
 0x8d8   : > { %v4280_v37 = vmul.f32 %v12208_v54, %v14877_v2  ;;  %v4674_v43 = vadd.f32 %v4642_v11, %v4480_v21  ;;  %v4697_v1 = vadd.f32 %v4665_v3, %v4503_v17  ;;  %v5095_v63 = vmul.f32 %v12689_v46, %v14878_v4  ;;  %v14882_v3 = vld [vmem:[#allocation569_spill] sm:$0xff] }
 0x8d9   : > { %14876 = vst [vmem:[#allocation149_spill] sm:$0xff] %v12681_v49  ;;  %v5118_v33 = vmul.f32 %v12689_v46, %v14879_v6  ;;  %v12697_v44 = vadd.f32 %v5546_v32, %v5319_v27  ;;  %v5781_v58 = vadd.f32 %v14881_v40, %v5587_v10  ;;  %v5943_v11 = vmul.f32 %v12523_v42, %v5852_v7  ;;  %v14883_v26 = vld [vmem:[#allocation601_spill] sm:$0xff]  ;;  %v14886_v27 = vld [vmem:[#allocation140_spill] sm:$0xff]  ;;  %v14887_v7 = vld [vmem:[#allocation3_spill] sm:$0xff] }
 0x8da   : > { %6073 = vst.msk [vmem:[%s12582_s11 + $0x48] sm:$0xff] %vm6063_vm0, %v6040_v29  ;;  %v4251_v20 = vmul.f32 %v12208_v54, %v14882_v3  ;;  %v4451_v21 = vmul.f32 %v12231_v38, %v14883_v26  ;;  %v14884_v17 = vld [vmem:[#allocation641_spill] sm:$0xff]  ;;  %v4933_v23 = vadd.f32 %v4901_v34, %v4674_v43  ;;  %v4260_v2 = vmul.f32 %v12208_v54, %v14885_v57  ;;  %v14888_v40 = vld [vmem:[#allocation94_spill] sm:$0xff] }
 0x8db   : > { %14880 = vst [vmem:[#allocation10_spill] sm:$0xff] %v12697_v44  ;;  %v4474_v45 = vmul.f32 %v12231_v38, %v14884_v17  ;;  %v4956_v29 = vadd.f32 %v4924_v47, %v4697_v1  ;;  %v5289_v32 = vmul.f32 %v12672_v13, %v14886_v27  ;;  %v5975_v10 = vadd.f32 %v5943_v11, %v5781_v58  ;;  %v14889_v44 = vld [vmem:[#allocation2_spill] sm:$0xff]  ;;  %v5269_v17 = vpop.permute.xlu1 %5268  ;;  %v14890_v43 = vld [vmem:[#allocation145_spill] sm:$0xff]  ;;  %v14892_v58 = vld [vmem:[#allocation292_spill] sm:$0xff] }
 0x8dc   : > { %v4312_v4 = vadd.f32 %v4280_v37, %v4052_v62  ;;  %v4645_v6 = vmul.f32 %v12259_v60, %v14887_v7  ;;  %v4668_v3 = vmul.f32 %v12259_v60, %v14888_v40  ;;  %v5127_v26 = vadd.f32 %v5095_v63, %v4933_v23  ;;  %5625 = vperm.xlu1 %6443, %v14889_v44   ;;  %v14891_v49 = vld [vmem:[#allocation130_spill] sm:$0xff]  ;;  %v14893_v11 = vld [vmem:[#allocation89_spill] sm:$0xff]  ;;  %v14894_v63 = vld [vmem:[#allocation132_spill] sm:$0xff] }
 0x8dd   : > { %v5150_v34 = vadd.f32 %v5118_v33, %v4956_v29  ;;  %v5590_v57 = vadd.f32 %v14891_v49, %v14890_v43  ;;  %v6011_v47 = vadd.f32 %v12550_v15, %v5975_v10  ;;  %v5312_v1 = vmul.f32 %v12672_v13, %v5269_v17  ;;  %v5410_v23 = vpop.permute.xlu2 %5409  ;;  %v14895_v43 = vld [vmem:[#allocation133_spill] sm:$0xff] }
 0x8de   : > { %5629 = vperm.xlu2 %6442, %v14892_v58   ;;  %v4483_v62 = vadd.f32 %v4451_v21, %v4289_v39  ;;  %v4506_v37 = vadd.f32 %v4474_v45, %v4312_v4  ;;  %v4904_v27 = vmul.f32 %v12281_v55, %v14893_v11  ;;  %v4927_v44 = vmul.f32 %v12281_v55, %v14894_v63  ;;  %v14896_v45 = vld [vmem:[#allocation144_spill] sm:$0xff]  ;;  %v14901_v63 = vld [vmem:[#allocation269_spill] sm:$0xff] }
 0x8df   : > { %v5321_v33 = vadd.f32 %v5289_v32, %v5127_v26  ;;  %v6043_v29 = vmax.f32 %v6011_v47, 0.0  ;;  %v12725_v7 = vadd.f32 %v5312_v1, %v5150_v34  ;;  %v5548_v49 = vmul.f32 %v12636_v61, %v5410_v23  ;;  %v5864_v21 = vpop.permute.xlu0 %5863  ;;  %v14897_v32 = vld [vmem:[#allocation559_spill] sm:$0xff] }
 0x8e0   : > { %v4283_v10 = vadd.f32 %v4251_v20, %v12434_v59  ;;  %v4677_v40 = vadd.f32 %v4645_v6, %v4483_v62  ;;  %v4700_v17 = vadd.f32 %v4668_v3, %v4506_v37  ;;  %v5098_v39 = vmul.f32 %v12689_v46, %v14895_v43  ;;  %v14898_v59 = vld [vmem:[#allocation603_spill] sm:$0xff]  ;;  %v14899_v6 = vld [vmem:[#allocation604_spill] sm:$0xff] }
 0x8e1   : > { %v5121_v4 = vmul.f32 %v12689_v46, %v14896_v45  ;;  %6076 = vst.msk [vmem:[%s12582_s11 + $0x60] sm:$0xff] %vm6063_vm0, %v6043_v29  ;;  %v12735_v58 = vadd.f32 %v5548_v49, %v5321_v33  ;;  %v5784_v26 = vadd.f32 %v14897_v32, %v5590_v57  ;;  %v5946_v34 = vmul.f32 %v12523_v42, %v5864_v21  ;;  %v14900_v62 = vld [vmem:[#allocation572_spill] sm:$0xff]  ;;  %v14902_v57 = vld [vmem:[#allocation573_spill] sm:$0xff]  ;;  %v14905_v45 = vld [vmem:[#allocation46_spill] sm:$0xff] }
 0x8e2   : > { %v4292_v47 = vadd.f32 %v4260_v2, %v12444_v36  ;;  %v4445_v20 = vmul.f32 %v12231_v38, %v14898_v59  ;;  %v4454_v3 = vmul.f32 %v12231_v38, %v14899_v6  ;;  %v4936_v1 = vadd.f32 %v4904_v27, %v4677_v40  ;;  %v14903_v49 = vld [vmem:[#allocation8_spill] sm:$0xff]  ;;  %v14904_v2 = vld [vmem:[#allocation9_spill] sm:$0xff] }
 0x8e3   : > { %v4253_v37 = vmul.f32 %v12208_v54, %v14900_v62  ;;  %v4959_v11 = vadd.f32 %v4927_v44, %v4700_v17  ;;  %v5292_v23 = vmul.f32 %v12672_v13, %v14901_v63  ;;  %v5978_v33 = vadd.f32 %v5946_v34, %v5784_v26  ;;  %v5281_v27 = vpop.permute.xlu1 %5280  ;;  %v14906_v32 = vld [vmem:[#allocation33_spill] sm:$0xff]  ;;  %v14907_v44 = vld [vmem:[#allocation263_spill] sm:$0xff] }
 0x8e4   : > { %v4263_v29 = vmul.f32 %v12208_v54, %v14902_v57  ;;  %v4639_v36 = vmul.f32 %v12259_v60, %v14903_v49  ;;  %v4648_v43 = vmul.f32 %v12259_v60, %v14904_v2  ;;  %v5130_v21 = vadd.f32 %v5098_v39, %v4936_v1  ;;  %5637 = vperm.xlu1 %6443, %v14905_v45   ;;  %v14908_v34 = vld [vmem:[#allocation583_spill] sm:$0xff]  ;;  %v14909_v63 = vld [vmem:[#allocation97_spill] sm:$0xff]  ;;  %v14911_v45 = vld [vmem:[#allocation606_spill] sm:$0xff] }
 0x8e5   : > { %v5153_v40 = vadd.f32 %v5121_v4, %v4959_v11  ;;  %v5593_v17 = vadd.f32 %v14907_v44, %v14906_v32  ;;  %v6014_v59 = vadd.f32 %v12550_v15, %v5978_v33  ;;  %v5315_v26 = vmul.f32 %v12672_v13, %v5281_v27  ;;  %v14910_v39 = vld [vmem:[#allocation99_spill] sm:$0xff]  ;;  %v5425_v49 = vpop.permute.xlu2 %5424 }
 0x8e6   : > { %5641 = vperm.xlu2 %6442, %v14908_v34   ;;  %v4477_v6 = vadd.f32 %v4445_v20, %v4283_v10  ;;  %v4486_v62 = vadd.f32 %v4454_v3, %v4292_v47  ;;  %v4898_v57 = vmul.f32 %v12281_v55, %v14909_v63  ;;  %v4907_v1 = vmul.f32 %v12281_v55, %v14910_v39  ;;  %v14912_v10 = vld [vmem:[#allocation289_spill] sm:$0xff]  ;;  %v14915_v63 = vld [vmem:[#allocation607_spill] sm:$0xff] }
 0x8e7   : > { %v5324_v4 = vadd.f32 %v5292_v23, %v5130_v21  ;;  %v6046_v11 = vmax.f32 %v6014_v59, 0.0  ;;  %v12764_v2 = vadd.f32 %v5315_v26, %v5153_v40  ;;  %v5551_v33 = vmul.f32 %v12636_v61, %v5425_v49  ;;  %v5876_v20 = vpop.permute.xlu0 %5875  ;;  %v14913_v3 = vld [vmem:[#allocation553_spill] sm:$0xff]  ;;  %v14914_v21 = vld [vmem:[#allocation148_spill] sm:$0xff] }
 0x8e8   : > { %v4447_v27 = vmul.f32 %v12231_v38, %v14911_v45  ;;  %v4671_v32 = vadd.f32 %v4639_v36, %v4477_v6  ;;  %v4680_v44 = vadd.f32 %v4648_v43, %v4486_v62  ;;  %v5092_v47 = vmul.f32 %v12689_v46, %v14912_v10  ;;  %v14916_v6 = vld [vmem:[#allocation19_spill] sm:$0xff]  ;;  %v14917_v45 = vld [vmem:[#allocation533_spill] sm:$0xff] }
 0x8e9   : > { %v5101_v34 = vmul.f32 %v12689_v46, %v14913_v3  ;;  %6079 = vst.msk [vmem:[%s12582_s11 + $0x78] sm:$0xff] %vm6063_vm0, %v6046_v11  ;;  %v12775_v23 = vadd.f32 %v5551_v33, %v5324_v4  ;;  %v5787_v40 = vadd.f32 %v14914_v21, %v5593_v17  ;;  %v5949_v59 = vmul.f32 %v12523_v42, %v5876_v20  ;;  %v14918_v33 = vld [vmem:[#allocation575_spill] sm:$0xff]  ;;  %v14919_v10 = vld [vmem:[#allocation17_spill] sm:$0xff] }
 0x8ea   : > { %v4285_v26 = vadd.f32 %v4253_v37, %v12453_v53  ;;  %v4457_v36 = vmul.f32 %v12231_v38, %v14915_v63  ;;  %v4930_v43 = vadd.f32 %v4898_v57, %v4671_v32  ;;  %v5286_v62 = vmul.f32 %v12672_v13, %v14916_v6  ;;  %v14920_v37 = vld [vmem:[#allocation27_spill] sm:$0xff]  ;;  %v14921_v32 = vld [vmem:[#allocation344_spill] sm:$0xff] }
 0x8eb   : > { %v4295_v39 = vadd.f32 %v4263_v29, %v12465_v18  ;;  %v4939_v49 = vadd.f32 %v4907_v1, %v4680_v44  ;;  %v5295_v4 = vmul.f32 %v12672_v13, %v14917_v45  ;;  %v5981_v11 = vadd.f32 %v5949_v59, %v5787_v40  ;;  %v14922_v18 = vld [vmem:[#allocation125_spill] sm:$0xff]  ;;  %v14923_v44 = vld [vmem:[#allocation608_spill] sm:$0xff]  ;;  %v5395_v40 = vpop.permute.xlu1 %5394 }
 0x8ec   : > { %v4256_v17 = vmul.f32 %v12208_v54, %v14918_v33  ;;  %v4641_v53 = vmul.f32 %v12259_v60, %v14919_v10  ;;  %v4651_v20 = vmul.f32 %v12259_v60, %v14920_v37  ;;  %v5124_v57 = vadd.f32 %v5092_v47, %v4930_v43  ;;  %5649 = vperm.xlu1 %6443, %v14921_v32   ;;  %v14924_v63 = vld [vmem:[#allocation100_spill] sm:$0xff]  ;;  %v14925_v33 = vld [vmem:[#allocation102_spill] sm:$0xff]  ;;  %v14926_v10 = vld [vmem:[#allocation135_spill] sm:$0xff] }
 0x8ed   : > { %v4479_v3 = vadd.f32 %v4447_v27, %v4285_v26  ;;  %v5133_v21 = vadd.f32 %v5101_v34, %v4939_v49  ;;  %v5596_v29 = vadd.f32 %v14922_v18, %v12310_v0  ;;  %v6017_v1 = vadd.f32 %v12550_v15, %v5981_v11  ;;  %v5440_v43 = vpop.permute.xlu2 %5439  ;;  %v14927_v32 = vld [vmem:[#allocation136_spill] sm:$0xff]  ;;  %v14928_v18 = vld [vmem:[#allocation586_spill] sm:$0xff] }
 0x8ee   : > { %5653 = vperm.xlu2 %6442, %v14923_v44   ;;  %v4489_v59 = vadd.f32 %v4457_v36, %v4295_v39  ;;  %v4900_v6 = vmul.f32 %v12281_v55, %v14924_v63  ;;  %v5318_v45 = vadd.f32 %v5286_v62, %v5124_v57  ;;  %v5545_v47 = vmul.f32 %v12636_v61, %v5395_v40  ;;  %v14930_v44 = vld [vmem:[#allocation320_spill] sm:$0xff] }
 0x8ef   : > { %v4910_v27 = vmul.f32 %v12281_v55, %v14925_v33  ;;  %v5327_v34 = vadd.f32 %v5295_v4, %v5133_v21  ;;  %v6049_v26 = vmax.f32 %v6017_v1, 0.0  ;;  %v5554_v0 = vmul.f32 %v12636_v61, %v5440_v43  ;;  %v5888_v39 = vpop.permute.xlu0 %5887  ;;  %v14933_v33 = vld [vmem:[#allocation509_spill] sm:$0xff] }
 0x8f0   : > { %v4673_v49 = vadd.f32 %v4641_v53, %v4479_v3  ;;  %v4683_v11 = vadd.f32 %v4651_v20, %v4489_v59  ;;  %v5094_v37 = vmul.f32 %v12689_v46, %v14926_v10  ;;  %v12806_v36 = vadd.f32 %v5545_v47, %v5318_v45  ;;  %v14929_v20 = vld [vmem:[#allocation609_spill] sm:$0xff]  ;;  %v14931_v59 = vld [vmem:[#allocation516_spill] sm:$0xff] }
 0x8f1   : > { %v5104_v62 = vmul.f32 %v12689_v46, %v14927_v32  ;;  %6082 = vst.msk [vmem:[%s12582_s11 + $0x90] sm:$0xff] %vm6063_vm0, %v6049_v26  ;;  %v12812_v57 = vadd.f32 %v5554_v0, %v5327_v34  ;;  %v5790_v4 = vadd.f32 %v14928_v18, %v5596_v29  ;;  %v5952_v21 = vmul.f32 %v12523_v42, %v5888_v39  ;;  %v14932_v47 = vld [vmem:[#allocation48_spill] sm:$0xff] }
 0x8f2   : > { %v4028_v53 = vadd.f32 %v12469_v25, %v12314_v31  ;;  %v4450_v3 = vmul.f32 %v12231_v38, %v14929_v20  ;;  %v4932_v1 = vadd.f32 %v4900_v6, %v4673_v49  ;;  %v5288_v40 = vmul.f32 %v12672_v13, %v14930_v44  ;;  %v14934_v34 = vld [vmem:[#allocation628_spill] sm:$0xff]  ;;  %v14935_v31 = vld [vmem:[#allocation26_spill] sm:$0xff] }
 0x8f3   : > { %v3805_v63 = vmul.f32 %v12123_v16, %v14931_v59  ;;  %v4942_v45 = vadd.f32 %v4910_v27, %v4683_v11  ;;  %v5298_v43 = vmul.f32 %v12672_v13, %v14932_v47  ;;  %v5984_v29 = vadd.f32 %v5952_v21, %v5790_v4  ;;  %v14936_v6 = vld [vmem:[#allocation4_spill] sm:$0xff]  ;;  %v14937_v49 = vld [vmem:[#allocation546_spill] sm:$0xff]  ;;  %v14939_v4 = vld [vmem:[#allocation295_spill] sm:$0xff]  ;;  %v5405_v21 = vpop.permute.xlu1 %5404 }
 0x8f4   : > { %v5761_v26 = vmul.f32 %v14934_v34, %v14933_v33  ;;  %v4288_v0 = vadd.f32 %v4256_v17, %v4028_v53  ;;  %v4644_v25 = vmul.f32 %v12259_v60, %v14935_v31  ;;  %v5126_v10 = vadd.f32 %v5094_v37, %v4932_v1  ;;  %5661 = vperm.xlu1 %6443, %v14936_v6   ;;  %v14938_v27 = vld [vmem:[#allocation128_spill] sm:$0xff]  ;;  %v14941_v59 = vld [vmem:[#allocation143_spill] sm:$0xff]  ;;  %v14942_v33 = vld [vmem:[#allocation578_spill] sm:$0xff] }
 0x8f5   : > { %v3999_v39 = vmul.f32 %v12183_v12, %v14937_v49  ;;  %v5136_v32 = vadd.f32 %v5104_v62, %v4942_v45  ;;  %v5599_v11 = vadd.f32 %v14938_v27, %v12374_v8  ;;  %v6020_v18 = vadd.f32 %v12550_v15, %v5984_v29  ;;  %v14940_v17 = vld [vmem:[#allocation92_spill] sm:$0xff]  ;;  %v14943_v31 = vld [vmem:[#allocation314_spill] sm:$0xff] }
 0x8f6   : > { %5665 = vperm.xlu2 %6442, %v14939_v4   ;;  %v4482_v20 = vadd.f32 %v4450_v3, %v4288_v0  ;;  %v4903_v53 = vmul.f32 %v12281_v55, %v14940_v17  ;;  %v5320_v37 = vadd.f32 %v5288_v40, %v5126_v10  ;;  %v5547_v1 = vmul.f32 %v12636_v61, %v5405_v21  ;;  %v5455_v44 = vpop.permute.xlu2 %5454  ;;  %v6697_v40 = vld [vmem:[%s13246_s1 + $0x14] ss:$0 sm:$0xff]  ;;  %v14944_v10 = vld [vmem:[#allocation486_spill] sm:$0xff]  ;;  %v14947_v17 = vld [vmem:[#allocation137_spill] sm:$0xff] }
 0x8f7   : > { %v3837_v47 = vadd.f32 %v3805_v63, %v14941_v59  ;;  %v5330_v62 = vadd.f32 %v5298_v43, %v5136_v32  ;;  %v6052_v45 = vmax.f32 %v6020_v18, 0.0  ;;  %v5557_v8 = vmul.f32 %v12636_v61, %v5455_v44  ;;  %v5900_v6 = vpop.permute.xlu0 %5899  ;;  %v14945_v27 = vld [vmem:[#allocation612_spill] sm:$0xff]  ;;  %v14949_v44 = vld [vmem:[#allocation317_spill] sm:$0xff] }
 0x8f8   : > { %v4259_v29 = vmul.f32 %v12208_v54, %v14942_v33  ;;  %v4676_v34 = vadd.f32 %v4644_v25, %v4482_v20  ;;  %v5097_v3 = vmul.f32 %v12689_v46, %v14943_v31  ;;  %v12846_v0 = vadd.f32 %v5547_v1, %v5320_v37  ;;  %v14946_v20 = vld [vmem:[#allocation266_spill] sm:$0xff]  ;;  %v14953_v31 = vld [vmem:[#allocation548_spill] sm:$0xff] }
 0x8f9   : > { %v3614_v63 = vmul.f32 %v6697_v40, %v14944_v10  ;;  %6085 = vst.msk [vmem:[%s12582_s11 + $0xa8] sm:$0xff] %vm6063_vm0, %v6052_v45  ;;  %v12854_v43 = vadd.f32 %v5557_v8, %v5330_v62  ;;  %v5793_v49 = vadd.f32 %v5761_v26, %v5599_v11  ;;  %v5955_v32 = vmul.f32 %v12523_v42, %v5900_v6  ;;  %v14948_v1 = vld [vmem:[#allocation530_spill] sm:$0xff]  ;;  %v14950_v45 = vld [vmem:[#allocation519_spill] sm:$0xff]  ;;  %v14951_v11 = vld [vmem:[#allocation456_spill] sm:$0xff] }
 0x8fa   : > { %v4031_v25 = vadd.f32 %v3999_v39, %v3837_v47  ;;  %v4453_v18 = vmul.f32 %v12231_v38, %v14945_v27  ;;  %v4935_v4 = vadd.f32 %v4903_v53, %v4676_v34  ;;  %v5291_v21 = vmul.f32 %v12672_v13, %v12319_v24  ;;  %v6698_v39 = vld [vmem:[%s13246_s1 + $0x12] ss:$0 sm:$0xff]  ;;  %v14952_v8 = vld [vmem:[#allocation45_spill] sm:$0xff] }
 0x8fb   : > { %v3196_v37 = vadd.f32 %v14947_v17, %v14946_v20  ;;  %v3387_v59 = vadd.f32 %v14949_v44, %v14948_v1  ;;  %v3808_v62 = vmul.f32 %v12123_v16, %v14950_v45  ;;  %v5987_v26 = vadd.f32 %v5955_v32, %v5793_v49  ;;  %v14954_v16 = vld [vmem:[#allocation131_spill] sm:$0xff]  ;;  %v14955_v32 = vld [vmem:[#allocation632_spill] sm:$0xff]  ;;  %v14958_v44 = vld [vmem:[#allocation581_spill] sm:$0xff] }
 0x8fc   : > { %v3358_v47 = vmul.f32 %v6698_v39, %v14951_v11  ;;  %v4291_v53 = vadd.f32 %v4259_v29, %v4031_v25  ;;  %v4647_v24 = vmul.f32 %v12259_v60, %v14952_v8  ;;  %v5129_v33 = vadd.f32 %v5097_v3, %v4935_v4  ;;  %5673 = vperm.xlu1 %6443, %v12286_v48   ;;  %v5420_v27 = vpop.permute.xlu1 %5419  ;;  %v14956_v29 = vld [vmem:[#allocation95_spill] sm:$0xff] }
 0x8fd   : > { %v3646_v34 = vadd.f32 %v3614_v63, %v3387_v59  ;;  %v4002_v6 = vmul.f32 %v12183_v12, %v14953_v31  ;;  %v5602_v10 = vadd.f32 %v14954_v16, %v12440_v41  ;;  %v6023_v49 = vadd.f32 %v12550_v15, %v5987_v26  ;;  %v12886_v12 = vld [vmem:[%s13246_s1 + $0x21] ss:$0 sm:$0xff]  ;;  %v14957_v41 = vld [vmem:[#allocation512_spill] sm:$0xff]  ;;  %v14961_v16 = vld [vmem:[#allocation615_spill] sm:$0xff] }
 0x8fe   : > { %5677 = vperm.xlu2 %6442, %v14955_v32   ;;  %v4485_v20 = vadd.f32 %v4453_v18, %v4291_v53  ;;  %v4906_v25 = vmul.f32 %v12281_v55, %v14956_v29  ;;  %v5323_v3 = vadd.f32 %v5291_v21, %v5129_v33  ;;  %v5550_v48 = vmul.f32 %v12636_v61, %v5420_v27  ;;  %v5470_v63 = vpop.permute.xlu2 %5469  ;;  %v14959_v21 = vld [vmem:[#allocation580_spill] sm:$0xff]  ;;  %v14960_v53 = vld [vmem:[#allocation489_spill] sm:$0xff]  ;;  %v14962_v32 = vld [vmem:[#allocation251_spill] sm:$0xff] }
 0x8ff   : > { %v5764_v4 = vmul.f32 %v12886_v12, %v14957_v41  ;;  %v3840_v17 = vadd.f32 %v3808_v62, %v3646_v34  ;;  %v6055_v1 = vmax.f32 %v6023_v49, 0.0  ;;  %v5560_v18 = vmul.f32 %v12636_v61, %v5470_v63 }
 0x900   : > { %v4262_v59 = vmul.f32 %v12208_v54, %v14958_v44  ;;  %v4679_v45 = vadd.f32 %v4647_v24, %v4485_v20  ;;  %v5100_v26 = vmul.f32 %v12689_v46, %v14959_v21  ;;  %v12895_v39 = vadd.f32 %v5550_v48, %v5323_v3  ;;  %v5912_v11 = vpop.permute.xlu0 %5911  ;;  %v14963_v20 = vld [vmem:[#allocation521_spill] sm:$0xff] }
 0x901   : > { %v3617_v8 = vmul.f32 %v6697_v40, %v14960_v53  ;;  %6088 = vst.msk [vmem:[%s12582_s11 + $0xc0] sm:$0xff] %vm6063_vm0, %v6055_v1  ;;  %v12901_v33 = vadd.f32 %v5560_v18, %v12345_v30  ;;  %v5796_v62 = vadd.f32 %v5764_v4, %v5602_v10  ;;  %v5958_v34 = vmul.f32 %v12523_v42, %v5912_v11  ;;  %v6700_v30 = vld [vmem:[%s13246_s1 + $0x15] ss:$0 sm:$0xff]  ;;  %v14966_v4 = vld [vmem:[#allocation146_spill] sm:$0xff]  ;;  %v6702_v53 = vld [vmem:[%s13246_s1 + $0x18] ss:$0 sm:$0xff] }
 0x902   : > { %v4034_v31 = vadd.f32 %v4002_v6, %v3840_v17  ;;  %v4456_v54 = vmul.f32 %v12231_v38, %v14961_v16  ;;  %v4938_v24 = vadd.f32 %v4906_v25, %v4679_v45  ;;  %v5294_v49 = vmul.f32 %v12672_v13, %v12383_v35  ;;  %v14964_v6 = vld [vmem:[#allocation44_spill] sm:$0xff]  ;;  %v14968_v45 = vld [vmem:[#allocation515_spill] sm:$0xff] }
 0x903   : > { %v5573_v27 = vmul.f32 %v12636_v61, %v14962_v32  ;;  %v3390_v40 = vadd.f32 %v3358_v47, %v3196_v37  ;;  %v3811_v10 = vmul.f32 %v6700_v30, %v14963_v20  ;;  %v5990_v29 = vadd.f32 %v5958_v34, %v5796_v62  ;;  %v6701_v35 = vld [vmem:[%s13246_s1 + $0x16] ss:$0 sm:$0xff]  ;;  %v14965_v37 = vld [vmem:[#allocation551_spill] sm:$0xff]  ;;  %v14971_v30 = vld [vmem:[#allocation618_spill] sm:$0xff] }
 0x904   : > { %v4294_v3 = vadd.f32 %v4262_v59, %v4034_v31  ;;  %v4650_v48 = vmul.f32 %v12259_v60, %v14964_v6  ;;  %v5132_v38 = vadd.f32 %v5100_v26, %v4938_v24  ;;  %5685 = vperm.xlu1 %6443, %v12348_v22   ;;  %v4005_v47 = vmul.f32 %v6701_v35, %v14965_v37  ;;  %v5435_v17 = vpop.permute.xlu1 %5434  ;;  %v14967_v60 = vld [vmem:[#allocation98_spill] sm:$0xff]  ;;  %v14973_v35 = vld [vmem:[#allocation272_spill] sm:$0xff] }
 0x905   : > { %v3649_v25 = vadd.f32 %v3617_v8, %v3390_v40  ;;  %v5605_v63 = vadd.f32 %v5573_v27, %v12501_v52  ;;  %v6026_v41 = vadd.f32 %v12550_v15, %v5990_v29  ;;  %v4909_v18 = vmul.f32 %v12281_v55, %v14967_v60  ;;  %v14969_v8 = vld [vmem:[#allocation584_spill] sm:$0xff]  ;;  %v14970_v31 = vld [vmem:[#allocation134_spill] sm:$0xff]  ;;  %v6703_v40 = vld [vmem:[%s13246_s1 + $0x19] ss:$0 sm:$0xff] }
 0x906   : > { %5689 = vperm.xlu2 %6442, %v14966_v4   ;;  %v4488_v1 = vadd.f32 %v4456_v54, %v4294_v3  ;;  %v5326_v22 = vadd.f32 %v5294_v49, %v5132_v38  ;;  %v5553_v44 = vmul.f32 %v12636_v61, %v5435_v17  ;;  %v5485_v59 = vpop.permute.xlu2 %5484  ;;  %v5767_v21 = vmul.f32 %v12886_v12, %v14968_v45  ;;  %v14975_v4 = vld [vmem:[#allocation106_spill] sm:$0xff] }
 0x907   : > { %v3843_v26 = vadd.f32 %v3811_v10, %v3649_v25  ;;  %v6058_v11 = vmax.f32 %v6026_v41, 0.0  ;;  %v5563_v52 = vmul.f32 %v12636_v61, %v5485_v59  ;;  %v4265_v62 = vmul.f32 %v6702_v53, %v14969_v8  ;;  %v14976_v45 = vld [vmem:[#allocation138_spill] sm:$0xff]  ;;  %v14978_v8 = vld [vmem:[#allocation21_spill] sm:$0xff] }
 0x908   : > { %v4682_v34 = vadd.f32 %v4650_v48, %v4488_v1  ;;  %v5103_v55 = vmul.f32 %v12689_v46, %v14970_v31  ;;  %v12936_v16 = vadd.f32 %v5553_v44, %v5326_v22  ;;  %v5924_v54 = vpop.permute.xlu0 %5923  ;;  %v5799_v49 = vadd.f32 %v5767_v21, %v5605_v63  ;;  %v14972_v48 = vld [vmem:[#allocation61_spill] sm:$0xff]  ;;  %v14979_v31 = vld [vmem:[#allocation611_spill] sm:$0xff] }
 0x909   : > { %6091 = vst.msk [vmem:[%s12582_s11 + $0xd8] sm:$0xff] %vm6063_vm0, %v6058_v11  ;;  %v12941_v24 = vadd.f32 %v5563_v52, %v12411_v56  ;;  %v5961_v32 = vmul.f32 %v12523_v42, %v5924_v54  ;;  %v4037_v27 = vadd.f32 %v4005_v47, %v3843_v26  ;;  %v4459_v20 = vmul.f32 %v6703_v40, %v14971_v30  ;;  %v6704_v56 = vld [vmem:[%s13246_s1 + $0x1a] ss:$0 sm:$0xff]  ;;  %v14977_v11 = vld [vmem:[#allocation347_spill] sm:$0xff] }
 0x90a   : > { %v4941_v10 = vadd.f32 %v4909_v18, %v4682_v34  ;;  %v5297_v29 = vmul.f32 %v12672_v13, %v12450_v51  ;;  %v4653_v38 = vmul.f32 %v6704_v56, %v14972_v48  ;;  %v14974_v47 = vld [vmem:[#allocation633_spill] sm:$0xff]  ;;  %v5106_v21 = vmul.f32 %v12689_v46, %v14976_v45  ;;  %v14982_v48 = vld [vmem:[#allocation22_spill] sm:$0xff] }
 0x90b   : > { %v5993_v3 = vadd.f32 %v5961_v32, %v5799_v49  ;;  %v4297_v6 = vadd.f32 %v4265_v62, %v4037_v27  ;;  %v6705_v51 = vld [vmem:[%s13246_s1 + $0x1c] ss:$0 sm:$0xff]  ;;  %v5300_v62 = vmul.f32 %v12672_v13, %v14978_v8 }
 0x90c   : > { %v5135_v25 = vadd.f32 %v5103_v55, %v4941_v10  ;;  %5697 = vperm.xlu1 %6443, %v14973_v35   ;;  %v4912_v17 = vmul.f32 %v6705_v51, %v14975_v4  ;;  %v14980_v55 = vld [vmem:[#allocation374_spill] sm:$0xff]  ;;  %v6706_v35 = vld [vmem:[%s6773_s17 + $0x32] sm:$0xff] }
 0x90d   : > { %v6029_v37 = vadd.f32 %v12550_v15, %v5993_v3  ;;  %v5450_v63 = vpop.permute.xlu1 %5449  ;;  %v4491_v41 = vadd.f32 %v4459_v20, %v4297_v6  ;;  %v14981_v6 = vld [vmem:[#allocation536_spill] sm:$0xff] }
 0x90e   : > { %5701 = vperm.xlu2 %6442, %v14974_v47   ;;  %v5329_v1 = vadd.f32 %v5297_v29, %v5135_v25  ;;  %v5556_v60 = vmul.f32 %v12636_v61, %v5450_v63  ;;  %v5500_v18 = vpop.permute.xlu2 %5499 }
 0x90f   : > { %v6061_v22 = vmax.f32 %v6029_v37, 0.0  ;;  %v5566_v44 = vmul.f32 %v12636_v61, %v5500_v18  ;;  %v4685_v59 = vadd.f32 %v4653_v38, %v4491_v41  ;;  %v6707_v41 = vld [vmem:[%s6773_s17 + $0x4a] sm:$0xff] }
 0x910   : > { %v12965_v26 = vadd.f32 %v5556_v60, %v5329_v1  ;;  %v14984_v60 = vld [vmem:[#allocation149_spill] sm:$0xff] }
 0x911   : > { %6094 = vst.msk [vmem:[%s12582_s11 + $0xf0] sm:$0xff] %vm6063_vm0, %v6061_v22  ;;  %v12970_v52 = vadd.f32 %v5566_v44, %v14977_v11  ;;  %v4944_v53 = vadd.f32 %v4912_v17, %v4685_v59  ;;  %v6708_v17 = vld [vmem:[%s6773_s17 + $0x52] sm:$0xff]  ;;  %v14985_v22 = vld [vmem:[#allocation10_spill] sm:$0xff] }
 0x912   : > { %v6709_v44 = vld [vmem:[%s6773_s17 + $0x62] sm:$0xff] }
 0x913   : > { %v5138_v34 = vadd.f32 %v5106_v21, %v4944_v53  ;;  %v6710_v21 = vld [vmem:[%s6773_s17 + $0x6a] sm:$0xff] }
 0x914   : > { %5709 = vperm.xlu1 %6443, %v14979_v31  }
 0x915   : > { %v5465_v54 = vpop.permute.xlu1 %5464  ;;  %v5332_v49 = vadd.f32 %v5300_v62, %v5138_v34  ;;  %v6711_v34 = vld [vmem:[%s6773_s17 + $0x82] sm:$0xff] }
 0x916   : > { %5713 = vperm.xlu2 %6442, %v14980_v55   ;;  %v5559_v46 = vmul.f32 %v12636_v61, %v5465_v54  ;;  %v5515_v32 = vpop.permute.xlu2 %5514 }
 0x917   : > { %v5569_v27 = vmul.f32 %v12636_v61, %v5515_v32 }
 0x918   : > { %v12978_v40 = vadd.f32 %v5559_v46, %v5332_v49  ;;  %v6712_v46 = vld [vmem:[%s6773_s17 + $0x92] sm:$0xff] }
 0x919   : > { %v12981_v30 = vadd.f32 %v5569_v27, %v12539_v19  ;;  %v14983_v19 = vmov 2  }
 0x91c   : > { %5721 = vperm.xlu1 %6443, %v12542_v14  }
 0x91d   : > { %v5480_v13 = vpop.permute.xlu1 %5479 }
 0x91e   : > { %5725 = vperm.xlu2 %6442, %v12554_v5   ;;  %v5562_v20 = vmul.f32 %v12636_v61, %v5480_v13  ;;  %v5530_v10 = vpop.permute.xlu2 %5529 }
 0x91f   : > { %v5572_v29 = vmul.f32 %v12636_v61, %v5530_v10 }
 0x920   : > { %v12988_v3 = vadd.f32 %v5562_v20, %v12587_v9  ;;  %v6714_v20 = vld [vmem:[%s6773_s17 + $0xb2] sm:$0xff] }
 0x921   : > { %v12991_v56 = vadd.f32 %v5572_v29, %v14981_v6 }
 0x924   : > { %5733 = vperm.xlu1 %6443, %v14982_v48  }
 0x925   : > { %v5495_v38 = vpop.permute.xlu1 %5494 }
 0x926   : > { %6445 = vset.pattern.permute.xlu2 %v14983_v19  ;;  %v5565_v25 = vmul.f32 %v12636_v61, %v5495_v38  ;;  %v6716_v38 = vld [vmem:[%s6773_s17 + $0xda] sm:$0xff] }
 0x927   : > { %5803 = vperm.xlu2 %6445, %v6706_v35  }
 0x928   : > { %v5610_v37 = vpop.permute.xlu2 %5609  ;;  %v12998_v47 = vadd.f32 %v5565_v25, %v12631_v28 }
 0x929   : > { %v5737_v9 = vmul.f32 %v12886_v12, %v5610_v37 }
 0x92b   : > { %v13002_v63 = vadd.f32 %v5737_v9, %v12647_v50 }
 0x92c   : > { %6446 = vset.pattern.permute.xlu1 %v14983_v19 }
 0x92d   : > { %5811 = vperm.xlu1 %6446, %v6707_v41   ;;  %v5510_v51 = vpop.permute.xlu1 %5509 }
 0x92e   : > { %v5568_v4 = vmul.f32 %v12636_v61, %v5510_v51  ;;  %v6718_v51 = vld [vmem:[%s6773_s17 + $0xfa] sm:$0xff] }
 0x92f   : > { %5815 = vperm.xlu2 %6445, %v6708_v17  }
 0x930   : > { %v5622_v1 = vpop.permute.xlu2 %5621  ;;  %v13009_v28 = vadd.f32 %v5568_v4, %v14984_v60 }
 0x931   : > { %v5740_v18 = vmul.f32 %v12886_v12, %v5622_v1 }
 0x933   : > { %v13013_v50 = vadd.f32 %v5740_v18, %v14985_v22  ;;  %v6720_v22 = vld [vmem:[%s6773_s17 + $0x122] sm:$0xff] }
 0x935   : > { %5819 = vperm.xlu1 %6446, %v6709_v44   ;;  %v5525_v59 = vpop.permute.xlu1 %5524 }
 0x936   : > { %v5571_v45 = vmul.f32 %v12636_v61, %v5525_v59 }
 0x937   : > { %5823 = vperm.xlu2 %6445, %v6710_v21  }
 0x938   : > { %v5630_v11 = vpop.permute.xlu2 %5629  ;;  %v13019_v53 = vadd.f32 %v5571_v45, %v12725_v7 }
 0x939   : > { %v5742_v8 = vmul.f32 %v12886_v12, %v5630_v11 }
 0x93b   : > { %v13023_v62 = vadd.f32 %v5742_v8, %v12735_v58  ;;  %v6713_v58 = vld [vmem:[%s6773_s17 + $0xaa] sm:$0xff] }
 0x93d   : > { %5831 = vperm.xlu1 %6446, %v6711_v34   ;;  %v5540_v54 = vpop.permute.xlu1 %5539 }
 0x93e   : > { %v5574_v49 = vmul.f32 %v12636_v61, %v5540_v54 }
 0x93f   : > { %5835 = vperm.xlu2 %6445, %v6712_v46  }
 0x940   : > { %v5642_v32 = vpop.permute.xlu2 %5641  ;;  %v13029_v27 = vadd.f32 %v5574_v49, %v12764_v2 }
 0x941   : > { %v5745_v7 = vmul.f32 %v12886_v12, %v5642_v32 }
 0x943   : > { %v13033_v13 = vadd.f32 %v5745_v7, %v12775_v23  ;;  %v6715_v23 = vld [vmem:[%s6773_s17 + $0xca] sm:$0xff] }
 0x945   : > { %5843 = vperm.xlu1 %6446, %v6713_v58  }
 0x946   : > { %v5618_v10 = vpop.permute.xlu1 %5617 }
 0x947   : > { %5847 = vperm.xlu2 %6445, %v6714_v20   ;;  %v5739_v61 = vmul.f32 %v12886_v12, %v5618_v10 }
 0x948   : > { %v5654_v29 = vpop.permute.xlu2 %5653 }
 0x949   : > { %v5748_v6 = vmul.f32 %v12886_v12, %v5654_v29  ;;  %v13040_v2 = vadd.f32 %v5739_v61, %v12806_v36 }
 0x94b   : > { %v13043_v19 = vadd.f32 %v5748_v6, %v12812_v57  ;;  %v6717_v57 = vld [vmem:[%s6773_s17 + $0xf2] sm:$0xff] }
 0x94d   : > { %5855 = vperm.xlu1 %6446, %v6715_v23  }
 0x94e   : > { %v5626_v25 = vpop.permute.xlu1 %5625 }
 0x94f   : > { %5859 = vperm.xlu2 %6445, %v6716_v38   ;;  %v5741_v35 = vmul.f32 %v12886_v12, %v5626_v25 }
 0x950   : > { %v5666_v37 = vpop.permute.xlu2 %5665 }
 0x951   : > { %v5751_v9 = vmul.f32 %v12886_v12, %v5666_v37  ;;  %v13050_v41 = vadd.f32 %v5741_v35, %v12846_v0 }
 0x953   : > { %v13053_v36 = vadd.f32 %v5751_v9, %v12854_v43  ;;  %v6719_v43 = vld [vmem:[%s6773_s17 + $0x112] sm:$0xff] }
 0x955   : > { %5867 = vperm.xlu1 %6446, %v6717_v57  }
 0x956   : > { %v5638_v4 = vpop.permute.xlu1 %5637 }
 0x957   : > { %5871 = vperm.xlu2 %6445, %v6718_v51   ;;  %v5744_v17 = vmul.f32 %v12886_v12, %v5638_v4 }
 0x958   : > { %v5678_v1 = vpop.permute.xlu2 %5677 }
 0x959   : > { %v5754_v60 = vmul.f32 %v12886_v12, %v5678_v1  ;;  %v13060_v18 = vadd.f32 %v5744_v17, %v12895_v39  ;;  %v6721_v39 = vld [vmem:[%s6773_s17 + $0x13a] sm:$0xff] }
 0x95b   : > { %v13063_v0 = vadd.f32 %v5754_v60, %v12901_v33  ;;  %v6722_v33 = vld [vmem:[%s6773_s17 + $0x142] sm:$0xff] }
 0x95d   : > { %5879 = vperm.xlu1 %6446, %v6719_v43  }
 0x95e   : > { %v5650_v44 = vpop.permute.xlu1 %5649 }
 0x95f   : > { %5883 = vperm.xlu2 %6445, %v6720_v22   ;;  %v5747_v59 = vmul.f32 %v12886_v12, %v5650_v44 }
 0x960   : > { %v5690_v45 = vpop.permute.xlu2 %5689 }
 0x961   : > { %v5757_v21 = vmul.f32 %v12886_v12, %v5690_v45  ;;  %v13070_v11 = vadd.f32 %v5747_v59, %v12936_v16 }
 0x963   : > { %v13073_v8 = vadd.f32 %v5757_v21, %v12941_v24 }
 0x965   : > { %5891 = vperm.xlu1 %6446, %v6721_v39  }
 0x966   : > { %v5662_v34 = vpop.permute.xlu1 %5661 }
 0x967   : > { %5895 = vperm.xlu2 %6445, %v6722_v33   ;;  %v5750_v54 = vmul.f32 %v12886_v12, %v5662_v34 }
 0x968   : > { %v5702_v49 = vpop.permute.xlu2 %5701 }
 0x969   : > { %v5760_v46 = vmul.f32 %v12886_v12, %v5702_v49  ;;  %v13080_v32 = vadd.f32 %v5750_v54, %v12965_v26 }
 0x96b   : > { %v13083_v7 = vadd.f32 %v5760_v46, %v12970_v52 }
 0x96d   : > { %5903 = vperm.xlu1 %6446, %v14979_v31  }
 0x96e   : > { %v5674_v16 = vpop.permute.xlu1 %5673 }
 0x96f   : > { %5907 = vperm.xlu2 %6445, %v14980_v55   ;;  %v5753_v24 = vmul.f32 %v12886_v12, %v5674_v16 }
 0x970   : > { %v5714_v58 = vpop.permute.xlu2 %5713 }
 0x971   : > { %v5763_v20 = vmul.f32 %v12886_v12, %v5714_v58  ;;  %v13090_v10 = vadd.f32 %v5753_v24, %v12978_v40 }
 0x973   : > { %v13093_v61 = vadd.f32 %v5763_v20, %v12981_v30 }
 0x975   : > { %5915 = vperm.xlu1 %6446, %v12542_v14  }
 0x976   : > { %v5686_v26 = vpop.permute.xlu1 %5685 }
 0x977   : > { %5919 = vperm.xlu2 %6445, %v12554_v5   ;;  %v5756_v52 = vmul.f32 %v12886_v12, %v5686_v26 }
 0x978   : > { %v5726_v31 = vpop.permute.xlu2 %5725 }
 0x979   : > { %v5766_v55 = vmul.f32 %v12886_v12, %v5726_v31  ;;  %v13100_v29 = vadd.f32 %v5756_v52, %v12988_v3 }
 0x97b   : > { %v13103_v40 = vadd.f32 %v5766_v55, %v12991_v56 }
 0x97d   : > { %5927 = vperm.xlu1 %6446, %v14982_v48  }
 0x97e   : > { %v5698_v30 = vpop.permute.xlu1 %5697 }
 0x97f   : > { %v5759_v14 = vmul.f32 %v12886_v12, %v5698_v30 }
 0x981   : > { %v5804_v6 = vpop.permute.xlu2 %5803  ;;  %v13108_v5 = vadd.f32 %v5759_v14, %v12998_v47  ;;  %v13122_v47 = vld [vmem:[%s13246_s1 + $0x22] ss:$0 sm:$0xff] }
 0x982   : > { %v5931_v23 = vmul.f32 %v12523_v42, %v5804_v6 }
 0x984   : > { %v5963_v38 = vadd.f32 %v5931_v23, %v13002_v63 }
 0x986   : > { %v5999_v3 = vadd.f32 %v12550_v15, %v5963_v38  ;;  %v5710_v25 = vpop.permute.xlu1 %5709 }
 0x987   : > { %v5762_v56 = vmul.f32 %v12886_v12, %v5710_v25 }
 0x988   : > { %v6031_v35 = vmax.f32 %v5999_v3, 0.0 }
 0x989   : > { %v5816_v37 = vpop.permute.xlu2 %5815  ;;  %v13117_v48 = vadd.f32 %v5762_v56, %v13009_v28 }
 0x98a   : > { %6064 = vst.msk [vmem:[%s12582_s11] sm:$0xff] %vm6063_vm0, %v6031_v35  ;;  %v5934_v42 = vmul.f32 %v13122_v47, %v5816_v37 }
 0x98c   : > { %v5966_v63 = vadd.f32 %v5934_v42, %v13013_v50 }
 0x98e   : > { %v6002_v9 = vadd.f32 %v12550_v15, %v5966_v63  ;;  %v5722_v57 = vpop.permute.xlu1 %5721 }
 0x98f   : > { %v5765_v4 = vmul.f32 %v12886_v12, %v5722_v57 }
 0x990   : > { %v6034_v51 = vmax.f32 %v6002_v9, 0.0 }
 0x991   : > { %v5824_v17 = vpop.permute.xlu2 %5823  ;;  %v13131_v28 = vadd.f32 %v5765_v4, %v13019_v53 }
 0x992   : > { %6067 = vst.msk [vmem:[%s12582_s11 + $0x18] sm:$0xff] %vm6063_vm0, %v6034_v51  ;;  %v5936_v1 = vmul.f32 %v13122_v47, %v5824_v17 }
 0x994   : > { %v5968_v60 = vadd.f32 %v5936_v1, %v13023_v62  ;;  %v13147_v62 = vld [vmem:[%s13247_s2] ss:$0 sm:$0xff] }
 0x996   : > { %v6004_v43 = vadd.f32 %v12550_v15, %v5968_v60  ;;  %v5734_v50 = vpop.permute.xlu1 %5733 }
 0x997   : > { %v5768_v44 = vmul.f32 %v12886_v12, %v5734_v50 }
 0x998   : > { %v6036_v22 = vmax.f32 %v6004_v43, 0.0 }
 0x999   : > { %v5836_v59 = vpop.permute.xlu2 %5835  ;;  %v13140_v45 = vadd.f32 %v5768_v44, %v13029_v27 }
 0x99a   : > { %6069 = vst.msk [vmem:[%s12582_s11 + $0x28] sm:$0xff] %vm6063_vm0, %v6036_v22  ;;  %v5939_v53 = vmul.f32 %v13122_v47, %v5836_v59 }
 0x99c   : > { %v5971_v21 = vadd.f32 %v5939_v53, %v13033_v13 }
 0x99e   : > { %v6007_v15 = vadd.f32 %v13147_v62, %v5971_v21 }
 0x99f   : > { %v5812_v12 = vpop.permute.xlu1 %5811 }
 0x9a0   : > { %v6039_v39 = vmax.f32 %v6007_v15, 0.0  ;;  %v5933_v33 = vmul.f32 %v13122_v47, %v5812_v12 }
 0x9a1   : > { %v5848_v34 = vpop.permute.xlu2 %5847 }
 0x9a2   : > { %6072 = vst.msk [vmem:[%s12582_s11 + $0x40] sm:$0xff] %vm6063_vm0, %v6039_v39  ;;  %v5942_v27 = vmul.f32 %v13122_v47, %v5848_v34  ;;  %v5965_v13 = vadd.f32 %v5933_v33, %v13040_v2 }
 0x9a4   : > { %v5974_v54 = vadd.f32 %v5942_v27, %v13043_v19  ;;  %v6001_v49 = vadd.f32 %v13147_v62, %v5965_v13 }
 0x9a6   : > { %v6010_v46 = vadd.f32 %v13147_v62, %v5974_v54  ;;  %v6033_v16 = vmax.f32 %v6001_v49, 0.0 }
 0x9a7   : > { %v5820_v58 = vpop.permute.xlu1 %5819 }
 0x9a8   : > { %v6042_v24 = vmax.f32 %v6010_v46, 0.0  ;;  %6066 = vst.msk [vmem:[%s12582_s11 + $0x10] sm:$0xff] %vm6063_vm0, %v6033_v16  ;;  %v5935_v20 = vmul.f32 %v13122_v47, %v5820_v58 }
 0x9a9   : > { %v5860_v26 = vpop.permute.xlu2 %5859 }
 0x9aa   : > { %6075 = vst.msk [vmem:[%s12582_s11 + $0x58] sm:$0xff] %vm6063_vm0, %v6042_v24  ;;  %v5945_v2 = vmul.f32 %v13122_v47, %v5860_v26  ;;  %v5967_v19 = vadd.f32 %v5935_v20, %v13050_v41 }
 0x9ac   : > { %v5977_v52 = vadd.f32 %v5945_v2, %v13053_v36  ;;  %v6003_v31 = vadd.f32 %v13147_v62, %v5967_v19 }
 0x9ae   : > { %v6013_v55 = vadd.f32 %v13147_v62, %v5977_v52  ;;  %v6035_v30 = vmax.f32 %v6003_v31, 0.0 }
 0x9af   : > { %v5832_v6 = vpop.permute.xlu1 %5831 }
 0x9b0   : > { %v6045_v14 = vmax.f32 %v6013_v55, 0.0  ;;  %6068 = vst.msk [vmem:[%s12582_s11 + $0x20] sm:$0xff] %vm6063_vm0, %v6035_v30  ;;  %v5938_v23 = vmul.f32 %v13122_v47, %v5832_v6 }
 0x9b1   : > { %v5872_v38 = vpop.permute.xlu2 %5871 }
 0x9b2   : > { %6078 = vst.msk [vmem:[%s12582_s11 + $0x70] sm:$0xff] %vm6063_vm0, %v6045_v14  ;;  %v5948_v41 = vmul.f32 %v13122_v47, %v5872_v38  ;;  %v5970_v36 = vadd.f32 %v5938_v23, %v13060_v18 }
 0x9b4   : > { %v5980_v3 = vadd.f32 %v5948_v41, %v13063_v0  ;;  %v6006_v25 = vadd.f32 %v13147_v62, %v5970_v36 }
 0x9b6   : > { %v6016_v35 = vadd.f32 %v13147_v62, %v5980_v3  ;;  %v6038_v56 = vmax.f32 %v6006_v25, 0.0 }
 0x9b7   : > { %v5844_v42 = vpop.permute.xlu1 %5843 }
 0x9b8   : > { %v6048_v37 = vmax.f32 %v6016_v35, 0.0  ;;  %6071 = vst.msk [vmem:[%s12582_s11 + $0x38] sm:$0xff] %vm6063_vm0, %v6038_v56  ;;  %v5941_v63 = vmul.f32 %v13122_v47, %v5844_v42 }
 0x9b9   : > { %v5884_v9 = vpop.permute.xlu2 %5883 }
 0x9ba   : > { %6081 = vst.msk [vmem:[%s12582_s11 + $0x88] sm:$0xff] %vm6063_vm0, %v6048_v37  ;;  %v5951_v18 = vmul.f32 %v13122_v47, %v5884_v9  ;;  %v5973_v0 = vadd.f32 %v5941_v63, %v13070_v11 }
 0x9bc   : > { %v5983_v57 = vadd.f32 %v5951_v18, %v13073_v8  ;;  %v6009_v51 = vadd.f32 %v13147_v62, %v5973_v0 }
 0x9be   : > { %v6019_v4 = vadd.f32 %v13147_v62, %v5983_v57  ;;  %v6041_v17 = vmax.f32 %v6009_v51, 0.0 }
 0x9bf   : > { %v5856_v60 = vpop.permute.xlu1 %5855 }
 0x9c0   : > { %v6051_v1 = vmax.f32 %v6019_v4, 0.0  ;;  %6074 = vst.msk [vmem:[%s12582_s11 + $0x50] sm:$0xff] %vm6063_vm0, %v6041_v17  ;;  %v5944_v43 = vmul.f32 %v13122_v47, %v5856_v60 }
 0x9c1   : > { %v5896_v50 = vpop.permute.xlu2 %5895 }
 0x9c2   : > { %6084 = vst.msk [vmem:[%s12582_s11 + $0xa0] sm:$0xff] %vm6063_vm0, %v6051_v1  ;;  %v5954_v11 = vmul.f32 %v13122_v47, %v5896_v50  ;;  %v5976_v8 = vadd.f32 %v5944_v43, %v13080_v32 }
 0x9c4   : > { %v5986_v22 = vadd.f32 %v5954_v11, %v13083_v7  ;;  %v6012_v44 = vadd.f32 %v13147_v62, %v5976_v8 }
 0x9c6   : > { %v6022_v59 = vadd.f32 %v13147_v62, %v5986_v22  ;;  %v6044_v53 = vmax.f32 %v6012_v44, 0.0 }
 0x9c7   : > { %v5868_v15 = vpop.permute.xlu1 %5867 }
 0x9c8   : > { %v6054_v21 = vmax.f32 %v6022_v59, 0.0  ;;  %6077 = vst.msk [vmem:[%s12582_s11 + $0x68] sm:$0xff] %vm6063_vm0, %v6044_v53  ;;  %v5947_v39 = vmul.f32 %v13122_v47, %v5868_v15 }
 0x9c9   : > { %v5908_v12 = vpop.permute.xlu2 %5907 }
 0x9ca   : > { %6087 = vst.msk [vmem:[%s12582_s11 + $0xb8] sm:$0xff] %vm6063_vm0, %v6054_v21  ;;  %v5957_v32 = vmul.f32 %v13122_v47, %v5908_v12  ;;  %v5979_v7 = vadd.f32 %v5947_v39, %v13090_v10 }
 0x9cc   : > { %v5989_v33 = vadd.f32 %v5957_v32, %v13093_v61  ;;  %v6015_v34 = vadd.f32 %v13147_v62, %v5979_v7 }
 0x9ce   : > { %v6025_v27 = vadd.f32 %v13147_v62, %v5989_v33  ;;  %v6047_v13 = vmax.f32 %v6015_v34, 0.0 }
 0x9cf   : > { %v5880_v49 = vpop.permute.xlu1 %5879 }
 0x9d0   : > { %v6057_v54 = vmax.f32 %v6025_v27, 0.0  ;;  %6080 = vst.msk [vmem:[%s12582_s11 + $0x80] sm:$0xff] %vm6063_vm0, %v6047_v13  ;;  %v5950_v46 = vmul.f32 %v13122_v47, %v5880_v49 }
 0x9d1   : > { %v5920_v16 = vpop.permute.xlu2 %5919 }
 0x9d2   : > { %6090 = vst.msk [vmem:[%s12582_s11 + $0xd0] sm:$0xff] %vm6063_vm0, %v6057_v54  ;;  %v5960_v10 = vmul.f32 %v13122_v47, %v5920_v16  ;;  %v5982_v61 = vadd.f32 %v5950_v46, %v13100_v29 }
 0x9d4   : > { %v5992_v24 = vadd.f32 %v5960_v10, %v13103_v40  ;;  %v6018_v58 = vadd.f32 %v13147_v62, %v5982_v61 }
 0x9d6   : > { %v6028_v20 = vadd.f32 %v13147_v62, %v5992_v24  ;;  %v6050_v26 = vmax.f32 %v6018_v58, 0.0 }
 0x9d7   : > { %v5892_v19 = vpop.permute.xlu1 %5891 }
 0x9d8   : > { %v6060_v2 = vmax.f32 %v6028_v20, 0.0  ;;  %6083 = vst.msk [vmem:[%s12582_s11 + $0x98] sm:$0xff] %vm6063_vm0, %v6050_v26  ;;  %v5953_v52 = vmul.f32 %v13122_v47, %v5892_v19 }
 0x9da   : > { %6093 = vst.msk [vmem:[%s12582_s11 + $0xe8] sm:$0xff] %vm6063_vm0, %v6060_v2  ;;  %v5985_v31 = vadd.f32 %v5953_v52, %v13108_v5 }
 0x9dc   : > { %v6021_v29 = vadd.f32 %v13147_v62, %v5985_v31 }
 0x9de   : > { %v6053_v40 = vmax.f32 %v6021_v29, 0.0 }
 0x9df   : > { %v5904_v55 = vpop.permute.xlu1 %5903 }
 0x9e0   : > { %6086 = vst.msk [vmem:[%s12582_s11 + $0xb0] sm:$0xff] %vm6063_vm0, %v6053_v40  ;;  %v5956_v30 = vmul.f32 %v13122_v47, %v5904_v55 }
 0x9e2   : > { %v5988_v14 = vadd.f32 %v5956_v30, %v13117_v48 }
 0x9e4   : > { %v6024_v6 = vadd.f32 %v13147_v62, %v5988_v14 }
 0x9e6   : > { %v6056_v23 = vmax.f32 %v6024_v6, 0.0 }
 0x9e7   : > { %v5916_v38 = vpop.permute.xlu1 %5915 }
 0x9e8   : > { %6089 = vst.msk [vmem:[%s12582_s11 + $0xc8] sm:$0xff] %vm6063_vm0, %v6056_v23  ;;  %v5959_v5 = vmul.f32 %v13122_v47, %v5916_v38 }
 0x9ea   : > { %v5991_v41 = vadd.f32 %v5959_v5, %v13131_v28 }
 0x9ec   : > { %v6027_v36 = vadd.f32 %v13147_v62, %v5991_v41 }
 0x9ee   : > { %v6059_v3 = vmax.f32 %v6027_v36, 0.0 }
 0x9ef   : > { %v5928_v25 = vpop.permute.xlu1 %5927 }
 0x9f0   : > { %6092 = vst.msk [vmem:[%s12582_s11 + $0xe0] sm:$0xff] %vm6063_vm0, %v6059_v3  ;;  %v5962_v35 = vmul.f32 %v13122_v47, %v5928_v25 }
 0x9f2   : > { %v5994_v48 = vadd.f32 %v5962_v35, %v13140_v45 }
 0x9f4   : > { %v6030_v56 = vadd.f32 %v13147_v62, %v5994_v48 }
 0x9f6   : > { %v6062_v37 = vmax.f32 %v6030_v56, 0.0 }
 0x9f8   : > { %6095 = vst.msk [vmem:[%s12582_s11 + $0xf8] sm:$0xff] %vm6063_vm0, %v6062_v37 }
 0x9f9 PF: > { %s13_s12 = sadd.s32 1, %s6731_s12  }
 0x9fa   : > { %p10_p4 = scmp.ge.s32.totalorder %s13_s12, 4  }
 0x9fc   :  { %12 = sbr.rel (!%p10_p4) target bundleno = 1 (0x1), region = 72 }

</bundles_post_ra>
